<compile_context>
chip_gen: v7x
topology: tpu7x:2x2x1
jax: 0.10.0
libtpu: 0.0.40
codegen_flags: <defaults>
</compile_context>

<pallas_src>
import numpy as np
import jax
import jax.numpy as jnp
from jax import lax
from jax.experimental import pallas as pl
from jax.experimental.pallas import tpu as pltpu

# ---- module hyper-params (synthetic but consistent with typical configs) ----
N_DIR = 3                        # n_dir_dims
N_FREQ = 4                       # dir_encoding_config: 4 frequencies
FEAT_DIM = 16                    # config.input_feature_dim
ENC_DIM = N_DIR * 2 * N_FREQ     # 24
IN_DIM = FEAT_DIM + ENC_DIM      # 40 (n_input_dims)
HIDDEN = 64                      # mlp_network_config: n_neurons
OUT_DIM = 3                      # n_output_dims


def _round_up(x, m):
    return ((x + m - 1) // m) * m


def _encoding_tables():
    """SCALE (3, 24) and OFFSET (1, 24) such that, with raw dirs in [-1, 1],
       sin(dirs @ SCALE + OFFSET) == [sin(2^j*pi*d'), cos(2^j*pi*d')]
    where d' = (dirs + 1) / 2.  The (dirs+1)*0.5 affine and the cos phase
    (cos(x) = sin(x + pi/2)) are folded into the tables."""
    rep = np.zeros((N_DIR, ENC_DIM), np.float32)
    phase = np.zeros((1, ENC_DIM), np.float32)
    for j in range(N_FREQ):
        for k in range(N_DIR):
            rep[k, j * N_DIR + k] = (2.0 ** j) * np.pi
            rep[k, N_FREQ * N_DIR + j * N_DIR + k] = (2.0 ** j) * np.pi
    phase[0, N_FREQ * N_DIR:] = np.pi / 2.0
    scale = 0.5 * rep                                        # d' = 0.5*d + 0.5
    offset = 0.5 * rep.sum(axis=0, keepdims=True) + phase
    return jnp.asarray(scale), jnp.asarray(offset)


def radiance_kernel(feat_ref, dirs_ref, scale_ref, offset_ref, w1f_ref, w1e_ref,
                    b1_ref, w2_ref, b2_ref, w3_ref, b3_ref, o_ref):
    """One row tile of the VolumeRadiance forward pass.

    feat_ref  : (tm, FEAT_DIM) native dtype
    dirs_ref  : (tm, N_DIR)    native dtype (raw dirs in [-1, 1])
    scale_ref : (N_DIR, ENC_DIM) f32   folded angle-scale table
    offset_ref: (1, ENC_DIM)     f32   folded angle-offset row
    w1f_ref   : (FEAT_DIM, HIDDEN) mm  W1 rows multiplying the features
    w1e_ref   : (ENC_DIM, HIDDEN)  mm  W1 rows multiplying the encoding
    b1_ref    : (1, HIDDEN) f32
    w2_ref    : (HIDDEN, HIDDEN) mm ; b2_ref (1, HIDDEN) f32
    w3_ref    : (HIDDEN, OUT_DIM) mm ; b3_ref (1, OUT_DIM) f32
    o_ref     : (tm, OUT_DIM) f32
    """
    mm = w2_ref.dtype
    d = dirs_ref[...].astype(jnp.float32)                      # (tm, 3)

    # ---- frequency encoding on the VPU: 3 broadcast mul-adds + ONE sin ----
    # (keeps the tiny K=3 contraction off the multi-pass f32 MXU path)
    ang = offset_ref[...]                                      # (1, 24) -> bcast
    for k in range(N_DIR):
        ang = ang + d[:, k:k + 1] * scale_ref[k:k + 1, :]
    enc = jnp.sin(ang)                                         # (tm, 24) f32

    # ---- layer 1: concat([feat, enc]) @ W1 as a split matmul (identical) ----
    h = jnp.dot(feat_ref[...].astype(mm), w1f_ref[...],
                preferred_element_type=jnp.float32)
    h = h + jnp.dot(enc.astype(mm), w1e_ref[...],
                    preferred_element_type=jnp.float32)
    h = jnp.maximum(h + b1_ref[...], 0.0)

    # ---- layer 2 ----
    h2 = jnp.dot(h.astype(mm), w2_ref[...], preferred_element_type=jnp.float32)
    h2 = jnp.maximum(h2 + b2_ref[...], 0.0)

    # ---- output layer: direct (tm, 3) store (no transposes anywhere) ----
    out = jnp.dot(h2.astype(mm), w3_ref[...], preferred_element_type=jnp.float32)
    out = out + b3_ref[...]
    o_ref[...] = jax.nn.sigmoid(out).astype(o_ref.dtype)


def make_params(key):
    """Deterministic synthetic VanillaMLP parameters (canonical layout).

    W1 rows 0..FEAT_DIM-1 multiply the features; rows FEAT_DIM.. multiply the
    frequency encoding with column order
      [sin(2^0 pi dx), sin(2^0 pi dy), sin(2^0 pi dz), sin(2^1 pi dx), ...,
       cos(2^0 pi dx), ..., cos(2^(NF-1) pi dz)].
    # TODO(synk): real checkpoints may order the encoding columns differently
    # (per-dim or interleaved sin/cos); permute W1 rows accordingly when
    # loading non-synthetic weights.
    """
    k1, k2, k3, k4, k5, k6 = jax.random.split(key, 6)
    s = 0.1
    return dict(
        w1=s * jax.random.normal(k1, (IN_DIM, HIDDEN), jnp.float32),
        b1=s * jax.random.normal(k2, (1, HIDDEN), jnp.float32),
        w2=s * jax.random.normal(k3, (HIDDEN, HIDDEN), jnp.float32),
        b2=s * jax.random.normal(k4, (1, HIDDEN), jnp.float32),
        w3=s * jax.random.normal(k5, (HIDDEN, OUT_DIM), jnp.float32),
        b3=s * jax.random.normal(k6, (1, OUT_DIM), jnp.float32),
    )


def _choose_tile(n, tm):
    """Row tile (multiple of 128).  Splits the work into >= 2 grid steps when
    possible so both v7x TensorCores get a share on mid-sized inputs."""
    half = _round_up(-(-n // 2), 128)          # ceil(n/2) rounded up to 128
    return max(128, min(tm, half))


def volume_radiance(features, dirs, params, *, tm=2048,
                    matmul_dtype=jnp.bfloat16):
    """Flatten leading dims, launch the tiled kernel, reshape back.

    tm: row tile, multiple of 128.  2048 keeps the per-tile VMEM footprint
    (~12-14 MiB incl. intermediates) safe on every generation including v5e;
    on v6e/v7x tm up to 4096 is fine (vmem_limit_bytes below already covers
    it); do not exceed 4096 on v7x (64 MiB physical VMEM per core).
    matmul_dtype: MXU operand dtype (bf16 is native on v5e/v6e/v7x); all
    element-wise / transcendental math (angles, sin, bias, sigmoid) stays f32.
    """
    assert tm > 0 and tm % 128 == 0, "tm must be a positive multiple of 128"
    lead_shape = features.shape[:-1]
    feat2 = features.reshape(-1, features.shape[-1])      # native dtype, no copy pass
    dirs2 = dirs.reshape(-1, dirs.shape[-1])
    assert feat2.shape[-1] == FEAT_DIM and dirs2.shape[-1] == N_DIR
    n = feat2.shape[0]

    tm_eff = _choose_tile(n, tm)
    grid = (pl.cdiv(n, tm_eff),)                          # ragged last tile OK

    scale, offset = _encoding_tables()
    mm = matmul_dtype
    w1f = params["w1"][:FEAT_DIM].astype(mm)              # (FEAT_DIM, HIDDEN)
    w1e = params["w1"][FEAT_DIM:].astype(mm)              # (ENC_DIM,  HIDDEN)
    b1 = params["b1"].astype(jnp.float32)
    w2 = params["w2"].astype(mm)
    b2 = params["b2"].astype(jnp.float32)
    w3 = params["w3"].astype(mm)                          # (HIDDEN, OUT_DIM)
    b3 = params["b3"].astype(jnp.float32)                 # (1, OUT_DIM)

    def full(arr):
        nd = arr.ndim
        return pl.BlockSpec(arr.shape, lambda i, _nd=nd: (0,) * _nd)

    out = pl.pallas_call(
        radiance_kernel,
        out_shape=jax.ShapeDtypeStruct((n, OUT_DIM), jnp.float32),
        grid_spec=pltpu.PrefetchScalarGridSpec(
            num_scalar_prefetch=0,
            grid=grid,
            in_specs=[
                pl.BlockSpec((tm_eff, FEAT_DIM), lambda i: (i, 0)),   # features
                pl.BlockSpec((tm_eff, N_DIR), lambda i: (i, 0)),      # dirs
                full(scale),           # angle scale table
                full(offset),          # angle offset row
                full(w1f),
                full(w1e),
                full(b1),
                full(w2),
                full(b2),
                full(w3),
                full(b3),
            ],
            out_specs=pl.BlockSpec((tm_eff, OUT_DIM), lambda i: (i, 0)),
        ),
        compiler_params=pltpu.CompilerParams(
            dimension_semantics=("parallel",),
            vmem_limit_bytes=64 * 1024 * 1024),
    )(feat2, dirs2, scale, offset, w1f, w1e, b1, w2, b2, w3, b3)

    return out.reshape(*lead_shape, OUT_DIM)


def volume_radiance_reference(features, dirs, params):
    """Pure-JAX fp32 reference (HIGHEST-precision matmuls)."""
    hp = lax.Precision.HIGHEST
    feat = features.reshape(-1, FEAT_DIM).astype(jnp.float32)
    d = (dirs.reshape(-1, N_DIR).astype(jnp.float32) + 1.0) / 2.0
    scales = (2.0 ** jnp.arange(N_FREQ, dtype=jnp.float32)) * jnp.pi
    ang = (d[:, None, :] * scales[None, :, None]).reshape(-1, N_FREQ * N_DIR)
    enc = jnp.concatenate([jnp.sin(ang), jnp.cos(ang)], axis=-1)
    x = jnp.concatenate([feat, enc], axis=-1)
    h = jnp.maximum(jnp.dot(x, params["w1"], precision=hp) + params["b1"], 0.0)
    h2 = jnp.maximum(jnp.dot(h, params["w2"], precision=hp) + params["b2"], 0.0)
    out = jnp.dot(h2, params["w3"], precision=hp) + params["b3"]
    return jax.nn.sigmoid(out).reshape(*features.shape[:-1], OUT_DIM)


if __name__ == "__main__":
    key = jax.random.PRNGKey(0)
    kf, kd, kp = jax.random.split(key, 3)

    # small example: batch=2, rays=333 -> 666 rows (exercises the ragged last
    # tile and the >=2-step grid split), dirs normalized to [-1, 1]
    B, R = 2, 333
    features = jax.random.normal(kf, (B, R, FEAT_DIM), jnp.float32)
    dirs_raw = jax.random.normal(kd, (B, R, N_DIR), jnp.float32)
    dirs = dirs_raw / jnp.linalg.norm(dirs_raw, axis=-1, keepdims=True)

    params = make_params(kp)
    ref = volume_radiance_reference(features, dirs, params)

    # 1) full-f32 MXU path: tight check against the fp32 reference
    c32 = jax.block_until_ready(
        volume_radiance(features, dirs, params, tm=2048,
                        matmul_dtype=jnp.float32))
    err32 = float(jnp.max(jnp.abs(c32 - ref)))
    assert err32 < 1e-3, f"f32 kernel mismatch vs fp32 reference: {err32}"

    # 2) default bf16-MXU path at two tilings (default large tile, small tile)
    for tm in (2048, 256):
        color = jax.block_until_ready(
            volume_radiance(features, dirs, params, tm=tm))
        assert color.shape == (B, R, OUT_DIM)
        assert color.dtype == jnp.float32
        assert bool(jnp.all(jnp.isfinite(color)))
        assert bool(jnp.all((color >= 0.0) & (color <= 1.0)))  # sigmoid output
        err = float(jnp.max(jnp.abs(color - ref)))
        assert err < 2.5e-2, f"bf16 kernel mismatch vs fp32 ref (tm={tm}): {err}"
    print("KERNEL_OK")
</pallas_src>

<mosaic_0001>
module attributes {stable_mosaic.version = 11 : i64} {
  func.func @radiance_kernel(%arg0: i32, %arg1: memref<384x16xf32, #tpu.memory_space<vmem>>, %arg2: memref<384x3xf32, #tpu.memory_space<vmem>>, %arg3: memref<3x24xf32, #tpu.memory_space<vmem>>, %arg4: memref<1x24xf32, #tpu.memory_space<vmem>>, %arg5: memref<16x64xf32, #tpu.memory_space<vmem>>, %arg6: memref<24x64xf32, #tpu.memory_space<vmem>>, %arg7: memref<1x64xf32, #tpu.memory_space<vmem>>, %arg8: memref<64x64xf32, #tpu.memory_space<vmem>>, %arg9: memref<1x64xf32, #tpu.memory_space<vmem>>, %arg10: memref<64x3xf32, #tpu.memory_space<vmem>>, %arg11: memref<1x3xf32, #tpu.memory_space<vmem>>, %arg12: memref<384x3xf32, #tpu.memory_space<vmem>>) attributes {dimension_semantics = [#tpu.dimension_semantics<parallel>], iteration_bounds = array<i64: 2>, scalar_prefetch = 0 : i64, scratch_operands = 0 : i64, tpu.core_type = #tpu.core_type<tc>, window_params = [{transform_indices = @transform_0, window_bounds = array<i64: 384, 16>}, {transform_indices = @transform_1, window_bounds = array<i64: 384, 3>}, {pipeline_mode = #tpu.pipeline_mode<synchronous>, transform_indices = @transform_2, window_bounds = array<i64: 3, 24>}, {pipeline_mode = #tpu.pipeline_mode<synchronous>, transform_indices = @transform_3, window_bounds = array<i64: 1, 24>}, {pipeline_mode = #tpu.pipeline_mode<synchronous>, transform_indices = @transform_4, window_bounds = array<i64: 16, 64>}, {pipeline_mode = #tpu.pipeline_mode<synchronous>, transform_indices = @transform_5, window_bounds = array<i64: 24, 64>}, {pipeline_mode = #tpu.pipeline_mode<synchronous>, transform_indices = @transform_6, window_bounds = array<i64: 1, 64>}, {pipeline_mode = #tpu.pipeline_mode<synchronous>, transform_indices = @transform_7, window_bounds = array<i64: 64, 64>}, {pipeline_mode = #tpu.pipeline_mode<synchronous>, transform_indices = @transform_8, window_bounds = array<i64: 1, 64>}, {pipeline_mode = #tpu.pipeline_mode<synchronous>, transform_indices = @transform_9, window_bounds = array<i64: 64, 3>}, {pipeline_mode = #tpu.pipeline_mode<synchronous>, transform_indices = @transform_10, window_bounds = array<i64: 1, 3>}, {transform_indices = @transform_11, window_bounds = array<i64: 384, 3>}]} {
    %c0 = arith.constant 0 : index
    %c0_0 = arith.constant 0 : index
    %0 = vector.load %arg2[%c0, %c0_0] : memref<384x3xf32, #tpu.memory_space<vmem>>, vector<384x3xf32>
    %c0_1 = arith.constant 0 : index
    %c0_2 = arith.constant 0 : index
    %1 = vector.load %arg4[%c0_1, %c0_2] : memref<1x24xf32, #tpu.memory_space<vmem>>, vector<1x24xf32>
    %2 = vector.extract_strided_slice %0 {offsets = [0, 0], sizes = [384, 1], strides = [1, 1]} : vector<384x3xf32> to vector<384x1xf32>
    %c0_3 = arith.constant 0 : index
    %c0_4 = arith.constant 0 : index
    %3 = vector.load %arg3[%c0_3, %c0_4] : memref<3x24xf32, #tpu.memory_space<vmem>>, vector<1x24xf32>
    %4 = vector.broadcast %2 : vector<384x1xf32> to vector<384x24xf32>
    %5 = vector.broadcast %3 : vector<1x24xf32> to vector<384x24xf32>
    %6 = arith.mulf %4, %5 : vector<384x24xf32>
    %7 = vector.broadcast %1 : vector<1x24xf32> to vector<384x24xf32>
    %8 = arith.addf %7, %6 : vector<384x24xf32>
    %9 = vector.extract_strided_slice %0 {offsets = [0, 1], sizes = [384, 1], strides = [1, 1]} : vector<384x3xf32> to vector<384x1xf32>
    %c1 = arith.constant 1 : index
    %c0_5 = arith.constant 0 : index
    %10 = vector.load %arg3[%c1, %c0_5] : memref<3x24xf32, #tpu.memory_space<vmem>>, vector<1x24xf32>
    %11 = vector.broadcast %9 : vector<384x1xf32> to vector<384x24xf32>
    %12 = vector.broadcast %10 : vector<1x24xf32> to vector<384x24xf32>
    %13 = arith.mulf %11, %12 : vector<384x24xf32>
    %14 = arith.addf %8, %13 : vector<384x24xf32>
    %15 = vector.extract_strided_slice %0 {offsets = [0, 2], sizes = [384, 1], strides = [1, 1]} : vector<384x3xf32> to vector<384x1xf32>
    %c2 = arith.constant 2 : index
    %c0_6 = arith.constant 0 : index
    %16 = vector.load %arg3[%c2, %c0_6] : memref<3x24xf32, #tpu.memory_space<vmem>>, vector<1x24xf32>
    %17 = vector.broadcast %15 : vector<384x1xf32> to vector<384x24xf32>
    %18 = vector.broadcast %16 : vector<1x24xf32> to vector<384x24xf32>
    %19 = arith.mulf %17, %18 : vector<384x24xf32>
    %20 = arith.addf %14, %19 : vector<384x24xf32>
    %21 = math.sin %20 : vector<384x24xf32>
    %c0_7 = arith.constant 0 : index
    %c0_8 = arith.constant 0 : index
    %22 = vector.load %arg1[%c0_7, %c0_8] : memref<384x16xf32, #tpu.memory_space<vmem>>, vector<384x16xf32>
    %c0_9 = arith.constant 0 : index
    %c0_10 = arith.constant 0 : index
    %23 = vector.load %arg5[%c0_9, %c0_10] : memref<16x64xf32, #tpu.memory_space<vmem>>, vector<16x64xf32>
    %cst = arith.constant dense<0.000000e+00> : vector<384x64xf32>
    %24 = tpu.matmul %22, %23, %cst {dimension_numbers = #tpu.dot_dimension_numbers<[1], [0], [0], [1], [0, 0, 1, 1], [], []>} : vector<384x16xf32>, vector<16x64xf32>, vector<384x64xf32> -> vector<384x64xf32>
    %c0_11 = arith.constant 0 : index
    %c0_12 = arith.constant 0 : index
    %25 = vector.load %arg6[%c0_11, %c0_12] : memref<24x64xf32, #tpu.memory_space<vmem>>, vector<24x64xf32>
    %cst_13 = arith.constant dense<0.000000e+00> : vector<384x64xf32>
    %26 = tpu.matmul %21, %25, %cst_13 {dimension_numbers = #tpu.dot_dimension_numbers<[1], [0], [0], [1], [0, 0, 1, 1], [], []>} : vector<384x24xf32>, vector<24x64xf32>, vector<384x64xf32> -> vector<384x64xf32>
    %27 = arith.addf %24, %26 : vector<384x64xf32>
    %c0_14 = arith.constant 0 : index
    %c0_15 = arith.constant 0 : index
    %28 = vector.load %arg7[%c0_14, %c0_15] : memref<1x64xf32, #tpu.memory_space<vmem>>, vector<1x64xf32>
    %29 = vector.broadcast %28 : vector<1x64xf32> to vector<384x64xf32>
    %30 = arith.addf %27, %29 : vector<384x64xf32>
    %cst_16 = arith.constant 0.000000e+00 : f32
    %31 = vector.broadcast %cst_16 : f32 to vector<384x64xf32>
    %32 = arith.maximumf %30, %31 : vector<384x64xf32>
    %c0_17 = arith.constant 0 : index
    %c0_18 = arith.constant 0 : index
    %33 = vector.load %arg8[%c0_17, %c0_18] : memref<64x64xf32, #tpu.memory_space<vmem>>, vector<64x64xf32>
    %cst_19 = arith.constant dense<0.000000e+00> : vector<384x64xf32>
    %34 = tpu.matmul %32, %33, %cst_19 {dimension_numbers = #tpu.dot_dimension_numbers<[1], [0], [0], [1], [0, 0, 1, 1], [], []>} : vector<384x64xf32>, vector<64x64xf32>, vector<384x64xf32> -> vector<384x64xf32>
    %c0_20 = arith.constant 0 : index
    %c0_21 = arith.constant 0 : index
    %35 = vector.load %arg9[%c0_20, %c0_21] : memref<1x64xf32, #tpu.memory_space<vmem>>, vector<1x64xf32>
    %36 = vector.broadcast %35 : vector<1x64xf32> to vector<384x64xf32>
    %37 = arith.addf %34, %36 : vector<384x64xf32>
    %cst_22 = arith.constant 0.000000e+00 : f32
    %38 = vector.broadcast %cst_22 : f32 to vector<384x64xf32>
    %39 = arith.maximumf %37, %38 : vector<384x64xf32>
    %c0_23 = arith.constant 0 : index
    %c0_24 = arith.constant 0 : index
    %40 = vector.load %arg10[%c0_23, %c0_24] : memref<64x3xf32, #tpu.memory_space<vmem>>, vector<64x3xf32>
    %cst_25 = arith.constant dense<0.000000e+00> : vector<384x3xf32>
    %41 = tpu.matmul %39, %40, %cst_25 {dimension_numbers = #tpu.dot_dimension_numbers<[1], [0], [0], [1], [0, 0, 1, 1], [], []>} : vector<384x64xf32>, vector<64x3xf32>, vector<384x3xf32> -> vector<384x3xf32>
    %c0_26 = arith.constant 0 : index
    %c0_27 = arith.constant 0 : index
    %42 = vector.load %arg11[%c0_26, %c0_27] : memref<1x3xf32, #tpu.memory_space<vmem>>, vector<1x3xf32>
    %43 = vector.broadcast %42 : vector<1x3xf32> to vector<384x3xf32>
    %44 = arith.addf %41, %43 : vector<384x3xf32>
    %45 = arith.negf %44 : vector<384x3xf32>
    %46 = math.exp %45 : vector<384x3xf32>
    %cst_28 = arith.constant 1.000000e+00 : f32
    %47 = vector.broadcast %cst_28 : f32 to vector<384x3xf32>
    %48 = arith.addf %47, %46 : vector<384x3xf32>
    %49 = arith.divf %47, %48 : vector<384x3xf32>
    %c0_29 = arith.constant 0 : index
    %c0_30 = arith.constant 0 : index
    %50 = vector.load %arg12[%c0_29, %c0_30] : memref<384x3xf32, #tpu.memory_space<vmem>>, vector<384x3xf32>
    tpu.vector_store %arg12[%c0_29, %c0_30], %49 {strides = array<i32>} : memref<384x3xf32, #tpu.memory_space<vmem>>, vector<384x3xf32>,
    return
  }
  func.func @transform_0(%arg0: i32) -> (i32, i32) {
    %c0_i32 = arith.constant 0 : i32
    %c0_i32_0 = arith.constant 0 : i32
    return %arg0, %c0_i32 : i32, i32
  }
  func.func @transform_1(%arg0: i32) -> (i32, i32) {
    %c0_i32 = arith.constant 0 : i32
    %c0_i32_0 = arith.constant 0 : i32
    return %arg0, %c0_i32 : i32, i32
  }
  func.func @transform_2(%arg0: i32) -> (i32, i32) {
    %c0_i32 = arith.constant 0 : i32
    %c0_i32_0 = arith.constant 0 : i32
    %c0_i32_1 = arith.constant 0 : i32
    return %c0_i32, %c0_i32_0 : i32, i32
  }
  func.func @transform_3(%arg0: i32) -> (i32, i32) {
    %c0_i32 = arith.constant 0 : i32
    %c0_i32_0 = arith.constant 0 : i32
    %c0_i32_1 = arith.constant 0 : i32
    return %c0_i32, %c0_i32_0 : i32, i32
  }
  func.func @transform_4(%arg0: i32) -> (i32, i32) {
    %c0_i32 = arith.constant 0 : i32
    %c0_i32_0 = arith.constant 0 : i32
    %c0_i32_1 = arith.constant 0 : i32
    return %c0_i32, %c0_i32_0 : i32, i32
  }
  func.func @transform_5(%arg0: i32) -> (i32, i32) {
    %c0_i32 = arith.constant 0 : i32
    %c0_i32_0 = arith.constant 0 : i32
    %c0_i32_1 = arith.constant 0 : i32
    return %c0_i32, %c0_i32_0 : i32, i32
  }
  func.func @transform_6(%arg0: i32) -> (i32, i32) {
    %c0_i32 = arith.constant 0 : i32
    %c0_i32_0 = arith.constant 0 : i32
    %c0_i32_1 = arith.constant 0 : i32
    return %c0_i32, %c0_i32_0 : i32, i32
  }
  func.func @transform_7(%arg0: i32) -> (i32, i32) {
    %c0_i32 = arith.constant 0 : i32
    %c0_i32_0 = arith.constant 0 : i32
    %c0_i32_1 = arith.constant 0 : i32
    return %c0_i32, %c0_i32_0 : i32, i32
  }
  func.func @transform_8(%arg0: i32) -> (i32, i32) {
    %c0_i32 = arith.constant 0 : i32
    %c0_i32_0 = arith.constant 0 : i32
    %c0_i32_1 = arith.constant 0 : i32
    return %c0_i32, %c0_i32_0 : i32, i32
  }
  func.func @transform_9(%arg0: i32) -> (i32, i32) {
    %c0_i32 = arith.constant 0 : i32
    %c0_i32_0 = arith.constant 0 : i32
    %c0_i32_1 = arith.constant 0 : i32
    return %c0_i32, %c0_i32_0 : i32, i32
  }
  func.func @transform_10(%arg0: i32) -> (i32, i32) {
    %c0_i32 = arith.constant 0 : i32
    %c0_i32_0 = arith.constant 0 : i32
    %c0_i32_1 = arith.constant 0 : i32
    return %c0_i32, %c0_i32_0 : i32, i32
  }
  func.func @transform_11(%arg0: i32) -> (i32, i32) {
    %c0_i32 = arith.constant 0 : i32
    %c0_i32_0 = arith.constant 0 : i32
    return %arg0, %c0_i32 : i32, i32
  }
}

</mosaic_0001>

<bundles_post_ra>
// kernel: tpu_custom_call.1
= control target key start
LH: loop header
LB: loop body
LE: loop exit
PB: predicated region body
PF: predicated region fallthrough
CT: control target
= control target key end

     0   :  { %s19325_s0 = inlined_call_operand.hbm [shape: f32[666,16], index: 0, kind: input, shape index: {}]   ;;  %s19326_s1 = inlined_call_operand.hbm [shape: f32[666,3], index: 1, kind: input, shape index: {}]   ;;  %s19327_s2 = inlined_call_operand.hbm [shape: f32[3,24], index: 2, kind: input, shape index: {}]   ;;  %s19328_s3 = inlined_call_operand.hbm [shape: f32[1,24], index: 3, kind: input, shape index: {}]   ;;  %s19329_s4 = inlined_call_operand.hbm [shape: f32[16,64], index: 4, kind: input, shape index: {}]   ;;  %s19330_s5 = inlined_call_operand.hbm [shape: f32[24,64], index: 5, kind: input, shape index: {}]   ;;  %s19331_s6 = inlined_call_operand.hbm [shape: f32[1,64], index: 6, kind: input, shape index: {}]   ;;  %s19332_s7 = inlined_call_operand.hbm [shape: f32[64,64], index: 7, kind: input, shape index: {}]   ;;  %s19333_s8 = inlined_call_operand.hbm [shape: f32[1,64], index: 8, kind: input, shape index: {}]   ;;  %s19334_s9 = inlined_call_operand.hbm [shape: f32[64,3], index: 9, kind: input, shape index: {}]   ;;  %s19335_s10 = inlined_call_operand.hbm [shape: f32[1,3], index: 10, kind: input, shape index: {}]   ;;  %s19336_s11 = inlined_call_operand.hbm [shape: f32[666,3], index: 11, kind: output, shape index: {}]  }
   0x1   :  { %19676 = sst [smem:[#allocation133_spill]] %s19328_s3 }
   0x2   :  { %19677 = sst [smem:[#allocation134_spill]] %s19336_s11 }
   0x3   :  { %16 = vsyncpa [#allocation3], 0 }
   0x4   :  { %18 = vsyncpa [#allocation3 + $0x1], 0 }
   0x5   :  { %19 = vsyncpa [#allocation6], 0 }
   0x6   :  { %21 = vsyncpa [#allocation6 + $0x1], 0 }
   0x7   :  { %22 = vsyncpa [#allocation9], 0 }
   0x8   :  { %23 = vsyncpa [#allocation12], 0 }
   0x9   :  { %24 = vsyncpa [#allocation15], 0 }
   0xa   :  { %25 = vsyncpa [#allocation18], 0 }
   0xb   :  { %26 = vsyncpa [#allocation4], 0 }
   0xc   :  { %28 = vsyncpa [#allocation4 + $0x1], 0  ;;  %s11585_s17 = smov 0   ;;  %s11587_s18 = smov 0  }
   0xd   :  { %s11589_s19 = smov 0   ;;  %s11591_s20 = smov 0  }
   0xe LB: > { %19678 = sst [smem:[#allocation29_spill]] %s11482_s17  ;;  %s11606_s21 = sadd.s32 4294967295, %s11494_s20   ;;  %s11494_s20 = sphi %s11591_s20, %s20341_s20   ;;  %s11490_s19 = sphi %s11589_s19, %s20345_s19   ;;  %s11486_s18 = sphi %s11587_s18, %s20344_s18   ;;  %s11482_s17 = sphi %s11585_s17, %s20342_s17  }
   0xf   : > { %19679 = sst [smem:[#allocation30_spill]] %s11486_s18  ;;  %s9137_s22 = sadd.s32 4294967294, %s11494_s20  }
  0x10   : > { %19680 = sst [smem:[#allocation31_spill]] %s11606_s21  ;;  %s11610_s23 = sadd.s32 1, %s11494_s20  }
  0x11   : > { %19681 = sst [smem:[#allocation32_spill]] %s11610_s23  ;;  %s41_s24 = sadd.s32 1, %s11490_s19 }
  0x12   : > { %s38_s25 = ssub.s32 %s11494_s20, %s11610_s23  ;;  %p48_p0 = scmp.ne.s32.totalorder %s11490_s19, %s11486_s18 }
  0x13   : > { %p39_p1 = scmp.eq.s32.totalorder %s38_s25, 0  ;;  %p49_p2 = scmp.eq.s32.totalorder %s11494_s20, 0 }
  0x14   : > { %p54_p3 = scmp.ne.s32.totalorder %s11486_s18, %s11482_s17  ;;  %p19341_p4 = scmp.eq.s32.totalorder %s11606_s21, 0 }
  0x15   : > { %s11622_s26 = scalar_select %p39_p1, %s11490_s19, %s41_s24  }
  0x16   : > { %p11624_p5 = por %p49_p2, %p48_p0  ;;  %p11630_p6 = por %p19341_p4, %p54_p3 }
  0x17   : > { %19682 = sst [smem:[#allocation33_spill]] %s11622_s26  ;;  %p293_p7 = scmp.eq.s32.totalorder %s11606_s21, 1 }
  0x18   : > { %s19683_s27 = scalar_select %p11624_p5, 1, 0 }
  0x19   : > { %s19684_s28 = scalar_select %p11630_p6, 1, 0 }
  0x1a   : > { %p299_p8 = scmp.eq.s32.totalorder %s9137_s22, 1  ;;  %p9138_p9 = scmp.ge.s32.totalorder %s11494_s20, 1 }
  0x1b   : > { %19685 = sst [smem:[#allocation34_spill]] %s19684_s28  ;;  %p306_p10 = scmp.lt.s32.totalorder %s11494_s20, 3 }
  0x1c   : > { %p11637_p11 = por %p293_p7, %p48_p0  ;;  %p11641_p12 = por %p299_p8, %p54_p3 }
  0x1d   : > { %p11645_p13 = pnand %p9138_p9, %p306_p10  ;;  %s11496_s13 = smov [#allocation8]  }
  0x1e   : > { %s19686_s29 = scalar_select %p11637_p11, 1, 0 }
  0x1f   : > { %s19688_s30 = scalar_select %p11641_p12, 1, 0 }
  0x20   : > { %19687 = sst [smem:[#allocation35_spill]] %s19686_s29  ;;  %p10491_p1 = pneg %p11645_p13 }
  0x21   : > { %19689 = sst [smem:[#allocation36_spill]] %s19688_s30  ;;  %s330_s14 = sshll.u32 %s11496_s13, 4  ;;  %s331_s14 = int_to_ptr.vmem [resolvable:$true] %s330_s14 }
  0x22   : > { %s19690_s12 = scalar_select %p11645_p13, 1, 0 }
  0x23   : > { %p11653_p2 = pnand %p10491_p1, %p19341_p4  ;;  %s11497_s16 = smov [#allocation11]  }
  0x24   : > { %19691 = sst [smem:[#allocation37_spill]] %s19690_s12  ;;  %s353_s22 = sshll.u32 %s11497_s16, 4  ;;  %s11657_s22 = int_to_ptr.vmem [resolvable:$true] %s353_s22 }
  0x25   : > { %s19693_s3 = sld [smem:[#allocation133_spill]]  ;;  %p11667_p3 = pneg %p11653_p2 }
  0x2b   : > { %s11096_s26 = scalar_lea.hbm %s19693_s3, 16 }
  0x2c   : > { %p11097_p0 = scmp.ne.s32.totalorder %s19693_s3, %s11096_s26  ;;  %p11103_p9 = scmp.lt.u32.totalorder %s11096_s26, %s19693_s3 }
  0x2e   : > { %p11099_p7 = pnand %p11667_p3, %p11097_p0 }
  0x30   : > { %p11100_p8 = pneg %p11099_p7 }
  0x32   : > { %p11105_p10 = pnand %p11103_p9, %p11100_p8 }
  0x34   : > { %11108 = shalt.err (!%p11105_p10)
}
  0x35   : > { %s11109_s24 = scalar_lea.vmem %s331_s14, 16  ;;  %s11116_s23 = scalar_lea.vmem %s331_s14, 32 }
  0x36   : > { %p11110_p1 = scmp.ne.s32.totalorder %s331_s14, %s11109_s24  ;;  %p11117_p11 = scmp.lt.s32.totalorder %s331_s14, %s331_s14 }
  0x37   : > { %p11118_p6 = scmp.lt.s32.totalorder %s11116_s23, %s11109_s24 }
  0x38   : > { %p11112_p4 = pnand %p11110_p1, %p11667_p3 }
  0x39   : > { %p11119_p13 = por %p11118_p6, %p11117_p11 }
  0x3a   : > { %p11113_p12 = pneg %p11112_p4 }
  0x3c   : > { %p11120_p5 = pnand %p11119_p13, %p11113_p12 }
  0x3e   : > { %11123 = shalt.err (!%p11120_p5)
}
  0x3f   : > { %10497 = dma.hbm_to_vmem [thread:$0]  (!%p11653_p2), %s19693_s3, 16, %s331_s14, [#allocation9]  }
  0x40   : > { %s11124_s16 = scalar_lea.hbm %s19330_s5, 384 }
  0x41   : > { %p11125_p4 = scmp.ne.s32.totalorder %s19330_s5, %s11124_s16  ;;  %p11131_p5 = scmp.lt.u32.totalorder %s11124_s16, %s19330_s5 }
  0x43   : > { %p11127_p0 = pnand %p11125_p4, %p11667_p3 }
  0x45   : > { %p11128_p6 = pneg %p11127_p0 }
  0x47   : > { %p11133_p11 = pnand %p11131_p5, %p11128_p6 }
  0x49   : > { %11136 = shalt.err (!%p11133_p11)
}
  0x4a   : > { %s11137_s14 = scalar_lea.vmem %s11657_s22, 384  ;;  %p11145_p8 = scmp.lt.s32.totalorder %s11657_s22, %s11657_s22 }
  0x4b   : > { %p11138_p12 = scmp.ne.s32.totalorder %s11657_s22, %s11137_s14  ;;  %p11146_p9 = scmp.lt.s32.totalorder %s11137_s14, %s11137_s14 }
  0x4d   : > { %p11140_p13 = pnand %p11138_p12, %p11667_p3  ;;  %p11147_p10 = por %p11146_p9, %p11145_p8 }
  0x4f   : > { %p11141_p7 = pneg %p11140_p13 }
  0x51   : > { %p11148_p1 = pnand %p11147_p10, %p11141_p7 }
  0x53   : > { %11151 = shalt.err (!%p11148_p1)
}
  0x54   : > { %s11498_s11 = smov 128   ;;  %s11499_s29 = smov 8  }
  0x55   : > { %10503 = dma.hbm_to_vmem [thread:$0]  (!%p11653_p2), %s19330_s5, 384, %s11657_s22, [#allocation12], %s11498_s11, %s11498_s11, %s11499_s29  }
  0x56   : > { %s11500_s17 = smov [#allocation14]   ;;  %s11501_s16 = smov [#allocation17]  }
  0x57   : > { %s377_s26 = sshll.u32 %s11500_s17, 4  ;;  %s401_s24 = sshll.u32 %s11501_s16, 4  ;;  %s378_s26 = int_to_ptr.vmem [resolvable:$true] %s377_s26  ;;  %s402_s24 = int_to_ptr.vmem [resolvable:$true] %s401_s24 }
  0x58   : > { %s11152_s3 = scalar_lea.hbm %s19332_s7, 1024 }
  0x59   : > { %p11153_p4 = scmp.ne.s32.totalorder %s19332_s7, %s11152_s3  ;;  %p11159_p5 = scmp.lt.u32.totalorder %s11152_s3, %s19332_s7 }
  0x5b   : > { %p11155_p0 = pnand %p11153_p4, %p11667_p3 }
  0x5d   : > { %p11156_p6 = pneg %p11155_p0 }
  0x5f   : > { %p11161_p11 = pnand %p11159_p5, %p11156_p6 }
  0x61   : > { %11164 = shalt.err (!%p11161_p11)
}
  0x62   : > { %s11165_s22 = scalar_lea.vmem %s378_s26, 1024  ;;  %p11173_p8 = scmp.lt.s32.totalorder %s378_s26, %s378_s26 }
  0x63   : > { %p11166_p12 = scmp.ne.s32.totalorder %s378_s26, %s11165_s22  ;;  %p11174_p9 = scmp.lt.s32.totalorder %s11165_s22, %s11165_s22 }
  0x65   : > { %p11168_p13 = pnand %p11166_p12, %p11667_p3  ;;  %p11175_p10 = por %p11174_p9, %p11173_p8 }
  0x67   : > { %p11169_p7 = pneg %p11168_p13 }
  0x69   : > { %p11176_p1 = pnand %p11175_p10, %p11169_p7 }
  0x6b   : > { %11179 = shalt.err (!%p11176_p1)
}
  0x6c   : > { %10509 = dma.hbm_to_vmem [thread:$0]  (!%p11653_p2), %s19332_s7, 1024, %s378_s26, [#allocation15], %s11498_s11, %s11498_s11, %s11499_s29  }
  0x6d   : > { %s11180_s12 = scalar_lea.hbm %s19334_s9, 1024 }
  0x6e   : > { %p11181_p4 = scmp.ne.s32.totalorder %s19334_s9, %s11180_s12  ;;  %p11187_p5 = scmp.lt.u32.totalorder %s11180_s12, %s19334_s9 }
  0x70   : > { %p11183_p0 = pnand %p11181_p4, %p11667_p3 }
  0x72   : > { %p11184_p6 = pneg %p11183_p0 }
  0x74   : > { %p11189_p11 = pnand %p11187_p5, %p11184_p6 }
  0x76   : > { %11192 = shalt.err (!%p11189_p11)
}
  0x77   : > { %s11193_s23 = scalar_lea.vmem %s402_s24, 1024  ;;  %p11201_p8 = scmp.lt.s32.totalorder %s402_s24, %s402_s24 }
  0x78   : > { %p11194_p12 = scmp.ne.s32.totalorder %s402_s24, %s11193_s23  ;;  %p11202_p9 = scmp.lt.s32.totalorder %s11193_s23, %s11193_s23 }
  0x7a   : > { %p11196_p13 = pnand %p11194_p12, %p11667_p3  ;;  %p11203_p10 = por %p11202_p9, %p11201_p8 }
  0x7c   : > { %p11197_p7 = pneg %p11196_p13 }
  0x7e   : > { %p11204_p1 = pnand %p11203_p10, %p11197_p7 }
  0x80   : > { %11207 = shalt.err (!%p11204_p1)
}
  0x81   : > { %10515 = dma.hbm_to_vmem [thread:$0]  (!%p11653_p2), %s19334_s9, 1024, %s402_s24, [#allocation18], %s11498_s11, %s11498_s11, %s11499_s29  }
  0x82   : > { %s11502_s22 = smov [#allocation7]   ;;  %s11503_s3 = smov [#allocation10]  }
  0x83   : > { %s319_s18 = sshll.u32 %s11502_s22, 4  ;;  %s340_s21 = sshll.u32 %s11503_s3, 4  ;;  %s320_s18 = int_to_ptr.vmem [resolvable:$true] %s319_s18  ;;  %s341_s21 = int_to_ptr.vmem [resolvable:$true] %s340_s21 }
  0x84   : > { %s11208_s30 = scalar_lea.hbm %s19327_s2, 64 }
  0x85   : > { %p11209_p4 = scmp.ne.s32.totalorder %s19327_s2, %s11208_s30  ;;  %p11215_p5 = scmp.lt.u32.totalorder %s11208_s30, %s19327_s2 }
  0x87   : > { %p11211_p0 = pnand %p11209_p4, %p11667_p3 }
  0x89   : > { %p11212_p6 = pneg %p11211_p0 }
  0x8b   : > { %p11217_p11 = pnand %p11215_p5, %p11212_p6 }
  0x8d   : > { %11220 = shalt.err (!%p11217_p11)
}
  0x8e   : > { %s11221_s24 = scalar_lea.vmem %s320_s18, 64  ;;  %p11229_p8 = scmp.lt.s32.totalorder %s320_s18, %s320_s18 }
  0x8f   : > { %p11222_p12 = scmp.ne.s32.totalorder %s320_s18, %s11221_s24  ;;  %p11230_p9 = scmp.lt.s32.totalorder %s11221_s24, %s11221_s24 }
  0x91   : > { %p11224_p13 = pnand %p11222_p12, %p11667_p3  ;;  %p11231_p10 = por %p11230_p9, %p11229_p8 }
  0x93   : > { %p11225_p7 = pneg %p11224_p13 }
  0x95   : > { %p11232_p1 = pnand %p11231_p10, %p11225_p7 }
  0x97   : > { %11235 = shalt.err (!%p11232_p1)
}
  0x98   : > { %10494 = dma.hbm_to_vmem [thread:$0]  (!%p11653_p2), %s19327_s2, 64, %s320_s18, [#allocation6]  }
  0x99   : > { %s11236_s28 = scalar_lea.hbm %s19329_s4, 256 }
  0x9a   : > { %p11237_p4 = scmp.ne.s32.totalorder %s19329_s4, %s11236_s28  ;;  %p11243_p5 = scmp.lt.u32.totalorder %s11236_s28, %s19329_s4 }
  0x9c   : > { %p11239_p0 = pnand %p11237_p4, %p11667_p3 }
  0x9e   : > { %p11240_p6 = pneg %p11239_p0 }
  0xa0   : > { %p11245_p11 = pnand %p11243_p5, %p11240_p6 }
  0xa2   : > { %11248 = shalt.err (!%p11245_p11)
}
  0xa3   : > { %s11249_s16 = scalar_lea.vmem %s341_s21, 256  ;;  %p11257_p8 = scmp.lt.s32.totalorder %s341_s21, %s341_s21 }
  0xa4   : > { %p11250_p12 = scmp.ne.s32.totalorder %s341_s21, %s11249_s16  ;;  %p11258_p9 = scmp.lt.s32.totalorder %s11249_s16, %s11249_s16 }
  0xa6   : > { %p11252_p13 = pnand %p11250_p12, %p11667_p3  ;;  %p11259_p10 = por %p11258_p9, %p11257_p8 }
  0xa8   : > { %p11253_p7 = pneg %p11252_p13 }
  0xaa   : > { %p11260_p1 = pnand %p11259_p10, %p11253_p7 }
  0xac   : > { %11263 = shalt.err (!%p11260_p1)
}
  0xad   : > { %10500 = dma.hbm_to_vmem [thread:$0]  (!%p11653_p2), %s19329_s4, 256, %s341_s21, [#allocation9], %s11498_s11, %s11498_s11, %s11499_s29  }
  0xae   : > { %s11504_s24 = smov [#allocation13]   ;;  %s11505_s14 = smov [#allocation16]  }
  0xaf   : > { %s367_s26 = sshll.u32 %s11504_s24, 4  ;;  %s391_s22 = sshll.u32 %s11505_s14, 4  ;;  %s368_s26 = int_to_ptr.vmem [resolvable:$true] %s367_s26  ;;  %s392_s22 = int_to_ptr.vmem [resolvable:$true] %s391_s22 }
  0xb0   : > { %s11264_s12 = scalar_lea.hbm %s19331_s6, 16 }
  0xb1   : > { %p11265_p4 = scmp.ne.s32.totalorder %s19331_s6, %s11264_s12  ;;  %p11271_p5 = scmp.lt.u32.totalorder %s11264_s12, %s19331_s6 }
  0xb3   : > { %p11267_p0 = pnand %p11265_p4, %p11667_p3 }
  0xb5   : > { %p11268_p6 = pneg %p11267_p0 }
  0xb7   : > { %p11273_p11 = pnand %p11271_p5, %p11268_p6 }
  0xb9   : > { %11276 = shalt.err (!%p11273_p11)
}
  0xba   : > { %s11277_s11 = scalar_lea.vmem %s368_s26, 16  ;;  %s11284_s29 = scalar_lea.vmem %s368_s26, 32 }
  0xbb   : > { %p11278_p12 = scmp.ne.s32.totalorder %s368_s26, %s11277_s11  ;;  %p11285_p8 = scmp.lt.s32.totalorder %s368_s26, %s368_s26 }
  0xbc   : > { %p11286_p9 = scmp.lt.s32.totalorder %s11284_s29, %s11277_s11 }
  0xbd   : > { %p11280_p13 = pnand %p11278_p12, %p11667_p3 }
  0xbe   : > { %p11287_p10 = por %p11286_p9, %p11285_p8 }
  0xbf   : > { %p11281_p7 = pneg %p11280_p13 }
  0xc1   : > { %p11288_p1 = pnand %p11287_p10, %p11281_p7 }
  0xc3   : > { %11291 = shalt.err (!%p11288_p1)
}
  0xc4   : > { %10506 = dma.hbm_to_vmem [thread:$0]  (!%p11653_p2), %s19331_s6, 16, %s368_s26, [#allocation12]  }
  0xc5   : > { %s11292_s14 = scalar_lea.hbm %s19333_s8, 16 }
  0xc6   : > { %p11293_p4 = scmp.ne.s32.totalorder %s19333_s8, %s11292_s14  ;;  %p11299_p5 = scmp.lt.u32.totalorder %s11292_s14, %s19333_s8 }
  0xc8   : > { %p11295_p0 = pnand %p11293_p4, %p11667_p3 }
  0xca   : > { %p11296_p6 = pneg %p11295_p0 }
  0xcc   : > { %p11301_p11 = pnand %p11299_p5, %p11296_p6 }
  0xce   : > { %11304 = shalt.err (!%p11301_p11)
}
  0xcf   : > { %s11305_s25 = scalar_lea.vmem %s392_s22, 16  ;;  %s11312_s26 = scalar_lea.vmem %s392_s22, 32 }
  0xd0   : > { %p11306_p12 = scmp.ne.s32.totalorder %s392_s22, %s11305_s25  ;;  %p11313_p8 = scmp.lt.s32.totalorder %s392_s22, %s392_s22 }
  0xd1   : > { %p11314_p9 = scmp.lt.s32.totalorder %s11312_s26, %s11305_s25 }
  0xd2   : > { %p11308_p13 = pnand %p11306_p12, %p11667_p3 }
  0xd3   : > { %p11315_p10 = por %p11314_p9, %p11313_p8 }
  0xd4   : > { %p11309_p7 = pneg %p11308_p13 }
  0xd6   : > { %p11316_p1 = pnand %p11315_p10, %p11309_p7 }
  0xd8   : > { %11319 = shalt.err (!%p11316_p1)
}
  0xd9   : > { %10512 = dma.hbm_to_vmem [thread:$0]  (!%p11653_p2), %s19333_s8, 16, %s392_s22, [#allocation15]  }
  0xda   : > { %s11506_s11 = smov [#allocation19]   ;;  %s11320_s23 = scalar_lea.hbm %s19335_s10, 16 }
  0xdb   : > { %s415_s29 = sshll.u32 %s11506_s11, 4  ;;  %p11321_p4 = scmp.ne.s32.totalorder %s19335_s10, %s11320_s23  ;;  %s416_s29 = int_to_ptr.vmem [resolvable:$true] %s415_s29 }
  0xdc   : > { %p11327_p5 = scmp.lt.u32.totalorder %s11320_s23, %s19335_s10 }
  0xdd   : > { %p11323_p0 = pnand %p11321_p4, %p11667_p3 }
  0xdf   : > { %p11324_p6 = pneg %p11323_p0 }
  0xe1   : > { %p11329_p11 = pnand %p11327_p5, %p11324_p6 }
  0xe3   : > { %11332 = shalt.err (!%p11329_p11)
}
  0xe4   : > { %s11333_s22 = scalar_lea.vmem %s416_s29, 16  ;;  %s11340_s12 = scalar_lea.vmem %s416_s29, 32 }
  0xe5   : > { %p11334_p12 = scmp.ne.s32.totalorder %s416_s29, %s11333_s22  ;;  %p11341_p8 = scmp.lt.s32.totalorder %s416_s29, %s416_s29 }
  0xe6   : > { %p11342_p9 = scmp.lt.s32.totalorder %s11340_s12, %s11333_s22 }
  0xe7   : > { %p11336_p13 = pnand %p11334_p12, %p11667_p3 }
  0xe8   : > { %p11343_p10 = por %p11342_p9, %p11341_p8 }
  0xe9   : > { %p11337_p7 = pneg %p11336_p13 }
  0xeb   : > { %p11344_p1 = pnand %p11343_p10, %p11337_p7 }
  0xed   : > { %11347 = shalt.err (!%p11344_p1)
}
  0xee   : > { %10518 = dma.hbm_to_vmem [thread:$0]  (!%p11653_p2), %s19335_s10, 16, %s416_s29, [#allocation18]  }
  0xef   : > { %p9148_p4 = scmp.ge.s32.totalorder %s11494_s20, 2 }
  0xf0   : > { %p19695_p3 = scmp.ne.s32.totalorder (!%p9148_p4), %s19683_s27, 0 }
  0xf1   : > { %422 = sbr.rel (%p9148_p4) target bundleno = 320 (0x140), region = 52 }
  0xf8   : > { %425 = sbr.rel (!%p19695_p3) target bundleno = 283 (0x11b), region = 56  ;;  %s426_s13 = sand.u32 (%p19695_p3), 1, %s11490_s19  }
  0xf9   : > { %s431_s26 = smul.u32 (%p19695_p3), 48, %s11494_s20  ;;  %s11854_s29 = scalar_lea.sflag (%p19695_p3), [#allocation3], %s426_s13 }
  0xfa   : > { %s10257_s17 = smul.u32 (%p19695_p3), 384, %s426_s13 }
  0xfb   : > { %s432_s16 = ssub.s32 (%p19695_p3), 84, %s431_s26 }
  0xfc   : > { %p433_p0 = scmp.lt.s32.totalorder (%p19695_p3), %s432_s16, 48  ;;  %s430_s21 = scalar_lea.vmem (%p19695_p3), [#allocation2], %s10257_s17 }
  0xff   : > { %s20347_s16 = smov (!%p433_p0, %s432_s16), 48 }
 0x100   : > { %s11851_s15 = sshll.u32 %s20347_s16, 7 }
 0x101   : > { %s437_s11 = ssub.s32 6144, %s11851_s15 }
 0x102   : > { %438 = vsyncadd %s11854_s29, %s437_s11  ;;  %p9150_p2 = scmp.ne.s32.totalorder %s11851_s15, 0  ;;  %s9615_s18 = smul.u32 6144, %s11494_s20 }
 0x103   : > { %s443_s23 = sshll.u32 %s430_s21, 4  ;;  %s11352_s30 = scalar_lea.hbm %s19325_s0, 10752  ;;  %s11864_s23 = int_to_ptr.vmem [resolvable:$true] %s443_s23 }
 0x104   : > { %s11862_s3 = scalar_lea.hbm %s19325_s0, %s9615_s18 }
 0x105   : > { %s11348_s28 = scalar_lea.hbm %s11862_s3, %s11851_s15  ;;  %p11353_p12 = scmp.lt.u32.totalorder %s11862_s3, %s19325_s0 }
 0x106   : > { %p11349_p6 = scmp.ne.s32.totalorder %s11862_s3, %s11348_s28  ;;  %p11354_p13 = scmp.lt.u32.totalorder %s11352_s30, %s11348_s28 }
 0x107   : > { %p11356_p8 = scmp.lt.u32.totalorder %s11348_s28, %s11862_s3 }
 0x108   : > { %p11350_p5 = pnand %p11349_p6, %p9150_p2  ;;  %p11355_p7 = por %p11354_p13, %p11353_p12 }
 0x10a   : > { %p11351_p11 = pneg %p11350_p5  ;;  %p11357_p9 = por %p11356_p8, %p11355_p7 }
 0x10c   : > { %p11358_p10 = pnand %p11357_p9, %p11351_p11 }
 0x10e   : > { %11361 = shalt.err (!%p11358_p10)
}
 0x10f   : > { %s11362_s26 = scalar_lea.vmem %s11864_s23, %s11851_s15  ;;  %s11507_s17 = smov [#allocation2]  }
 0x110   : > { %p11363_p1 = scmp.ne.s32.totalorder %s11864_s23, %s11362_s26  ;;  %s11366_s16 = sshll.u32 %s11507_s17, 4  ;;  %s11367_s16 = int_to_ptr.vmem [resolvable:$false] %s11366_s16 }
 0x111   : > { %s11368_s11 = scalar_lea.vmem %s11367_s16, 12288  ;;  %p11369_p6 = scmp.lt.s32.totalorder %s11864_s23, %s11367_s16 }
 0x112   : > { %p11364_p3 = pnand %p11363_p1, %p9150_p2  ;;  %p11370_p5 = scmp.lt.s32.totalorder %s11368_s11, %s11362_s26 }
 0x114   : > { %p11365_p0 = pneg %p11364_p3  ;;  %p11371_p12 = por %p11370_p5, %p11369_p6 }
 0x116   : > { %p11372_p13 = pnand %p11371_p12, %p11365_p0 }
 0x118   : > { %11375 = shalt.err (!%p11372_p13)
}
 0x119   : > { %s11508_s21 = smov 128   ;;  %s11509_s18 = smov 8  }
 0x11a   : > { %449 = dma.hbm_to_vmem [thread:$0]  (%p9150_p2), %s11862_s3, %s11851_s15, %s11864_s23, %s11854_s29, %s11508_s21, %s11508_s21, %s11509_s18  }
 0x11b PF: > { %p19696_p11 = scmp.ne.s32.totalorder %s19683_s27, 0 }
 0x11c   : > { %s453_s24 = sand.u32 (%p19696_p11), 1, %s11494_s20   ;;  %s455_s14 = sand.u32 (%p19696_p11), 1, %s11490_s19  }
 0x11d   : > { %452 = sbr.rel (!%p19696_p11) target bundleno = 320 (0x140), region = 60  ;;  %s11899_s13 = scalar_lea.sflag (%p19696_p11), [#allocation6], %s453_s24 }
 0x11e   : > { %s10258_s28 = smul.u32 (%p19696_p11), 384, %s455_s14 }
 0x11f   : > { %s458_s22 = smul.u32 (%p19696_p11), 48, %s11494_s20 }
 0x120   : > { %s457_s15 = scalar_lea.vmem (%p19696_p11), [#allocation5], %s10258_s28 }
 0x121   : > { %s459_s12 = ssub.s32 (%p19696_p11), 84, %s458_s22 }
 0x122   : > { %p460_p7 = scmp.lt.s32.totalorder (%p19696_p11), %s459_s12, 48 }
 0x124   : > { %s20349_s12 = smov (!%p460_p7, %s459_s12), 48 }
 0x125   : > { %s11896_s30 = sshll.u32 %s20349_s12, 7 }
 0x126   : > { %s464_s25 = ssub.s32 6144, %s11896_s30 }
 0x127   : > { %465 = vsyncadd %s11899_s13, %s464_s25  ;;  %p9155_p2 = scmp.ne.s32.totalorder %s11896_s30, 0  ;;  %s9616_s27 = smul.u32 6144, %s11494_s20 }
 0x128   : > { %s470_s29 = sshll.u32 %s457_s15, 4  ;;  %s11380_s21 = scalar_lea.hbm %s19326_s1, 10752  ;;  %s11909_s29 = int_to_ptr.vmem [resolvable:$true] %s470_s29 }
 0x129   : > { %s11907_s26 = scalar_lea.hbm %s19326_s1, %s9616_s27 }
 0x12a   : > { %s11376_s17 = scalar_lea.hbm %s11907_s26, %s11896_s30  ;;  %p11381_p1 = scmp.lt.u32.totalorder %s11907_s26, %s19326_s1 }
 0x12b   : > { %p11377_p8 = scmp.ne.s32.totalorder %s11907_s26, %s11376_s17  ;;  %p11382_p3 = scmp.lt.u32.totalorder %s11380_s21, %s11376_s17 }
 0x12c   : > { %p11384_p6 = scmp.lt.u32.totalorder %s11376_s17, %s11907_s26 }
 0x12d   : > { %p11378_p9 = pnand %p11377_p8, %p9155_p2  ;;  %p11383_p0 = por %p11382_p3, %p11381_p1 }
 0x12f   : > { %p11379_p10 = pneg %p11378_p9  ;;  %p11385_p5 = por %p11384_p6, %p11383_p0 }
 0x131   : > { %p11386_p12 = pnand %p11385_p5, %p11379_p10 }
 0x133   : > { %11389 = shalt.err (!%p11386_p12)
}
 0x134   : > { %s11390_s14 = scalar_lea.vmem %s11909_s29, %s11896_s30  ;;  %s11510_s28 = smov [#allocation5]  }
 0x135   : > { %p11391_p13 = scmp.ne.s32.totalorder %s11909_s29, %s11390_s14  ;;  %s11394_s22 = sshll.u32 %s11510_s28, 4  ;;  %s11395_s22 = int_to_ptr.vmem [resolvable:$false] %s11394_s22 }
 0x136   : > { %s11396_s12 = scalar_lea.vmem %s11395_s22, 12288  ;;  %p11397_p8 = scmp.lt.s32.totalorder %s11909_s29, %s11395_s22 }
 0x137   : > { %p11392_p11 = pnand %p11391_p13, %p9155_p2  ;;  %p11398_p9 = scmp.lt.s32.totalorder %s11396_s12, %s11390_s14 }
 0x139   : > { %p11393_p7 = pneg %p11392_p11  ;;  %p11399_p1 = por %p11398_p9, %p11397_p8 }
 0x13b   : > { %p11400_p3 = pnand %p11399_p1, %p11393_p7 }
 0x13d   : > { %11403 = shalt.err (!%p11400_p3)
}
 0x13e   : > { %s11511_s25 = smov 128   ;;  %s11512_s15 = smov 8  }
 0x13f   : > { %476 = dma.hbm_to_vmem [thread:$0]  (%p9155_p2), %s11907_s26, %s11896_s30, %s11909_s29, %s11899_s13, %s11511_s25, %s11511_s25, %s11512_s15  }
 0x140 PF: > { %s19697_s27 = sld [smem:[#allocation37_spill]] }
 0x146   : > { %p19698_p10 = scmp.ne.s32.totalorder %s19697_s27, 0 }
 0x148   : > { %482 = sbr.rel (%p19698_p10) target bundleno = 2632 (0xa48), region = 64 }
 0x14f   : > { %s19699_s23 = sld [smem:[#allocation30_spill]]  ;;  %s19700_s3 = sld [smem:[#allocation34_spill]] }
 0x155   : > { %s11939_s17 = sand.u32 1, %s19699_s23   ;;  %p19701_p0 = scmp.ne.s32.totalorder %s19700_s3, 0 }
 0x156   : > { %s11942_s16 = smul.u32 384, %s11939_s17  ;;  %s485_s11 = scalar_lea.sflag [#allocation3], %s11939_s17 }
 0x158   : > { %s11946_s21 = scalar_lea.vmem [#allocation2], %s11942_s16 }
 0x159   : > { %11449 = dma.done.wait (%p19701_p0), %s485_s11, 6144  }
 0x15a   : > { %11451 = vsyncadd (%p19701_p0), %s485_s11, 4294961152  ;;  %s19702_s30 = sld [smem:[#allocation31_spill]]  ;;  %s11954_s26 = scalar_lea.vmem [#allocation5], %s11942_s16 }
 0x160   : > { %s493_s13 = sand.u32 1, %s19702_s30  }
 0x161   : > { %s494_s29 = scalar_lea.sflag [#allocation6], %s493_s13 }
 0x162   : > { %11453 = dma.done.wait (%p19701_p0), %s494_s29, 6144  }
 0x163   : > { %11455 = vsyncadd (%p19701_p0), %s494_s29, 4294961152  ;;  %p19703_p2 = scmp.eq.s32.totalorder %s19702_s30, 0 }
 0x165   : > { %11457 = dma.done.wait (%p19703_p2), [#allocation6], 64   ;;  %p19704_p6 = pmov %p19703_p2 }
 0x166   : > { %p19705_p5 = pmov %p19703_p2 }
 0x167   : > { %11459 = vsyncadd (%p19704_p6), [#allocation6], 4294967232 }
 0x168   : > { %11461 = dma.done.wait (%p19705_p5), [#allocation9], 272   ;;  %p19706_p12 = pmov %p19703_p2 }
 0x169   : > { %p19707_p13 = pmov %p19703_p2 }
 0x16a   : > { %11463 = vsyncadd (%p19706_p12), [#allocation9], 4294967024 }
 0x16b   : > { %11465 = dma.done.wait (%p19707_p13), [#allocation12], 400   ;;  %p19708_p11 = pmov %p19703_p2 }
 0x16c   : > { %p19709_p7 = pmov %p19703_p2 }
 0x16d   : > { %11467 = vsyncadd (%p19708_p11), [#allocation12], 4294966896 }
 0x16e   : > { %11469 = dma.done.wait (%p19709_p7), [#allocation15], 1040   ;;  %p19710_p8 = pmov %p19703_p2 }
 0x16f   : > { %p19711_p9 = pmov %p19703_p2 }
 0x170   : > { %11471 = vsyncadd (%p19710_p8), [#allocation15], 4294966256 }
 0x171   : > { %11473 = dma.done.wait (%p19711_p9), [#allocation18], 1040   ;;  %p19712_p1 = pmov %p19703_p2 }
 0x172   : > { %v19373_v0 = vmov 1   ;;  %v19365_v1 = vmov 0   ;;  %v592_v2 = vld [vmem:[%s11954_s26] sm:$0xff]  ;;  %v593_v3 = vld [vmem:[%s11954_s26 + $0x8] sm:$0xff]  ;;  %v11985_v4 = vld [vmem:[%s11954_s26 + $0x10] sm:$0xff]  ;;  %v19367_v5 = vmov 2  }
 0x173   : > { %11475 = vsyncadd (%p19712_p1), [#allocation18], 4294966256  ;;  %10601 = vset.pattern.permute.xlu1 %v19373_v0  ;;  %10600 = vset.pattern.permute.xlu0 %v19365_v1  ;;  %v595_v6 = vld [vmem:[%s11954_s26 + $0x18] sm:$0xff]  ;;  %v11994_v7 = vld [vmem:[%s11954_s26 + $0x20] sm:$0xff]  ;;  %s19130_s18 = scalar_lea.vmem [#allocation20], %s11942_s16  ;;  %s8937_s24 = scalar_lea.sflag [#allocation4], %s11939_s17 }
 0x174   : > { %990 = vperm.xlu1 %10601, %v592_v2   ;;  %644 = vperm.xlu0 %10600, %v592_v2   ;;  %v11999_v8 = vld [vmem:[%s11954_s26 + $0x30] sm:$0xff]  ;;  %v597_v9 = vld [vmem:[%s11954_s26 + $0x28] sm:$0xff]  ;;  %v12005_v10 = vld [vmem:[%s11954_s26 + $0x40] sm:$0xff]  ;;  %s20334_s14 = sld [smem:[#allocation35_spill]] }
 0x175   : > { %v12009_v11 = vld [vmem:[%s11954_s26 + $0x50] sm:$0xff]  ;;  %v12014_v12 = vld [vmem:[%s11954_s26 + $0x60] sm:$0xff]  ;;  %v599_v15 = vld [vmem:[%s11954_s26 + $0x38] sm:$0xff] }
 0x176   : > { %v12019_v13 = vld [vmem:[%s11954_s26 + $0x70] sm:$0xff]  ;;  %v12025_v14 = vld [vmem:[%s11954_s26 + $0x80] sm:$0xff]  ;;  %v601_v20 = vld [vmem:[%s11954_s26 + $0x48] sm:$0xff] }
 0x177   : > { %v12030_v16 = vld [vmem:[%s11954_s26 + $0x90] sm:$0xff]  ;;  %v12035_v17 = vld [vmem:[%s11954_s26 + $0xa0] sm:$0xff]  ;;  %v603_v26 = vld [vmem:[%s11954_s26 + $0x58] sm:$0xff] }
 0x178   : > { %994 = vperm.xlu1 %10601, %v593_v3   ;;  %649 = vperm.xlu0 %10600, %v593_v3   ;;  %v12039_v18 = vld [vmem:[%s11954_s26 + $0xb0] sm:$0xff]  ;;  %v12044_v19 = vld [vmem:[%s11954_s26 + $0xc0] sm:$0xff]  ;;  %v605_v35 = vld [vmem:[%s11954_s26 + $0x68] sm:$0xff] }
 0x179   : > { %v12051_v21 = vld [vmem:[%s11954_s26 + $0xd0] sm:$0xff]  ;;  %v12055_v22 = vld [vmem:[%s11954_s26 + $0xe0] sm:$0xff]  ;;  %v607_v37 = vld [vmem:[%s11954_s26 + $0x78] sm:$0xff] }
 0x17a   : > { %v12060_v23 = vld [vmem:[%s11954_s26 + $0xf0] sm:$0xff]  ;;  %v12065_v24 = vld [vmem:[%s11954_s26 + $0x100] sm:$0xff]  ;;  %v12135_v55 = vld [vmem:[%s11954_s26 + $0x88] sm:$0xff]  ;;  %p20335_p3 = scmp.ne.s32.totalorder %s20334_s14, 0 }
 0x17b   : > { %v12069_v25 = vld [vmem:[%s11954_s26 + $0x110] sm:$0xff]  ;;  %v12076_v27 = vld [vmem:[%s11954_s26 + $0x120] sm:$0xff]  ;;  %s20336_s28 = sld [smem:[#allocation31_spill]] (%p20335_p3) }
 0x17c   : > { %10602 = vset.pattern.permute.xlu1 %v19367_v5  ;;  %654 = vperm.xlu0 %10600, %v11985_v4   ;;  %v12080_v28 = vld [vmem:[%s11954_s26 + $0x130] sm:$0xff]  ;;  %v6617_v30 = vld [vmem:[#allocation11 + $0x8] sm:$0xff]  ;;  %v6618_v36 = vld [vmem:[#allocation11 + $0x10] sm:$0xff] }
 0x17d   : > { %1283 = vperm.xlu1 %10602, %v592_v2   ;;  %v6616_v29 = vld [vmem:[#allocation11] sm:$0xff]  ;;  %v12085_v31 = vld [vmem:[%s11954_s26 + $0x140] sm:$0xff] }
 0x17e   : > { %v10161_v32 = vpack.c.bf16 %v6617_v30, %v6616_v29  ;;  %v12090_v33 = vld [vmem:[%s11954_s26 + $0x150] sm:$0xff]  ;;  %v12095_v34 = vld [vmem:[%s11954_s26 + $0x160] sm:$0xff] }
 0x17f   : > { %v12113_v38 = vld [vmem:[#allocation7] ss:$0 sm:$0xff]  ;;  %v12116_v42 = vld [vmem:[#allocation8] ss:$0 sm:$0xff]  ;;  %v12120_v45 = vld [vmem:[#allocation7 + $0x1] ss:$0 sm:$0xff] }
 0x180   : > { %659 = vperm.xlu0 %10600, %v595_v6   ;;  %10162 = vmatprep.subr.bf16.mxu0 %v10161_v32  ;;  %v12124_v48 = vld [vmem:[#allocation7 + $0x2] ss:$0 sm:$0xff] }
 0x181   : > { %1287 = vperm.xlu1 %10602, %v593_v3   ;;  %10164 = vmatpush3.bf16.msra.mxu0 %v10161_v32  ;;  %s8944_s22 = smul.u32 (%p20335_p3), 48, %s20336_s28 }
 0x182   : > { %9835 = vmatprep.subr.mxu0 %v6618_v36 }
 0x183   : > { %s8945_s12 = ssub.s32 (%p20335_p3), 84, %s8944_s22 }
 0x184   : > { %10605 = vset.pattern.permute.xlu0 %v19367_v5  ;;  %p8946_p10 = scmp.lt.s32.totalorder (%p20335_p3), %s8945_s12, 48 }
 0x185   : > { %10603 = vset.pattern.permute.xlu1 %v19373_v0  ;;  %1291 = vperm.xlu0 %10605, %v11985_v4  }
 0x186   : > { %1002 = vperm.xlu1 %10603, %v595_v6   ;;  %9836 = vmatpush3.msra.mxu0 %v6618_v36 }
 0x189   : > { %1299 = vperm.xlu0 %10605, %v11994_v7  }
 0x18a   : > { %10604 = vset.pattern.permute.xlu1 %v19365_v1 }
 0x18b   : > { %664 = vperm.xlu1 %10604, %v11994_v7  }
 0x18d   : > { %1307 = vperm.xlu0 %10605, %v11999_v8  }
 0x18f   : > { %669 = vperm.xlu1 %10604, %v597_v9  }
 0x191   : > { %1315 = vperm.xlu0 %10605, %v12005_v10  }
 0x193   : > { %10606 = vset.pattern.permute.xlu1 %v19367_v5 }
 0x194   : > { %1295 = vperm.xlu1 %10606, %v595_v6  }
 0x195   : > { %1323 = vperm.xlu0 %10605, %v12009_v11  }
 0x198   : > { %10607 = vset.pattern.permute.xlu1 %v19373_v0 }
 0x199   : > { %1010 = vperm.xlu1 %10607, %v597_v9   ;;  %1331 = vperm.xlu0 %10605, %v12014_v12  }
 0x19d   : > { %10608 = vset.pattern.permute.xlu1 %v19365_v1  ;;  %1339 = vperm.xlu0 %10605, %v12019_v13  }
 0x19e   : > { %674 = vperm.xlu1 %10608, %v11999_v8  }
 0x1a1   : > { %1347 = vperm.xlu0 %10605, %v12025_v14  }
 0x1a2   : > { %679 = vperm.xlu1 %10608, %v599_v15  }
 0x1a5   : > { %1355 = vperm.xlu0 %10605, %v12030_v16  }
 0x1a6   : > { %10609 = vset.pattern.permute.xlu1 %v19367_v5 }
 0x1a7   : > { %1303 = vperm.xlu1 %10609, %v597_v9  }
 0x1a9   : > { %1363 = vperm.xlu0 %10605, %v12035_v17  }
 0x1ab   : > { %10610 = vset.pattern.permute.xlu1 %v19373_v0 }
 0x1ac   : > { %1018 = vperm.xlu1 %10610, %v599_v15  }
 0x1ad   : > { %1371 = vperm.xlu0 %10605, %v12039_v18  }
 0x1b0   : > { %10611 = vset.pattern.permute.xlu1 %v19365_v1 }
 0x1b1   : > { %684 = vperm.xlu1 %10611, %v12005_v10   ;;  %1379 = vperm.xlu0 %10605, %v12044_v19  }
 0x1b5   : > { %689 = vperm.xlu1 %10611, %v601_v20   ;;  %1387 = vperm.xlu0 %10605, %v12051_v21  }
 0x1b9   : > { %10612 = vset.pattern.permute.xlu1 %v19367_v5  ;;  %1395 = vperm.xlu0 %10605, %v12055_v22  }
 0x1ba   : > { %1311 = vperm.xlu1 %10612, %v599_v15  }
 0x1bd   : > { %1403 = vperm.xlu0 %10605, %v12060_v23  }
 0x1be   : > { %10613 = vset.pattern.permute.xlu1 %v19373_v0 }
 0x1bf   : > { %1026 = vperm.xlu1 %10613, %v601_v20  }
 0x1c1   : > { %1411 = vperm.xlu0 %10605, %v12065_v24  }
 0x1c3   : > { %10614 = vset.pattern.permute.xlu1 %v19365_v1 }
 0x1c4   : > { %694 = vperm.xlu1 %10614, %v12009_v11  }
 0x1c5   : > { %1419 = vperm.xlu0 %10605, %v12069_v25  }
 0x1c8   : > { %699 = vperm.xlu1 %10614, %v603_v26  }
 0x1c9   : > { %1427 = vperm.xlu0 %10605, %v12076_v27  }
 0x1cc   : > { %10615 = vset.pattern.permute.xlu1 %v19367_v5 }
 0x1cd   : > { %1319 = vperm.xlu1 %10615, %v601_v20   ;;  %1435 = vperm.xlu0 %10605, %v12080_v28  }
 0x1d1   : > { %10616 = vset.pattern.permute.xlu1 %v19373_v0  ;;  %1443 = vperm.xlu0 %10605, %v12085_v31  }
 0x1d2   : > { %1034 = vperm.xlu1 %10616, %v603_v26  }
 0x1d5   : > { %1451 = vperm.xlu0 %10605, %v12090_v33  }
 0x1d6   : > { %10617 = vset.pattern.permute.xlu1 %v19365_v1 }
 0x1d7   : > { %704 = vperm.xlu1 %10617, %v12014_v12  }
 0x1d9   : > { %1459 = vperm.xlu0 %10605, %v12095_v34  }
 0x1db   : > { %709 = vperm.xlu1 %10617, %v605_v35  }
 0x1dd   : > { %10669 = vset.pattern.permute.xlu0 %v19373_v0 }
 0x1de   : > { %998 = vperm.xlu0 %10669, %v11985_v4  }
 0x1df   : > { %10618 = vset.pattern.permute.xlu1 %v19367_v5 }
 0x1e0   : > { %1327 = vperm.xlu1 %10618, %v603_v26  }
 0x1e2   : > { %1006 = vperm.xlu0 %10669, %v11994_v7  }
 0x1e4   : > { %10619 = vset.pattern.permute.xlu1 %v19373_v0 }
 0x1e5   : > { %1042 = vperm.xlu1 %10619, %v605_v35  }
 0x1e6   : > { %1014 = vperm.xlu0 %10669, %v11999_v8  }
 0x1e9   : > { %10620 = vset.pattern.permute.xlu1 %v19365_v1 }
 0x1ea   : > { %714 = vperm.xlu1 %10620, %v12019_v13   ;;  %1022 = vperm.xlu0 %10669, %v12005_v10  }
 0x1ee   : > { %719 = vperm.xlu1 %10620, %v607_v37   ;;  %1030 = vperm.xlu0 %10669, %v12009_v11  }
 0x1f2   : > { %10621 = vset.pattern.permute.xlu1 %v19367_v5  ;;  %1038 = vperm.xlu0 %10669, %v12014_v12  }
 0x1f3   : > { %1335 = vperm.xlu1 %10621, %v605_v35   ;;  %v991_v39 = vpop.permute.xlu1 %990  ;;  %v645_v40 = vpop.permute.xlu0 %644  ;;  %v19357_v35 = vmov 2475754826  }
 0x1f4   : > { %v886_v41 = vmul.f32 %v12113_v38, %v645_v40  ;;  %v1185_v49 = vmul.f32 %v12120_v45, %v991_v39 }
 0x1f6   : > { %1046 = vperm.xlu0 %10669, %v12019_v13   ;;  %v940_v46 = vadd.f32 %v12116_v42, %v886_v41  ;;  %v12176_v41 = vld [vmem:[%s11954_s26 + $0x98] sm:$0xff] }
 0x1f7   : > { %10622 = vset.pattern.permute.xlu1 %v19373_v0  ;;  %v995_v43 = vpop.permute.xlu1 %994  ;;  %v650_v44 = vpop.permute.xlu0 %649 }
 0x1f8   : > { %1050 = vperm.xlu1 %10622, %v607_v37   ;;  %v887_v47 = vmul.f32 %v12113_v38, %v650_v44  ;;  %v1233_v53 = vadd.f32 %v1185_v49, %v940_v46  ;;  %v1186_v56 = vmul.f32 %v12120_v45, %v995_v43  ;;  %v19369_v44 = vmov 2102212464  }
 0x1fa   : > { %1054 = vperm.xlu0 %10669, %v12025_v14   ;;  %v941_v52 = vadd.f32 %v12116_v42, %v887_v47  ;;  %v19363_v47 = vmov 683565275  }
 0x1fb   : > { %v12128_v50 = vpop.permute.xlu0 %654 }
 0x1fc   : > { %10623 = vset.pattern.permute.xlu1 %v19365_v1  ;;  %v1284_v51 = vpop.permute.xlu1 %1283  ;;  %v1234_v60 = vadd.f32 %v1186_v56, %v941_v52  ;;  %v19359_v56 = vmov 920167782  }
 0x1fd   : > { %v1478_v54 = vmul.f32 %v12124_v48, %v1284_v51  ;;  %724 = vperm.xlu1 %10623, %v12025_v14  }
 0x1fe   : > { %1062 = vperm.xlu0 %10669, %v12030_v16  }
 0x1ff   : > { %v12139_v57 = vadd.f32 %v1478_v54, %v1233_v53  ;;  %v12141_v58 = vpop.permute.xlu0 %659 }
 0x200   : > { %v1288_v59 = vpop.permute.xlu1 %1287 }
 0x201   : > { %v1577_v61 = vand.u32 2139095040, %v12139_v57  ;;  %v1479_v62 = vmul.f32 %v12124_v48, %v1288_v59  ;;  %729 = vperm.xlu1 %10623, %v12135_v55   ;;  %v19356_v29 = vand.u32 2147483647, %v12139_v57  ;;  %vm1576_vm14 = vcmp.lt.s32.totalorder %v12139_v57, 0 }
 0x202   : > { %1070 = vperm.xlu0 %10669, %v12035_v17  }
 0x203   : > { %v1578_v63 = vshrl.u32 %v1577_v61, 23  ;;  %v12147_v2 = vadd.f32 %v1479_v62, %v1234_v60  ;;  %v1581_v43 = vand.u32 8388607, %v19356_v29 }
 0x204   : > { %v12149_v3 = vpop.permute.xlu0 %1291 }
 0x205   : > { %v9173_v4 = vadd.s32 4294967169, %v1578_v63  ;;  %v1681_v6 = vand.u32 2139095040, %v12147_v2  ;;  %10624 = vset.pattern.permute.xlu1 %v19367_v5  ;;  %v12153_v7 = vpop.permute.xlu1 %1002 }
 0x206   : > { %1343 = vperm.xlu1 %10624, %v607_v37   ;;  %1078 = vperm.xlu0 %10669, %v12039_v18   ;;  %v19361_v37 = vmov 2131351028  }
 0x207   : > { %v1584_v8 = vadd.s32 1, %v9173_v4  ;;  %v1682_v9 = vshrl.u32 %v1681_v6, 23  ;;  %v19353_v4 = vmov 1326507024   ;;  %v1582_v6 = vor.u32 8388608, %v1581_v43 }
 0x208   : > { %v12156_v10 = vpop.permute.xlu0 %1299 }
 0x209   : > { %vm1585_vm0 = vcmp.gt.s32.totalorder %v1584_v8, 0  ;;  %v9177_v11 = vadd.s32 4294967169, %v1682_v9 }
 0x20a   : > { %v1586_v12 = vsel %vm1585_vm0, %v1584_v8, 0  ;;  %10625 = vset.pattern.permute.xlu1 %v19373_v0  ;;  %v12159_v13 = vpop.permute.xlu1 %664  ;;  %1086 = vperm.xlu0 %10669, %v12044_v19  }
 0x20b   : > { %v1588_v14 = vand.u32 31, %v1586_v12  ;;  %v1688_v15 = vadd.s32 1, %v9177_v11  ;;  %1058 = vperm.xlu1 %10625, %v12135_v55   ;;  %v12184_v51 = vshrl.u32 %v1586_v12, 5 }
 0x20c   : > { %v12163_v20 = vpop.permute.xlu0 %1307 }
 0x20d   : > { %v1589_v26 = vsub.s32 32, %v1588_v14  ;;  %vm1689_vm1 = vcmp.gt.s32.totalorder %v1688_v15, 0  ;;  %v1594_v49 = vshll.u32 %v19357_v35, %v1588_v14  ;;  %v1597_v53 = vshll.u32 %v19361_v37, %v1588_v14 }
 0x20e   : > { %v12166_v30 = vpop.permute.xlu1 %669  ;;  %1094 = vperm.xlu0 %10669, %v12051_v21   ;;  %v1690_v40 = vsel %vm1689_vm1, %v1688_v15, 0  ;;  %v1600_v54 = vshll.u32 %v19369_v44, %v1588_v14  ;;  %v1603_v11 = vshll.u32 %v19359_v56, %v1588_v14  ;;  %vm1606_vm2 = vcmp.lt.s32.totalorder %v12184_v51, 1 }
 0x20f   : > { %10626 = vset.pattern.permute.xlu1 %v19365_v1  ;;  %v1592_v36 = vshrl.u32 %v19357_v35, %v1589_v26  ;;  %v1595_v39 = vshrl.u32 %v19361_v37, %v1589_v26  ;;  %v1598_v46 = vshrl.u32 %v19369_v44, %v1589_v26  ;;  %v1601_v59 = vshrl.u32 %v19359_v56, %v1589_v26 }
 0x210   : > { %734 = vperm.xlu1 %10626, %v12030_v16   ;;  %v12171_v32 = vpop.permute.xlu0 %1315  ;;  %v1591_v16 = vshll.u32 %v19363_v47, %v1588_v14  ;;  %v1692_v60 = vand.u32 31, %v1690_v40  ;;  %vm1609_vm3 = vcmp.lt.s32.totalorder %v12184_v51, 4  ;;  %vm1608_vm4 = vcmp.lt.s32.totalorder %v12184_v51, 3 }
 0x211   : > { %v1596_v63 = vor.u32 %v1595_v39, %v1594_v49  ;;  %v1599_v8 = vor.u32 %v1598_v46, %v1597_v53  ;;  %v1602_v9 = vor.u32 %v1601_v59, %v1600_v54  ;;  %vm1607_vm5 = vcmp.lt.s32.totalorder %v12184_v51, 2 }
 0x212   : > { %1102 = vperm.xlu0 %10669, %v12055_v22   ;;  %v1593_v62 = vor.u32 %v1592_v36, %v1591_v16  ;;  %v1604_v22 = vshrl.u32 %v19353_v4, %v1589_v26  ;;  %v12199_v15 = vsub.s32 32, %v1692_v60  ;;  %v1622_v46 = vshll.u32 %v1582_v6, 8 }
 0x213   : > { %v12186_v52 = vpop.permute.xlu1 %1295  ;;  %v1611_v16 = vsel %vm1609_vm3, %v1599_v8, 2102212464  ;;  %v1618_v53 = vsel %vm1606_vm2, %v1596_v63, %v1599_v8  ;;  %v19355_v54 = vand.u32 2147483647, %v12147_v2  ;;  %v1698_v29 = vshll.u32 %v19357_v35, %v1692_v60 }
 0x214   : > { %739 = vperm.xlu1 %10626, %v12176_v41   ;;  %v12192_v61 = vpop.permute.xlu0 %1323  ;;  %v1605_v12 = vor.u32 %v1604_v22, %v1603_v11  ;;  %v1614_v14 = vsel %vm1606_vm2, %v1593_v62, %v1596_v63  ;;  %v1705_v11 = vshrl.u32 %v19359_v56, %v12199_v15  ;;  %vm6619_vm1 = vcmask 195584  }
 0x216   : > { %1110 = vperm.xlu0 %10669, %v12060_v23   ;;  %v1615_v23 = vsel %vm1609_vm3, %v1602_v9, 920167782  ;;  %v1619_v59 = vsel %vm1609_vm3, %v1605_v12, 1326507024  ;;  %v1612_v12 = vsel %vm1608_vm4, %v1596_v63, %v1611_v16  ;;  %v1696_v63 = vshrl.u32 %v19357_v35, %v12199_v15 }
 0x217   : > { %v1616_v43 = vsel %vm1608_vm4, %v1599_v8, %v1615_v23  ;;  %v1620_v8 = vsel %vm1608_vm4, %v1602_v9, %v1619_v59  ;;  %v12236_v23 = vshrl.u32 %v1690_v40, 5  ;;  %v1708_v9 = vshrl.u32 %v19353_v4, %v12199_v15 }
 0x218   : > { %10627 = vset.pattern.permute.xlu1 %v19367_v5  ;;  %v12202_v36 = vpop.permute.xlu1 %1010  ;;  %v12204_v39 = vpop.permute.xlu0 %1331  ;;  %v1617_v49 = vsel %vm1607_vm5, %v1614_v14, %v1616_v43  ;;  %v1621_v43 = vsel %vm1607_vm5, %v1618_v53, %v1620_v8  ;;  %v1699_v16 = vshrl.u32 %v19361_v37, %v12199_v15  ;;  %vm1680_vm3 = vcmp.lt.s32.totalorder %v12147_v2, 0 }
 0x219   : > { %1351 = vperm.xlu1 %10627, %v12135_v55   ;;  %v1590_v55 = vshrl.u32 %v19363_v47, %v1589_v26  ;;  %v12226_v22 = vmul.u32.u64.low %v1622_v46, %v1617_v49  ;;  %v12227_v6 = vmul.u32.u64.high %v1622_v46, %v1617_v49, %v12226_v22  ;;  %v1704_v49 = vshll.u32 %v19369_v44, %v1692_v60 }
 0x21a   : > { %1118 = vperm.xlu0 %10669, %v12065_v24   ;;  %v12251_v40 = vmul.u32.u64.low %v1622_v46, %v1621_v43  ;;  %v12252_v59 = vmul.u32.u64.high %v1622_v46, %v1621_v43, %v12251_v40  ;;  %vm1713_vm6 = vcmp.lt.s32.totalorder %v12236_v23, 4  ;;  %vm1710_vm8 = vcmp.lt.s32.totalorder %v12236_v23, 1 }
 0x21b   : > { %v1610_v26 = vsel %vm1606_vm2, %v1590_v55, %v1593_v62  ;;  %v1685_v62 = vand.u32 8388607, %v19355_v54  ;;  %v1706_v53 = vor.u32 %v1705_v11, %v1704_v49  ;;  %v1707_v55 = vshll.u32 %v19359_v56, %v1692_v60 }
 0x21c   : > { %v12232_v14 = vpop.permute.xlu0 %1339  ;;  %v1613_v43 = vsel %vm1607_vm5, %v1610_v26, %v1612_v12  ;;  %v1632_v4 = vadd.s32 1, %v12227_v6  ;;  %v1695_v54 = vshll.u32 %v19363_v47, %v1692_v60  ;;  %v1701_v11 = vshll.u32 %v19361_v37, %v1692_v60  ;;  %v12285_v60 = vld [vmem:[%s11954_s26 + $0xa8] sm:$0xff] }
 0x21d   : > { %10628 = vset.pattern.permute.xlu1 %v19373_v0  ;;  %v12239_v24 = vpop.permute.xlu1 %674  ;;  %v1709_v49 = vor.u32 %v1708_v9, %v1707_v55  ;;  %vm1631_vm7 = vc.u32 %v12252_v59, %v12226_v22  ;;  %v1700_v26 = vor.u32 %v1699_v16, %v1698_v29  ;;  %v1719_v35 = vsel %vm1713_vm6, %v1706_v53, 920167782 }
 0x21e   : > { %1066 = vperm.xlu1 %10628, %v12176_v41   ;;  %1126 = vperm.xlu0 %10669, %v12069_v25   ;;  %v1702_v25 = vshrl.u32 %v19369_v44, %v12199_v15  ;;  %v1697_v51 = vor.u32 %v1696_v63, %v1695_v54  ;;  %v1629_v9 = vmul.u32 %v1622_v46, %v1613_v43  ;;  %v1686_v37 = vor.u32 8388608, %v1685_v62 }
 0x21f   : > { %v1633_v55 = vsel %vm1631_vm7, %v1632_v4, %v12227_v6  ;;  %vm1712_vm9 = vcmp.lt.s32.totalorder %v12236_v23, 3  ;;  %v1723_v29 = vsel %vm1713_vm6, %v1709_v49, 1326507024  ;;  %vm1711_vm10 = vcmp.lt.s32.totalorder %v12236_v23, 2 }
 0x220   : > { %v12262_v8 = vpop.permute.xlu0 %1347  ;;  %v1703_v12 = vor.u32 %v1702_v25, %v1701_v11  ;;  %v1718_v46 = vsel %vm1710_vm8, %v1697_v51, %v1700_v26  ;;  %v889_v62 = vmul.f32 %v12113_v38, %v12141_v58  ;;  %v1726_v16 = vshll.u32 %v1686_v37, 8 }
 0x221   : > { %v12268_v40 = vpop.permute.xlu1 %679  ;;  %vm1666_vm2 = vweird.f32 %v12139_v57 }
 0x222   : > { %10629 = vset.pattern.permute.xlu1 %v19365_v1  ;;  %1134 = vperm.xlu0 %10669, %v12076_v27   ;;  %v1720_v4 = vsel %vm1712_vm9, %v1703_v12, %v1719_v35  ;;  %v1722_v63 = vsel %vm1710_vm8, %v1700_v26, %v1703_v12  ;;  %v1724_v35 = vsel %vm1712_vm9, %v1706_v53, %v1723_v29  ;;  %v1715_v58 = vsel %vm1713_vm6, %v1703_v12, 2102212464 }
 0x223   : > { %744 = vperm.xlu1 %10629, %v12035_v17   ;;  %v1634_v17 = vadd.s32 %v1633_v55, %v1629_v9  ;;  %v1725_v11 = vsel %vm1711_vm10, %v1722_v63, %v1724_v35  ;;  %v1694_v53 = vshrl.u32 %v19363_v47, %v12199_v15  ;;  %v943_v55 = vadd.f32 %v12116_v42, %v889_v62 }
 0x224   : > { %v12282_v56 = vpop.permute.xlu0 %1355  ;;  %v1188_v12 = vmul.f32 %v12120_v45, %v12153_v7  ;;  %v1481_v15 = vmul.f32 %v12124_v48, %v12186_v52  ;;  %v12454_v47 = vmul.f32 %v12124_v48, %v12149_v3 }
 0x225   : > { %v1635_v6 = vadd.s32 536870912, %v1634_v17 }
 0x226   : > { %v12288_v27 = vpop.permute.xlu1 %1303  ;;  %1142 = vperm.xlu0 %10669, %v12080_v28   ;;  %v1721_v28 = vsel %vm1711_vm10, %v1718_v46, %v1720_v4  ;;  %v12334_v29 = vmul.u32.u64.low %v1726_v16, %v1725_v11  ;;  %v12335_v46 = vmul.u32.u64.high %v1726_v16, %v1725_v11, %v12334_v29  ;;  %v1236_v63 = vadd.f32 %v1188_v12, %v943_v55  ;;  %v12367_v12 = vld [vmem:[%s11954_s26 + $0xb8] sm:$0xff] }
 0x227   : > { %749 = vperm.xlu1 %10629, %v12285_v60   ;;  %v12309_v43 = vshrl.u32 %v1635_v6, 30  ;;  %v12321_v49 = vmul.u32.u64.low %v1726_v16, %v1721_v28  ;;  %v12322_v9 = vmul.u32.u64.high %v1726_v16, %v1721_v28, %v12321_v49  ;;  %v1714_v6 = vsel %vm1710_vm8, %v1694_v53, %v1697_v51 }
 0x228   : > { %v12300_v54 = vpop.permute.xlu0 %1363  ;;  %v12356_v52 = vadd.f32 %v1481_v15, %v1236_v63 }
 0x229   : > { %v1736_v62 = vadd.s32 1, %v12322_v9  ;;  %vm1735_vm11 = vc.u32 %v12335_v46, %v12321_v49 }
 0x22a   : > { %1150 = vperm.xlu0 %10669, %v12085_v31   ;;  %v1637_v31 = vshll.u32 %v12309_v43, 30  ;;  %v1889_v55 = vand.u32 2139095040, %v12356_v52 }
 0x22b   : > { %10630 = vset.pattern.permute.xlu1 %v19367_v5  ;;  %v12315_v25 = vpop.permute.xlu1 %1018 }
 0x22c   : > { %1359 = vperm.xlu1 %10630, %v12176_v41   ;;  %v12326_v37 = vpop.permute.xlu0 %1371  ;;  %v1638_v4 = vsub.s32 %v1634_v17, %v1637_v31  ;;  %v1716_v41 = vsel %vm1712_vm9, %v1700_v26, %v1715_v58  ;;  %v1737_v26 = vsel %vm1735_vm11, %v1736_v62, %v12322_v9  ;;  %v1890_v15 = vshrl.u32 %v1889_v55, 23 }
 0x22d   : > { %v1717_v51 = vsel %vm1711_vm10, %v1714_v6, %v1716_v41 }
 0x22e   : > { %1158 = vperm.xlu0 %10669, %v12090_v33   ;;  %v1640_v17 = vsub.s32 0, %v1638_v4  ;;  %v1733_v11 = vmul.u32 %v1726_v16, %v1717_v51  ;;  %v1630_v16 = vadd.s32 %v12226_v22, %v12252_v59  ;;  %v891_v59 = vmul.f32 %v12113_v38, %v12166_v30 }
 0x22f   : > { %v1483_v30 = vmul.f32 %v12124_v48, %v12288_v27 }
 0x230   : > { %10631 = vset.pattern.permute.xlu1 %v19373_v0  ;;  %v12346_v7 = vpop.permute.xlu1 %684  ;;  %v12348_v28 = vpop.permute.xlu0 %1379  ;;  %v9174_v33 = vmin.u32 %v1640_v17, %v1638_v4  ;;  %v1738_v53 = vadd.s32 %v1737_v26, %v1733_v11 }
 0x231   : > { %1074 = vperm.xlu1 %10631, %v12285_v60  }
 0x232   : > { %1166 = vperm.xlu0 %10669, %v12095_v34   ;;  %v1642_v58 = vclz %v9174_v33  ;;  %v1739_v9 = vadd.s32 536870912, %v1738_v53 }
 0x234   : > { %v12359_v35 = vpop.permute.xlu0 %1387  ;;  %v12362_v31 = vpop.permute.xlu1 %689  ;;  %v9175_v23 = vadd.s32 4294967294, %v1642_v58 }
 0x235   : > { %10632 = vset.pattern.permute.xlu1 %v19365_v1 }
 0x236   : > { %754 = vperm.xlu1 %10632, %v12039_v18   ;;  %vm9176_vm12 = vcmp.lt.s32.totalorder %v9175_v23, 0  ;;  %v12374_v18 = vshrl.u32 %v1739_v9, 30 }
 0x237   : > { %v1645_v29 = vsel %vm9176_vm12, 0, %v9175_v23  ;;  %v9185_v23 = vadd.s32 4294967169, %v1890_v15  ;;  %vm1770_vm12 = vweird.f32 %v12147_v2 }
 0x238   : > { %v12369_v34 = vpop.permute.xlu0 %1395  ;;  %v1646_v6 = vsub.s32 32, %v1645_v29  ;;  %v1650_v41 = vsub.s32 4294967266, %v1645_v29  ;;  %v1647_v63 = vshll.u32 %v1638_v4, %v1645_v29  ;;  %v1741_v26 = vshll.u32 %v12374_v18, 30 }
 0x239   : > { %v12376_v62 = vpop.permute.xlu1 %1311  ;;  %v1190_v29 = vmul.f32 %v12120_v45, %v12202_v36  ;;  %v1896_v15 = vadd.s32 1, %v9185_v23  ;;  %v1660_v36 = vsub.s32 4, %v12309_v43 }
 0x23a   : > { %759 = vperm.xlu1 %10632, %v12367_v12   ;;  %v1648_v51 = vshrl.u32 %v1630_v16, %v1646_v6  ;;  %v1651_v33 = vadd.s32 127, %v1650_v41  ;;  %v12383_v22 = vsub.s32 %v1738_v53, %v1741_v26  ;;  %v945_v53 = vadd.f32 %v12116_v42, %v891_v59 }
 0x23b   : > { %vm1897_vm13 = vcmp.gt.s32.totalorder %v1896_v15, 0 }
 0x23c   : > { %v12378_v17 = vpop.permute.xlu0 %1403  ;;  %v1649_v58 = vor.u32 %v1648_v51, %v1647_v63  ;;  %v1652_v11 = vshll.u32 %v1651_v33, 23  ;;  %v1744_v4 = vsub.s32 0, %v12383_v22  ;;  %v1238_v26 = vadd.f32 %v1190_v29, %v945_v53 }
 0x23d   : > { %v1898_v53 = vsel %vm1897_vm13, %v1896_v15, 0 }
 0x23e   : > { %10633 = vset.pattern.permute.xlu1 %v19367_v5  ;;  %v1653_v9 = vor.u32 4788187, %v1652_v11  ;;  %v12392_v16 = vpop.permute.xlu1 %1026  ;;  %v1656_v41 = vcvt.s32.f32 %v1649_v58  ;;  %v12404_v23 = vadd.f32 %v1483_v30, %v1238_v26  ;;  %v12425_v30 = vld [vmem:[%s11954_s26 + $0xc8] sm:$0xff]  ;;  %v1734_v26 = vadd.s32 %v12321_v49, %v12335_v46 }
 0x23f   : > { %1367 = vperm.xlu1 %10633, %v12285_v60   ;;  %v9178_v60 = vmin.u32 %v1744_v4, %v12383_v22  ;;  %v12436_v15 = vand.u32 31, %v1898_v53  ;;  %v1485_v49 = vmul.f32 %v12124_v48, %v12376_v62 }
 0x240   : > { %v12387_v55 = vpop.permute.xlu0 %1411  ;;  %v1654_v6 = vand.u32 2147483647, %v1653_v9  ;;  %19713 = vst [vmem:[#allocation38_spill] sm:$0xff] %v12404_v23  ;;  %v19714_v9 = vand.u32 2147483647, %v12139_v57 }
 0x241   : > { %v1746_v33 = vclz %v9178_v60  ;;  %v888_v60 = vmul.f32 %v12113_v38, %v12128_v50 }
 0x242   : > { %v1657_v51 = vmul.f32 %v1656_v41, %v1654_v6  ;;  %vm12413_vm15 = vcmp.le.f32.partialorder %v19714_v9, 0.7853982  ;;  %v1661_v6 = vsel %vm1576_vm14, %v1660_v36, %v12309_v43 }
 0x243   : > { %10634 = vset.pattern.permute.xlu1 %v19373_v0  ;;  %v9179_v11 = vadd.s32 4294967294, %v1746_v33  ;;  %v12406_v59 = vpop.permute.xlu1 %694  ;;  %v893_v33 = vmul.f32 %v12113_v38, %v12268_v40 }
 0x244   : > { %1082 = vperm.xlu1 %10634, %v12367_v12   ;;  %v12400_v63 = vpop.permute.xlu0 %1419  ;;  %v1658_v58 = vxor.u32 2147483648, %v1657_v51 }
 0x245   : > { %vm9180_vm0 = vcmp.lt.s32.totalorder %v9179_v11, 0 }
 0x246   : > { %v1659_v29 = vsel %vm1576_vm14, %v1658_v58, %v1657_v51  ;;  %v1663_v51 = vsel %vm12413_vm15, 0, %v1661_v6  ;;  %v1749_v43 = vsel %vm9180_vm0, 0, %v9179_v11  ;;  %v1192_v58 = vmul.f32 %v12120_v45, %v12315_v25 }
 0x247   : > { %v1662_v41 = vsel %vm12413_vm15, %v12139_v57, %v1659_v29  ;;  %v1750_v50 = vsub.s32 32, %v1749_v43  ;;  %v1754_v40 = vsub.s32 4294967266, %v1749_v43  ;;  %v890_v11 = vmul.f32 %v12113_v38, %v12159_v13  ;;  %v12443_v9 = vpop.permute.xlu1 %699 }
 0x248   : > { %10635 = vset.pattern.permute.xlu1 %v19365_v1  ;;  %v12409_v27 = vpop.permute.xlu0 %1427  ;;  %10674 = vcosq.f32 %v1662_v41  ;;  %v1667_v4 = vadd.s32 3, %v1663_v51  ;;  %v947_v6 = vadd.f32 %v12116_v42, %v893_v33  ;;  %v1751_v46 = vshll.u32 %v12383_v22, %v1749_v43 }
 0x249   : > { %764 = vperm.xlu1 %10635, %v12044_v19   ;;  %v2097_v19 = vand.u32 2139095040, %v12404_v23  ;;  %10676 = vsinq.f32 %v1662_v41  ;;  %v1752_v29 = vshrl.u32 %v1734_v26, %v1750_v50  ;;  %v1755_v41 = vadd.s32 127, %v1754_v40 }
 0x24a   : > { %v12450_v25 = vadd.f32 %v12116_v42, %v888_v60  ;;  %v12459_v51 = vsub.s32 32, %v12436_v15  ;;  %v1240_v33 = vadd.f32 %v1192_v58, %v947_v6  ;;  %v12464_v60 = vmul.f32 %v12124_v48, %v12156_v10 }
 0x24b   : > { %v2098_v13 = vshrl.u32 %v2097_v19, 23  ;;  %v1753_v62 = vor.u32 %v1752_v29, %v1751_v46  ;;  %v1756_v22 = vshll.u32 %v1755_v41, 23  ;;  %v12467_v43 = vadd.f32 %v12116_v42, %v890_v11 }
 0x24c   : > { %v12432_v36 = vpop.permute.xlu0 %1435  ;;  %v1668_v3 = vand.u32 3, %v1667_v4  ;;  %v12474_v19 = vmul.f32 %v12124_v48, %v12163_v20  ;;  %v12478_v26 = vmul.f32 %v12124_v48, %v12171_v32  ;;  %v12480_v10 = vadd.f32 %v1485_v49, %v1240_v33  ;;  %v1320_v4 = vpop.permute.xlu1 %1319 }
 0x24d   : > { %19717 = vst [vmem:[#allocation39_spill] sm:$0xff] %v12432_v36  ;;  %769 = vperm.xlu1 %10635, %v12425_v30   ;;  %v19721_v50 = vand.u32 2147483647, %v12147_v2  ;;  %v1757_v40 = vor.u32 4788187, %v1756_v22  ;;  %v12492_v11 = vmul.f32 %v12124_v48, %v12192_v61  ;;  %v12496_v20 = vmul.f32 %v12113_v38, %v12239_v24 }
 0x24e   : > { %19719 = vst [vmem:[#allocation41_spill] sm:$0xff] %v12478_v26  ;;  %19720 = vst [vmem:[#allocation42_spill] sm:$0xff] %v12480_v10  ;;  %v9193_v32 = vadd.s32 4294967169, %v2098_v13  ;;  %v1912_v49 = vshll.u32 %v19369_v44, %v12436_v15  ;;  %v19726_v46 = vmov 920167782   ;;  %v1760_v33 = vcvt.s32.f32 %v1753_v62 }
 0x24f   : > { %vm12484_vm4 = vcmp.le.f32.partialorder %v19721_v50, 0.7853982  ;;  %19724 = vst [vmem:[#allocation43_spill] sm:$0xff] %v12492_v11  ;;  %v1758_v41 = vand.u32 2147483647, %v1757_v40  ;;  %v12506_v61 = vshll.u32 %v19726_v46, %v12436_v15  ;;  %vm1673_vm5 = vcmp.eq.s32.totalorder %v1668_v3, 2 }
 0x250   : > { %v12456_v1 = vpop.permute.xlu0 %1443  ;;  %v19727_v24 = vmov 1326507024   ;;  %v1764_v40 = vsub.s32 4, %v12374_v18  ;;  %v2104_v62 = vadd.s32 1, %v9193_v32  ;;  %v895_v26 = vmul.f32 %v12113_v38, %v12362_v31 }
 0x251   : > { %19718 = vst [vmem:[#allocation40_spill] sm:$0xff] %v12456_v1  ;;  %10636 = vset.pattern.permute.xlu1 %v19367_v5  ;;  %v12510_v13 = vshrl.u32 %v19727_v24, %v12459_v51  ;;  %v2305_v5 = vand.u32 2139095040, %v12480_v10  ;;  %v1761_v11 = vmul.f32 %v1760_v33, %v1758_v41  ;;  %vm1670_vm6 = vcmp.eq.s32.totalorder %v1668_v3, 0  ;;  %v12527_v33 = vpop.permute.xlu1 %1034 }
 0x252   : > { %1375 = vperm.xlu1 %10636, %v12367_v12   ;;  %v12488_v12 = vshrl.u32 %v1898_v53, 5  ;;  %v10675_v6 = vpop.eup %10674  ;;  %v1913_v53 = vshrl.u32 %v19726_v46, %v12459_v51  ;;  %vm1669_vm8 = vcmp.lt.s32.totalorder %v1668_v3, 2  ;;  %v1194_v32 = vmul.f32 %v12120_v45, %v12392_v16 }
 0x253   : > { %v10677_v22 = vpop.eup %10676  ;;  %v1674_v50 = vxor.u32 2147483648, %v10675_v6  ;;  %v1762_v10 = vxor.u32 2147483648, %v1761_v11  ;;  %v1917_v41 = vor.u32 %v12510_v13, %v12506_v61  ;;  %v1765_v3 = vsel %vm1680_vm3, %v1764_v40, %v12374_v18 }
 0x254   : > { %v12498_v29 = vpop.permute.xlu0 %1451  ;;  %v1671_v44 = vxor.u32 2147483648, %v10677_v22  ;;  %v12520_v23 = vor.u32 %v1913_v53, %v1912_v49  ;;  %vm1921_vm7 = vcmp.lt.s32.totalorder %v12488_v12, 4  ;;  %vm2105_vm9 = vcmp.gt.s32.totalorder %v2104_v62, 0 }
 0x255   : > { %19725 = vst [vmem:[#allocation44_spill] sm:$0xff] %v12498_v29  ;;  %v1675_v29 = vsel %vm1673_vm5, %v1674_v50, %v10677_v22  ;;  %v2306_v50 = vshrl.u32 %v2305_v5, 23  ;;  %v949_v16 = vadd.f32 %v12116_v42, %v895_v26  ;;  %v19730_v18 = vmov 683565275  }
 0x256   : > { %10637 = vset.pattern.permute.xlu1 %v19373_v0  ;;  %v1672_v0 = vsel %vm1670_vm6, %v10675_v6, %v1671_v44  ;;  %v1763_v44 = vsel %vm1680_vm3, %v1762_v10, %v1761_v11  ;;  %v19729_v6 = vmov 0   ;;  %v12546_v10 = vld [vmem:[%s11954_s26 + $0xd8] sm:$0xff]  ;;  %v1903_v11 = vshll.u32 %v19730_v18, %v12436_v15 }
 0x257   : > { %1090 = vperm.xlu1 %10637, %v12425_v30   ;;  %v1676_v31 = vsel %vm1669_vm8, %v1672_v0, %v1675_v29  ;;  %v1487_v0 = vmul.f32 %v12124_v48, %v1320_v4  ;;  %v1766_v5 = vsel %vm12484_vm4, %v12147_v2, %v1763_v44  ;;  %v19731_v29 = vmov 2475754826  }
 0x258   : > { %v12518_v1 = vpop.permute.xlu0 %1459  ;;  %v1677_v49 = vsel %vm1666_vm2, nan, %v1676_v31  ;;  %v1904_v53 = vshrl.u32 %v19731_v29, %v12459_v51  ;;  %v19732_v26 = vmov 2131351028   ;;  %v19733_v61 = vmov 2102212464  }
 0x259   : > { %19728 = vst [vmem:[#allocation45_spill] sm:$0xff] %v12518_v1  ;;  %9837 = vmatprep.mubr.msk.f32.mxu0 %vm6619_vm1, %v1677_v49  ;;  %v1907_v4 = vshrl.u32 %v19732_v26, %v12459_v51  ;;  %v1910_v13 = vshrl.u32 %v19733_v61, %v12459_v51  ;;  %v1242_v40 = vadd.f32 %v1194_v32, %v949_v16  ;;  %v1767_v31 = vsel %vm12484_vm4, 0, %v1765_v3  ;;  %v12568_v32 = vpop.permute.xlu1 %704 }
 0x25a   : > { %10678 = vcosq.f32 %v1766_v5  ;;  %v9201_v49 = vadd.s32 4294967169, %v2306_v50  ;;  %v1906_v44 = vshll.u32 %v19731_v29, %v12436_v15  ;;  %v1909_v22 = vshll.u32 %v19732_v26, %v12436_v15 }
 0x25b   : > { %10638 = vset.pattern.permute.xlu1 %v19729_v6  ;;  %10680 = vsinq.f32 %v1766_v5  ;;  %v12564_v1 = vsel %vm2105_vm9, %v2104_v62, 0  ;;  %v12566_v36 = vadd.f32 %v1487_v0, %v1242_v40  ;;  %v19735_v50 = vand.u32 2147483647, %v12356_v52 }
 0x25c   : > { %774 = vperm.xlu1 %10638, %v12051_v21   ;;  %v1771_v16 = vadd.s32 3, %v1767_v31  ;;  %v12574_v5 = vor.u32 %v1904_v53, %v1903_v11  ;;  %v12578_v15 = vor.u32 %v1910_v13, %v1909_v22  ;;  %v1927_v62 = vsel %vm1921_vm7, %v12520_v23, 920167782 }
 0x25d   : > { %v999_v57 = vpop.permute.xlu0 %998  ;;  %19734 = vst [vmem:[#allocation46_spill] sm:$0xff] %v12566_v36  ;;  %v1893_v3 = vand.u32 8388607, %v19735_v50  ;;  %v12585_v0 = vmul.f32 %v12124_v48, %v12204_v39  ;;  %v1931_v11 = vsel %vm1921_vm7, %v1917_v41, 1326507024  ;;  %v12598_v22 = vadd.f32 %v12116_v42, %v12496_v20 }
 0x25e   : > { %v1187_v21 = vmul.f32 %v12120_v45, %v999_v57  ;;  %v12576_v57 = vor.u32 %v1907_v4, %v1906_v44  ;;  %v12602_v53 = vmul.f32 %v12124_v48, %v12262_v8  ;;  %v2312_v39 = vadd.s32 1, %v9201_v49  ;;  %v12628_v44 = vpop.permute.xlu1 %709 }
 0x25f   : > { %v12605_v4 = vand.u32 31, %v12564_v1  ;;  %v19739_v13 = vmov 2   ;;  %vm1918_vm10 = vcmp.lt.s32.totalorder %v12488_v12, 1  ;;  %vm1920_vm11 = vcmp.lt.s32.totalorder %v12488_v12, 3 }
 0x260   : > { %v1235_v58 = vadd.f32 %v1187_v21, %v12450_v25  ;;  %779 = vperm.xlu1 %10638, %v12546_v10   ;;  %v12589_v25 = vmul.f32 %v12124_v48, %v12232_v14  ;;  %19737 = vst [vmem:[#allocation48_spill] sm:$0xff] %v12602_v53  ;;  %v2513_v14 = vand.u32 2139095040, %v12566_v36  ;;  %v1894_v8 = vor.u32 8388608, %v1893_v3 }
 0x261   : > { %19738 = vst [vmem:[#allocation49_spill] sm:$0xff] %v12605_v4  ;;  %v1007_v20 = vpop.permute.xlu0 %1006  ;;  %v1926_v41 = vsel %vm1918_vm10, %v12574_v5, %v12576_v57  ;;  %v1928_v31 = vsel %vm1920_vm11, %v12578_v15, %v1927_v62  ;;  %v12622_v21 = vmul.f32 %v12124_v48, %v12282_v56  ;;  %v12626_v49 = vmul.f32 %v12124_v48, %v12300_v54 }
 0x262   : > { %19736 = vst [vmem:[#allocation47_spill] sm:$0xff] %v12589_v25  ;;  %v12592_v40 = vadd.f32 %v12454_v47, %v1235_v58  ;;  %v1772_v47 = vand.u32 3, %v1771_v16  ;;  %v1932_v58 = vsel %vm1920_vm11, %v12520_v23, %v1931_v11  ;;  %v12639_v50 = vmul.f32 %v12124_v48, %v12326_v37 }
 0x263   : > { %19740 = vst [vmem:[#allocation50_spill] sm:$0xff] %v12622_v21  ;;  %19741 = vst [vmem:[#allocation51_spill] sm:$0xff] %v12626_v49  ;;  %v894_v56 = vmul.f32 %v12113_v38, %v12346_v7  ;;  %vm2313_vm13 = vcmp.gt.s32.totalorder %v2312_v39, 0  ;;  %vm1919_vm14 = vcmp.lt.s32.totalorder %v12488_v12, 2  ;;  %v12645_v3 = vsub.s32 32, %v12605_v4 }
 0x264   : > { %10639 = vset.pattern.permute.xlu1 %v19739_v13  ;;  %19742 = vst [vmem:[#allocation52_spill] sm:$0xff] %v12639_v50  ;;  %v10679_v54 = vpop.eup %10678  ;;  %v12649_v16 = vmul.f32 %v12124_v48, %v12348_v28  ;;  %v2514_v62 = vshrl.u32 %v2513_v14, 23  ;;  %v1929_v23 = vsel %vm1919_vm14, %v1926_v41, %v1928_v31  ;;  %vm1773_vm15 = vcmp.lt.s32.totalorder %v1772_v47, 2 }
 0x265   : > { %1383 = vperm.xlu1 %10639, %v12425_v30   ;;  %v1930_v30 = vsel %vm1918_vm10, %v12576_v57, %v12578_v15  ;;  %v10681_v37 = vpop.eup %10680  ;;  %v1778_v11 = vxor.u32 2147483648, %v10679_v54  ;;  %v19744_v50 = vmov 1   ;;  %v12656_v36 = vshll.u32 %v1894_v8, 8  ;;  %v1015_v41 = vpop.permute.xlu0 %1014 }
 0x266   : > { %19743 = vst [vmem:[#allocation53_spill] sm:$0xff] %v12649_v16  ;;  %v1933_v7 = vsel %vm1919_vm14, %v1930_v30, %v1932_v58  ;;  %v2314_v49 = vsel %vm2313_vm13, %v2312_v39, 0  ;;  %vm1774_vm0 = vcmp.eq.s32.totalorder %v1772_v47, 0  ;;  %v1775_v21 = vxor.u32 2147483648, %v10681_v37  ;;  %v1328_v8 = vpop.permute.xlu1 %1327 }
 0x267   : > { %vm1777_vm2 = vcmp.eq.s32.totalorder %v1772_v47, 2  ;;  %v897_v28 = vmul.f32 %v12113_v38, %v12443_v9  ;;  %v12662_v31 = vmul.u32.u64.low %v12656_v36, %v1929_v23  ;;  %v12663_v16 = vmul.u32.u64.high %v12656_v36, %v1929_v23, %v12662_v31 }
 0x268   : > { %v1779_v14 = vsel %vm1777_vm2, %v1778_v11, %v10681_v37  ;;  %v9209_v26 = vadd.s32 4294967169, %v2514_v62  ;;  %v1776_v30 = vsel %vm1774_vm0, %v10679_v54, %v1775_v21  ;;  %v2121_v53 = vshrl.u32 %v19726_v46, %v12645_v3  ;;  %v11058_v11 = vld [vmem:[%s11954_s26 + $0xe0] sm:$0xff] }
 0x269   : > { %10640 = vset.pattern.permute.xlu1 %v19744_v50  ;;  %v12667_v39 = vmul.u32.u64.low %v12656_v36, %v1933_v7  ;;  %v12668_v58 = vmul.u32.u64.high %v12656_v36, %v1933_v7, %v12667_v39  ;;  %v12672_v25 = vand.u32 31, %v2314_v49  ;;  %v1196_v9 = vmul.f32 %v12120_v45, %v12527_v33 }
 0x26a   : > { %1098 = vperm.xlu1 %10640, %v12546_v10   ;;  %v1780_v23 = vsel %vm1773_vm15, %v1776_v30, %v1779_v14  ;;  %v12678_v62 = vshrl.u32 %v12564_v1, 5  ;;  %v2120_v21 = vshll.u32 %v19733_v61, %v12605_v4  ;;  %v12683_v54 = vadd.f32 %v12116_v42, %v894_v56  ;;  %v12703_v30 = vld [vmem:[%s11954_s26 + $0xe8] sm:$0xff] }
 0x26b   : > { %19745 = vst [vmem:[#allocation54_spill] sm:$0xff] %v12672_v25  ;;  %v1781_v37 = vsel %vm1770_vm12, nan, %v1780_v23  ;;  %v2124_v33 = vshrl.u32 %v19727_v24, %v12645_v3  ;;  %v951_v47 = vadd.f32 %v12116_v42, %v897_v28  ;;  %v1489_v1 = vmul.f32 %v12124_v48, %v1328_v8  ;;  %v1023_v23 = vpop.permute.xlu0 %1022 }
 0x26c   : > { %19746 = vst [vmem:[#allocation55_spill] sm:$0xff] %v12678_v62  ;;  %9838 = vmatmul.mubr.msk.f32.vlgmr.msra.gmra.mrb[0].mxu0 %vm6619_vm1, %v1781_v37  ;;  %v1923_v56 = vsel %vm1921_vm7, %v12578_v15, 2102212464  ;;  %v12699_v2 = vmul.f32 %v12124_v48, %v12359_v35  ;;  %v2520_v7 = vadd.s32 1, %v9209_v26  ;;  %v1189_v14 = vmul.f32 %v12120_v45, %v1007_v20  ;;  %v12719_v26 = vpop.permute.xlu1 %1042 }
 0x26d   : > { %v1902_v42 = vshrl.u32 %v19730_v18, %v12459_v51  ;;  %v12707_v28 = vor.u32 %v2121_v53, %v2120_v21  ;;  %v2123_v8 = vshll.u32 %v19726_v46, %v12605_v4  ;;  %v12712_v39 = vsub.s32 32, %v12672_v25 }
 0x26e   : > { %10641 = vset.pattern.permute.xlu1 %v19729_v6  ;;  %19747 = vst [vmem:[#allocation56_spill] sm:$0xff] %v12699_v2  ;;  %v1244_v15 = vadd.f32 %v1196_v9, %v951_v47  ;;  %vm2129_vm3 = vcmp.lt.s32.totalorder %v12678_v62, 4  ;;  %v12717_v35 = vmul.f32 %v12124_v48, %v12369_v34  ;;  %v1924_v53 = vsel %vm1920_vm11, %v12576_v57, %v1923_v56 }
 0x26f   : > { %784 = vperm.xlu1 %10641, %v11058_v11   ;;  %19748 = vst [vmem:[#allocation57_spill] sm:$0xff] %v12707_v28  ;;  %19749 = vst [vmem:[#allocation58_spill] sm:$0xff] %v12712_v39  ;;  %v1922_v51 = vsel %vm1918_vm10, %v1902_v42, %v12574_v5  ;;  %v2125_v20 = vor.u32 %v2124_v33, %v2123_v8  ;;  %v1191_v9 = vmul.f32 %v12120_v45, %v1015_v41 }
 0x270   : > { %19750 = vst [vmem:[#allocation59_spill] sm:$0xff] %v12717_v35  ;;  %v12727_v21 = vadd.f32 %v1489_v1, %v1244_v15  ;;  %v1944_v34 = vadd.s32 1, %v12663_v16  ;;  %vm2521_vm4 = vcmp.gt.s32.totalorder %v2520_v7, 0  ;;  %v1785_v37 = vand.u32 2139095040, %v12592_v40  ;;  %v12762_v15 = vpop.permute.xlu1 %714  ;;  %v12868_v35 = vld [vmem:[%s11954_s26 + $0xf8] sm:$0xff] }
 0x271   : > { %v1237_v47 = vadd.f32 %v1189_v14, %v12467_v43  ;;  %vm1943_vm5 = vc.u32 %v12668_v58, %v12662_v31  ;;  %v12739_v5 = vsel %vm2129_vm3, %v12707_v28, 920167782  ;;  %v2329_v57 = vshrl.u32 %v19726_v46, %v12712_v39 }
 0x272   : > { %19751 = vst [vmem:[#allocation60_spill] sm:$0xff] %v12727_v21  ;;  %19752 = vst [vmem:[#allocation61_spill] sm:$0xff] %v12739_v5  ;;  %v896_v41 = vmul.f32 %v12113_v38, %v12406_v59  ;;  %v1925_v33 = vsel %vm1919_vm14, %v1922_v51, %v1924_v53  ;;  %v12747_v1 = vshrl.u32 %v2314_v49, 5  ;;  %v2328_v43 = vshll.u32 %v19733_v61, %v12672_v25  ;;  %v1031_v38 = vpop.permute.xlu0 %1030 }
 0x273   : > { %789 = vperm.xlu1 %10641, %v12703_v30   ;;  %v2331_v11 = vshll.u32 %v19726_v46, %v12672_v25  ;;  %v2332_v56 = vshrl.u32 %v19727_v24, %v12712_v39  ;;  %v2522_v14 = vsel %vm2521_vm4, %v2520_v7, 0  ;;  %v2721_v42 = vand.u32 2139095040, %v12727_v21 }
 0x274   : > { %19753 = vst [vmem:[#allocation62_spill] sm:$0xff] %v12747_v1  ;;  %v1239_v8 = vadd.f32 %v1191_v9, %v12598_v22  ;;  %v1945_v59 = vsel %vm1943_vm5, %v1944_v34, %v12663_v16  ;;  %v1786_v12 = vshrl.u32 %v1785_v37, 23  ;;  %v12760_v49 = vadd.f32 %v12464_v60, %v1237_v47 }
 0x275   : > { %v1193_v51 = vmul.f32 %v12120_v45, %v1023_v23  ;;  %v1941_v7 = vmul.u32 %v12656_v36, %v1925_v33  ;;  %v12769_v22 = vsel %vm2129_vm3, %v2125_v20, 1326507024  ;;  %v12771_v53 = vor.u32 %v2329_v57, %v2328_v43  ;;  %v12789_v23 = vld [vmem:[#allocation8] ss:$0 sm:$0xff] }
 0x276   : > { %19754 = vst [vmem:[#allocation63_spill] sm:$0xff] %v12769_v22  ;;  %v12775_v16 = vmul.f32 %v12124_v48, %v12378_v17  ;;  %v12779_v60 = vmul.f32 %v12124_v48, %v12387_v55  ;;  %v2333_v9 = vor.u32 %v2332_v56, %v2331_v11  ;;  %v12783_v45 = vmul.f32 %v12124_v48, %v12400_v63  ;;  %v1039_v43 = vpop.permute.xlu0 %1038  ;;  %v12839_v11 = vld [vmem:[#allocation7 + $0x1] ss:$0 sm:$0xff] }
 0x277   : > { %10642 = vset.pattern.permute.xlu1 %v19739_v13  ;;  %19755 = vst [vmem:[#allocation64_spill] sm:$0xff] %v12771_v53  ;;  %v12785_v36 = vand.u32 31, %v2522_v14  ;;  %v950_v20 = vadd.f32 %v12789_v23, %v896_v41  ;;  %v12794_v17 = vmul.f32 %v12124_v48, %v12409_v27  ;;  %v2722_v34 = vshrl.u32 %v2721_v42, 23  ;;  %v12808_v48 = vld [vmem:[#allocation7 + $0x2] ss:$0 sm:$0xff] }
 0x278   : > { %1391 = vperm.xlu1 %10642, %v12546_v10   ;;  %19756 = vst [vmem:[#allocation65_spill] sm:$0xff] %v12775_v16  ;;  %19757 = vst [vmem:[#allocation66_spill] sm:$0xff] %v12779_v60  ;;  %v12787_v10 = vadd.s32 %v1945_v59, %v1941_v7  ;;  %v12797_v55 = vadd.f32 %v12474_v19, %v1239_v8  ;;  %vm2337_vm6 = vcmp.lt.s32.totalorder %v12747_v1, 4  ;;  %v9181_v63 = vadd.s32 4294967169, %v1786_v12  ;;  %v19763_v27 = vld [vmem:[#allocation39_spill] sm:$0xff]  ;;  %v19768_v8 = vld [vmem:[#allocation40_spill] sm:$0xff]  ;;  %v12831_v12 = vpop.permute.xlu1 %719 }
 0x279   : > { %19758 = vst [vmem:[#allocation67_spill] sm:$0xff] %v12783_v45  ;;  %19759 = vst [vmem:[#allocation68_spill] sm:$0xff] %v12785_v36  ;;  %v1993_v37 = vand.u32 2139095040, %v12760_v49  ;;  %v1241_v47 = vadd.f32 %v1193_v51, %v12683_v54  ;;  %v12806_v57 = vsel %vm2337_vm6, %v12771_v53, 920167782  ;;  %v12812_v19 = vmul.f32 %v12808_v48, %v19763_v27  ;;  %v19765_v54 = vld [vmem:[#allocation38_spill] sm:$0xff] }
 0x27a   : > { %19760 = vst [vmem:[#allocation69_spill] sm:$0xff] %v12794_v17  ;;  %19761 = vst [vmem:[#allocation70_spill] sm:$0xff] %v12797_v55  ;;  %v12814_v41 = vld [vmem:[#allocation7] ss:$0 sm:$0xff]  ;;  %v12822_v56 = vsel %vm2337_vm6, %v2333_v9, 1326507024  ;;  %v12829_v59 = vmul.f32 %v12808_v48, %v19768_v8  ;;  %v1197_v60 = vmul.f32 %v12839_v11, %v1039_v43 }
 0x27b   : > { %19762 = vst [vmem:[#allocation71_spill] sm:$0xff] %v12806_v57  ;;  %19764 = vst [vmem:[#allocation39_spill] sm:$0xff] %v12812_v19  ;;  %v898_v33 = vmul.f32 %v12814_v41, %v12568_v32  ;;  %v12825_v42 = vsub.s32 32, %v12785_v36  ;;  %v1947_v32 = vadd.s32 536870912, %v12787_v10  ;;  %v19770_v51 = vld [vmem:[#allocation44_spill] sm:$0xff]  ;;  %v9217_v27 = vadd.s32 4294967169, %v2722_v34 }
 0x27c   : > { %10643 = vset.pattern.permute.xlu1 %v19744_v50  ;;  %19766 = vst [vmem:[#allocation72_spill] sm:$0xff] %v12822_v56  ;;  %19769 = vst [vmem:[#allocation40_spill] sm:$0xff] %v12829_v59  ;;  %v12836_v7 = vmul.f32 %v12808_v48, %v19770_v51  ;;  %v2201_v9 = vand.u32 2139095040, %v12797_v55  ;;  %v1195_v19 = vmul.f32 %v12839_v11, %v1031_v38  ;;  %v1792_v17 = vadd.s32 1, %v9181_v63  ;;  %v19772_v8 = vld [vmem:[#allocation41_spill] sm:$0xff]  ;;  %v1336_v56 = vpop.permute.xlu1 %1335 }
 0x27d   : > { %1106 = vperm.xlu1 %10643, %v12703_v30   ;;  %19767 = vst [vmem:[#allocation73_spill] sm:$0xff] %v12825_v42  ;;  %v1994_v45 = vshrl.u32 %v1993_v37, 23  ;;  %v12843_v59 = vadd.f32 %v19772_v8, %v1241_v47  ;;  %v12846_v16 = vshrl.u32 %v2522_v14, 5  ;;  %v952_v51 = vadd.f32 %v12789_v23, %v898_v33  ;;  %v11063_v47 = vld [vmem:[%s11954_s26 + $0xf0] sm:$0xff]  ;;  %v12995_v55 = vld [vmem:[%s11954_s26 + $0x108] sm:$0xff] }
 0x27e   : > { %19771 = vst [vmem:[#allocation44_spill] sm:$0xff] %v12836_v7  ;;  %v899_v34 = vmul.f32 %v12814_v41, %v12628_v44  ;;  %v19775_v7 = vand.u32 2147483647, %v19765_v54  ;;  %v2536_v63 = vshll.u32 %v19733_v61, %v12785_v36  ;;  %v2537_v37 = vshrl.u32 %v19726_v46, %v12825_v42 }
 0x27f   : > { %19773 = vst [vmem:[#allocation41_spill] sm:$0xff] %v12843_v59  ;;  %19774 = vst [vmem:[#allocation74_spill] sm:$0xff] %v12846_v16  ;;  %v2540_v14 = vshrl.u32 %v19727_v24, %v12825_v42  ;;  %v12863_v33 = vshrl.u32 %v1947_v32, 30  ;;  %v2539_v44 = vshll.u32 %v19726_v46, %v12785_v36  ;;  %v2728_v43 = vadd.s32 1, %v9217_v27  ;;  %v19777_v42 = vld [vmem:[#allocation45_spill] sm:$0xff] }
 0x280   : > { %v12854_v38 = vand.u32 8388607, %v19775_v7  ;;  %v2202_v8 = vshrl.u32 %v2201_v9, 23  ;;  %v1243_v7 = vadd.f32 %v1195_v19, %v950_v20  ;;  %vm1793_vm7 = vcmp.gt.s32.totalorder %v1792_v17, 0 }
 0x281   : > { %10644 = vset.pattern.permute.xlu1 %v19729_v6  ;;  %v9189_v2 = vadd.s32 4294967169, %v1994_v45  ;;  %v2409_v21 = vand.u32 2139095040, %v12843_v59  ;;  %v1245_v53 = vadd.f32 %v1197_v60, %v952_v51  ;;  %vm19482_vm8 = vcmp.lt.s32.totalorder %v12846_v16, 4 }
 0x282   : > { %19776 = vst [vmem:[#allocation75_spill] sm:$0xff] %v12854_v38  ;;  %794 = vperm.xlu1 %10644, %v11063_v47   ;;  %v12874_v32 = vmul.f32 %v12808_v48, %v19777_v42  ;;  %v953_v47 = vadd.f32 %v12789_v23, %v899_v34  ;;  %v12879_v27 = vadd.s32 %v12662_v31, %v12668_v58  ;;  %v19387_v60 = vand.u32 2147483647, %v12592_v40  ;;  %v19780_v42 = vld [vmem:[#allocation43_spill] sm:$0xff] }
 0x283   : > { %v12881_v20 = vor.u32 %v2537_v37, %v2536_v63  ;;  %v2541_v19 = vor.u32 %v2540_v14, %v2539_v44  ;;  %v1949_v45 = vshll.u32 %v12863_v33, 30  ;;  %v1794_v9 = vsel %vm1793_vm7, %v1792_v17, 0 }
 0x284   : > { %19778 = vst [vmem:[#allocation45_spill] sm:$0xff] %v12874_v32  ;;  %vm2729_vm9 = vcmp.gt.s32.totalorder %v2728_v43, 0  ;;  %v9197_v51 = vadd.s32 4294967169, %v2202_v8  ;;  %v12887_v32 = vadd.f32 %v19780_v42, %v1243_v7  ;;  %v2000_v34 = vadd.s32 1, %v9189_v2 }
 0x285   : > { %19779 = vst [vmem:[#allocation76_spill] sm:$0xff] %v12881_v20  ;;  %v2410_v36 = vshrl.u32 %v2409_v21, 23  ;;  %v12890_v31 = vadd.f32 %v12585_v0, %v1245_v53  ;;  %v1198_v63 = vmul.f32 %v12839_v11, %v12719_v26  ;;  %v12897_v37 = vshrl.u32 %v19730_v18, %v12645_v3  ;;  %v12909_v53 = vpop.permute.xlu1 %1050 }
 0x286   : > { %799 = vperm.xlu1 %10644, %v12868_v35   ;;  %19781 = vst [vmem:[#allocation43_spill] sm:$0xff] %v12887_v32  ;;  %v12901_v17 = vshll.u32 %v19730_v18, %v12605_v4  ;;  %v12905_v2 = vshrl.u32 %v19731_v29, %v12645_v3  ;;  %v12907_v21 = vand.u32 31, %v1794_v9  ;;  %v2730_v0 = vsel %vm2729_vm9, %v2728_v43, 0 }
 0x287   : > { %19782 = vst [vmem:[#allocation77_spill] sm:$0xff] %v12890_v31  ;;  %19783 = vst [vmem:[#allocation78_spill] sm:$0xff] %v12897_v37  ;;  %v12914_v26 = vand.u32 8388607, %v19387_v60  ;;  %v12917_v14 = vsub.s32 %v12787_v10, %v1949_v45  ;;  %v12922_v44 = vsel %vm19482_vm8, %v12881_v20, 920167782  ;;  %v1491_v10 = vmul.f32 %v12808_v48, %v1336_v56  ;;  %v1047_v20 = vpop.permute.xlu0 %1046 }
 0x288   : > { %19784 = vst [vmem:[#allocation79_spill] sm:$0xff] %v12905_v2  ;;  %19785 = vst [vmem:[#allocation80_spill] sm:$0xff] %v12922_v44  ;;  %v12926_v8 = vsel %vm19482_vm8, %v2541_v19, 1326507024  ;;  %v2208_v43 = vadd.s32 1, %v9197_v51  ;;  %v2617_v7 = vand.u32 2139095040, %v12887_v32  ;;  %v900_v60 = vmul.f32 %v12814_v41, %v12762_v15 }
 0x289   : > { %19786 = vst [vmem:[#allocation81_spill] sm:$0xff] %v12926_v8  ;;  %vm2001_vm10 = vcmp.gt.s32.totalorder %v2000_v34, 0  ;;  %v9205_v42 = vadd.s32 4294967169, %v2410_v36  ;;  %v2825_v58 = vand.u32 2139095040, %v12890_v31  ;;  %v12932_v45 = vand.u32 31, %v2730_v0 }
 0x28a   : > { %10645 = vset.pattern.permute.xlu1 %v19739_v13  ;;  %v1972_v19 = vsub.s32 4, %v12863_v33  ;;  %v12939_v51 = vshll.u32 %v19731_v29, %v12605_v4  ;;  %v1246_v36 = vadd.f32 %v1198_v63, %v953_v47  ;;  %v12946_v32 = vshrl.u32 %v1794_v9, 5  ;;  %v725_v47 = vpop.permute.xlu1 %724 }
 0x28b   : > { %1399 = vperm.xlu1 %10645, %v12703_v30   ;;  %19787 = vst [vmem:[#allocation82_spill] sm:$0xff] %v12932_v45  ;;  %v12942_v30 = vsub.s32 32, %v12907_v21  ;;  %v2002_v8 = vsel %vm2001_vm10, %v2000_v34, 0  ;;  %vm2209_vm11 = vcmp.gt.s32.totalorder %v2208_v43, 0  ;;  %v2618_v15 = vshrl.u32 %v2617_v7, 23  ;;  %v1055_v54 = vpop.permute.xlu0 %1054 }
 0x28c   : > { %19788 = vst [vmem:[#allocation83_spill] sm:$0xff] %v12939_v51  ;;  %vm1888_vm12 = vcmp.lt.s32.totalorder %v12356_v52, 0  ;;  %v2416_v44 = vadd.s32 1, %v9205_v42  ;;  %v2826_v16 = vshrl.u32 %v2825_v58, 23  ;;  %v12950_v59 = vadd.f32 %v1491_v10, %v1246_v36 }
 0x28d   : > { %v1199_v57 = vmul.f32 %v12839_v11, %v1047_v20  ;;  %v1808_v9 = vshll.u32 %v19733_v61, %v12907_v21  ;;  %v12956_v63 = vshrl.u32 %v2730_v0, 5  ;;  %v12959_v34 = vsub.s32 32, %v12932_v45 }
 0x28e   : > { %19789 = vst [vmem:[#allocation84_spill] sm:$0xff] %v12950_v59  ;;  %v954_v7 = vadd.f32 %v12789_v23, %v900_v60  ;;  %v1809_v58 = vshrl.u32 %v19726_v46, %v12942_v30  ;;  %v1811_v42 = vshll.u32 %v19726_v46, %v12907_v21  ;;  %v1812_v20 = vshrl.u32 %v19727_v24, %v12942_v30 }
 0x28f   : > { %10646 = vset.pattern.permute.xlu1 %v19744_v50  ;;  %19790 = vst [vmem:[#allocation85_spill] sm:$0xff] %v12956_v63  ;;  %19791 = vst [vmem:[#allocation86_spill] sm:$0xff] %v12959_v34  ;;  %v12968_v10 = vand.u32 31, %v2002_v8  ;;  %vm1817_vm13 = vcmp.lt.s32.totalorder %v12946_v32, 4  ;;  %v12972_v0 = vsel %vm2209_vm11, %v2208_v43, 0  ;;  %v9213_v36 = vadd.s32 4294967169, %v2618_v15 }
 0x290   : > { %1114 = vperm.xlu1 %10646, %v12868_v35   ;;  %v902_v60 = vmul.f32 %v12814_v41, %v725_v47  ;;  %vm2417_vm14 = vcmp.gt.s32.totalorder %v2416_v44, 0  ;;  %v9221_v56 = vadd.s32 4294967169, %v2826_v16  ;;  %v2929_v31 = vand.u32 2139095040, %v12950_v59  ;;  %v11064_v47 = vld [vmem:[%s11954_s26 + $0x100] sm:$0xff] }
 0x291   : > { %v1247_v1 = vadd.f32 %v1199_v57, %v954_v7  ;;  %v2744_v39 = vshll.u32 %v19733_v61, %v12932_v45  ;;  %v2745_v25 = vshrl.u32 %v19726_v46, %v12959_v34  ;;  %v2747_v43 = vshll.u32 %v19726_v46, %v12932_v45 }
 0x292   : > { %v2748_v15 = vshrl.u32 %v19727_v24, %v12959_v34  ;;  %v12986_v16 = vor.u32 %v1809_v58, %v1808_v9  ;;  %v1813_v57 = vor.u32 %v1812_v20, %v1811_v42  ;;  %v12989_v7 = vsub.s32 32, %v12968_v10  ;;  %v19793_v9 = vld [vmem:[#allocation47_spill] sm:$0xff]  ;;  %v13003_v42 = vpop.permute.xlu1 %729 }
 0x293   : > { %v12992_v59 = vand.u32 31, %v12972_v0  ;;  %v2418_v37 = vsel %vm2417_vm14, %v2416_v44, 0  ;;  %v2624_v38 = vadd.s32 1, %v9213_v36  ;;  %v956_v45 = vadd.f32 %v12789_v23, %v902_v60 }
 0x294   : > { %10647 = vset.pattern.permute.xlu1 %v19729_v6  ;;  %v1201_v34 = vmul.f32 %v12839_v11, %v1055_v54  ;;  %v2832_v5 = vadd.s32 1, %v9221_v56  ;;  %v13001_v58 = vadd.f32 %v19793_v9, %v1247_v1  ;;  %v13008_v20 = vsel %vm1888_vm12, %v1972_v19, %v12863_v33 }
 0x295   : > { %804 = vperm.xlu1 %10647, %v11064_v47   ;;  %19792 = vst [vmem:[#allocation87_spill] sm:$0xff] %v12992_v59  ;;  %v2930_v47 = vshrl.u32 %v2929_v31, 23  ;;  %v13010_v28 = vor.u32 %v2745_v25, %v2744_v39  ;;  %v2749_v44 = vor.u32 %v2748_v15, %v2747_v43  ;;  %vm19480_vm15 = vcmp.lt.s32.totalorder %v12956_v63, 4 }
 0x296   : > { %19794 = vst [vmem:[#allocation47_spill] sm:$0xff] %v13001_v58  ;;  %v13013_v36 = vshrl.u32 %v2002_v8, 5  ;;  %v13019_v1 = vsel %vm1817_vm13, %v12986_v16, 920167782  ;;  %v13023_v54 = vsel %vm1817_vm13, %v1813_v57, 1326507024  ;;  %v2016_v39 = vshll.u32 %v19733_v61, %v12968_v10 }
 0x297   : > { %19795 = vst [vmem:[#allocation88_spill] sm:$0xff] %v13010_v28  ;;  %v13026_v33 = vsub.s32 32, %v12992_v59  ;;  %v13028_v25 = vand.u32 31, %v2418_v37  ;;  %v2017_v31 = vshrl.u32 %v19726_v46, %v12989_v7  ;;  %vm2625_vm0 = vcmp.gt.s32.totalorder %v2624_v38, 0 }
 0x298   : > { %v1249_v8 = vadd.f32 %v1201_v34, %v956_v45  ;;  %v2020_v19 = vshrl.u32 %v19727_v24, %v12989_v7  ;;  %vm2833_vm2 = vcmp.gt.s32.totalorder %v2832_v5, 0  ;;  %v9225_v56 = vadd.s32 4294967169, %v2930_v47 }
 0x299   : > { %809 = vperm.xlu1 %10647, %v12995_v55   ;;  %19796 = vst [vmem:[#allocation89_spill] sm:$0xff] %v13026_v33  ;;  %19797 = vst [vmem:[#allocation90_spill] sm:$0xff] %v13028_v25  ;;  %v3033_v60 = vand.u32 2139095040, %v13001_v58  ;;  %v13040_v43 = vsel %vm19480_vm15, %v13010_v28, 920167782  ;;  %v2019_v57 = vshll.u32 %v19726_v46, %v12968_v10  ;;  %v901_v45 = vmul.f32 %v12814_v41, %v12831_v12  ;;  %v1344_v58 = vpop.permute.xlu1 %1343 }
 0x29a   : > { %19798 = vst [vmem:[#allocation91_spill] sm:$0xff] %v13040_v43  ;;  %v13044_v15 = vsel %vm19480_vm15, %v2749_v44, 1326507024  ;;  %vm2025_vm4 = vcmp.lt.s32.totalorder %v13013_v36, 4  ;;  %v2225_v34 = vshrl.u32 %v19726_v46, %v13026_v33  ;;  %v13055_v47 = vsub.s32 32, %v13028_v25 }
 0x29b   : > { %19799 = vst [vmem:[#allocation92_spill] sm:$0xff] %v13044_v15  ;;  %v2626_v9 = vsel %vm2625_vm0, %v2624_v38, 0  ;;  %v13058_v44 = vor.u32 %v2017_v31, %v2016_v39  ;;  %v2228_v28 = vshrl.u32 %v19727_v24, %v13026_v33  ;;  %v2834_v12 = vsel %vm2833_vm2, %v2832_v5, 0  ;;  %v19801_v15 = vld [vmem:[#allocation48_spill] sm:$0xff] }
 0x29c   : > { %19800 = vst [vmem:[#allocation93_spill] sm:$0xff] %v13055_v47  ;;  %v13064_v43 = vadd.f32 %v19801_v15, %v1249_v8  ;;  %v2021_v63 = vor.u32 %v2020_v19, %v2019_v57  ;;  %v2224_v22 = vshll.u32 %v19733_v61, %v12992_v59  ;;  %v2936_v62 = vadd.s32 1, %v9225_v56 }
 0x29d   : > { %10648 = vset.pattern.permute.xlu1 %v19739_v13  ;;  %v3034_v51 = vshrl.u32 %v3033_v60, 23  ;;  %v13069_v38 = vshrl.u32 %v12972_v0, 5  ;;  %v955_v39 = vadd.f32 %v12789_v23, %v901_v45  ;;  %v13074_v31 = vand.u32 31, %v2626_v9 }
 0x29e   : > { %1407 = vperm.xlu1 %10648, %v12868_v35   ;;  %19802 = vst [vmem:[#allocation48_spill] sm:$0xff] %v13064_v43  ;;  %v2227_v35 = vshll.u32 %v19726_v46, %v12992_v59  ;;  %v13076_v5 = vor.u32 %v2225_v34, %v2224_v22  ;;  %v2433_v8 = vshrl.u32 %v19726_v46, %v13055_v47  ;;  %v13080_v19 = vand.u32 31, %v2834_v12  ;;  %v13098_v34 = vpop.permute.xlu1 %1058 }
 0x29f   : > { %19803 = vst [vmem:[#allocation94_spill] sm:$0xff] %v13069_v38  ;;  %19804 = vst [vmem:[#allocation95_spill] sm:$0xff] %v13074_v31  ;;  %v1200_v56 = vmul.f32 %v12839_v11, %v12909_v53  ;;  %v13088_v0 = vsel %vm2025_vm4, %v13058_v44, 920167782  ;;  %v2436_v22 = vshrl.u32 %v19727_v24, %v13055_v47  ;;  %v3241_v15 = vand.u32 2139095040, %v13064_v43 }
 0x2a0   : > { %19805 = vst [vmem:[#allocation96_spill] sm:$0xff] %v13076_v5  ;;  %19806 = vst [vmem:[#allocation97_spill] sm:$0xff] %v13080_v19  ;;  %v2229_v60 = vor.u32 %v2228_v28, %v2227_v35  ;;  %v13094_v57 = vshrl.u32 %v2418_v37, 5  ;;  %v2432_v53 = vshll.u32 %v19733_v61, %v13028_v25  ;;  %vm2937_vm5 = vcmp.gt.s32.totalorder %v2936_v62, 0 }
 0x2a1   : > { %v9229_v45 = vadd.s32 4294967169, %v3034_v51  ;;  %v13102_v59 = vsel %vm2025_vm4, %v2021_v63, 1326507024  ;;  %vm2233_vm7 = vcmp.lt.s32.totalorder %v13069_v38, 4  ;;  %v2435_v28 = vshll.u32 %v19726_v46, %v13028_v25 }
 0x2a2   : > { %10649 = vset.pattern.permute.xlu1 %v19744_v50  ;;  %19807 = vst [vmem:[#allocation98_spill] sm:$0xff] %v13094_v57  ;;  %v13108_v37 = vsub.s32 32, %v13074_v31  ;;  %v13113_v35 = vsel %vm2233_vm7, %v13076_v5, 920167782  ;;  %v13115_v51 = vor.u32 %v2433_v8, %v2432_v53  ;;  %v13118_v43 = vsub.s32 32, %v13080_v19 }
 0x2a3   : > { %1122 = vperm.xlu1 %10649, %v12995_v55   ;;  %19809 = vst [vmem:[#allocation100_spill] sm:$0xff] %v13113_v35  ;;  %v1248_v63 = vadd.f32 %v1200_v56, %v955_v39  ;;  %v13122_v47 = vsel %vm2233_vm7, %v2229_v60, 1326507024  ;;  %v2437_v25 = vor.u32 %v2436_v22, %v2435_v28  ;;  %v2938_v33 = vsel %vm2937_vm5, %v2936_v62, 0  ;;  %v11065_v39 = vld [vmem:[%s11954_s26 + $0x110] sm:$0xff] }
 0x2a4   : > { %19808 = vst [vmem:[#allocation99_spill] sm:$0xff] %v13108_v37  ;;  %19810 = vst [vmem:[#allocation101_spill] sm:$0xff] %v13115_v51  ;;  %v3242_v4 = vshrl.u32 %v3241_v15, 23  ;;  %vm2441_vm9 = vcmp.lt.s32.totalorder %v13094_v57, 4  ;;  %v13126_v5 = vshrl.u32 %v2626_v9, 5  ;;  %v3040_v8 = vadd.s32 1, %v9229_v45 }
 0x2a5   : > { %19811 = vst [vmem:[#allocation102_spill] sm:$0xff] %v13118_v43  ;;  %19812 = vst [vmem:[#allocation103_spill] sm:$0xff] %v13122_v47  ;;  %v13130_v53 = vmul.f32 %v12814_v41, %v13003_v42  ;;  %v2641_v56 = vshrl.u32 %v19726_v46, %v13108_v37  ;;  %v2644_v62 = vshrl.u32 %v19727_v24, %v13108_v37  ;;  %v13137_v60 = vshrl.u32 %v2834_v12, 5  ;;  %v13141_v15 = vld [vmem:[%s11954_s26 + $0x118] sm:$0xff] }
 0x2a6   : > { %v1493_v22 = vmul.f32 %v12808_v48, %v1344_v58  ;;  %v13146_v9 = vsel %vm2441_vm9, %v13115_v51, 920167782  ;;  %v2849_v42 = vshrl.u32 %v19726_v46, %v13118_v43  ;;  %v2852_v45 = vshrl.u32 %v19727_v24, %v13118_v43 }
 0x2a7   : > { %10650 = vset.pattern.permute.xlu1 %v19729_v6  ;;  %19813 = vst [vmem:[#allocation104_spill] sm:$0xff] %v13137_v60  ;;  %19814 = vst [vmem:[#allocation105_spill] sm:$0xff] %v13146_v9  ;;  %v13152_v28 = vand.u32 31, %v2938_v33  ;;  %v13156_v12 = vsel %vm2441_vm9, %v2437_v25, 1326507024  ;;  %v2640_v58 = vshll.u32 %v19733_v61, %v13074_v31  ;;  %v2643_v37 = vshll.u32 %v19726_v46, %v13074_v31 }
 0x2a8   : > { %814 = vperm.xlu1 %10650, %v11065_v39   ;;  %v735_v39 = vpop.permute.xlu1 %734  ;;  %19816 = vst [vmem:[#allocation107_spill] sm:$0xff] %v13156_v12  ;;  %v9237_v51 = vadd.s32 4294967169, %v3242_v4  ;;  %vm19481_vm10 = vcmp.lt.s32.totalorder %v13126_v5, 4  ;;  %v2848_v9 = vshll.u32 %v19733_v61, %v13080_v19  ;;  %v2851_v43 = vshll.u32 %v19726_v46, %v13080_v19 }
 0x2a9   : > { %19815 = vst [vmem:[#allocation106_spill] sm:$0xff] %v13152_v28  ;;  %vm3041_vm11 = vcmp.gt.s32.totalorder %v3040_v8, 0  ;;  %v13168_v25 = vor.u32 %v2641_v56, %v2640_v58  ;;  %v2645_v12 = vor.u32 %v2644_v62, %v2643_v37  ;;  %vm19479_vm14 = vcmp.lt.s32.totalorder %v13137_v60, 4  ;;  %v1063_v37 = vpop.permute.xlu0 %1062 }
 0x2aa   : > { %v13171_v57 = vadd.f32 %v1493_v22, %v1248_v63  ;;  %v13173_v31 = vor.u32 %v2849_v42, %v2848_v9  ;;  %v2853_v4 = vor.u32 %v2852_v45, %v2851_v43  ;;  %v13175_v47 = vshrl.u32 %v2938_v33, 5 }
 0x2ab   : > { %19817 = vst [vmem:[#allocation108_spill] sm:$0xff] %v13168_v25  ;;  %v13178_v35 = vsub.s32 32, %v13152_v28  ;;  %v3042_v38 = vsel %vm3041_vm11, %v3040_v8, 0  ;;  %v3248_v19 = vadd.s32 1, %v9237_v51  ;;  %v904_v2 = vmul.f32 %v12814_v41, %v735_v39 }
 0x2ac   : > { %819 = vperm.xlu1 %10650, %v13141_v15   ;;  %19818 = vst [vmem:[#allocation109_spill] sm:$0xff] %v13171_v57  ;;  %19819 = vst [vmem:[#allocation110_spill] sm:$0xff] %v13173_v31  ;;  %v1799_v56 = vshll.u32 %v19730_v18, %v12907_v21  ;;  %v13183_v62 = vpop.permute.xlu1 %739  ;;  %v1800_v43 = vshrl.u32 %v19731_v29, %v12942_v30  ;;  %v1802_v33 = vshll.u32 %v19731_v29, %v12907_v21  ;;  %v19820_v63 = vmov 2131351028  }
 0x2ad   : > { %v1803_v8 = vshrl.u32 %v19820_v63, %v12942_v30  ;;  %v1805_v51 = vshll.u32 %v19820_v63, %v12907_v21  ;;  %v13197_v22 = vsel %vm19481_vm10, %v13168_v25, 920167782  ;;  %v13201_v9 = vsel %vm19481_vm10, %v2645_v12, 1326507024 }
 0x2ae   : > { %19821 = vst [vmem:[#allocation111_spill] sm:$0xff] %v13197_v22  ;;  %19822 = vst [vmem:[#allocation112_spill] sm:$0xff] %v13201_v9  ;;  %v3137_v42 = vand.u32 2139095040, %v13171_v57  ;;  %v1806_v45 = vshrl.u32 %v19733_v61, %v12942_v30  ;;  %v13210_v21 = vsel %vm19479_vm14, %v13173_v31, 920167782  ;;  %v2952_v12 = vshll.u32 %v19733_v61, %v13152_v28 }
 0x2af   : > { %19823 = vst [vmem:[#allocation113_spill] sm:$0xff] %v13210_v21  ;;  %v13214_v39 = vsel %vm19479_vm14, %v2853_v4, 1326507024  ;;  %v2955_v58 = vshll.u32 %v19726_v46, %v13152_v28  ;;  %v13222_v57 = vand.u32 31, %v3042_v38  ;;  %v958_v25 = vadd.f32 %v12789_v23, %v904_v2 }
 0x2b0   : > { %10651 = vset.pattern.permute.xlu1 %v19739_v13  ;;  %19824 = vst [vmem:[#allocation114_spill] sm:$0xff] %v13214_v39  ;;  %v1203_v31 = vmul.f32 %v12839_v11, %v1063_v37  ;;  %vm3249_vm0 = vcmp.gt.s32.totalorder %v3248_v19, 0  ;;  %v1801_v21 = vor.u32 %v1800_v43, %v1799_v56  ;;  %v1804_v60 = vor.u32 %v1803_v8, %v1802_v33  ;;  %v1352_v37 = vpop.permute.xlu1 %1351 }
 0x2b1   : > { %1415 = vperm.xlu1 %10651, %v12995_v55   ;;  %v2953_v55 = vshrl.u32 %v19726_v46, %v13178_v35  ;;  %19825 = vst [vmem:[#allocation115_spill] sm:$0xff] %v13222_v57  ;;  %v1807_v4 = vor.u32 %v1806_v45, %v1805_v51  ;;  %v2956_v39 = vshrl.u32 %v19727_v24, %v13178_v35  ;;  %v13228_v9 = vshrl.u32 %v3042_v38, 5 }
 0x2b2   : > { %v3138_v22 = vshrl.u32 %v3137_v42, 23  ;;  %vm1814_vm2 = vcmp.lt.s32.totalorder %v12946_v32, 1  ;;  %v957_v28 = vadd.f32 %v12789_v23, %v13130_v53  ;;  %v1202_v2 = vmul.f32 %v12839_v11, %v13098_v34 }
 0x2b3   : > { %19826 = vst [vmem:[#allocation116_spill] sm:$0xff] %v13228_v9  ;;  %v1798_v56 = vshrl.u32 %v19730_v18, %v12942_v30  ;;  %vm1816_vm5 = vcmp.lt.s32.totalorder %v12946_v32, 3  ;;  %v13240_v38 = vor.u32 %v2953_v55, %v2952_v12  ;;  %v13243_v43 = vsub.s32 32, %v13222_v57 }
 0x2b4   : > { %v3250_v33 = vsel %vm3249_vm0, %v3248_v19, 0  ;;  %v1251_v8 = vadd.f32 %v1203_v31, %v958_v25  ;;  %vm1815_vm11 = vcmp.lt.s32.totalorder %v12946_v32, 2  ;;  %v1819_v34 = vsel %vm1817_vm13, %v1807_v4, 2102212464 }
 0x2b5   : > { %10652 = vset.pattern.permute.xlu1 %v19744_v50  ;;  %19827 = vst [vmem:[#allocation117_spill] sm:$0xff] %v13243_v43  ;;  %v1822_v30 = vsel %vm1814_vm2, %v1801_v21, %v1804_v60  ;;  %v1824_v53 = vsel %vm1816_vm5, %v1807_v4, %v13019_v1  ;;  %v9233_v51 = vadd.s32 4294967169, %v3138_v22  ;;  %v1495_v42 = vmul.f32 %v12808_v48, %v1352_v37 }
 0x2b6   : > { %1130 = vperm.xlu1 %10652, %v13141_v15   ;;  %v1826_v19 = vsel %vm1814_vm2, %v1804_v60, %v1807_v4  ;;  %v1828_v31 = vsel %vm1816_vm5, %v12986_v16, %v13023_v54  ;;  %v2957_v25 = vor.u32 %v2956_v39, %v2955_v58  ;;  %v13261_v45 = vand.u32 31, %v3250_v33  ;;  %v11066_v39 = vld [vmem:[%s11954_s26 + $0x120] sm:$0xff]  ;;  %v19830_v58 = vld [vmem:[#allocation50_spill] sm:$0xff] }
 0x2b7   : > { %v1250_v12 = vadd.f32 %v1202_v2, %v957_v28  ;;  %v1818_v55 = vsel %vm1814_vm2, %v1798_v56, %v1801_v21  ;;  %v1820_v48 = vsel %vm1816_vm5, %v1804_v60, %v1819_v34  ;;  %v1825_v1 = vsel %vm1815_vm11, %v1822_v30, %v1824_v53  ;;  %v1067_v56 = vpop.permute.xlu1 %1066 }
 0x2b8   : > { %19828 = vst [vmem:[#allocation118_spill] sm:$0xff] %v13261_v45  ;;  %v1829_v22 = vsel %vm1815_vm11, %v1826_v19, %v1828_v31  ;;  %v19829_v16 = vor.u32 8388608, %v12914_v26  ;;  %v3056_v28 = vshll.u32 %v19733_v61, %v13222_v57  ;;  %v3057_v21 = vshrl.u32 %v19726_v46, %v13243_v43 }
 0x2b9   : > { %v3060_v60 = vshrl.u32 %v19727_v24, %v13243_v43  ;;  %v13282_v4 = vadd.f32 %v19830_v58, %v1251_v8  ;;  %v3144_v2 = vadd.s32 1, %v9233_v51  ;;  %v13284_v37 = vadd.f32 %v1495_v42, %v1250_v12 }
 0x2ba   : > { %10653 = vset.pattern.permute.xlu1 %v19729_v6  ;;  %v1830_v54 = vshll.u32 %v19829_v16, 8  ;;  %v905_v30 = vmul.f32 %v12814_v41, %v13183_v62  ;;  %v1821_v53 = vsel %vm1815_vm11, %v1818_v55, %v1820_v48  ;;  %vm19478_vm13 = vcmp.lt.s32.totalorder %v13175_v47, 4 }
 0x2bb   : > { %824 = vperm.xlu1 %10653, %v11066_v39   ;;  %19831 = vst [vmem:[#allocation50_spill] sm:$0xff] %v13282_v4  ;;  %19832 = vst [vmem:[#allocation119_spill] sm:$0xff] %v13284_v37  ;;  %v3059_v8 = vshll.u32 %v19726_v46, %v13222_v57  ;;  %vm19477_vm0 = vcmp.lt.s32.totalorder %v13228_v9, 4  ;;  %v13302_v51 = vsub.s32 32, %v13261_v45  ;;  %v13307_v62 = vsel %vm19478_vm13, %v13240_v38, 920167782 }
 0x2bc   : > { %v13286_v26 = vmul.u32.u64.low %v1830_v54, %v1829_v22  ;;  %v13287_v34 = vmul.u32.u64.high %v1830_v54, %v1829_v22, %v13286_v26  ;;  %v13293_v19 = vmul.u32.u64.low %v1830_v54, %v1825_v1  ;;  %v13294_v31 = vmul.u32.u64.high %v1830_v54, %v1825_v1, %v13293_v19  ;;  %19834 = vst [vmem:[#allocation121_spill] sm:$0xff] %v13307_v62 }
 0x2bd   : > { %19833 = vst [vmem:[#allocation120_spill] sm:$0xff] %v13302_v51  ;;  %v13311_v32 = vsel %vm19478_vm13, %v2957_v25, 1326507024  ;;  %v13313_v42 = vor.u32 %v3057_v21, %v3056_v28  ;;  %v3449_v12 = vand.u32 2139095040, %v13282_v4  ;;  %vm3145_vm2 = vcmp.gt.s32.totalorder %v3144_v2, 0  ;;  %v745_v26 = vpop.permute.xlu1 %744 }
 0x2be   : > { %v3345_v55 = vand.u32 2139095040, %v13284_v37  ;;  %v1837_v48 = vmul.u32 %v1830_v54, %v1821_v53  ;;  %vm1839_vm5 = vc.u32 %v13287_v34, %v13293_v19  ;;  %v3061_v1 = vor.u32 %v3060_v60, %v3059_v8  ;;  %v1071_v60 = vpop.permute.xlu0 %1070 }
 0x2bf   : > { %19835 = vst [vmem:[#allocation122_spill] sm:$0xff] %v13313_v42  ;;  %v959_v22 = vadd.f32 %v12789_v23, %v905_v30  ;;  %v1840_v16 = vadd.s32 1, %v13294_v31  ;;  %v19836_v25 = vsub.s32 0, %v12917_v14  ;;  %v13324_v28 = vshrl.u32 %v3250_v33, 5 }
 0x2c0   : > { %v3265_v21 = vshrl.u32 %v19726_v46, %v13302_v51  ;;  %v3268_v54 = vshrl.u32 %v19727_v24, %v13302_v51  ;;  %v1204_v58 = vmul.f32 %v12839_v11, %v1067_v56  ;;  %v3264_v30 = vshll.u32 %v19733_v61, %v13261_v45 }
 0x2c1   : > { %v9186_v39 = vmin.u32 %v19836_v25, %v12917_v14  ;;  %19837 = vst [vmem:[#allocation123_spill] sm:$0xff] %v13324_v28  ;;  %v3146_v53 = vsel %vm3145_vm2, %v3144_v2, 0  ;;  %v1841_v8 = vsel %vm1839_vm5, %v1840_v16, %v13294_v31  ;;  %v3267_v33 = vshll.u32 %v19726_v46, %v13261_v45 }
 0x2c2   : > { %v3450_v25 = vshrl.u32 %v3449_v12, 23  ;;  %v3346_v37 = vshrl.u32 %v3345_v55, 23  ;;  %v1842_v57 = vadd.s32 %v1841_v8, %v1837_v48  ;;  %v13339_v51 = vsel %vm19477_vm0, %v13313_v42, 920167782 }
 0x2c3   : > { %v1954_v4 = vclz %v9186_v39  ;;  %19838 = vst [vmem:[#allocation124_spill] sm:$0xff] %v13339_v51  ;;  %v906_v56 = vmul.f32 %v12814_v41, %v745_v26  ;;  %v1205_v43 = vmul.f32 %v12839_v11, %v1071_v60  ;;  %v13343_v2 = vor.u32 %v3265_v21, %v3264_v30  ;;  %v19850_v51 = vld [vmem:[#allocation51_spill] sm:$0xff] }
 0x2c4   : > { %v3269_v31 = vor.u32 %v3268_v54, %v3267_v33  ;;  %v13345_v16 = vand.u32 31, %v3146_v53  ;;  %v1843_v39 = vadd.s32 536870912, %v1842_v57  ;;  %v13349_v12 = vsel %vm19477_vm0, %v3061_v1, 1326507024 }
 0x2c5   : > { %v9187_v62 = vadd.s32 4294967294, %v1954_v4  ;;  %19839 = vst [vmem:[#allocation125_spill] sm:$0xff] %v13343_v2  ;;  %19841 = vst [vmem:[#allocation127_spill] sm:$0xff] %v13349_v12  ;;  %vm19474_vm11 = vcmp.lt.s32.totalorder %v13324_v28, 4  ;;  %v13352_v55 = vadd.f32 %v1204_v58, %v959_v22  ;;  %v9245_v48 = vadd.s32 4294967169, %v3450_v25 }
 0x2c6   : > { %19840 = vst [vmem:[#allocation126_spill] sm:$0xff] %v13345_v16  ;;  %v9241_v26 = vadd.s32 4294967169, %v3346_v37  ;;  %v13354_v8 = vshrl.u32 %v1843_v39, 30  ;;  %v19842_v11 = vand.u32 2147483647, %v12356_v52  ;;  %v13362_v54 = vshrl.u32 %v3146_v53, 5 }
 0x2c7   : > { %vm9188_vm2 = vcmp.lt.s32.totalorder %v9187_v62, 0  ;;  %v960_v1 = vadd.f32 %v12789_v23, %v906_v56  ;;  %v13368_v22 = vsel %vm19474_vm11, %v13343_v2, 920167782  ;;  %v13372_v37 = vsel %vm19474_vm11, %v3269_v31, 1326507024 }
 0x2c8   : > { %vm13358_vm5 = vcmp.le.f32.partialorder %v19842_v11, 0.7853982  ;;  %v1957_v21 = vsel %vm9188_vm2, 0, %v9187_v62  ;;  %19845 = vst [vmem:[#allocation128_spill] sm:$0xff] %v13362_v54  ;;  %19846 = vst [vmem:[#allocation129_spill] sm:$0xff] %v13368_v22  ;;  %v13375_v58 = vsub.s32 32, %v13345_v16  ;;  %v3160_v53 = vshll.u32 %v19733_v61, %v13345_v16  ;;  %v750_v22 = vpop.permute.xlu1 %749 }
 0x2c9   : > { %v1958_v60 = vsub.s32 32, %v1957_v21  ;;  %v1962_v30 = vsub.s32 4294967266, %v1957_v21  ;;  %19847 = vst [vmem:[#allocation130_spill] sm:$0xff] %v13372_v37  ;;  %v1845_v62 = vshll.u32 %v13354_v8, 30  ;;  %v1959_v33 = vshll.u32 %v12917_v14, %v1957_v21 }
 0x2ca   : > { %19848 = vst [vmem:[#allocation131_spill] sm:$0xff] %v13375_v58  ;;  %v13384_v39 = vshll.u32 %v19726_v46, %v13345_v16  ;;  %v13386_v31 = vadd.s32 1, %v9245_v48  ;;  %v13388_v11 = vadd.s32 1, %v9241_v26  ;;  %v1253_v37 = vadd.f32 %v1205_v43, %v960_v1  ;;  %v629_v26 = vld [vmem:[%s11954_s26 + $0x128] sm:$0xff] }
 0x2cb   : > { %v1960_v25 = vshrl.u32 %v12879_v27, %v1958_v60  ;;  %v1963_v56 = vadd.s32 127, %v1962_v30  ;;  %v13390_v2 = vsub.s32 %v1842_v57, %v1845_v62  ;;  %v2008_v27 = vshrl.u32 %v19731_v29, %v12989_v7  ;;  %829 = vperm.xlu1 %10653, %v629_v26  }
 0x2cc   : > { %v2011_v60 = vshrl.u32 %v19820_v63, %v12989_v7  ;;  %v2014_v48 = vshrl.u32 %v19733_v61, %v12989_v7  ;;  %v3161_v57 = vshrl.u32 %v19726_v46, %v13375_v58  ;;  %v13405_v43 = vshrl.u32 %v19727_v24, %v13375_v58 }
 0x2cd   : > { %v1961_v28 = vor.u32 %v1960_v25, %v1959_v33  ;;  %v1964_v45 = vshll.u32 %v1963_v56, 23  ;;  %v1848_v21 = vsub.s32 0, %v13390_v2  ;;  %v907_v1 = vmul.f32 %v12814_v41, %v750_v22 }
 0x2ce   : > { %v2007_v33 = vshll.u32 %v19730_v18, %v12968_v10  ;;  %v2010_v25 = vshll.u32 %v19731_v29, %v12968_v10  ;;  %v2013_v56 = vshll.u32 %v19820_v63, %v12968_v10  ;;  %v1975_v58 = vsel %vm13358_vm5, 0, %v13008_v20 }
 0x2cf   : > { %v1965_v30 = vor.u32 4788187, %v1964_v45  ;;  %v9182_v62 = vmin.u32 %v1848_v21, %v13390_v2  ;;  %v1968_v16 = vcvt.s32.f32 %v1961_v28  ;;  %v19849_v41 = vand.u32 2147483647, %v12760_v49  ;;  %10654 = vset.pattern.permute.xlu1 %v19739_v13 }
 0x2d0   : > { %vm1784_vm2 = vcmp.lt.s32.totalorder %v12592_v40, 0  ;;  %v2009_v21 = vor.u32 %v2008_v27, %v2007_v33  ;;  %v2012_v42 = vor.u32 %v2011_v60, %v2010_v25  ;;  %v2015_v12 = vor.u32 %v2014_v48, %v2013_v56  ;;  %1423 = vperm.xlu1 %10654, %v13141_v15  }
 0x2d1   : > { %v1966_v14 = vand.u32 2147483647, %v1965_v30  ;;  %v1997_v45 = vand.u32 8388607, %v19849_v41  ;;  %v1850_v22 = vclz %v9182_v62  ;;  %vm3457_vm11 = vcmp.gt.s32.totalorder %v13386_v31, 0 }
 0x2d2   : > { %v13423_v9 = vadd.f32 %v19850_v51, %v1253_v37  ;;  %v13426_v10 = vadd.f32 %v12789_v23, %v907_v1  ;;  %v13429_v20 = vor.u32 %v3161_v57, %v3160_v53  ;;  %v3165_v30 = vor.u32 %v13405_v43, %v13384_v39 }
 0x2d3   : > { %v1969_v28 = vmul.f32 %v1968_v16, %v1966_v14  ;;  %vm3353_vm0 = vcmp.gt.s32.totalorder %v13388_v11, 0  ;;  %v1838_v27 = vadd.s32 %v13293_v19, %v13287_v34  ;;  %v9183_v60 = vadd.s32 4294967294, %v1850_v22 }
 0x2d4   : > { %19851 = vst [vmem:[#allocation51_spill] sm:$0xff] %v13423_v9  ;;  %19852 = vst [vmem:[#allocation132_spill] sm:$0xff] %v13429_v20  ;;  %v1979_v37 = vadd.s32 3, %v1975_v58  ;;  %vm2022_vm13 = vcmp.lt.s32.totalorder %v13013_v36, 1  ;;  %vm2024_vm14 = vcmp.lt.s32.totalorder %v13013_v36, 3  ;;  %v1998_v23 = vor.u32 8388608, %v1997_v45  ;;  %10655 = vset.pattern.permute.xlu1 %v19744_v50 }
 0x2d5   : > { %v1970_v51 = vxor.u32 2147483648, %v1969_v28  ;;  %vm9184_vm15 = vcmp.lt.s32.totalorder %v9183_v60, 0  ;;  %v2030_v16 = vsel %vm2022_vm13, %v2009_v21, %v2012_v42  ;;  %v2032_v53 = vsel %vm2024_vm14, %v2015_v12, %v13088_v0  ;;  %1138 = vperm.xlu1 %10655, %v629_v26  }
 0x2d6   : > { %v19853_v34 = vand.u32 2147483647, %v12592_v40  ;;  %v1853_v15 = vsel %vm9184_vm15, 0, %v9183_v60  ;;  %v1868_v58 = vsub.s32 4, %v13354_v8  ;;  %vm2023_vm8 = vcmp.lt.s32.totalorder %v13013_v36, 2 }
 0x2d7   : > { %v1971_v14 = vsel %vm1888_vm12, %v1970_v51, %v1969_v28  ;;  %v1854_v48 = vsub.s32 32, %v1853_v15  ;;  %v1855_v57 = vshll.u32 %v13390_v2, %v1853_v15  ;;  %v1858_v1 = vsub.s32 4294967266, %v1853_v15 }
 0x2d8   : > { %vm13446_vm10 = vcmp.le.f32.partialorder %v19853_v34, 0.7853982  ;;  %v1974_v0 = vsel %vm13358_vm5, %v12356_v52, %v1971_v14  ;;  %v2006_v62 = vshrl.u32 %v19730_v18, %v12989_v7  ;;  %v2027_v33 = vsel %vm2025_vm4, %v2015_v12, 2102212464  ;;  %v19856_v14 = vld [vmem:[#allocation79_spill] sm:$0xff] }
 0x2d9   : > { %10682 = vcosq.f32 %v1974_v0  ;;  %v2033_v25 = vsel %vm2023_vm8, %v2030_v16, %v2032_v53  ;;  %v1856_v56 = vshrl.u32 %v1838_v27, %v1854_v48  ;;  %v1859_v2 = vadd.s32 127, %v1858_v1  ;;  %10656 = vset.pattern.permute.xlu1 %v19729_v6 }
 0x2da   : > { %10684 = vsinq.f32 %v1974_v0  ;;  %v2034_v4 = vsel %vm2022_vm13, %v2012_v42, %v2015_v12  ;;  %v1869_v41 = vsel %vm1784_vm2, %v1868_v58, %v13354_v8  ;;  %v2026_v7 = vsel %vm2022_vm13, %v2006_v62, %v2009_v21  ;;  %v19858_v0 = vld [vmem:[#allocation83_spill] sm:$0xff] }
 0x2db   : > { %v2036_v45 = vsel %vm2024_vm14, %v13058_v44, %v13102_v59  ;;  %v2038_v26 = vshll.u32 %v1998_v23, 8  ;;  %v1857_v22 = vor.u32 %v1856_v56, %v1855_v57  ;;  %v1860_v28 = vshll.u32 %v1859_v2, 23  ;;  %v19857_v57 = vld [vmem:[#allocation49_spill] sm:$0xff] }
 0x2dc   : > { %v2028_v27 = vsel %vm2024_vm14, %v2012_v42, %v2027_v33  ;;  %v2037_v12 = vsel %vm2023_vm8, %v2034_v4, %v2036_v45  ;;  %v3458_v59 = vsel %vm3457_vm11, %v13386_v31, 0  ;;  %v13491_v23 = vand.u32 3, %v1979_v37  ;;  %v11067_v42 = vld [vmem:[%s11954_s26 + $0x130] sm:$0xff]  ;;  %v19859_v4 = vld [vmem:[#allocation55_spill] sm:$0xff] }
 0x2dd   : > { %v13480_v60 = vmul.u32.u64.low %v2038_v26, %v2037_v12  ;;  %v13481_v51 = vmul.u32.u64.high %v2038_v26, %v2037_v12, %v13480_v60  ;;  %v13483_v8 = vmul.u32.u64.low %v2038_v26, %v2033_v25  ;;  %v13484_v16 = vmul.u32.u64.high %v2038_v26, %v2033_v25, %v13483_v8  ;;  %834 = vperm.xlu1 %10656, %v11067_v42   ;;  %v19862_v12 = vld [vmem:[#allocation61_spill] sm:$0xff] }
 0x2de   : > { %v1861_v44 = vor.u32 4788187, %v1860_v28  ;;  %v1864_v21 = vcvt.s32.f32 %v1857_v22  ;;  %v13497_v53 = vsel %vm3353_vm0, %v13388_v11, 0  ;;  %v2029_v34 = vsel %vm2023_vm8, %v2026_v7, %v2028_v27  ;;  %v19860_v28 = vld [vmem:[#allocation63_spill] sm:$0xff]  ;;  %v19861_v27 = vld [vmem:[#allocation57_spill] sm:$0xff] }
 0x2df   : > { %v2115_v15 = vshrl.u32 %v19820_v63, %v12645_v3  ;;  %v2118_v31 = vshrl.u32 %v19733_v61, %v12645_v3  ;;  %v1871_v37 = vsel %vm13446_vm10, 0, %v1869_v41  ;;  %v2113_v48 = vor.u32 %v19856_v14, %v12901_v17 }
 0x2e0   : > { %v1862_v58 = vand.u32 2147483647, %v1861_v44  ;;  %v2117_v11 = vshll.u32 %v19820_v63, %v19857_v57  ;;  %v13511_v1 = vshrl.u32 %v3458_v59, 5  ;;  %vm2047_vm8 = vc.u32 %v13481_v51, %v13483_v8  ;;  %v19863_v44 = vld [vmem:[#allocation75_spill] sm:$0xff] }
 0x2e1   : > { %v2048_v36 = vadd.s32 1, %v13484_v16  ;;  %v2116_v62 = vor.u32 %v2115_v15, %v19858_v0  ;;  %vm1982_vm12 = vcmp.eq.s32.totalorder %v13491_v23, 0  ;;  %v2045_v33 = vmul.u32 %v2038_v26, %v2029_v34 }
 0x2e2   : > { %v1865_v3 = vmul.f32 %v1864_v21, %v1862_v58  ;;  %v2119_v25 = vor.u32 %v2118_v31, %v2117_v11  ;;  %v1875_v2 = vadd.s32 3, %v1871_v37  ;;  %vm2126_vm15 = vcmp.lt.s32.totalorder %v19859_v4, 1 }
 0x2e3   : > { %v10683_v56 = vpop.eup %10682  ;;  %v2049_v17 = vsel %vm2047_vm8, %v2048_v36, %v13484_v16  ;;  %vm2128_vm4 = vcmp.lt.s32.totalorder %v19859_v4, 3  ;;  %v2134_v22 = vsel %vm2126_vm15, %v2113_v48, %v2116_v62  ;;  %vm2127_vm14 = vcmp.lt.s32.totalorder %v19859_v4, 2 }
 0x2e4   : > { %v10685_v41 = vpop.eup %10684  ;;  %v1866_v7 = vxor.u32 2147483648, %v1865_v3  ;;  %v2050_v45 = vadd.s32 %v2049_v17, %v2045_v33  ;;  %v2140_v26 = vsel %vm2128_vm4, %v19861_v27, %v19860_v28  ;;  %v2136_v60 = vsel %vm2128_vm4, %v2119_v25, %v19862_v12 }
 0x2e5   : > { %v2138_v16 = vsel %vm2126_vm15, %v2116_v62, %v2119_v25  ;;  %v19864_v21 = vor.u32 8388608, %v19863_v44  ;;  %v1986_v15 = vxor.u32 2147483648, %v10683_v56  ;;  %v2131_v58 = vsel %vm2129_vm3, %v2119_v25, 2102212464 }
 0x2e6   : > { %v1867_v34 = vsel %vm1784_vm2, %v1866_v7, %v1865_v3  ;;  %v2051_v31 = vadd.s32 536870912, %v2050_v45  ;;  %v1983_v14 = vxor.u32 2147483648, %v10685_v41  ;;  %v2137_v57 = vsel %vm2127_vm14, %v2134_v22, %v2136_v60  ;;  %v19865_v3 = vld [vmem:[#allocation78_spill] sm:$0xff] }
 0x2e7   : > { %v2142_v42 = vshll.u32 %v19864_v21, 8  ;;  %v1870_v37 = vsel %vm13446_vm10, %v12592_v40, %v1867_v34  ;;  %v2141_v11 = vsel %vm2127_vm14, %v2138_v16, %v2140_v26  ;;  %v13546_v36 = vand.u32 3, %v1875_v2  ;;  %v19867_v26 = vld [vmem:[#allocation70_spill] sm:$0xff] }
 0x2e8   : > { %10686 = vcosq.f32 %v1870_v37  ;;  %vm1978_vm13 = vweird.f32 %v12356_v52  ;;  %v13549_v0 = vshrl.u32 %v2051_v31, 30  ;;  %v2130_v33 = vsel %vm2126_vm15, %v19865_v3, %v2113_v48 }
 0x2e9   : > { %10688 = vsinq.f32 %v1870_v37  ;;  %v2132_v19 = vsel %vm2128_vm4, %v2116_v62, %v2131_v58  ;;  %v13556_v25 = vmul.u32.u64.low %v2142_v42, %v2141_v11  ;;  %v13557_v17 = vmul.u32.u64.high %v2142_v42, %v2141_v11, %v13556_v25  ;;  %v19869_v58 = vld [vmem:[#allocation87_spill] sm:$0xff] }
 0x2ea   : > { %vm1985_vm3 = vcmp.eq.s32.totalorder %v13491_v23, 2  ;;  %v2053_v2 = vshll.u32 %v13549_v0, 30  ;;  %v13561_v7 = vmul.u32.u64.low %v2142_v42, %v2137_v57  ;;  %v13562_v22 = vmul.u32.u64.high %v2142_v42, %v2137_v57, %v13561_v7 }
 0x2eb   : > { %v13565_v28 = vand.u32 31, %v3458_v59  ;;  %v1984_v48 = vsel %vm1982_vm12, %v10683_v56, %v1983_v14  ;;  %v1987_v27 = vsel %vm1985_vm3, %v1986_v15, %v10685_v41  ;;  %v2198_v12 = vand.u32 2147483647, %v19867_v26  ;;  %v19868_v41 = vld [vmem:[#allocation89_spill] sm:$0xff] }
 0x2ec   : > { %v13571_v62 = vshrl.u32 %v13497_v53, 5  ;;  %vm1981_vm10 = vcmp.lt.s32.totalorder %v13491_v23, 2  ;;  %v13574_v60 = vsub.s32 %v2050_v45, %v2053_v2  ;;  %v2133_v16 = vsel %vm2127_vm14, %v2130_v33, %v2132_v19 }
 0x2ed   : > { %19866 = vst [vmem:[#allocation79_spill] sm:$0xff] %v13565_v28  ;;  %vm1874_vm0 = vweird.f32 %v12592_v40  ;;  %vm1877_vm11 = vcmp.lt.s32.totalorder %v13546_v36, 2  ;;  %vm1878_vm5 = vcmp.eq.s32.totalorder %v13546_v36, 0  ;;  %vm1881_vm2 = vcmp.eq.s32.totalorder %v13546_v36, 2 }
 0x2ee   : > { %vm2151_vm8 = vc.u32 %v13557_v17, %v13561_v7  ;;  %v1988_v59 = vsel %vm1981_vm10, %v1984_v48, %v1987_v27  ;;  %v2056_v56 = vsub.s32 0, %v13574_v60  ;;  %v2152_v23 = vadd.s32 1, %v13562_v22 }
 0x2ef   : > { %v2216_v4 = vshrl.u32 %v19731_v29, %v19868_v41  ;;  %v2149_v45 = vmul.u32 %v2142_v42, %v2133_v16  ;;  %v2205_v44 = vand.u32 8388607, %v2198_v12  ;;  %v2219_v21 = vshrl.u32 %v19820_v63, %v19868_v41 }
 0x2f0   : > { %v2222_v34 = vshrl.u32 %v19733_v61, %v19868_v41  ;;  %v9190_v15 = vmin.u32 %v2056_v56, %v13574_v60  ;;  %v2153_v31 = vsel %vm2151_vm8, %v2152_v23, %v13562_v22  ;;  %v2215_v37 = vshll.u32 %v19730_v18, %v19869_v58 }
 0x2f1   : > { %v2221_v14 = vshll.u32 %v19820_v63, %v19869_v58  ;;  %v1989_v42 = vsel %vm1978_vm13, nan, %v1988_v59  ;;  %v2046_v57 = vadd.s32 %v13483_v8, %v13481_v51  ;;  %v2154_v11 = vadd.s32 %v2153_v31, %v2149_v45  ;;  %v19870_v8 = vld [vmem:[#allocation94_spill] sm:$0xff] }
 0x2f2   : > { %v2218_v3 = vshll.u32 %v19731_v29, %v19869_v58  ;;  %v10687_v33 = vpop.eup %10686  ;;  %v2058_v19 = vclz %v9190_v15  ;;  %v2076_v25 = vsub.s32 4, %v13549_v0  ;;  %v2217_v2 = vor.u32 %v2216_v4, %v2215_v37 }
 0x2f3   : > { %v2223_v22 = vor.u32 %v2222_v34, %v2221_v14  ;;  %v10689_v48 = vpop.eup %10688  ;;  %v1882_v27 = vxor.u32 2147483648, %v10687_v33  ;;  %v2155_v16 = vadd.s32 536870912, %v2154_v11  ;;  %v2214_v52 = vshrl.u32 %v19730_v18, %v19868_v41 }
 0x2f4   : > { %v2220_v59 = vor.u32 %v2219_v21, %v2218_v3  ;;  %v1879_v56 = vxor.u32 2147483648, %v10689_v48  ;;  %v9191_v23 = vadd.s32 4294967294, %v2058_v19  ;;  %v2206_v51 = vor.u32 8388608, %v2205_v44 }
 0x2f5   : > { %vm2230_vm12 = vcmp.lt.s32.totalorder %v19870_v8, 1  ;;  %v1883_v45 = vsel %vm1881_vm2, %v1882_v27, %v10689_v48  ;;  %v13612_v15 = vshrl.u32 %v2155_v16, 30  ;;  %vm2231_vm15 = vcmp.lt.s32.totalorder %v19870_v8, 2  ;;  %v19873_v16 = vld [vmem:[#allocation96_spill] sm:$0xff] }
 0x2f6   : > { %vm2232_vm4 = vcmp.lt.s32.totalorder %v19870_v8, 3  ;;  %vm3169_vm14 = vcmp.lt.s32.totalorder %v13362_v54, 4  ;;  %v1880_v41 = vsel %vm1878_vm5, %v10687_v33, %v1879_v56  ;;  %vm9192_vm13 = vcmp.lt.s32.totalorder %v9191_v23, 0  ;;  %v19871_v33 = vld [vmem:[#allocation100_spill] sm:$0xff]  ;;  %v19910_v54 = vld [vmem:[#allocation74_spill] sm:$0xff] }
 0x2f7   : > { %v2234_v4 = vsel %vm2230_vm12, %v2214_v52, %v2217_v2  ;;  %v2235_v44 = vsel %vm2233_vm7, %v2223_v22, 2102212464  ;;  %v1884_v21 = vsel %vm1877_vm11, %v1880_v41, %v1883_v45  ;;  %v2061_v34 = vsel %vm9192_vm13, 0, %v9191_v23 }
 0x2f8   : > { %v2157_v31 = vshll.u32 %v13612_v15, 30  ;;  %v2238_v58 = vsel %vm2230_vm12, %v2217_v2, %v2220_v59  ;;  %v1885_v37 = vsel %vm1874_vm0, nan, %v1884_v21  ;;  %v2062_v14 = vsub.s32 32, %v2061_v34  ;;  %v19872_v2 = vld [vmem:[#allocation103_spill] sm:$0xff] }
 0x2f9   : > { %v2066_v3 = vsub.s32 4294967266, %v2061_v34  ;;  %v2240_v19 = vsel %vm2232_vm4, %v2223_v22, %v19871_v33  ;;  %9840 = vmatprep.mubr.msk.f32.mxu0 %vm6619_vm1, %v1885_v37  ;;  %v2236_v36 = vsel %vm2232_vm4, %v2220_v59, %v2235_v44  ;;  %v2242_v27 = vsel %vm2230_vm12, %v2220_v59, %v2223_v22 }
 0x2fa   : > { %v13634_v48 = vsub.s32 %v2154_v11, %v2157_v31  ;;  %v2244_v40 = vsel %vm2232_vm4, %v19873_v16, %v19872_v2  ;;  %9841 = vmatmul.mubr.msk.f32.gmra.mrb[2].mxu0 %vm6619_vm1, %v1989_v42  ;;  %v2063_v52 = vshll.u32 %v13574_v60, %v2061_v34  ;;  %v2064_v56 = vshrl.u32 %v2046_v57, %v2062_v14 }
 0x2fb   : > { %v2067_v23 = vadd.s32 127, %v2066_v3  ;;  %v2245_v11 = vsel %vm2231_vm15, %v2242_v27, %v2244_v40  ;;  %vm1992_vm7 = vcmp.lt.s32.totalorder %v12760_v49, 0  ;;  %v2241_v22 = vsel %vm2231_vm15, %v2238_v58, %v2240_v19 }
 0x2fc   : > { %v2160_v45 = vsub.s32 0, %v13634_v48  ;;  %v2246_v59 = vshll.u32 %v2206_v51, 8  ;;  %v13653_v41 = vand.u32 31, %v13497_v53  ;;  %v2065_v44 = vor.u32 %v2064_v56, %v2063_v52  ;;  %v19875_v53 = vld [vmem:[#allocation42_spill] sm:$0xff] }
 0x2fd   : > { %v2068_v42 = vshll.u32 %v2067_v23, 23  ;;  %v2077_v60 = vsel %vm1992_vm7, %v2076_v25, %v13549_v0  ;;  %v2237_v21 = vsel %vm2231_vm15, %v2234_v4, %v2236_v36  ;;  %v19483_v14 = vand.u32 2147483647, %v19875_v53  ;;  %v19881_v52 = vld [vmem:[#allocation54_spill] sm:$0xff] }
 0x2fe   : > { %19874 = vst [vmem:[#allocation49_spill] sm:$0xff] %v13653_v41  ;;  %v9194_v57 = vmin.u32 %v2160_v45, %v13634_v48  ;;  %v13661_v34 = vmul.u32.u64.low %v2246_v59, %v2245_v11  ;;  %v13662_v31 = vmul.u32.u64.high %v2246_v59, %v2245_v11, %v13661_v34  ;;  %v13672_v3 = vsel %vm3169_vm14, %v13429_v20, 920167782  ;;  %v19882_v23 = vld [vmem:[#allocation58_spill] sm:$0xff] }
 0x2ff   : > { %v2069_v37 = vor.u32 4788187, %v2068_v42  ;;  %v13664_v58 = vmul.u32.u64.low %v2246_v59, %v2241_v22  ;;  %v13665_v51 = vmul.u32.u64.high %v2246_v59, %v2241_v22, %v13664_v58  ;;  %19876 = vst [vmem:[#allocation83_spill] sm:$0xff] %v13672_v3  ;;  %v13679_v0 = vsel %vm3169_vm14, %v3165_v30, 1326507024  ;;  %v1360_v42 = vpop.permute.xlu1 %1359 }
 0x300   : > { %19877 = vst [vmem:[#allocation55_spill] sm:$0xff] %v13679_v0  ;;  %v19878_v25 = vand.u32 2147483647, %v12760_v49  ;;  %v2162_v4 = vclz %v9194_v57  ;;  %v3657_v33 = vand.u32 2139095040, %v13423_v9  ;;  %v2072_v36 = vcvt.s32.f32 %v2065_v44 }
 0x301   : > { %v2070_v19 = vand.u32 2147483647, %v2069_v37  ;;  %v2150_v39 = vadd.s32 %v13561_v7, %v13557_v17  ;;  %v2253_v30 = vmul.u32 %v2246_v59, %v2237_v21  ;;  %vm2255_vm10 = vc.u32 %v13662_v31, %v13664_v58 }
 0x302   : > { %vm13683_vm3 = vcmp.le.f32.partialorder %v19878_v25, 0.7853982  ;;  %v9195_v43 = vadd.s32 4294967294, %v2162_v4  ;;  %v2256_v16 = vadd.s32 1, %v13665_v51  ;;  %v2309_v40 = vand.u32 8388607, %v19483_v14 }
 0x303   : > { %v2079_v27 = vsel %vm13683_vm3, 0, %v2077_v60  ;;  %v2073_v2 = vmul.f32 %v2072_v36, %v2070_v19  ;;  %v2319_v56 = vshll.u32 %v19730_v18, %v19881_v52  ;;  %v2320_v11 = vshrl.u32 %v19731_v29, %v19882_v23  ;;  %v19883_v25 = vld [vmem:[#allocation38_spill] sm:$0xff] }
 0x304   : > { %vm9196_vm0 = vcmp.lt.s32.totalorder %v9195_v43, 0  ;;  %v2322_v17 = vshll.u32 %v19731_v29, %v19881_v52  ;;  %v2323_v7 = vshrl.u32 %v19820_v63, %v19882_v23  ;;  %v2257_v59 = vsel %vm2255_vm10, %v2256_v16, %v13665_v51 }
 0x305   : > { %v2074_v45 = vxor.u32 2147483648, %v2073_v2  ;;  %v2165_v22 = vsel %vm9196_vm0, 0, %v9195_v43  ;;  %v2325_v44 = vshll.u32 %v19820_v63, %v19881_v52  ;;  %v2258_v34 = vadd.s32 %v2257_v59, %v2253_v30 }
 0x306   : > { %v2166_v60 = vsub.s32 32, %v2165_v22  ;;  %v2167_v57 = vshll.u32 %v13634_v48, %v2165_v22  ;;  %v2170_v21 = vsub.s32 4294967266, %v2165_v22  ;;  %vm2096_vm11 = vcmp.lt.s32.totalorder %v19883_v25, 0  ;;  %v11068_v48 = vld [vmem:[#allocation7 + $0x2] ss:$0 sm:$0xff] }
 0x307   : > { %v2075_v37 = vsel %vm1992_vm7, %v2074_v45, %v2073_v2  ;;  %v2321_v4 = vor.u32 %v2320_v11, %v2319_v56  ;;  %v2324_v19 = vor.u32 %v2323_v7, %v2322_v17  ;;  %v2326_v36 = vshrl.u32 %v19733_v61, %v19882_v23 }
 0x308   : > { %v2078_v51 = vsel %vm13683_vm3, %v12760_v49, %v2075_v37  ;;  %v2168_v43 = vshrl.u32 %v2150_v39, %v2166_v60  ;;  %v2171_v16 = vadd.s32 127, %v2170_v21  ;;  %v2259_v52 = vadd.s32 536870912, %v2258_v34  ;;  %v19889_v21 = vld [vmem:[#allocation71_spill] sm:$0xff] }
 0x309   : > { %v13717_v22 = vmul.f32 %v11068_v48, %v1360_v42  ;;  %10690 = vcosq.f32 %v2078_v51  ;;  %v2083_v30 = vadd.s32 3, %v2079_v27  ;;  %v2327_v2 = vor.u32 %v2326_v36, %v2325_v44  ;;  %v19888_v42 = vld [vmem:[#allocation62_spill] sm:$0xff] }
 0x30a   : > { %10692 = vsinq.f32 %v2078_v51  ;;  %v19884_v56 = vand.u32 2147483647, %v19883_v25  ;;  %v2169_v17 = vor.u32 %v2168_v43, %v2167_v57  ;;  %v2172_v7 = vshll.u32 %v2171_v16, 23  ;;  %v19890_v51 = vld [vmem:[#allocation72_spill] sm:$0xff] }
 0x30b   : > { %v13725_v8 = vshrl.u32 %v2259_v52, 30  ;;  %v13728_v39 = vsub.s32 32, %v13565_v28  ;;  %v2180_v45 = vsub.s32 4, %v13612_v15  ;;  %v2310_v59 = vor.u32 8388608, %v2309_v40  ;;  %v19891_v40 = vld [vmem:[#allocation64_spill] sm:$0xff] }
 0x30c   : > { %vm13721_vm5 = vcmp.le.f32.partialorder %v19884_v56, 0.7853982  ;;  %vm2334_vm2 = vcmp.lt.s32.totalorder %v19888_v42, 1  ;;  %v2173_v27 = vor.u32 4788187, %v2172_v7  ;;  %vm2336_vm8 = vcmp.lt.s32.totalorder %v19888_v42, 3 }
 0x30d   : > { %19887 = vst [vmem:[#allocation63_spill] sm:$0xff] %v13728_v39  ;;  %v2261_v44 = vshll.u32 %v13725_v8, 30  ;;  %v2342_v60 = vsel %vm2334_vm2, %v2321_v4, %v2324_v19  ;;  %v2084_v57 = vand.u32 3, %v2083_v30  ;;  %v2344_v37 = vsel %vm2336_vm8, %v2327_v2, %v19889_v21 }
 0x30e   : > { %v2346_v36 = vsel %vm2334_vm2, %v2324_v19, %v2327_v2  ;;  %v2348_v43 = vsel %vm2336_vm8, %v19891_v40, %v19890_v51  ;;  %v2174_v16 = vand.u32 2147483647, %v2173_v27  ;;  %v2176_v52 = vcvt.s32.f32 %v2169_v17 }
 0x30f   : > { %v13745_v48 = vsub.s32 %v2258_v34, %v2261_v44  ;;  %vm2335_vm12 = vcmp.lt.s32.totalorder %v19888_v42, 2  ;;  %v2339_v30 = vsel %vm2337_vm6, %v2327_v2, 2102212464  ;;  %v2350_v21 = vshll.u32 %v2310_v59, 8 }
 0x310   : > { %v2345_v56 = vsel %vm2335_vm12, %v2342_v60, %v2344_v37  ;;  %v2349_v7 = vsel %vm2335_vm12, %v2346_v36, %v2348_v43  ;;  %v2177_v14 = vmul.f32 %v2176_v52, %v2174_v16  ;;  %v2181_v27 = vsel %vm2096_vm11, %v2180_v45, %v13612_v15 }
 0x311   : > { %v2264_v34 = vsub.s32 0, %v13745_v48  ;;  %v2318_v17 = vshrl.u32 %v19730_v18, %v19882_v23  ;;  %v13760_v44 = vmul.u32.u64.low %v2350_v21, %v2349_v7  ;;  %v13761_v51 = vmul.u32.u64.high %v2350_v21, %v2349_v7, %v13760_v44 }
 0x312   : > { %v13763_v2 = vmul.u32.u64.low %v2350_v21, %v2345_v56  ;;  %v13764_v40 = vmul.u32.u64.high %v2350_v21, %v2345_v56, %v13763_v2  ;;  %v2178_v60 = vxor.u32 2147483648, %v2177_v14  ;;  %v2340_v15 = vsel %vm2336_vm8, %v2324_v19, %v2339_v30 }
 0x313   : > { %v9198_v59 = vmin.u32 %v2264_v34, %v13745_v48  ;;  %v2338_v37 = vsel %vm2334_vm2, %v2318_v17, %v2321_v4  ;;  %v10691_v45 = vpop.eup %10690  ;;  %v13774_v23 = vshll.u32 %v19733_v61, %v13565_v28  ;;  %v13778_v36 = vshll.u32 %v19726_v46, %v13565_v28 }
 0x314   : > { %vm2085_vm6 = vcmp.lt.s32.totalorder %v2084_v57, 2  ;;  %v2183_v43 = vsel %vm13721_vm5, 0, %v2181_v27  ;;  %v10693_v16 = vpop.eup %10692  ;;  %vm2086_vm15 = vcmp.eq.s32.totalorder %v2084_v57, 0  ;;  %v2090_v52 = vxor.u32 2147483648, %v10691_v45 }
 0x315   : > { %v2179_v4 = vsel %vm2096_vm11, %v2178_v60, %v2177_v14  ;;  %v2266_v19 = vclz %v9198_v59  ;;  %v2087_v30 = vxor.u32 2147483648, %v10693_v16  ;;  %vm2089_vm4 = vcmp.eq.s32.totalorder %v2084_v57, 2 }
 0x316   : > { %v2182_v56 = vsel %vm13721_vm5, %v19883_v25, %v2179_v4  ;;  %v2341_v7 = vsel %vm2335_vm12, %v2338_v37, %v2340_v15  ;;  %v2091_v34 = vsel %vm2089_vm4, %v2090_v52, %v10693_v16  ;;  %v2187_v17 = vadd.s32 3, %v2183_v43 }
 0x317   : > { %10694 = vcosq.f32 %v2182_v56  ;;  %v9199_v27 = vadd.s32 4294967294, %v2266_v19  ;;  %v2088_v44 = vsel %vm2086_vm15, %v10691_v45, %v2087_v30  ;;  %vm2359_vm13 = vc.u32 %v13761_v51, %v13763_v2 }
 0x318   : > { %10696 = vsinq.f32 %v2182_v56  ;;  %v2360_v14 = vadd.s32 1, %v13764_v40  ;;  %vm2082_vm7 = vweird.f32 %v12760_v49  ;;  %v2092_v60 = vsel %vm2085_vm6, %v2088_v44, %v2091_v34 }
 0x319   : > { %vm9200_vm3 = vcmp.lt.s32.totalorder %v9199_v27, 0  ;;  %v2357_v11 = vmul.u32 %v2350_v21, %v2341_v7  ;;  %v2093_v59 = vsel %vm2082_vm7, nan, %v2092_v60  ;;  %v2254_v42 = vadd.s32 %v13664_v58, %v13662_v31 }
 0x31a   : > { %v2269_v37 = vsel %vm9200_vm3, 0, %v9199_v27  ;;  %v2361_v15 = vsel %vm2359_vm13, %v2360_v14, %v13764_v40  ;;  %9843 = vmatprep.mubr.msk.f32.mxu0 %vm6619_vm1, %v2093_v59  ;;  %v2284_v16 = vsub.s32 4, %v13725_v8  ;;  %v13800_v49 = vsub.s32 32, %v13653_v41  ;;  %v19896_v59 = vld [vmem:[#allocation41_spill] sm:$0xff] }
 0x31b   : > { %v2270_v45 = vsub.s32 32, %v2269_v37  ;;  %v2274_v43 = vsub.s32 4294967266, %v2269_v37  ;;  %v2362_v52 = vadd.s32 %v2361_v15, %v2357_v11  ;;  %v13804_v57 = vshll.u32 %v19733_v61, %v13653_v41 }
 0x31c   : > { %19892 = vst [vmem:[#allocation57_spill] sm:$0xff] %v13800_v49  ;;  %v13808_v31 = vshll.u32 %v19726_v46, %v13653_v41  ;;  %v2188_v58 = vand.u32 3, %v2187_v17  ;;  %v2271_v21 = vshll.u32 %v13745_v48, %v2269_v37  ;;  %v13813_v30 = vshrl.u32 %v19726_v46, %v13728_v39 }
 0x31d   : > { %v2272_v40 = vshrl.u32 %v2254_v42, %v2270_v45  ;;  %v2275_v4 = vadd.s32 127, %v2274_v43  ;;  %v2363_v19 = vadd.s32 536870912, %v2362_v52  ;;  %v13817_v56 = vshrl.u32 %v19727_v24, %v13728_v39 }
 0x31e   : > { %v13821_v7 = vshrl.u32 %v3657_v33, 23  ;;  %vm2200_vm10 = vcmp.lt.s32.totalorder %v19867_v26, 0  ;;  %v13829_v44 = vadd.f32 %v13717_v22, %v13352_v55  ;;  %vm2186_vm0 = vweird.f32 %v19883_v25  ;;  %v19897_v22 = vld [vmem:[#allocation93_spill] sm:$0xff] }
 0x31f   : > { %v2273_v34 = vor.u32 %v2272_v40, %v2271_v21  ;;  %v2276_v17 = vshll.u32 %v2275_v4, 23  ;;  %v2285_v48 = vsel %vm2200_vm10, %v2284_v16, %v13725_v8  ;;  %v2364_v27 = vshrl.u32 %v2363_v19, 30  ;;  %v19898_v19 = vld [vmem:[#allocation90_spill] sm:$0xff] }
 0x320   : > { %19893 = vst [vmem:[#allocation61_spill] sm:$0xff] %v13829_v44  ;;  %vm2189_vm11 = vcmp.lt.s32.totalorder %v2188_v58, 2  ;;  %vm13834_vm5 = vcmp.le.f32.partialorder %v2198_v12, 0.7853982  ;;  %vm2190_vm2 = vcmp.eq.s32.totalorder %v2188_v58, 0  ;;  %vm2193_vm8 = vcmp.eq.s32.totalorder %v2188_v58, 2 }
 0x321   : > { %v10695_v14 = vpop.eup %10694  ;;  %v2277_v60 = vor.u32 4788187, %v2276_v17  ;;  %v2365_v11 = vshll.u32 %v2364_v27, 30  ;;  %v2287_v55 = vsel %vm13834_vm5, 0, %v2285_v48  ;;  %vm2304_vm12 = vcmp.lt.s32.totalorder %v19875_v53, 0 }
 0x322   : > { %v10697_v42 = vpop.eup %10696  ;;  %v2194_v37 = vxor.u32 2147483648, %v10695_v14  ;;  %v2430_v12 = vshrl.u32 %v19733_v61, %v19897_v22  ;;  %v2280_v43 = vcvt.s32.f32 %v2273_v34  ;;  %v2424_v40 = vshrl.u32 %v19731_v29, %v19897_v22 }
 0x323   : > { %v2191_v15 = vxor.u32 2147483648, %v10697_v42  ;;  %v2278_v45 = vand.u32 2147483647, %v2277_v60  ;;  %v13844_v16 = vsub.s32 %v2362_v52, %v2365_v11  ;;  %v2427_v4 = vshrl.u32 %v19820_v63, %v19897_v22 }
 0x324   : > { %v2195_v21 = vsel %vm2193_vm8, %v2194_v37, %v10697_v42  ;;  %v2429_v17 = vshll.u32 %v19820_v63, %v19898_v19  ;;  %v19899_v60 = vand.u32 2147483647, %v19896_v59  ;;  %v2423_v11 = vshll.u32 %v19730_v18, %v19898_v19 }
 0x325   : > { %v2192_v48 = vsel %vm2190_vm2, %v10695_v14, %v2191_v15  ;;  %v2281_v8 = vmul.f32 %v2280_v43, %v2278_v45  ;;  %v2368_v9 = vsub.s32 0, %v13844_v16  ;;  %v2426_v42 = vshll.u32 %v19731_v29, %v19898_v19  ;;  %v13871_v19 = vpop.permute.xlu1 %1074 }
 0x326   : > { %v2413_v34 = vand.u32 8388607, %v19899_v60  ;;  %v2196_v52 = vsel %vm2189_vm11, %v2192_v48, %v2195_v21  ;;  %v2431_v37 = vor.u32 %v2430_v12, %v2429_v17  ;;  %v2388_v15 = vsub.s32 4, %v2364_v27  ;;  %v19904_v60 = vld [vmem:[#allocation105_spill] sm:$0xff] }
 0x327   : > { %v2197_v39 = vsel %vm2186_vm0, nan, %v2196_v52  ;;  %v2282_v28 = vxor.u32 2147483648, %v2281_v8  ;;  %v9202_v14 = vmin.u32 %v2368_v9, %v13844_v16  ;;  %v2291_v45 = vadd.s32 3, %v2287_v55  ;;  %v19903_v55 = vld [vmem:[#allocation98_spill] sm:$0xff] }
 0x328   : > { %9844 = vmatmul.mubr.msk.f32.gmra.mrb[4].mxu0 %vm6619_vm1, %v2197_v39  ;;  %v19900_v58 = vand.u32 2147483647, %v19875_v53  ;;  %v2425_v21 = vor.u32 %v2424_v40, %v2423_v11  ;;  %v2428_v48 = vor.u32 %v2427_v4, %v2426_v42  ;;  %v2414_v17 = vor.u32 8388608, %v2413_v34  ;;  %v19905_v11 = vld [vmem:[#allocation107_spill] sm:$0xff]  ;;  %v19906_v42 = vld [vmem:[#allocation101_spill] sm:$0xff] }
 0x329   : > { %v2283_v25 = vsel %vm2200_vm10, %v2282_v28, %v2281_v8  ;;  %v2370_v12 = vclz %v9202_v14  ;;  %v2422_v9 = vshrl.u32 %v19730_v18, %v19897_v22  ;;  %vm2438_vm15 = vcmp.lt.s32.totalorder %v19903_v55, 1 }
 0x32a   : > { %vm13867_vm6 = vcmp.le.f32.partialorder %v19900_v58, 0.7853982  ;;  %v2286_v39 = vsel %vm13834_vm5, %v19867_v26, %v2283_v25  ;;  %vm2439_vm4 = vcmp.lt.s32.totalorder %v19903_v55, 2  ;;  %v2443_v40 = vsel %vm2441_vm9, %v2431_v37, 2102212464 }
 0x32b   : > { %10698 = vcosq.f32 %v2286_v39  ;;  %v9203_v4 = vadd.s32 4294967294, %v2370_v12  ;;  %v2389_v28 = vsel %vm2304_vm12, %v2388_v15, %v2364_v27  ;;  %vm2440_vm13 = vcmp.lt.s32.totalorder %v19903_v55, 3  ;;  %v755_v15 = vpop.permute.xlu1 %754 }
 0x32c   : > { %10700 = vsinq.f32 %v2286_v39  ;;  %v2442_v8 = vsel %vm2438_vm15, %v2422_v9, %v2425_v21  ;;  %v2446_v22 = vsel %vm2438_vm15, %v2425_v21, %v2428_v48  ;;  %v2448_v33 = vsel %vm2440_vm13, %v2431_v37, %v19904_v60 }
 0x32d   : > { %vm9204_vm7 = vcmp.lt.s32.totalorder %v9203_v4, 0  ;;  %v2444_v34 = vsel %vm2440_vm13, %v2428_v48, %v2443_v40  ;;  %v2450_v52 = vsel %vm2438_vm15, %v2428_v48, %v2431_v37  ;;  %v2452_v14 = vsel %vm2440_vm13, %v19906_v42, %v19905_v11  ;;  %v11069_v42 = vld [vmem:[#allocation7] ss:$0 sm:$0xff] }
 0x32e   : > { %v2292_v58 = vand.u32 3, %v2291_v45  ;;  %v2358_v25 = vadd.s32 %v13763_v2, %v13761_v51  ;;  %v2373_v12 = vsel %vm9204_vm7, 0, %v9203_v4  ;;  %v2453_v27 = vsel %vm2439_vm4, %v2450_v52, %v2452_v14  ;;  %v19907_v51 = vld [vmem:[#allocation46_spill] sm:$0xff] }
 0x32f   : > { %v2374_v39 = vsub.s32 32, %v2373_v12  ;;  %v2378_v9 = vsub.s32 4294967266, %v2373_v12  ;;  %v2449_v21 = vsel %vm2439_vm4, %v2446_v22, %v2448_v33  ;;  %v2454_v60 = vshll.u32 %v2414_v17, 8  ;;  %v19908_v33 = vld [vmem:[#allocation73_spill] sm:$0xff] }
 0x330   : > { %v2375_v37 = vshll.u32 %v13844_v16, %v2373_v12  ;;  %v2391_v48 = vsel %vm13867_vm6, 0, %v2389_v28  ;;  %v2445_v45 = vsel %vm2439_vm4, %v2442_v8, %v2444_v34  ;;  %v19490_v2 = vand.u32 2147483647, %v19907_v51 }
 0x331   : > { %v2376_v40 = vshrl.u32 %v2358_v25, %v2374_v39  ;;  %v2379_v4 = vadd.s32 127, %v2378_v9  ;;  %v13902_v52 = vmul.u32.u64.low %v2454_v60, %v2453_v27  ;;  %v13903_v11 = vmul.u32.u64.high %v2454_v60, %v2453_v27, %v13902_v52 }
 0x332   : > { %v13905_v14 = vmul.f32 %v11069_v42, %v755_v15  ;;  %vm2290_vm9 = vweird.f32 %v19867_v26  ;;  %v13908_v17 = vmul.u32.u64.low %v2454_v60, %v2449_v21  ;;  %v13909_v16 = vmul.u32.u64.high %v2454_v60, %v2449_v21, %v13908_v17  ;;  %v19909_v15 = vld [vmem:[#allocation68_spill] sm:$0xff] }
 0x333   : > { %vm2293_vm3 = vcmp.lt.s32.totalorder %v2292_v58, 2  ;;  %vm2294_vm10 = vcmp.eq.s32.totalorder %v2292_v58, 0  ;;  %v2377_v55 = vor.u32 %v2376_v40, %v2375_v37  ;;  %v2380_v28 = vshll.u32 %v2379_v4, 23 }
 0x334   : > { %vm2297_vm0 = vcmp.eq.s32.totalorder %v2292_v58, 2  ;;  %v2395_v8 = vadd.s32 3, %v2391_v48  ;;  %v2461_v22 = vmul.u32 %v2454_v60, %v2445_v45  ;;  %v2528_v34 = vshrl.u32 %v19731_v29, %v19908_v33 }
 0x335   : > { %v10699_v25 = vpop.eup %10698  ;;  %v2381_v12 = vor.u32 4788187, %v2380_v28  ;;  %vm2463_vm11 = vc.u32 %v13903_v11, %v13908_v17  ;;  %v2517_v27 = vand.u32 8388607, %v19490_v2  ;;  %v2527_v39 = vshll.u32 %v19730_v18, %v19909_v15 }
 0x336   : > { %v10701_v9 = vpop.eup %10700  ;;  %v2298_v21 = vxor.u32 2147483648, %v10699_v25  ;;  %v2384_v37 = vcvt.s32.f32 %v2377_v55  ;;  %v2464_v48 = vadd.s32 1, %v13909_v16  ;;  %v2530_v60 = vshll.u32 %v19731_v29, %v19909_v15 }
 0x337   : > { %v2295_v45 = vxor.u32 2147483648, %v10701_v9  ;;  %v2382_v40 = vand.u32 2147483647, %v2381_v12  ;;  %v2529_v4 = vor.u32 %v2528_v34, %v2527_v39  ;;  %v2531_v52 = vshrl.u32 %v19820_v63, %v19908_v33 }
 0x338   : > { %v2299_v42 = vsel %vm2297_vm0, %v2298_v21, %v10701_v9  ;;  %v2465_v28 = vsel %vm2463_vm11, %v2464_v48, %v13909_v16  ;;  %v2533_v2 = vshll.u32 %v19820_v63, %v19909_v15  ;;  %v2534_v55 = vshrl.u32 %v19733_v61, %v19908_v33  ;;  %v19913_v48 = vld [vmem:[#allocation81_spill] sm:$0xff] }
 0x339   : > { %v2296_v41 = vsel %vm2294_vm10, %v10699_v25, %v2295_v45  ;;  %v2385_v20 = vmul.f32 %v2384_v37, %v2382_v40  ;;  %v2466_v0 = vadd.s32 %v2465_v28, %v2461_v22  ;;  %v2532_v3 = vor.u32 %v2531_v52, %v2530_v60  ;;  %v19914_v60 = vld [vmem:[#allocation76_spill] sm:$0xff] }
 0x33a   : > { %v2300_v34 = vsel %vm2293_vm3, %v2296_v41, %v2299_v42  ;;  %v2518_v12 = vor.u32 8388608, %v2517_v27  ;;  %v2535_v39 = vor.u32 %v2534_v55, %v2533_v2  ;;  %vm2542_vm5 = vcmp.lt.s32.totalorder %v19910_v54, 1  ;;  %v19911_v41 = vld [vmem:[#allocation80_spill] sm:$0xff] }
 0x33b   : > { %v2301_v16 = vsel %vm2290_vm9, nan, %v2300_v34  ;;  %v2386_v9 = vxor.u32 2147483648, %v2385_v20  ;;  %v2467_v21 = vadd.s32 536870912, %v2466_v0  ;;  %vm2544_vm2 = vcmp.lt.s32.totalorder %v19910_v54, 3  ;;  %v1079_v34 = vpop.permute.xlu0 %1078 }
 0x33c   : > { %9846 = vmatprep.mubr.msk.f32.mxu0 %vm6619_vm1, %v2301_v16  ;;  %v2526_v25 = vshrl.u32 %v19730_v18, %v19908_v33  ;;  %v2550_v58 = vsel %vm2542_vm5, %v2529_v4, %v2532_v3  ;;  %v2552_v2 = vsel %vm2544_vm2, %v2535_v39, %v19911_v41  ;;  %v2554_v26 = vsel %vm2542_vm5, %v2532_v3, %v2535_v39  ;;  %v11071_v41 = vld [vmem:[#allocation8] ss:$0 sm:$0xff] }
 0x33d   : > { %v2387_v22 = vsel %vm2304_vm12, %v2386_v9, %v2385_v20  ;;  %v2468_v27 = vshrl.u32 %v2467_v21, 30  ;;  %vm2543_vm8 = vcmp.lt.s32.totalorder %v19910_v54, 2  ;;  %vm19912_vm15 = vcmp.lt.s32.totalorder %v19910_v54, 4 }
 0x33e   : > { %v2547_v15 = vsel %vm19912_vm15, %v2535_v39, 2102212464  ;;  %v2390_v33 = vsel %vm13867_vm6, %v19875_v53, %v2387_v22  ;;  %v2553_v37 = vsel %vm2543_vm8, %v2550_v58, %v2552_v2  ;;  %v2556_v45 = vsel %vm2544_vm2, %v19914_v60, %v19913_v48 }
 0x33f   : > { %v2558_v40 = vshll.u32 %v2518_v12, 8  ;;  %10702 = vcosq.f32 %v2390_v33  ;;  %v13961_v20 = vand.u32 3, %v2395_v8  ;;  %v2469_v52 = vshll.u32 %v2468_v27, 30 }
 0x340   : > { %v2557_v42 = vsel %vm2543_vm8, %v2554_v26, %v2556_v45  ;;  %10704 = vsinq.f32 %v2390_v33  ;;  %v2546_v43 = vsel %vm2542_vm5, %v2526_v25, %v2529_v4  ;;  %v2548_v12 = vsel %vm2544_vm2, %v2532_v3, %v2547_v15  ;;  %v19916_v33 = vld [vmem:[#allocation99_spill] sm:$0xff] }
 0x341   : > { %v13967_v28 = vmul.u32.u64.low %v2558_v40, %v2557_v42  ;;  %v13968_v55 = vmul.u32.u64.high %v2558_v40, %v2557_v42, %v13967_v28  ;;  %v13970_v39 = vsub.s32 %v2466_v0, %v2469_v52  ;;  %v13980_v9 = vor.u32 %v13813_v30, %v13774_v23  ;;  %v11070_v0 = vld [vmem:[#allocation7 + $0x1] ss:$0 sm:$0xff] }
 0x342   : > { %v13974_v16 = vmul.u32.u64.low %v2558_v40, %v2553_v37  ;;  %v13975_v8 = vmul.u32.u64.high %v2558_v40, %v2553_v37, %v13974_v16  ;;  %v13984_v4 = vshrl.u32 %v19726_v46, %v13800_v49  ;;  %v13988_v21 = vshrl.u32 %v19727_v24, %v13800_v49 }
 0x343   : > { %v13991_v25 = vmul.f32 %v11070_v0, %v13871_v19  ;;  %v13994_v3 = vadd.s32 4294967169, %v13821_v7  ;;  %v13998_v23 = vadd.f32 %v11071_v41, %v13905_v14  ;;  %v2472_v30 = vsub.s32 0, %v13970_v39  ;;  %v19915_v19 = vld [vmem:[#allocation43_spill] sm:$0xff] }
 0x344   : > { %v14001_v2 = vmul.f32 %v11070_v0, %v1079_v34  ;;  %vm2408_vm12 = vcmp.lt.s32.totalorder %v19896_v59, 0  ;;  %v2549_v26 = vsel %vm2543_vm8, %v2546_v43, %v2548_v12  ;;  %v19496_v22 = vand.u32 2147483647, %v19915_v19  ;;  %v19917_v43 = vld [vmem:[#allocation95_spill] sm:$0xff] }
 0x345   : > { %vm2397_vm6 = vcmp.lt.s32.totalorder %v13961_v20, 2  ;;  %v9206_v7 = vmin.u32 %v2472_v30, %v13970_v39  ;;  %vm2567_vm4 = vc.u32 %v13968_v55, %v13974_v16  ;;  %v2568_v14 = vadd.s32 1, %v13975_v8 }
 0x346   : > { %vm2394_vm13 = vweird.f32 %v19875_v53  ;;  %vm2398_vm7 = vcmp.eq.s32.totalorder %v13961_v20, 0  ;;  %v2492_v15 = vsub.s32 4, %v2468_v27  ;;  %v2632_v54 = vshrl.u32 %v19731_v29, %v19916_v33 }
 0x347   : > { %v2635_v37 = vshrl.u32 %v19820_v63, %v19916_v33  ;;  %vm2401_vm9 = vcmp.eq.s32.totalorder %v13961_v20, 2  ;;  %v2462_v48 = vadd.s32 %v13908_v17, %v13903_v11  ;;  %v2474_v60 = vclz %v9206_v7 }
 0x348   : > { %v2565_v45 = vmul.u32 %v2558_v40, %v2549_v26  ;;  %v2569_v52 = vsel %vm2567_vm4, %v2568_v14, %v13975_v8  ;;  %v2621_v42 = vand.u32 8388607, %v19496_v22  ;;  %v2631_v28 = vshll.u32 %v19730_v18, %v19917_v43 }
 0x349   : > { %v2634_v34 = vshll.u32 %v19731_v29, %v19917_v43  ;;  %v10703_v12 = vpop.eup %10702  ;;  %v9207_v0 = vadd.s32 4294967294, %v2474_v60  ;;  %v2637_v30 = vshll.u32 %v19820_v63, %v19917_v43  ;;  %v2638_v11 = vshrl.u32 %v19733_v61, %v19916_v33 }
 0x34a   : > { %v2570_v41 = vadd.s32 %v2569_v52, %v2565_v45  ;;  %v10705_v17 = vpop.eup %10704  ;;  %v2402_v40 = vxor.u32 2147483648, %v10703_v12  ;;  %v19918_v8 = vand.u32 2147483647, %v19896_v59  ;;  %v2493_v7 = vsel %vm2408_vm12, %v2492_v15, %v2468_v27 }
 0x34b   : > { %v2633_v14 = vor.u32 %v2632_v54, %v2631_v28  ;;  %v2636_v60 = vor.u32 %v2635_v37, %v2634_v34  ;;  %v2399_v45 = vxor.u32 2147483648, %v10705_v17  ;;  %vm9208_vm10 = vcmp.lt.s32.totalorder %v9207_v0, 0 }
 0x34c   : > { %vm14034_vm3 = vcmp.le.f32.partialorder %v19918_v8, 0.7853982  ;;  %v2571_v52 = vadd.s32 536870912, %v2570_v41  ;;  %v2639_v43 = vor.u32 %v2638_v11, %v2637_v30  ;;  %v2403_v22 = vsel %vm2401_vm9, %v2402_v40, %v10705_v17 }
 0x34d   : > { %v2477_v58 = vsel %vm9208_vm10, 0, %v9207_v0  ;;  %v2622_v49 = vor.u32 8388608, %v2621_v42  ;;  %vm2646_vm0 = vcmp.lt.s32.totalorder %v13126_v5, 1  ;;  %v2400_v8 = vsel %vm2398_vm7, %v10703_v12, %v2399_v45  ;;  %v19921_v12 = vld [vmem:[#allocation111_spill] sm:$0xff] }
 0x34e   : > { %v2478_v24 = vsub.s32 32, %v2477_v58  ;;  %v2482_v46 = vsub.s32 4294967266, %v2477_v58  ;;  %vm2648_vm11 = vcmp.lt.s32.totalorder %v13126_v5, 3  ;;  %v2404_v27 = vsel %vm2397_vm6, %v2400_v8, %v2403_v22 }
 0x34f   : > { %v2479_v15 = vshll.u32 %v13970_v39, %v2477_v58  ;;  %v14049_v54 = vshrl.u32 %v2571_v52, 30  ;;  %v2654_v37 = vsel %vm2646_vm0, %v2633_v14, %v2636_v60  ;;  %v2405_v42 = vsel %vm2394_vm13, nan, %v2404_v27 }
 0x350   : > { %v2480_v28 = vshrl.u32 %v2462_v48, %v2478_v24  ;;  %v2483_v34 = vadd.s32 127, %v2482_v46  ;;  %v2656_v0 = vsel %vm2648_vm11, %v2639_v43, %v19921_v12  ;;  %9847 = vmatmul.mubr.msk.f32.gmra.mrb[6].mxu0 %vm6619_vm1, %v2405_v42  ;;  %v2630_v39 = vshrl.u32 %v19730_v18, %v19916_v33  ;;  %v19923_v24 = vld [vmem:[#allocation112_spill] sm:$0xff] }
 0x351   : > { %v2573_v20 = vshll.u32 %v14049_v54, 30  ;;  %vm2647_vm5 = vcmp.lt.s32.totalorder %v13126_v5, 2  ;;  %vm19922_vm2 = vcmp.lt.s32.totalorder %v13126_v5, 4  ;;  %v2658_v46 = vsel %vm2646_vm0, %v2636_v60, %v2639_v43  ;;  %v19924_v48 = vld [vmem:[#allocation108_spill] sm:$0xff] }
 0x352   : > { %v2651_v58 = vsel %vm19922_vm2, %v2639_v43, 2102212464  ;;  %v2481_v53 = vor.u32 %v2480_v28, %v2479_v15  ;;  %v2484_v22 = vshll.u32 %v2483_v34, 23  ;;  %v2660_v30 = vsel %vm2648_vm11, %v19924_v48, %v19923_v24  ;;  %v19929_v24 = vld [vmem:[#allocation86_spill] sm:$0xff] }
 0x353   : > { %v14071_v11 = vsub.s32 %v2570_v41, %v2573_v20  ;;  %v2657_v33 = vsel %vm2647_vm5, %v2654_v37, %v2656_v0  ;;  %v2661_v17 = vsel %vm2647_vm5, %v2658_v46, %v2660_v30  ;;  %v2662_v40 = vshll.u32 %v2622_v49, 8  ;;  %v19926_v0 = vld [vmem:[#allocation52_spill] sm:$0xff] }
 0x354   : > { %v1255_v45 = vadd.f32 %v14001_v2, %v13998_v23  ;;  %v2485_v52 = vor.u32 4788187, %v2484_v22  ;;  %v2495_v43 = vsel %vm14034_vm3, 0, %v2493_v7  ;;  %v2650_v8 = vsel %vm2646_vm0, %v2630_v39, %v2633_v14 }
 0x355   : > { %v2576_v41 = vsub.s32 0, %v14071_v11  ;;  %v2652_v27 = vsel %vm2648_vm11, %v2636_v60, %v2651_v58  ;;  %v14086_v15 = vmul.u32.u64.low %v2662_v40, %v2661_v17  ;;  %v14087_v37 = vmul.u32.u64.high %v2662_v40, %v2661_v17, %v14086_v15 }
 0x356   : > { %v2486_v42 = vand.u32 2147483647, %v2485_v52  ;;  %v2488_v49 = vcvt.s32.f32 %v2481_v53  ;;  %v14089_v28 = vmul.u32.u64.low %v2662_v40, %v2657_v33  ;;  %v14090_v34 = vmul.u32.u64.high %v2662_v40, %v2657_v33, %v14089_v28 }
 0x357   : > { %v14097_v2 = vor.u32 %v13984_v4, %v13804_v57  ;;  %v14100_v7 = vadd.s32 1, %v13994_v3  ;;  %v9210_v14 = vmin.u32 %v2576_v41, %v14071_v11  ;;  %v19925_v60 = vand.u32 2139095040, %v13829_v44  ;;  %v19928_v4 = vld [vmem:[#allocation60_spill] sm:$0xff] }
 0x358   : > { %v14108_v20 = vadd.f32 %v19926_v0, %v1255_v45  ;;  %v2489_v39 = vmul.f32 %v2488_v49, %v2486_v42  ;;  %v2653_v58 = vsel %vm2647_vm5, %v2650_v8, %v2652_v27  ;;  %v2499_v53 = vadd.s32 3, %v2495_v43  ;;  %v19930_v43 = vld [vmem:[#allocation82_spill] sm:$0xff] }
 0x359   : > { %v14105_v12 = vshrl.u32 %v19925_v60, 23  ;;  %vm2512_vm8 = vcmp.lt.s32.totalorder %v19907_v51, 0  ;;  %v2578_v57 = vclz %v9210_v14  ;;  %v2718_v3 = vand.u32 2147483647, %v19928_v4 }
 0x35a   : > { %19927 = vst [vmem:[#allocation75_spill] sm:$0xff] %v14108_v20  ;;  %v2490_v22 = vxor.u32 2147483648, %v2489_v39  ;;  %vm2671_vm15 = vc.u32 %v14087_v37, %v14089_v28  ;;  %v2672_v46 = vadd.s32 1, %v14090_v34  ;;  %v2736_v48 = vshrl.u32 %v19731_v29, %v19929_v24 }
 0x35b   : > { %v2566_v30 = vadd.s32 %v13974_v16, %v13968_v55  ;;  %v9211_v5 = vadd.s32 4294967294, %v2578_v57  ;;  %v2596_v33 = vsub.s32 4, %v14049_v54  ;;  %v2669_v17 = vmul.u32 %v2662_v40, %v2653_v58 }
 0x35c   : > { %v2491_v45 = vsel %vm2408_vm12, %v2490_v22, %v2489_v39  ;;  %v2673_v52 = vsel %vm2671_vm15, %v2672_v46, %v14090_v34  ;;  %v2735_v8 = vshll.u32 %v19730_v18, %v19930_v43  ;;  %v2739_v41 = vshrl.u32 %v19820_v63, %v19929_v24 }
 0x35d   : > { %v2494_v27 = vsel %vm14034_vm3, %v19896_v59, %v2491_v45  ;;  %vm9212_vm6 = vcmp.lt.s32.totalorder %v9211_v5, 0  ;;  %v2674_v55 = vadd.s32 %v2673_v52, %v2669_v17  ;;  %v2738_v16 = vshll.u32 %v19731_v29, %v19930_v43 }
 0x35e   : > { %10706 = vcosq.f32 %v2494_v27  ;;  %v2581_v40 = vsel %vm9212_vm6, 0, %v9211_v5  ;;  %v2725_v15 = vand.u32 8388607, %v2718_v3  ;;  %v2737_v42 = vor.u32 %v2736_v48, %v2735_v8 }
 0x35f   : > { %10708 = vsinq.f32 %v2494_v27  ;;  %v2582_v49 = vsub.s32 32, %v2581_v40  ;;  %v2586_v34 = vsub.s32 4294967266, %v2581_v40  ;;  %v2740_v14 = vor.u32 %v2739_v41, %v2738_v16  ;;  %v19936_v41 = vld [vmem:[#allocation92_spill] sm:$0xff] }
 0x360   : > { %v2500_v60 = vand.u32 3, %v2499_v53  ;;  %v2675_v0 = vadd.s32 536870912, %v2674_v55  ;;  %v2741_v26 = vshll.u32 %v19820_v63, %v19930_v43  ;;  %v2742_v39 = vshrl.u32 %v19733_v61, %v19929_v24  ;;  %v19931_v53 = vld [vmem:[#allocation85_spill] sm:$0xff]  ;;  %v19937_v27 = vld [vmem:[#allocation88_spill] sm:$0xff] }
 0x361   : > { %v2583_v58 = vshll.u32 %v14071_v11, %v2581_v40  ;;  %v2584_v57 = vshrl.u32 %v2566_v30, %v2582_v49  ;;  %v2587_v22 = vadd.s32 127, %v2586_v34  ;;  %v2597_v46 = vsel %vm2512_vm8, %v2596_v33, %v14049_v54  ;;  %v19935_v33 = vld [vmem:[#allocation91_spill] sm:$0xff] }
 0x362   : > { %v14144_v48 = vshrl.u32 %v2675_v0, 30  ;;  %v2726_v5 = vor.u32 8388608, %v2725_v15  ;;  %v2743_v17 = vor.u32 %v2742_v39, %v2741_v26  ;;  %vm2750_vm12 = vcmp.lt.s32.totalorder %v19931_v53, 1 }
 0x363   : > { %v2585_v45 = vor.u32 %v2584_v57, %v2583_v58  ;;  %v2588_v52 = vshll.u32 %v2587_v22, 23  ;;  %vm2752_vm4 = vcmp.lt.s32.totalorder %v19931_v53, 3  ;;  %v2758_v43 = vsel %vm2750_vm12, %v2737_v42, %v2740_v14 }
 0x364   : > { %v19932_v11 = vand.u32 2147483647, %v19907_v51  ;;  %v2677_v54 = vshll.u32 %v14144_v48, 30  ;;  %v2760_v8 = vsel %vm2752_vm4, %v2743_v17, %v19935_v33  ;;  %v2764_v16 = vsel %vm2752_vm4, %v19937_v27, %v19936_v41 }
 0x365   : > { %vm2505_vm7 = vcmp.eq.s32.totalorder %v2500_v60, 2  ;;  %v2589_v40 = vor.u32 4788187, %v2588_v52  ;;  %vm2751_vm9 = vcmp.lt.s32.totalorder %v19931_v53, 2  ;;  %v2762_v0 = vsel %vm2750_vm12, %v2740_v14, %v2743_v17 }
 0x366   : > { %vm14152_vm13 = vcmp.le.f32.partialorder %v19932_v11, 0.7853982  ;;  %v14167_v49 = vsub.s32 %v2674_v55, %v2677_v54  ;;  %v2761_v34 = vsel %vm2751_vm9, %v2758_v43, %v2760_v8  ;;  %v2766_v26 = vshll.u32 %v2726_v5, 8 }
 0x367   : > { %v2599_v15 = vsel %vm14152_vm13, 0, %v2597_v46  ;;  %v2590_v39 = vand.u32 2147483647, %v2589_v40  ;;  %v2592_v58 = vcvt.s32.f32 %v2585_v45  ;;  %vm19938_vm3 = vcmp.lt.s32.totalorder %v19931_v53, 4 }
 0x368   : > { %v2755_v57 = vsel %vm19938_vm3, %v2743_v17, 2102212464  ;;  %v2765_v22 = vsel %vm2751_vm9, %v2762_v0, %v2764_v16  ;;  %v10707_v46 = vpop.eup %10706  ;;  %v2680_v52 = vsub.s32 0, %v14167_v49  ;;  %v2734_v55 = vshrl.u32 %v19730_v18, %v19929_v24 }
 0x369   : > { %v14180_v11 = vmul.u32.u64.low %v2766_v26, %v2765_v22  ;;  %v14181_v43 = vmul.u32.u64.high %v2766_v26, %v2765_v22, %v14180_v11  ;;  %v10709_v54 = vpop.eup %10708  ;;  %v2506_v33 = vxor.u32 2147483648, %v10707_v46  ;;  %v2593_v5 = vmul.f32 %v2592_v58, %v2590_v39 }
 0x36a   : > { %v14183_v8 = vmul.u32.u64.low %v2766_v26, %v2761_v34  ;;  %v14184_v45 = vmul.u32.u64.high %v2766_v26, %v2761_v34, %v14183_v8  ;;  %v2503_v17 = vxor.u32 2147483648, %v10709_v54  ;;  %v9214_v41 = vmin.u32 %v2680_v52, %v14167_v49 }
 0x36b   : > { %v2754_v27 = vsel %vm2750_vm12, %v2734_v55, %v2737_v42  ;;  %v2756_v24 = vsel %vm2752_vm4, %v2740_v14, %v2755_v57  ;;  %vm2498_vm10 = vweird.f32 %v19896_v59  ;;  %vm2502_vm0 = vcmp.eq.s32.totalorder %v2500_v60, 0  ;;  %v638_v14 = vld [vmem:[%s11954_s26 + $0x170] sm:$0xff]  ;;  %v14201_v57 = vld [vmem:[%s11954_s26 + $0x138] sm:$0xff] }
 0x36c   : > { %v2507_v16 = vsel %vm2505_vm7, %v2506_v33, %v10709_v54  ;;  %v2594_v40 = vxor.u32 2147483648, %v2593_v5  ;;  %vm2501_vm11 = vcmp.lt.s32.totalorder %v2500_v60, 2  ;;  %v2504_v34 = vsel %vm2502_vm0, %v10707_v46, %v2503_v17  ;;  %1174 = vperm.xlu0 %10669, %v638_v14   ;;  %839 = vperm.xlu1 %10656, %v14201_v57  }
 0x36d   : > { %v2603_v0 = vadd.s32 3, %v2599_v15  ;;  %v2682_v39 = vclz %v9214_v41  ;;  %v2508_v58 = vsel %vm2501_vm11, %v2504_v34, %v2507_v16  ;;  %v2700_v52 = vsub.s32 4, %v14144_v48  ;;  %v19939_v15 = vld [vmem:[#allocation77_spill] sm:$0xff] }
 0x36e   : > { %v2595_v22 = vsel %vm2512_vm8, %v2594_v40, %v2593_v5  ;;  %v2757_v42 = vsel %vm2751_vm9, %v2754_v27, %v2756_v24  ;;  %v2509_v59 = vsel %vm2498_vm10, nan, %v2508_v58  ;;  %vm2775_vm5 = vc.u32 %v14181_v43, %v14183_v8 }
 0x36f   : > { %v2598_v60 = vsel %vm14152_vm13, %v19907_v51, %v2595_v22  ;;  %v9215_v46 = vadd.s32 4294967294, %v2682_v39  ;;  %9849 = vmatprep.mubr.msk.f32.mxu0 %vm6619_vm1, %v2509_v59  ;;  %vm2616_vm2 = vcmp.lt.s32.totalorder %v19915_v19, 0  ;;  %v2776_v53 = vadd.s32 1, %v14184_v45  ;;  %v19944_v22 = vld [vmem:[#allocation97_spill] sm:$0xff] }
 0x370   : > { %10710 = vcosq.f32 %v2598_v60  ;;  %v19501_v55 = vand.u32 2147483647, %v19939_v15  ;;  %v14213_v11 = vand.u32 3, %v2603_v0  ;;  %v2773_v30 = vmul.u32 %v2766_v26, %v2757_v42  ;;  %10657 = vset.pattern.permute.xlu1 %v19739_v13  ;;  %10673 = vset.pattern.permute.xlu0 %v19739_v13  ;;  %v11072_v0 = vld [vmem:[%s11954_s26 + $0x128] sm:$0xff] }
 0x371   : > { %10712 = vsinq.f32 %v2598_v60  ;;  %vm9216_vm8 = vcmp.lt.s32.totalorder %v9215_v46, 0  ;;  %v19940_v54 = vand.u32 2147483647, %v19915_v19  ;;  %v2670_v5 = vadd.s32 %v14089_v28, %v14087_v37  ;;  %v19943_v28 = vld [vmem:[#allocation102_spill] sm:$0xff]  ;;  %1431 = vperm.xlu1 %10657, %v11072_v0  }
 0x372   : > { %v2685_v17 = vsel %vm9216_vm8, 0, %v9215_v46  ;;  %v2777_v41 = vsel %vm2775_vm5, %v2776_v53, %v14184_v45  ;;  %v14227_v16 = vsel %vm2616_vm2, %v2700_v52, %v14144_v48  ;;  %v2829_v37 = vand.u32 8388607, %v19501_v55 }
 0x373   : > { %vm14217_vm15 = vcmp.le.f32.partialorder %v19940_v54, 0.7853982  ;;  %v2686_v27 = vsub.s32 32, %v2685_v17  ;;  %v2690_v24 = vsub.s32 4294967266, %v2685_v17  ;;  %v2778_v26 = vadd.s32 %v2777_v41, %v2773_v30 }
 0x374   : > { %v2687_v40 = vshll.u32 %v14167_v49, %v2685_v17  ;;  %v2840_v45 = vshrl.u32 %v19731_v29, %v19943_v28  ;;  %v2843_v34 = vshrl.u32 %v19820_v63, %v19943_v28  ;;  %vm2606_vm6 = vcmp.eq.s32.totalorder %v14213_v11, 0 }
 0x375   : > { %v2688_v48 = vshrl.u32 %v2670_v5, %v2686_v27  ;;  %v2691_v39 = vadd.s32 127, %v2690_v24  ;;  %v2779_v58 = vadd.s32 536870912, %v2778_v26  ;;  %v2842_v52 = vshll.u32 %v19731_v29, %v19944_v22  ;;  %10658 = vset.pattern.permute.xlu1 %v19744_v50 }
 0x376   : > { %vm3665_vm12 = vcmp.gt.s32.totalorder %v14100_v7, 0  ;;  %vm2605_vm4 = vcmp.lt.s32.totalorder %v14213_v11, 2  ;;  %vm2609_vm13 = vcmp.eq.s32.totalorder %v14213_v11, 2  ;;  %v2839_v49 = vshll.u32 %v19730_v18, %v19944_v22  ;;  %1146 = vperm.xlu1 %10658, %v14201_v57  }
 0x377   : > { %v2845_v42 = vshll.u32 %v19820_v63, %v19944_v22  ;;  %v2846_v14 = vshrl.u32 %v19733_v61, %v19943_v28  ;;  %vm2602_vm7 = vweird.f32 %v19907_v51  ;;  %v2689_v59 = vor.u32 %v2688_v48, %v2687_v40  ;;  %v19945_v40 = vld [vmem:[#allocation104_spill] sm:$0xff] }
 0x378   : > { %v2692_v60 = vshll.u32 %v2691_v39, 23  ;;  %v14252_v46 = vshrl.u32 %v2779_v58, 30  ;;  %v2844_v53 = vor.u32 %v2843_v34, %v2842_v52  ;;  %v2703_v30 = vsel %vm14217_vm15, 0, %v14227_v16 }
 0x379   : > { %v2838_v54 = vshrl.u32 %v19730_v18, %v19943_v28  ;;  %v2841_v5 = vor.u32 %v2840_v45, %v2839_v49  ;;  %v2847_v17 = vor.u32 %v2846_v14, %v2845_v42  ;;  %v2830_v24 = vor.u32 8388608, %v2829_v37  ;;  %v19947_v28 = vld [vmem:[#allocation114_spill] sm:$0xff]  ;;  %v19949_v14 = vld [vmem:[#allocation113_spill] sm:$0xff] }
 0x37a   : > { %v2693_v41 = vor.u32 4788187, %v2692_v60  ;;  %v2781_v27 = vshll.u32 %v14252_v46, 30  ;;  %vm2856_vm9 = vcmp.lt.s32.totalorder %v19945_v40, 3  ;;  %v10711_v34 = vpop.eup %10710  ;;  %v2696_v0 = vcvt.s32.f32 %v2689_v59  ;;  %v19948_v45 = vld [vmem:[#allocation110_spill] sm:$0xff]  ;;  %10659 = vset.pattern.permute.xlu1 %v19729_v6 }
 0x37b   : > { %vm2854_vm3 = vcmp.lt.s32.totalorder %v19945_v40, 1  ;;  %vm19946_vm10 = vcmp.lt.s32.totalorder %v19945_v40, 4  ;;  %v2868_v48 = vsel %vm2856_vm9, %v19948_v45, %v19947_v28  ;;  %v10713_v39 = vpop.eup %10712  ;;  %v2610_v58 = vxor.u32 2147483648, %v10711_v34 }
 0x37c   : > { %v2859_v16 = vsel %vm19946_vm10, %v2847_v17, 2102212464  ;;  %v2694_v22 = vand.u32 2147483647, %v2693_v41  ;;  %v14270_v37 = vsub.s32 %v2778_v26, %v2781_v27  ;;  %v2866_v52 = vsel %vm2854_vm3, %v2844_v53, %v2847_v17 }
 0x37d   : > { %v2607_v49 = vxor.u32 2147483648, %v10713_v39  ;;  %vm2855_vm0 = vcmp.lt.s32.totalorder %v19945_v40, 2  ;;  %v2862_v42 = vsel %vm2854_vm3, %v2841_v5, %v2844_v53  ;;  %v2864_v59 = vsel %vm2856_vm9, %v2847_v17, %v19949_v14  ;;  %v11073_v17 = vld [vmem:[%s11954_s26 + $0x140] sm:$0xff] }
 0x37e   : > { %v2611_v60 = vsel %vm2609_vm13, %v2610_v58, %v10713_v39  ;;  %v2697_v55 = vmul.f32 %v2696_v0, %v2694_v22  ;;  %v2784_v28 = vsub.s32 0, %v14270_v37  ;;  %v2858_v45 = vsel %vm2854_vm3, %v2838_v54, %v2841_v5  ;;  %844 = vperm.xlu1 %10659, %v11073_v17   ;;  %v19951_v17 = vld [vmem:[#allocation106_spill] sm:$0xff] }
 0x37f   : > { %v2608_v26 = vsel %vm2606_vm6, %v10711_v34, %v2607_v49  ;;  %v2860_v41 = vsel %vm2856_vm9, %v2844_v53, %v2859_v16  ;;  %v2869_v27 = vsel %vm2855_vm0, %v2866_v52, %v2868_v48  ;;  %v2870_v23 = vshll.u32 %v2830_v24, 8 }
 0x380   : > { %v2612_v0 = vsel %vm2605_vm4, %v2608_v26, %v2611_v60  ;;  %v2698_v39 = vxor.u32 2147483648, %v2697_v55  ;;  %v9218_v54 = vmin.u32 %v2784_v28, %v14270_v37  ;;  %v2865_v5 = vsel %vm2855_vm0, %v2862_v42, %v2864_v59  ;;  %v19950_v42 = vld [vmem:[#allocation84_spill] sm:$0xff] }
 0x381   : > { %v2613_v34 = vsel %vm2602_vm7, nan, %v2612_v0  ;;  %v2707_v58 = vadd.s32 3, %v2703_v30  ;;  %v14294_v53 = vmul.u32.u64.low %v2870_v23, %v2869_v27  ;;  %v14295_v16 = vmul.u32.u64.high %v2870_v23, %v2869_v27, %v14294_v53 }
 0x382   : > { %v14300_v24 = vsel %vm3665_vm12, %v14100_v7, 0  ;;  %v14303_v11 = vadd.s32 4294967169, %v14105_v12  ;;  %9850 = vmatmul.mubr.msk.f32.gmra.mrb[8].mxu0 %vm6619_vm1, %v2613_v34  ;;  %v2699_v48 = vsel %vm2616_vm2, %v2698_v39, %v2697_v55  ;;  %v2786_v22 = vclz %v9218_v54 }
 0x383   : > { %v2702_v51 = vsel %vm14217_vm15, %v19915_v19, %v2699_v48  ;;  %v2861_v30 = vsel %vm2855_vm0, %v2858_v45, %v2860_v41  ;;  %v14313_v52 = vmul.u32.u64.low %v2870_v23, %v2865_v5  ;;  %v14314_v49 = vmul.u32.u64.high %v2870_v23, %v2865_v5, %v14313_v52 }
 0x384   : > { %v3865_v7 = vand.u32 2139095040, %v14108_v20  ;;  %10714 = vcosq.f32 %v2702_v51  ;;  %v9219_v12 = vadd.s32 4294967294, %v2786_v22  ;;  %v19503_v14 = vand.u32 2147483647, %v19950_v42 }
 0x385   : > { %10716 = vsinq.f32 %v2702_v51  ;;  %v14319_v55 = vand.u32 3, %v2707_v58  ;;  %vm2720_vm11 = vcmp.lt.s32.totalorder %v19928_v4, 0  ;;  %v2774_v33 = vadd.s32 %v14183_v8, %v14181_v43 }
 0x386   : > { %vm9220_vm5 = vcmp.lt.s32.totalorder %v9219_v12, 0  ;;  %v2804_v40 = vsub.s32 4, %v14252_v46  ;;  %v2877_v59 = vmul.u32 %v2870_v23, %v2861_v30  ;;  %vm2879_vm2 = vc.u32 %v14295_v16, %v14313_v52 }
 0x387   : > { %v2789_v60 = vsel %vm9220_vm5, 0, %v9219_v12  ;;  %v2880_v28 = vadd.s32 1, %v14314_v49  ;;  %v2933_v45 = vand.u32 8388607, %v19503_v14  ;;  %v2944_v26 = vshrl.u32 %v19731_v29, %v13178_v35 }
 0x388   : > { %v2790_v41 = vsub.s32 32, %v2789_v60  ;;  %v2794_v27 = vsub.s32 4294967266, %v2789_v60  ;;  %v2943_v43 = vshll.u32 %v19730_v18, %v19951_v17  ;;  %v2946_v23 = vshll.u32 %v19731_v29, %v19951_v17 }
 0x389   : > { %vm2710_vm8 = vcmp.eq.s32.totalorder %v14319_v55, 0  ;;  %v2791_v8 = vshll.u32 %v14270_v37, %v2789_v60  ;;  %v2881_v0 = vsel %vm2879_vm2, %v2880_v28, %v14314_v49  ;;  %v2947_v39 = vshrl.u32 %v19820_v63, %v13178_v35 }
 0x38a   : > { %v2949_v54 = vshll.u32 %v19820_v63, %v19951_v17  ;;  %vm2709_vm15 = vcmp.lt.s32.totalorder %v14319_v55, 2  ;;  %v2792_v5 = vshrl.u32 %v2774_v33, %v2790_v41  ;;  %v2795_v34 = vadd.s32 127, %v2794_v27 }
 0x38b   : > { %v2882_v58 = vadd.s32 %v2881_v0, %v2877_v59  ;;  %v2950_v53 = vshrl.u32 %v19733_v61, %v13178_v35  ;;  %vm2706_vm6 = vweird.f32 %v19915_v19  ;;  %vm2713_vm12 = vcmp.eq.s32.totalorder %v14319_v55, 2 }
 0x38c   : > { %v14351_v37 = vsel %vm2720_vm11, %v2804_v40, %v14252_v46  ;;  %v2945_v48 = vor.u32 %v2944_v26, %v2943_v43  ;;  %v2948_v22 = vor.u32 %v2947_v39, %v2946_v23  ;;  %v2793_v51 = vor.u32 %v2792_v5, %v2791_v8  ;;  %v19952_v26 = vld [vmem:[#allocation121_spill] sm:$0xff] }
 0x38d   : > { %v2796_v30 = vshll.u32 %v2795_v34, 23  ;;  %v2883_v49 = vadd.s32 536870912, %v2882_v58  ;;  %v2951_v12 = vor.u32 %v2950_v53, %v2949_v54  ;;  %v2934_v33 = vor.u32 8388608, %v2933_v45 }
 0x38e   : > { %v2942_v59 = vshrl.u32 %v19730_v18, %v13178_v35  ;;  %vm2958_vm4 = vcmp.lt.s32.totalorder %v13175_v47, 1  ;;  %vm2960_vm13 = vcmp.lt.s32.totalorder %v13175_v47, 3  ;;  %v10715_v60 = vpop.eup %10714  ;;  %vm2959_vm7 = vcmp.lt.s32.totalorder %v13175_v47, 2 }
 0x38f   : > { %v2797_v28 = vor.u32 4788187, %v2796_v30  ;;  %v14357_v41 = vshrl.u32 %v2883_v49, 30  ;;  %v2972_v46 = vsel %vm2960_vm13, %v13240_v38, %v13311_v32  ;;  %v10717_v40 = vpop.eup %10716  ;;  %v2714_v45 = vxor.u32 2147483648, %v10715_v60 }
 0x390   : > { %v2966_v35 = vsel %vm2958_vm4, %v2945_v48, %v2948_v22  ;;  %v2968_v27 = vsel %vm2960_vm13, %v2951_v12, %v19952_v26  ;;  %v2970_v17 = vsel %vm2958_vm4, %v2948_v22, %v2951_v12  ;;  %v2711_v43 = vxor.u32 2147483648, %v10717_v40 }
 0x391   : > { %v2798_v23 = vand.u32 2147483647, %v2797_v28  ;;  %v2800_v8 = vcvt.s32.f32 %v2793_v51  ;;  %v2885_v0 = vshll.u32 %v14357_v41, 30  ;;  %vm3481_vm9 = vcmp.lt.s32.totalorder %v13511_v1, 4 }
 0x392   : > { %v2715_v38 = vsel %vm2713_vm12, %v2714_v45, %v10717_v40  ;;  %vm19953_vm3 = vcmp.lt.s32.totalorder %v13175_v47, 4  ;;  %v2973_v39 = vsel %vm2959_vm7, %v2970_v17, %v2972_v46  ;;  %v2974_v54 = vshll.u32 %v2934_v33, 8 }
 0x393   : > { %v2963_v32 = vsel %vm19953_vm3, %v2951_v12, 2102212464  ;;  %vm3377_vm10 = vcmp.lt.s32.totalorder %v13571_v62, 4  ;;  %v2712_v5 = vsel %vm2710_vm8, %v10715_v60, %v2711_v43  ;;  %v2801_v34 = vmul.f32 %v2800_v8, %v2798_v23 }
 0x394   : > { %v14382_v53 = vsub.s32 %v2882_v58, %v2885_v0  ;;  %v2969_v51 = vsel %vm2959_vm7, %v2966_v35, %v2968_v27  ;;  %v2716_v30 = vsel %vm2709_vm15, %v2712_v5, %v2715_v38  ;;  %v2962_v49 = vsel %vm2958_vm4, %v2942_v59, %v2945_v48 }
 0x395   : > { %v14390_v12 = vmul.u32.u64.low %v2974_v54, %v2973_v39  ;;  %v14391_v28 = vmul.u32.u64.high %v2974_v54, %v2973_v39, %v14390_v12  ;;  %v2717_v33 = vsel %vm2706_vm6, nan, %v2716_v30  ;;  %v2802_v46 = vxor.u32 2147483648, %v2801_v34  ;;  %v14460_v39 = vld [vmem:[%s11954_s26 + $0x148] sm:$0xff] }
 0x396   : > { %v2888_v60 = vsub.s32 0, %v14382_v53  ;;  %v2964_v58 = vsel %vm2960_vm13, %v2948_v22, %v2963_v32  ;;  %v3560_v40 = vadd.s32 1, %v14303_v11  ;;  %9852 = vmatprep.mubr.msk.f32.mxu0 %vm6619_vm1, %v2717_v33  ;;  %vm14402_vm0 = vcmp.le.f32.partialorder %v2718_v3, 0.7853982  ;;  %849 = vperm.xlu1 %10659, %v14460_v39  }
 0x397   : > { %v14406_v48 = vmul.u32.u64.low %v2974_v54, %v2969_v51  ;;  %v14407_v59 = vmul.u32.u64.high %v2974_v54, %v2969_v51, %v14406_v48  ;;  %v3373_v19 = vor.u32 %v13988_v21, %v13808_v31  ;;  %v2803_v22 = vsel %vm2720_vm11, %v2802_v46, %v2801_v34 }
 0x398   : > { %v2807_v11 = vsel %vm14402_vm0, 0, %v14351_v37  ;;  %v9222_v45 = vmin.u32 %v2888_v60, %v14382_v53  ;;  %v14420_v3 = vadd.f32 %v13991_v25, %v13426_v10  ;;  %v3866_v35 = vshrl.u32 %v3865_v7, 23  ;;  %v14432_v37 = vpop.permute.xlu1 %759 }
 0x399   : > { %v2806_v31 = vsel %vm14402_vm0, %v19928_v4, %v2803_v22  ;;  %v2965_v21 = vsel %vm2959_vm7, %v2962_v49, %v2964_v58  ;;  %v14430_v26 = vand.u32 31, %v14300_v24  ;;  %vm2983_vm11 = vc.u32 %v14391_v28, %v14406_v48 }
 0x39a   : > { %10718 = vcosq.f32 %v2806_v31  ;;  %v2890_v27 = vclz %v9222_v45  ;;  %vm3561_vm5 = vcmp.gt.s32.totalorder %v3560_v40, 0  ;;  %v2811_v10 = vadd.s32 3, %v2807_v11  ;;  %10660 = vset.pattern.permute.xlu1 %v19739_v13 }
 0x39b   : > { %19956 = vst [vmem:[#allocation78_spill] sm:$0xff] %v14430_v26  ;;  %10720 = vsinq.f32 %v2806_v31  ;;  %v2984_v25 = vadd.s32 1, %v14407_v59  ;;  %v14440_v47 = vsel %vm3481_vm9, %v13980_v9, 920167782  ;;  %v19957_v7 = vor.u32 %v13817_v56, %v13778_v36  ;;  %1439 = vperm.xlu1 %10660, %v14201_v57  }
 0x39c   : > { %v9223_v43 = vadd.s32 4294967294, %v2890_v27  ;;  %v2981_v23 = vmul.u32 %v2974_v54, %v2965_v21  ;;  %v14452_v8 = vsel %vm3377_vm10, %v14097_v2, 920167782  ;;  %v14456_v0 = vsel %vm3377_vm10, %v3373_v19, 1326507024  ;;  %v1368_v49 = vpop.permute.xlu1 %1367 }
 0x39d   : > { %v14447_v17 = vsel %vm3481_vm9, %v19957_v7, 1326507024  ;;  %v9261_v38 = vadd.s32 4294967169, %v3866_v35  ;;  %v2985_v32 = vsel %vm2983_vm11, %v2984_v25, %v14407_v59  ;;  %v14463_v36 = vshrl.u32 %v14300_v24, 5 }
 0x39e   : > { %v14465_v56 = vsel %vm3561_vm5, %v3560_v40, 0  ;;  %vm9224_vm2 = vcmp.lt.s32.totalorder %v9223_v43, 0  ;;  %v2986_v54 = vadd.s32 %v2985_v32, %v2981_v23  ;;  %v14469_v5 = vsub.s32 32, %v14430_v26 }
 0x39f   : > { %19958 = vst [vmem:[#allocation70_spill] sm:$0xff] %v14463_v36  ;;  %v14473_v34 = vshll.u32 %v19733_v61, %v14430_v26  ;;  %v2812_v51 = vand.u32 3, %v2811_v10  ;;  %v2893_v30 = vsel %vm9224_vm2, 0, %v9223_v43  ;;  %v2878_v24 = vadd.s32 %v14313_v52, %v14295_v16  ;;  %v14491_v16 = vld [vmem:[#allocation7 + $0x2] ss:$0 sm:$0xff]  ;;  %10661 = vset.pattern.permute.xlu1 %v19744_v50 }
 0x3a0   : > { %19959 = vst [vmem:[#allocation89_spill] sm:$0xff] %v14469_v5  ;;  %v2894_v12 = vsub.s32 32, %v2893_v30  ;;  %v2898_v33 = vsub.s32 4294967266, %v2893_v30  ;;  %v2987_v46 = vadd.s32 536870912, %v2986_v54  ;;  %v19960_v60 = vmov 920167782   ;;  %1154 = vperm.xlu1 %10661, %v14460_v39  }
 0x3a1   : > { %v14479_v58 = vshll.u32 %v19960_v60, %v14430_v26  ;;  %v14482_v40 = vand.u32 31, %v14465_v56  ;;  %v14484_v55 = vadd.s32 1, %v9261_v38  ;;  %v2908_v59 = vsub.s32 4, %v14357_v41 }
 0x3a2   : > { %v2895_v19 = vshll.u32 %v14382_v53, %v2893_v30  ;;  %v2896_v22 = vshrl.u32 %v2878_v24, %v2894_v12  ;;  %v2899_v11 = vadd.s32 127, %v2898_v33  ;;  %v14488_v45 = vshrl.u32 %v2987_v46, 30  ;;  %v19965_v30 = vld [vmem:[#allocation47_spill] sm:$0xff]  ;;  %v19966_v24 = vld [vmem:[#allocation117_spill] sm:$0xff] }
 0x3a3   : > { %19961 = vst [vmem:[#allocation87_spill] sm:$0xff] %v14482_v40  ;;  %v1499_v52 = vmul.f32 %v14491_v16, %v1368_v49  ;;  %vm2810_vm8 = vweird.f32 %v19928_v4  ;;  %v19962_v35 = vand.u32 2147483647, %v19939_v15  ;;  %vm2824_vm6 = vcmp.lt.s32.totalorder %v19939_v15, 0 }
 0x3a4   : > { %v10719_v53 = vpop.eup %10718  ;;  %vm2813_vm12 = vcmp.lt.s32.totalorder %v2812_v51, 2  ;;  %v2897_v21 = vor.u32 %v2896_v22, %v2895_v19  ;;  %v2900_v27 = vshll.u32 %v2899_v11, 23  ;;  %v2989_v10 = vshll.u32 %v14488_v45, 30  ;;  %10662 = vset.pattern.permute.xlu1 %v19729_v6 }
 0x3a5   : > { %vm14497_vm15 = vcmp.le.f32.partialorder %v19962_v35, 0.7853982  ;;  %v10721_v25 = vpop.eup %10720  ;;  %vm2814_vm4 = vcmp.eq.s32.totalorder %v2812_v51, 0  ;;  %vm2817_vm13 = vcmp.eq.s32.totalorder %v2812_v51, 2  ;;  %v2818_v7 = vxor.u32 2147483648, %v10719_v53  ;;  %v19967_v35 = vld [vmem:[#allocation115_spill] sm:$0xff] }
 0x3a6   : > { %v2909_v43 = vsel %vm2824_vm6, %v2908_v59, %v14357_v41  ;;  %v2815_v23 = vxor.u32 2147483648, %v10721_v25  ;;  %v2901_v38 = vor.u32 4788187, %v2900_v27  ;;  %v14507_v32 = vsub.s32 %v2986_v54, %v2989_v10 }
 0x3a7   : > { %v19502_v57 = vand.u32 2147483647, %v19965_v30  ;;  %v2819_v49 = vsel %vm2817_vm13, %v2818_v7, %v10721_v25  ;;  %v3048_v12 = vshrl.u32 %v19731_v29, %v19966_v24  ;;  %v3051_v33 = vshrl.u32 %v19820_v63, %v19966_v24 }
 0x3a8   : > { %v3054_v46 = vshrl.u32 %v19733_v61, %v19966_v24  ;;  %v2816_v19 = vsel %vm2814_vm4, %v10719_v53, %v2815_v23  ;;  %v2902_v41 = vand.u32 2147483647, %v2901_v38  ;;  %v2904_v59 = vcvt.s32.f32 %v2897_v21 }
 0x3a9   : > { %v2992_v54 = vsub.s32 0, %v14507_v32  ;;  %v2820_v22 = vsel %vm2813_vm12, %v2816_v19, %v2819_v49  ;;  %v2911_v11 = vsel %vm14497_vm15, 0, %v2909_v43  ;;  %v3047_v27 = vshll.u32 %v19730_v18, %v19967_v35 }
 0x3aa   : > { %v3050_v10 = vshll.u32 %v19731_v29, %v19967_v35  ;;  %v2821_v53 = vsel %vm2810_vm8, nan, %v2820_v22  ;;  %v2905_v25 = vmul.f32 %v2904_v59, %v2902_v41  ;;  %v3053_v51 = vshll.u32 %v19820_v63, %v19967_v35 }
 0x3ab   : > { %v9226_v21 = vmin.u32 %v2992_v54, %v14507_v32  ;;  %v3681_v7 = vshrl.u32 %v19960_v60, %v14469_v5  ;;  %9853 = vmatmul.mubr.msk.f32.gmra.mrb[10].mxu0 %vm6619_vm1, %v2821_v53  ;;  %v3037_v43 = vand.u32 8388607, %v19502_v57  ;;  %v3049_v23 = vor.u32 %v3048_v12, %v3047_v27  ;;  %v11075_v12 = vld [vmem:[%s11954_s26 + $0x150] sm:$0xff] }
 0x3ac   : > { %v3052_v38 = vor.u32 %v3051_v33, %v3050_v10  ;;  %v19968_v4 = vmov 1326507024   ;;  %v2906_v19 = vxor.u32 2147483648, %v2905_v25  ;;  %v3055_v59 = vor.u32 %v3054_v46, %v3053_v51  ;;  %854 = vperm.xlu1 %10662, %v11075_v12   ;;  %v19971_v10 = vld [vmem:[#allocation116_spill] sm:$0xff] }
 0x3ad   : > { %v14538_v49 = vshrl.u32 %v19968_v4, %v14469_v5  ;;  %v2994_v41 = vclz %v9226_v21  ;;  %v14542_v54 = vsub.s32 32, %v14482_v40  ;;  %vm3873_vm7 = vcmp.gt.s32.totalorder %v14484_v55, 0 }
 0x3ae   : > { %v14546_v22 = vadd.f32 %v1499_v52, %v14420_v3  ;;  %v2915_v35 = vadd.s32 3, %v2911_v11  ;;  %v2907_v33 = vsel %vm2824_vm6, %v2906_v19, %v2905_v25  ;;  %v3046_v46 = vshrl.u32 %v19730_v18, %v19966_v24  ;;  %v19973_v11 = vld [vmem:[#allocation124_spill] sm:$0xff] }
 0x3af   : > { %19969 = vst [vmem:[#allocation94_spill] sm:$0xff] %v14542_v54  ;;  %v9227_v27 = vadd.s32 4294967294, %v2994_v41  ;;  %vm3062_vm3 = vcmp.lt.s32.totalorder %v19971_v10, 1  ;;  %v2910_v53 = vsel %vm14497_vm15, %v19939_v15, %v2907_v33  ;;  %v3038_v21 = vor.u32 8388608, %v3037_v43 }
 0x3b0   : > { %19970 = vst [vmem:[#allocation100_spill] sm:$0xff] %v14546_v22  ;;  %vm3064_vm0 = vcmp.lt.s32.totalorder %v19971_v10, 3  ;;  %v3070_v3 = vsel %vm3062_vm3, %v3049_v23, %v3052_v38  ;;  %10722 = vcosq.f32 %v2910_v53  ;;  %vm19972_vm5 = vcmp.lt.s32.totalorder %v19971_v10, 4 }
 0x3b1   : > { %vm9228_vm11 = vcmp.lt.s32.totalorder %v9227_v27, 0  ;;  %v3067_v52 = vsel %vm19972_vm5, %v3055_v59, 2102212464  ;;  %v3072_v24 = vsel %vm3064_vm0, %v3055_v59, %v19973_v11  ;;  %10724 = vsinq.f32 %v2910_v53  ;;  %v19975_v53 = vld [vmem:[#allocation122_spill] sm:$0xff] }
 0x3b2   : > { %v2997_v25 = vsel %vm9228_vm11, 0, %v9227_v27  ;;  %vm3063_vm2 = vcmp.lt.s32.totalorder %v19971_v10, 2  ;;  %v3074_v31 = vsel %vm3062_vm3, %v3052_v38, %v3055_v59  ;;  %v2982_v51 = vadd.s32 %v14406_v48, %v14391_v28  ;;  %v19974_v27 = vld [vmem:[#allocation127_spill] sm:$0xff] }
 0x3b3   : > { %v2998_v43 = vsub.s32 32, %v2997_v25  ;;  %v3002_v19 = vsub.s32 4294967266, %v2997_v25  ;;  %v3073_v41 = vsel %vm3063_vm2, %v3070_v3, %v3072_v24  ;;  %v3066_v12 = vsel %vm3062_vm3, %v3046_v46, %v3049_v23 }
 0x3b4   : > { %v3068_v33 = vsel %vm3064_vm0, %v3052_v38, %v3067_v52  ;;  %v3076_v11 = vsel %vm3064_vm0, %v19975_v53, %v19974_v27  ;;  %v3078_v59 = vshll.u32 %v3038_v21, 8  ;;  %v2999_v57 = vshll.u32 %v14507_v32, %v2997_v25 }
 0x3b5   : > { %v3000_v28 = vshrl.u32 %v2982_v51, %v2998_v43  ;;  %v3003_v48 = vadd.s32 127, %v3002_v19  ;;  %v3077_v14 = vsel %vm3063_vm2, %v3074_v31, %v3076_v11  ;;  %v14591_v38 = vor.u32 %v3681_v7, %v14473_v34 }
 0x3b6   : > { %v14583_v3 = vmul.u32.u64.low %v3078_v59, %v3077_v14  ;;  %v14584_v24 = vmul.u32.u64.high %v3078_v59, %v3077_v14, %v14583_v3  ;;  %v14586_v23 = vmul.u32.u64.low %v3078_v59, %v3073_v41  ;;  %v14587_v46 = vmul.u32.u64.high %v3078_v59, %v3073_v41, %v14586_v23 }
 0x3b7   : > { %19976 = vst [vmem:[#allocation103_spill] sm:$0xff] %v14591_v38  ;;  %v14594_v52 = vshrl.u32 %v14465_v56, 5  ;;  %v3001_v21 = vor.u32 %v3000_v28, %v2999_v57  ;;  %v3004_v32 = vshll.u32 %v3003_v48, 23  ;;  %v14601_v14 = vsel %vm3873_vm7, %v14484_v55, 0 }
 0x3b8   : > { %v2916_v31 = vand.u32 3, %v2915_v35  ;;  %v3069_v51 = vsel %vm3063_vm2, %v3066_v12, %v3068_v33  ;;  %v3576_v34 = vshll.u32 %v19733_v61, %v14482_v40  ;;  %v3577_v56 = vshrl.u32 %v19960_v60, %v14542_v54 }
 0x3b9   : > { %v3005_v57 = vor.u32 4788187, %v3004_v32  ;;  %v3012_v7 = vsub.s32 4, %v14488_v45  ;;  %v14612_v43 = vshrl.u32 %v19968_v4, %v14542_v54  ;;  %v3761_v55 = vand.u32 2139095040, %v14546_v22 }
 0x3ba   : > { %vm3087_vm8 = vc.u32 %v14584_v24, %v14586_v23  ;;  %v3088_v35 = vadd.s32 1, %v14587_v46  ;;  %v10723_v10 = vpop.eup %10722  ;;  %v14619_v19 = vand.u32 31, %v14601_v14  ;;  %v3008_v12 = vcvt.s32.f32 %v3001_v21 }
 0x3bb   : > { %v3006_v41 = vand.u32 2147483647, %v3005_v57  ;;  %v3085_v33 = vmul.u32 %v3078_v59, %v3069_v51  ;;  %v10725_v27 = vpop.eup %10724  ;;  %vm3689_vm15 = vcmp.lt.s32.totalorder %v14463_v36, 4  ;;  %vm2921_vm6 = vcmp.eq.s32.totalorder %v2916_v31, 2 }
 0x3bc   : > { %19977 = vst [vmem:[#allocation96_spill] sm:$0xff] %v14619_v19  ;;  %v2922_v53 = vxor.u32 2147483648, %v10723_v10  ;;  %vm2928_vm12 = vcmp.lt.s32.totalorder %v19950_v42, 0  ;;  %v3089_v11 = vsel %vm3087_vm8, %v3088_v35, %v14587_v46  ;;  %v2919_v28 = vxor.u32 2147483648, %v10725_v27 }
 0x3bd   : > { %v3009_v48 = vmul.f32 %v3008_v12, %v3006_v41  ;;  %v3013_v3 = vsel %vm2928_vm12, %v3012_v7, %v14488_v45  ;;  %v3090_v32 = vadd.s32 %v3089_v11, %v3085_v33  ;;  %v3762_v25 = vshrl.u32 %v3761_v55, 23  ;;  %v19981_v7 = vld [vmem:[#allocation131_spill] sm:$0xff]  ;;  %v19983_v11 = vld [vmem:[#allocation126_spill] sm:$0xff] }
 0x3be   : > { %vm2918_vm4 = vcmp.eq.s32.totalorder %v2916_v31, 0  ;;  %v2923_v21 = vsel %vm2921_vm6, %v2922_v53, %v10725_v27  ;;  %v19978_v59 = vand.u32 2147483647, %v19950_v42  ;;  %vm2917_vm7 = vcmp.lt.s32.totalorder %v2916_v31, 2  ;;  %v19982_v27 = vld [vmem:[#allocation109_spill] sm:$0xff] }
 0x3bf   : > { %v2920_v57 = vsel %vm2918_vm4, %v10723_v10, %v2919_v28  ;;  %v3010_v20 = vxor.u32 2147483648, %v3009_v48  ;;  %v3091_v46 = vadd.s32 536870912, %v3090_v32  ;;  %vm2914_vm3 = vweird.f32 %v19939_v15 }
 0x3c0   : > { %vm14629_vm13 = vcmp.le.f32.partialorder %v19978_v59, 0.7853982  ;;  %v2924_v35 = vsel %vm2917_vm7, %v2920_v57, %v2923_v21  ;;  %v3158_v55 = vshrl.u32 %v19733_v61, %v19981_v7  ;;  %v19506_v31 = vand.u32 2147483647, %v19982_v27 }
 0x3c1   : > { %v3015_v45 = vsel %vm14629_vm13, 0, %v3013_v3  ;;  %v2925_v41 = vsel %vm2914_vm3, nan, %v2924_v35  ;;  %v3011_v12 = vsel %vm2928_vm12, %v3010_v20, %v3009_v48  ;;  %v14640_v33 = vshrl.u32 %v3091_v46, 30  ;;  %v14653_v48 = vpop.permute.xlu1 %1082 }
 0x3c2   : > { %9855 = vmatprep.mubr.msk.f32.mxu0 %vm6619_vm1, %v2925_v41  ;;  %v3014_v15 = vsel %vm14629_vm13, %v19950_v42, %v3011_v12  ;;  %v3152_v10 = vshrl.u32 %v19731_v29, %v19981_v7  ;;  %v3155_v53 = vshrl.u32 %v19820_v63, %v19981_v7  ;;  %v3157_v28 = vshll.u32 %v19820_v63, %v19983_v11 }
 0x3c3   : > { %v9257_v20 = vadd.s32 4294967169, %v3762_v25  ;;  %10726 = vcosq.f32 %v3014_v15  ;;  %v3019_v3 = vadd.s32 3, %v3015_v45  ;;  %v3093_v21 = vshll.u32 %v14640_v33, 30 }
 0x3c4   : > { %10728 = vsinq.f32 %v3014_v15  ;;  %v3151_v59 = vshll.u32 %v19730_v18, %v19983_v11  ;;  %v3154_v51 = vshll.u32 %v19731_v29, %v19983_v11  ;;  %v3159_v57 = vor.u32 %v3158_v55, %v3157_v28  ;;  %v19990_v28 = vld [vmem:[#allocation83_spill] sm:$0xff] }
 0x3c5   : > { %v14663_v46 = vsel %vm3689_vm15, %v14591_v38, 920167782  ;;  %v14667_v25 = vshll.u32 %v19960_v60, %v14482_v40  ;;  %v14669_v35 = vsub.s32 %v3090_v32, %v3093_v21  ;;  %v3141_v45 = vand.u32 8388607, %v19506_v31  ;;  %v14687_v21 = vld [vmem:[#allocation7] ss:$0 sm:$0xff] }
 0x3c6   : > { %19984 = vst [vmem:[#allocation42_spill] sm:$0xff] %v14663_v46  ;;  %v19985_v41 = vor.u32 %v14538_v49, %v14479_v58  ;;  %v14680_v12 = vor.u32 %v3577_v56, %v3576_v34  ;;  %v3153_v15 = vor.u32 %v3152_v10, %v3151_v59  ;;  %v3156_v11 = vor.u32 %v3155_v53, %v3154_v51  ;;  %v19989_v56 = vld [vmem:[#allocation128_spill] sm:$0xff]  ;;  %v765_v53 = vpop.permute.xlu1 %764 }
 0x3c7   : > { %v14685_v32 = vsub.s32 32, %v14619_v19  ;;  %v14691_v31 = vmul.f32 %v14687_v21, %v14432_v37  ;;  %v3096_v58 = vsub.s32 0, %v14669_v35  ;;  %v3768_v49 = vadd.s32 1, %v9257_v20  ;;  %v19991_v20 = vld [vmem:[#allocation55_spill] sm:$0xff] }
 0x3c8   : > { %v14678_v55 = vsel %vm3689_vm15, %v19985_v41, 1326507024  ;;  %19987 = vst [vmem:[#allocation58_spill] sm:$0xff] %v14680_v12  ;;  %v3020_v41 = vand.u32 3, %v3019_v3  ;;  %v3150_v34 = vshrl.u32 %v19730_v18, %v19981_v7  ;;  %v3171_v10 = vsel %vm3169_vm14, %v3159_v57, 2102212464 }
 0x3c9   : > { %19986 = vst [vmem:[#allocation54_spill] sm:$0xff] %v14678_v55  ;;  %19988 = vst [vmem:[#allocation38_spill] sm:$0xff] %v14685_v32  ;;  %v9230_v59 = vmin.u32 %v3096_v58, %v14669_v35  ;;  %v3142_v51 = vor.u32 8388608, %v3141_v45  ;;  %vm3166_vm0 = vcmp.lt.s32.totalorder %v19989_v56, 1  ;;  %vm3168_vm11 = vcmp.lt.s32.totalorder %v19989_v56, 3  ;;  %v19992_v3 = vld [vmem:[#allocation132_spill] sm:$0xff] }
 0x3ca   : > { %v3174_v37 = vsel %vm3166_vm0, %v3153_v15, %v3156_v11  ;;  %v3176_v22 = vsel %vm3168_vm11, %v3159_v57, %v19990_v28  ;;  %v3178_v46 = vsel %vm3166_vm0, %v3156_v11, %v3159_v57  ;;  %v3180_v38 = vsel %vm3168_vm11, %v19992_v3, %v19991_v20 }
 0x3cb   : > { %v3098_v55 = vclz %v9230_v59  ;;  %vm3167_vm5 = vcmp.lt.s32.totalorder %v19989_v56, 2  ;;  %v3170_v7 = vsel %vm3166_vm0, %v3150_v34, %v3153_v15  ;;  %v3172_v36 = vsel %vm3168_vm11, %v3156_v11, %v3171_v10  ;;  %v1087_v10 = vpop.permute.xlu0 %1086 }
 0x3cc   : > { %vm3769_vm14 = vcmp.gt.s32.totalorder %v3768_v49, 0  ;;  %v910_v58 = vmul.f32 %v14687_v21, %v765_v53  ;;  %vm3021_vm2 = vcmp.lt.s32.totalorder %v3020_v41, 2  ;;  %v3181_v45 = vsel %vm3167_vm5, %v3178_v46, %v3180_v38 }
 0x3cd   : > { %v10727_v26 = vpop.eup %10726  ;;  %vm3022_vm8 = vcmp.eq.s32.totalorder %v3020_v41, 0  ;;  %v9231_v5 = vadd.s32 4294967294, %v3098_v55  ;;  %v3177_v57 = vsel %vm3167_vm5, %v3174_v37, %v3176_v22  ;;  %v3182_v28 = vshll.u32 %v3142_v51, 8 }
 0x3ce   : > { %v10729_v20 = vpop.eup %10728  ;;  %vm3025_vm6 = vcmp.eq.s32.totalorder %v3020_v41, 2  ;;  %v3026_v59 = vxor.u32 2147483648, %v10727_v26  ;;  %v3086_v15 = vadd.s32 %v14586_v23, %v14584_v24  ;;  %v3173_v11 = vsel %vm3167_vm5, %v3170_v7, %v3172_v36  ;;  %v19993_v23 = vld [vmem:[#allocation48_spill] sm:$0xff] }
 0x3cf   : > { %v3023_v34 = vxor.u32 2147483648, %v10729_v20  ;;  %vm9232_vm12 = vcmp.lt.s32.totalorder %v9231_v5, 0  ;;  %v14714_v38 = vmul.u32.u64.low %v3182_v28, %v3181_v45  ;;  %v14715_v46 = vmul.u32.u64.high %v3182_v28, %v3181_v45, %v14714_v38  ;;  %v14723_v36 = vld [vmem:[#allocation8] ss:$0 sm:$0xff] }
 0x3d0   : > { %v3027_v55 = vsel %vm3025_vm6, %v3026_v59, %v10729_v20  ;;  %v3101_v53 = vsel %vm9232_vm12, 0, %v9231_v5  ;;  %v14717_v22 = vmul.u32.u64.low %v3182_v28, %v3177_v57  ;;  %v14718_v51 = vmul.u32.u64.high %v3182_v28, %v3177_v57, %v14717_v22  ;;  %v14728_v5 = vld [vmem:[#allocation7 + $0x1] ss:$0 sm:$0xff]  ;;  %v14733_v38 = vld [vmem:[%s11954_s26 + $0x158] sm:$0xff] }
 0x3d1   : > { %v3024_v37 = vsel %vm3022_vm8, %v10727_v26, %v3023_v34  ;;  %v3102_v3 = vsub.s32 32, %v3101_v53  ;;  %v3106_v24 = vsub.s32 4294967266, %v3101_v53  ;;  %v964_v7 = vadd.f32 %v14723_v36, %v910_v58  ;;  %859 = vperm.xlu1 %10662, %v14733_v38  }
 0x3d2   : > { %vm3018_vm4 = vweird.f32 %v19950_v42  ;;  %v3028_v45 = vsel %vm3021_vm2, %v3024_v37, %v3027_v55  ;;  %v1209_v57 = vmul.f32 %v14728_v5, %v1087_v10  ;;  %v3103_v59 = vshll.u32 %v14669_v35, %v3101_v53  ;;  %v19995_v55 = vld [vmem:[#allocation120_spill] sm:$0xff]  ;;  %v19996_v37 = vld [vmem:[#allocation118_spill] sm:$0xff] }
 0x3d3   : > { %v3029_v20 = vsel %vm3018_vm4, nan, %v3028_v45  ;;  %v3104_v26 = vshrl.u32 %v3086_v15, %v3102_v3  ;;  %v3107_v34 = vadd.s32 127, %v3106_v24  ;;  %v14736_v56 = vsel %vm3769_vm14, %v3768_v49, 0 }
 0x3d4   : > { %9856 = vmatmul.mubr.msk.f32.gmra.mrb[12].mxu0 %vm6619_vm1, %v3029_v20  ;;  %v3189_v58 = vmul.u32 %v3182_v28, %v3173_v11  ;;  %vm3191_vm13 = vc.u32 %v14715_v46, %v14717_v22  ;;  %v3192_v42 = vadd.s32 1, %v14718_v51  ;;  %v19994_v35 = vand.u32 2147483647, %v19993_v23 }
 0x3d5   : > { %v3105_v41 = vor.u32 %v3104_v26, %v3103_v59  ;;  %v3108_v10 = vshll.u32 %v3107_v34, 23  ;;  %v3256_v53 = vshrl.u32 %v19731_v29, %v19995_v55  ;;  %v3255_v28 = vshll.u32 %v19730_v18, %v19996_v37  ;;  %10663 = vset.pattern.permute.xlu1 %v19739_v13 }
 0x3d6   : > { %v3245_v15 = vand.u32 8388607, %v19994_v35  ;;  %v3193_v49 = vsel %vm3191_vm13, %v3192_v42, %v14718_v51  ;;  %v3258_v11 = vshll.u32 %v19731_v29, %v19996_v37  ;;  %v3259_v3 = vshrl.u32 %v19820_v63, %v19995_v55  ;;  %1447 = vperm.xlu1 %10663, %v14460_v39  }
 0x3d7   : > { %v14755_v24 = vand.u32 31, %v14736_v56  ;;  %v1257_v45 = vadd.f32 %v1209_v57, %v964_v7  ;;  %v3109_v20 = vor.u32 4788187, %v3108_v10  ;;  %v3194_v59 = vadd.s32 %v3193_v49, %v3189_v58  ;;  %v19997_v58 = vld [vmem:[#allocation123_spill] sm:$0xff]  ;;  %v19998_v49 = vld [vmem:[#allocation130_spill] sm:$0xff] }
 0x3d8   : > { %v3257_v26 = vor.u32 %v3256_v53, %v3255_v28  ;;  %v3260_v34 = vor.u32 %v3259_v3, %v3258_v11  ;;  %v3261_v51 = vshll.u32 %v19820_v63, %v19996_v37  ;;  %v3262_v42 = vshrl.u32 %v19733_v61, %v19995_v55  ;;  %v20000_v28 = vld [vmem:[#allocation53_spill] sm:$0xff] }
 0x3d9   : > { %v3110_v35 = vand.u32 2147483647, %v3109_v20  ;;  %v3112_v40 = vcvt.s32.f32 %v3105_v41  ;;  %v3116_v54 = vsub.s32 4, %v14640_v33  ;;  %v3195_v44 = vadd.s32 536870912, %v3194_v59  ;;  %v19999_v41 = vld [vmem:[#allocation125_spill] sm:$0xff] }
 0x3da   : > { %vm3585_vm7 = vcmp.lt.s32.totalorder %v14594_v52, 4  ;;  %vm3032_vm3 = vcmp.lt.s32.totalorder %v19965_v30, 0  ;;  %v3246_v7 = vor.u32 8388608, %v3245_v15  ;;  %v3263_v57 = vor.u32 %v3262_v42, %v3261_v51  ;;  %v20002_v15 = vld [vmem:[#allocation129_spill] sm:$0xff]  ;;  %10664 = vset.pattern.permute.xlu1 %v19744_v50 }
 0x3db   : > { %vm3272_vm0 = vcmp.lt.s32.totalorder %v19997_v58, 3  ;;  %v3113_v10 = vmul.f32 %v3112_v40, %v3110_v35  ;;  %v14767_v53 = vshrl.u32 %v3195_v44, 30  ;;  %vm3270_vm11 = vcmp.lt.s32.totalorder %v19997_v58, 1  ;;  %v14784_v40 = vpop.permute.xlu1 %769  ;;  %1162 = vperm.xlu1 %10664, %v14733_v38  }
 0x3dc   : > { %v3284_v37 = vsel %vm3272_vm0, %v19999_v41, %v19998_v49  ;;  %v14775_v39 = vadd.f32 %v20000_v28, %v1257_v45  ;;  %v3278_v11 = vsel %vm3270_vm11, %v3257_v26, %v3260_v34  ;;  %v3280_v3 = vsel %vm3272_vm0, %v3263_v57, %v20002_v15 }
 0x3dd   : > { %v3282_v44 = vsel %vm3270_vm11, %v3260_v34, %v3263_v57  ;;  %v3114_v20 = vxor.u32 2147483648, %v3113_v10  ;;  %v3117_v51 = vsel %vm3032_vm3, %v3116_v54, %v14640_v33  ;;  %v3197_v45 = vshll.u32 %v14767_v53, 30 }
 0x3de   : > { %20001 = vst [vmem:[#allocation62_spill] sm:$0xff] %v14775_v39  ;;  %vm3271_vm5 = vcmp.lt.s32.totalorder %v19997_v58, 2  ;;  %v20003_v42 = vand.u32 2147483647, %v19965_v30  ;;  %vm20006_vm2 = vcmp.lt.s32.totalorder %v19997_v58, 4  ;;  %v3286_v28 = vshll.u32 %v3246_v7, 8 }
 0x3df   : > { %v3275_v49 = vsel %vm20006_vm2, %v3263_v57, 2102212464  ;;  %v3285_v41 = vsel %vm3271_vm5, %v3282_v44, %v3284_v37  ;;  %v3115_v54 = vsel %vm3032_vm3, %v3114_v20, %v3113_v10  ;;  %v14805_v33 = vsub.s32 %v3194_v59, %v3197_v45  ;;  %10665 = vset.pattern.permute.xlu1 %v19729_v6  ;;  %v1376_v35 = vpop.permute.xlu1 %1375 }
 0x3e0   : > { %vm14794_vm14 = vcmp.le.f32.partialorder %v20003_v42, 0.7853982  ;;  %v3254_v15 = vshrl.u32 %v19730_v18, %v19995_v55  ;;  %v3281_v42 = vsel %vm3271_vm5, %v3278_v11, %v3280_v3  ;;  %v3276_v10 = vsel %vm3272_vm0, %v3260_v34, %v3275_v49 }
 0x3e1   : > { %v3118_v57 = vsel %vm14794_vm14, %v19965_v30, %v3115_v54  ;;  %v3119_v7 = vsel %vm14794_vm14, 0, %v3117_v51  ;;  %v14816_v37 = vmul.u32.u64.low %v3286_v28, %v3285_v41  ;;  %v14817_v44 = vmul.u32.u64.high %v3286_v28, %v3285_v41, %v14816_v37  ;;  %v11079_v41 = vld [vmem:[%s11954_s26 + $0x160] sm:$0xff] }
 0x3e2   : > { %10730 = vcosq.f32 %v3118_v57  ;;  %v3200_v59 = vsub.s32 0, %v14805_v33  ;;  %v3274_v55 = vsel %vm3270_vm11, %v3254_v15, %v3257_v26  ;;  %v4073_v11 = vand.u32 2139095040, %v14775_v39  ;;  %864 = vperm.xlu1 %10665, %v11079_v41  }
 0x3e3   : > { %10732 = vsinq.f32 %v3118_v57  ;;  %v14825_v3 = vmul.u32.u64.low %v3286_v28, %v3281_v42  ;;  %v14826_v20 = vmul.u32.u64.high %v3286_v28, %v3281_v42, %v14825_v3  ;;  %v14833_v51 = vsel %vm3585_vm7, %v14680_v12, 920167782 }
 0x3e4   : > { %v20007_v26 = vor.u32 %v14612_v43, %v14667_v25  ;;  %v3888_v45 = vshll.u32 %v19733_v61, %v14619_v19  ;;  %v9234_v49 = vmin.u32 %v3200_v59, %v14805_v33  ;;  %v3889_v54 = vshrl.u32 %v19960_v60, %v14685_v32 }
 0x3e5   : > { %v1208_v15 = vmul.f32 %v14728_v5, %v14653_v48  ;;  %v3123_v42 = vadd.s32 3, %v3119_v7  ;;  %v3277_v43 = vsel %vm3271_vm5, %v3274_v55, %v3276_v10  ;;  %v14854_v25 = vshrl.u32 %v19968_v4, %v14685_v32 }
 0x3e6   : > { %v14840_v34 = vsel %vm3585_vm7, %v20007_v26, 1326507024  ;;  %v14857_v57 = vsub.s32 32, %v14755_v24  ;;  %v3202_v37 = vclz %v9234_v49  ;;  %vm3295_vm8 = vc.u32 %v14817_v44, %v14825_v3 }
 0x3e7   : > { %v963_v59 = vadd.f32 %v14723_v36, %v14691_v31  ;;  %v4074_v26 = vshrl.u32 %v4073_v11, 23  ;;  %v1501_v48 = vmul.f32 %v14491_v16, %v1376_v35  ;;  %v3296_v58 = vadd.s32 1, %v14826_v20 }
 0x3e8   : > { %20008 = vst [vmem:[#allocation71_spill] sm:$0xff] %v14857_v57  ;;  %v14866_v7 = vshrl.u32 %v14601_v14, 5  ;;  %v14870_v55 = vshll.u32 %v19960_v60, %v14619_v19  ;;  %v9235_v10 = vadd.s32 4294967294, %v3202_v37  ;;  %v3293_v49 = vmul.u32 %v3286_v28, %v3277_v43 }
 0x3e9   : > { %v14872_v41 = vor.u32 %v3889_v54, %v3888_v45  ;;  %v1256_v39 = vadd.f32 %v1208_v15, %v963_v59  ;;  %v3124_v32 = vand.u32 3, %v3123_v42  ;;  %v3297_v31 = vsel %vm3295_vm8, %v3296_v58, %v14826_v20 }
 0x3ea   : > { %v3893_v16 = vor.u32 %v14854_v25, %v14870_v55  ;;  %v3785_v11 = vshrl.u32 %v19960_v60, %v14857_v57  ;;  %vm9236_vm6 = vcmp.lt.s32.totalorder %v9235_v10, 0  ;;  %v3298_v14 = vadd.s32 %v3297_v31, %v3293_v49 }
 0x3eb   : > { %20009 = vst [vmem:[#allocation72_spill] sm:$0xff] %v14872_v41  ;;  %v14881_v35 = vshrl.u32 %v19968_v4, %v14857_v57  ;;  %v9269_v37 = vadd.s32 4294967169, %v4074_v26  ;;  %v14883_v28 = vadd.f32 %v1501_v48, %v1256_v39  ;;  %v3205_v45 = vsel %vm9236_vm6, 0, %v9235_v10  ;;  %v14890_v39 = vpop.permute.xlu1 %1090 }
 0x3ec   : > { %v10731_v54 = vpop.eup %10730  ;;  %v3190_v20 = vadd.s32 %v14717_v22, %v14715_v46  ;;  %v3206_v15 = vsub.s32 32, %v3205_v45  ;;  %v3210_v42 = vsub.s32 4294967266, %v3205_v45  ;;  %v3299_v43 = vadd.s32 536870912, %v3298_v14 }
 0x3ed   : > { %20010 = vst [vmem:[#allocation64_spill] sm:$0xff] %v14883_v28  ;;  %v10733_v25 = vpop.eup %10732  ;;  %vm3129_vm12 = vcmp.eq.s32.totalorder %v3124_v32, 2  ;;  %v3130_v59 = vxor.u32 2147483648, %v10731_v54  ;;  %v3207_v58 = vshll.u32 %v14805_v33, %v3205_v45  ;;  %v3220_v55 = vsub.s32 4, %v14767_v53 }
 0x3ee   : > { %vm3897_vm4 = vcmp.lt.s32.totalorder %v14866_v7, 4  ;;  %v3127_v26 = vxor.u32 2147483648, %v10733_v25  ;;  %v3208_v48 = vshrl.u32 %v3190_v20, %v3206_v15  ;;  %v3211_v10 = vadd.s32 127, %v3210_v42 }
 0x3ef   : > { %v14892_v49 = vshrl.u32 %v3299_v43, 30  ;;  %v4080_v46 = vadd.s32 1, %v9269_v37  ;;  %vm3125_vm13 = vcmp.lt.s32.totalorder %v3124_v32, 2  ;;  %vm3126_vm3 = vcmp.eq.s32.totalorder %v3124_v32, 0 }
 0x3f0   : > { %v3131_v22 = vsel %vm3129_vm12, %v3130_v59, %v10733_v25  ;;  %v3128_v31 = vsel %vm3126_vm3, %v10731_v54, %v3127_v26  ;;  %v3209_v19 = vor.u32 %v3208_v48, %v3207_v58  ;;  %v3212_v57 = vshll.u32 %v3211_v10, 23  ;;  %v775_v25 = vpop.permute.xlu1 %774 }
 0x3f1   : > { %v3301_v33 = vshll.u32 %v14892_v49, 30  ;;  %vm3122_vm0 = vweird.f32 %v19965_v30  ;;  %v3132_v45 = vsel %vm3125_vm13, %v3128_v31, %v3131_v22  ;;  %v3969_v12 = vand.u32 2139095040, %v14883_v28 }
 0x3f2   : > { %vm3136_vm11 = vcmp.lt.s32.totalorder %v19982_v27, 0  ;;  %v3133_v20 = vsel %vm3122_vm0, nan, %v3132_v45  ;;  %v3213_v15 = vor.u32 4788187, %v3212_v57  ;;  %v14904_v54 = vshrl.u32 %v14736_v56, 5 }
 0x3f3   : > { %v3221_v37 = vsel %vm3136_vm11, %v3220_v55, %v14767_v53  ;;  %v14901_v32 = vsub.s32 %v3298_v14, %v3301_v33  ;;  %v3784_v42 = vshll.u32 %v19733_v61, %v14755_v24  ;;  %v3787_v30 = vshll.u32 %v19960_v60, %v14755_v24  ;;  %9858 = vmatprep.mubr.msk.f32.mxu0 %vm6619_vm1, %v3133_v20  ;;  %v1095_v20 = vpop.permute.xlu0 %1094 }
 0x3f4   : > { %vm4081_vm5 = vcmp.gt.s32.totalorder %v4080_v46, 0  ;;  %v20011_v57 = vand.u32 2147483647, %v19982_v27  ;;  %v3214_v53 = vand.u32 2147483647, %v3213_v15  ;;  %v3216_v14 = vcvt.s32.f32 %v3209_v19 }
 0x3f5   : > { %v3304_v56 = vsub.s32 0, %v14901_v32  ;;  %v14918_v59 = vor.u32 %v3785_v11, %v3784_v42  ;;  %v3789_v58 = vor.u32 %v14881_v35, %v3787_v30  ;;  %v911_v55 = vmul.f32 %v14687_v21, %v14784_v40  ;;  %v20016_v35 = vld [vmem:[#allocation119_spill] sm:$0xff] }
 0x3f6   : > { %vm14913_vm14 = vcmp.le.f32.partialorder %v20011_v57, 0.7853982  ;;  %v14925_v48 = vsel %vm4081_vm5, %v4080_v46, 0  ;;  %v3970_v10 = vshrl.u32 %v3969_v12, 23  ;;  %v3217_v22 = vmul.f32 %v3216_v14, %v3214_v53  ;;  %v20017_v14 = vld [vmem:[#allocation57_spill] sm:$0xff] }
 0x3f7   : > { %v3223_v26 = vsel %vm14913_vm14, 0, %v3221_v37  ;;  %v9238_v31 = vmin.u32 %v3304_v56, %v14901_v32  ;;  %v14931_v19 = vsel %vm3897_vm4, %v14872_v41, 920167782  ;;  %v14935_v11 = vsel %vm3897_vm4, %v3893_v16, 1326507024 }
 0x3f8   : > { %20014 = vst [vmem:[#allocation41_spill] sm:$0xff] %v14931_v19  ;;  %20015 = vst [vmem:[#allocation93_spill] sm:$0xff] %v14935_v11  ;;  %v912_v40 = vmul.f32 %v14687_v21, %v775_v25  ;;  %v19531_v33 = vand.u32 2147483647, %v20016_v35  ;;  %vm3793_vm2 = vcmp.lt.s32.totalorder %v14904_v54, 4  ;;  %v3218_v46 = vxor.u32 2147483648, %v3217_v22 }
 0x3f9   : > { %v3227_v12 = vadd.s32 3, %v3223_v26  ;;  %v3306_v45 = vclz %v9238_v31  ;;  %v14943_v15 = vsel %vm3793_vm2, %v14918_v59, 920167782  ;;  %v14947_v37 = vsel %vm3793_vm2, %v3789_v58, 1326507024 }
 0x3fa   : > { %v14950_v16 = vand.u32 31, %v14925_v48  ;;  %v14953_v42 = vadd.f32 %v14723_v36, %v911_v55  ;;  %v14955_v30 = vadd.s32 4294967169, %v3970_v10  ;;  %v3219_v57 = vsel %vm3136_vm11, %v3218_v46, %v3217_v22  ;;  %v20018_v22 = vld [vmem:[#allocation49_spill] sm:$0xff] }
 0x3fb   : > { %v9239_v53 = vadd.s32 4294967294, %v3306_v45  ;;  %v3360_v25 = vshrl.u32 %v19731_v29, %v20017_v14  ;;  %v3222_v56 = vsel %vm14913_vm14, %v19982_v27, %v3219_v57  ;;  %v966_v58 = vadd.f32 %v14723_v36, %v912_v40 }
 0x3fc   : > { %v1211_v26 = vmul.f32 %v14728_v5, %v1095_v20  ;;  %v3349_v55 = vand.u32 8388607, %v19531_v33  ;;  %10734 = vcosq.f32 %v3222_v56  ;;  %v14968_v10 = vand.u32 3, %v3227_v12 }
 0x3fd   : > { %vm9240_vm8 = vcmp.lt.s32.totalorder %v9239_v53, 0  ;;  %v3359_v31 = vshll.u32 %v19730_v18, %v20018_v22  ;;  %10736 = vsinq.f32 %v3222_v56  ;;  %v3362_v43 = vshll.u32 %v19731_v29, %v20018_v22 }
 0x3fe   : > { %v3309_v46 = vsel %vm9240_vm8, 0, %v9239_v53  ;;  %v3363_v40 = vshrl.u32 %v19820_v63, %v20017_v14  ;;  %v3294_v45 = vadd.s32 %v14825_v3, %v14817_v44  ;;  %v3350_v12 = vor.u32 8388608, %v3349_v55 }
 0x3ff   : > { %v3310_v20 = vsub.s32 32, %v3309_v46  ;;  %v3314_v57 = vsub.s32 4294967266, %v3309_v46  ;;  %v3361_v33 = vor.u32 %v3360_v25, %v3359_v31  ;;  %v3365_v19 = vshll.u32 %v19820_v63, %v20018_v22 }
 0x400   : > { %v3364_v28 = vor.u32 %v3363_v40, %v3362_v43  ;;  %v3366_v53 = vshrl.u32 %v19733_v61, %v20017_v14  ;;  %vm3240_vm6 = vcmp.lt.s32.totalorder %v19993_v23, 0  ;;  %v3311_v56 = vshll.u32 %v14901_v32, %v3309_v46 }
 0x401   : > { %v3312_v41 = vshrl.u32 %v3294_v45, %v3310_v20  ;;  %v3315_v11 = vadd.s32 127, %v3314_v57  ;;  %v3358_v44 = vshrl.u32 %v19730_v18, %v20017_v14  ;;  %vm3374_vm12 = vcmp.lt.s32.totalorder %v13571_v62, 1 }
 0x402   : > { %v3367_v3 = vor.u32 %v3366_v53, %v3365_v19  ;;  %vm3375_vm13 = vcmp.lt.s32.totalorder %v13571_v62, 2  ;;  %vm3376_vm3 = vcmp.lt.s32.totalorder %v13571_v62, 3  ;;  %v3382_v22 = vsel %vm3374_vm12, %v3361_v33, %v3364_v28 }
 0x403   : > { %v3313_v25 = vor.u32 %v3312_v41, %v3311_v56  ;;  %v3316_v55 = vshll.u32 %v3315_v11, 23  ;;  %v3388_v31 = vsel %vm3376_vm3, %v14097_v2, %v14456_v0  ;;  %vm3226_vm0 = vweird.f32 %v19982_v27 }
 0x404   : > { %v3379_v32 = vsel %vm3377_vm10, %v3367_v3, 2102212464  ;;  %v3384_v19 = vsel %vm3376_vm3, %v3367_v3, %v14452_v8  ;;  %v3386_v14 = vsel %vm3374_vm12, %v3364_v28, %v3367_v3  ;;  %v3390_v46 = vshll.u32 %v3350_v12, 8  ;;  %v15011_v12 = vld [vmem:[%s11954_s26 + $0x168] sm:$0xff] }
 0x405   : > { %v20019_v43 = vand.u32 2147483647, %v19993_v23  ;;  %v3317_v41 = vor.u32 4788187, %v3316_v55  ;;  %v3378_v11 = vsel %vm3374_vm12, %v3358_v44, %v3361_v33  ;;  %v3380_v45 = vsel %vm3376_vm3, %v3364_v28, %v3379_v32  ;;  %869 = vperm.xlu1 %10665, %v15011_v12   ;;  %v20022_v32 = vld [vmem:[#allocation50_spill] sm:$0xff] }
 0x406   : > { %v3385_v2 = vsel %vm3375_vm13, %v3382_v22, %v3384_v19  ;;  %v3324_v0 = vsub.s32 4, %v14892_v49  ;;  %v3389_v20 = vsel %vm3375_vm13, %v3386_v14, %v3388_v31  ;;  %v10735_v53 = vpop.eup %10734  ;;  %v3320_v3 = vcvt.s32.f32 %v3313_v25 }
 0x407   : > { %vm14997_vm11 = vcmp.le.f32.partialorder %v20019_v43, 0.7853982  ;;  %v15006_v8 = vmul.u32.u64.low %v3390_v46, %v3385_v2  ;;  %v15007_v57 = vmul.u32.u64.high %v3390_v46, %v3385_v2, %v15006_v8  ;;  %v3318_v56 = vand.u32 2147483647, %v3317_v41  ;;  %v10737_v28 = vpop.eup %10736 }
 0x408   : > { %v15013_v55 = vmul.u32.u64.low %v3390_v46, %v3389_v20  ;;  %v15014_v33 = vmul.u32.u64.high %v3390_v46, %v3389_v20, %v15013_v55  ;;  %v3234_v44 = vxor.u32 2147483648, %v10735_v53  ;;  %v1259_v22 = vadd.f32 %v1211_v26, %v966_v58  ;;  %v20023_v20 = vld [vmem:[#allocation79_spill] sm:$0xff] }
 0x409   : > { %v3381_v31 = vsel %vm3375_vm13, %v3378_v11, %v3380_v45  ;;  %v19535_v19 = vand.u32 2147483647, %v20022_v32  ;;  %vm3229_vm10 = vcmp.lt.s32.totalorder %v14968_v10, 2  ;;  %v3231_v14 = vxor.u32 2147483648, %v10737_v28  ;;  %10666 = vset.pattern.permute.xlu1 %v19739_v13  ;;  %v20025_v55 = vld [vmem:[#allocation56_spill] sm:$0xff] }
 0x40a   : > { %vm3233_vm5 = vcmp.eq.s32.totalorder %v14968_v10, 2  ;;  %v3321_v43 = vmul.f32 %v3320_v3, %v3318_v56  ;;  %vm3230_vm14 = vcmp.eq.s32.totalorder %v14968_v10, 0  ;;  %v3325_v41 = vsel %vm3240_vm6, %v3324_v0, %v14892_v49  ;;  %1455 = vperm.xlu1 %10666, %v14733_v38   ;;  %v15049_v38 = vpop.permute.xlu1 %779 }
 0x40b   : > { %v3235_v25 = vsel %vm3233_vm5, %v3234_v44, %v10737_v28  ;;  %v3400_v58 = vadd.s32 1, %v15007_v57  ;;  %v3232_v26 = vsel %vm3230_vm14, %v10735_v53, %v3231_v14  ;;  %v3397_v11 = vmul.u32 %v3390_v46, %v3381_v31  ;;  %v20024_v53 = vld [vmem:[#allocation63_spill] sm:$0xff] }
 0x40c   : > { %v3322_v62 = vxor.u32 2147483648, %v3321_v43  ;;  %vm3399_vm8 = vc.u32 %v15014_v33, %v15006_v8  ;;  %v3236_v45 = vsel %vm3229_vm10, %v3232_v26, %v3235_v25  ;;  %v3453_v10 = vand.u32 8388607, %v19535_v19 }
 0x40d   : > { %v3401_v2 = vsel %vm3399_vm8, %v3400_v58, %v15007_v57  ;;  %v3463_v56 = vshll.u32 %v19730_v18, %v20023_v20  ;;  %v3237_v49 = vsel %vm3226_vm0, nan, %v3236_v45  ;;  %v3464_v3 = vshrl.u32 %v19731_v29, %v20024_v53 }
 0x40e   : > { %v3323_v46 = vsel %vm3240_vm6, %v3322_v62, %v3321_v43  ;;  %v3402_v0 = vadd.s32 %v3401_v2, %v3397_v11  ;;  %9859 = vmatmul.mubr.msk.f32.gmra.mrb[14].mxu0 %vm6619_vm1, %v3237_v49  ;;  %v15047_v28 = vadd.f32 %v20025_v55, %v1259_v22  ;;  %v3466_v27 = vshll.u32 %v19731_v29, %v20023_v20  ;;  %v1384_v49 = vpop.permute.xlu1 %1383 }
 0x40f   : > { %v3326_v57 = vsel %vm14997_vm11, %v19993_v23, %v3323_v46  ;;  %v3467_v44 = vshrl.u32 %v19820_v63, %v20024_v53  ;;  %v3327_v31 = vsel %vm14997_vm11, 0, %v3325_v41  ;;  %v3465_v43 = vor.u32 %v3464_v3, %v3463_v56  ;;  %10667 = vset.pattern.permute.xlu1 %v19744_v50 }
 0x410   : > { %20026 = vst [vmem:[#allocation90_spill] sm:$0xff] %v15047_v28  ;;  %10738 = vcosq.f32 %v3326_v57  ;;  %v3403_v14 = vadd.s32 536870912, %v3402_v0  ;;  %v3469_v22 = vshll.u32 %v19820_v63, %v20023_v20  ;;  %v3470_v58 = vshrl.u32 %v19733_v61, %v20024_v53  ;;  %1170 = vperm.xlu1 %10667, %v15011_v12  }
 0x411   : > { %10740 = vsinq.f32 %v3326_v57  ;;  %v3468_v25 = vor.u32 %v3467_v44, %v3466_v27  ;;  %v3976_v26 = vadd.s32 1, %v14955_v30  ;;  %v3454_v11 = vor.u32 8388608, %v3453_v10  ;;  %v15099_v44 = vld [vmem:[%s11954_s26 + $0x170] sm:$0xff] }
 0x412   : > { %v15063_v62 = vshrl.u32 %v3403_v14, 30  ;;  %vm3478_vm6 = vcmp.lt.s32.totalorder %v13511_v1, 1  ;;  %v4281_v40 = vand.u32 2139095040, %v15047_v28  ;;  %v3471_v41 = vor.u32 %v3470_v58, %v3469_v22 }
 0x413   : > { %vm3480_vm12 = vcmp.lt.s32.totalorder %v13511_v1, 3  ;;  %v3486_v45 = vsel %vm3478_vm6, %v3465_v43, %v3468_v25  ;;  %v15072_v2 = vsub.s32 32, %v14950_v16  ;;  %v3331_v20 = vadd.s32 3, %v3327_v31 }
 0x414   : > { %v3405_v30 = vshll.u32 %v15063_v62, 30  ;;  %v3492_v10 = vsel %vm3480_vm12, %v13980_v9, %v14447_v17  ;;  %v1210_v56 = vmul.f32 %v14728_v5, %v14890_v39  ;;  %vm3479_vm13 = vcmp.lt.s32.totalorder %v13511_v1, 2  ;;  %10668 = vset.pattern.permute.xlu1 %v19729_v6 }
 0x415   : > { %v3488_v46 = vsel %vm3480_vm12, %v3471_v41, %v14440_v47  ;;  %v3490_v3 = vsel %vm3478_vm6, %v3468_v25, %v3471_v41  ;;  %v3483_v55 = vsel %vm3481_vm9, %v3471_v41, 2102212464  ;;  %v3494_v17 = vshll.u32 %v3454_v11, 8  ;;  %874 = vperm.xlu1 %10668, %v15099_v44  }
 0x416   : > { %v15087_v57 = vsub.s32 %v3402_v0, %v3405_v30  ;;  %v3489_v9 = vsel %vm3479_vm13, %v3486_v45, %v3488_v46  ;;  %vm3977_vm3 = vcmp.gt.s32.totalorder %v3976_v26, 0  ;;  %v4282_v39 = vshrl.u32 %v4281_v40, 23 }
 0x417   : > { %v3462_v27 = vshrl.u32 %v19730_v18, %v20024_v53  ;;  %v3493_v47 = vsel %vm3479_vm13, %v3490_v3, %v3492_v10  ;;  %v3332_v0 = vand.u32 3, %v3331_v20  ;;  %v3484_v58 = vsel %vm3480_vm12, %v3468_v25, %v3483_v55  ;;  %v15126_v3 = vld [vmem:[#allocation7 + $0x2] ss:$0 sm:$0xff]  ;;  %v15129_v55 = vpop.permute.xlu1 %1098 }
 0x418   : > { %v3408_v31 = vsub.s32 0, %v15087_v57  ;;  %v15103_v14 = vmul.u32.u64.low %v3494_v17, %v3493_v47  ;;  %v15104_v22 = vmul.u32.u64.high %v3494_v17, %v3493_v47, %v15103_v14  ;;  %v15115_v41 = vshrl.u32 %v14925_v48, 5 }
 0x419   : > { %v3482_v6 = vsel %vm3478_vm6, %v3462_v27, %v3465_v43  ;;  %v15110_v53 = vmul.u32.u64.low %v3494_v17, %v3489_v9  ;;  %v15111_v11 = vmul.u32.u64.high %v3494_v17, %v3489_v9, %v15110_v53  ;;  %v4096_v45 = vshll.u32 %v19733_v61, %v14950_v16 }
 0x41a   : > { %v10739_v40 = vpop.eup %10738  ;;  %20027 = vst [vmem:[#allocation98_spill] sm:$0xff] %v15115_v41  ;;  %v4097_v20 = vshrl.u32 %v19960_v60, %v15072_v2  ;;  %v9242_v30 = vmin.u32 %v3408_v31, %v15087_v57  ;;  %v15123_v10 = vsel %vm3977_vm3, %v3976_v26, 0  ;;  %v1258_v25 = vadd.f32 %v1210_v56, %v14953_v42 }
 0x41b   : > { %v10741_v43 = vpop.eup %10740  ;;  %v3338_v46 = vxor.u32 2147483648, %v10739_v40  ;;  %v1503_v48 = vmul.f32 %v15126_v3, %v1384_v49  ;;  %vm3337_vm9 = vcmp.eq.s32.totalorder %v3332_v0, 2  ;;  %v3485_v47 = vsel %vm3479_vm13, %v3482_v6, %v3484_v58 }
 0x41c   : > { %v3335_v9 = vxor.u32 2147483648, %v10741_v43  ;;  %v3410_v27 = vclz %v9242_v30  ;;  %vm3334_vm0 = vcmp.eq.s32.totalorder %v3332_v0, 0  ;;  %v9277_v14 = vadd.s32 4294967169, %v4282_v39 }
 0x41d   : > { %v3339_v31 = vsel %vm3337_vm9, %v3338_v46, %v10741_v43  ;;  %vm3503_vm11 = vc.u32 %v15104_v22, %v15110_v53  ;;  %vm3333_vm10 = vcmp.lt.s32.totalorder %v3332_v0, 2  ;;  %v3504_v56 = vadd.s32 1, %v15111_v11 }
 0x41e   : > { %v3336_v42 = vsel %vm3334_vm0, %v10739_v40, %v3335_v9  ;;  %v9243_v26 = vadd.s32 4294967294, %v3410_v27  ;;  %vm3330_vm5 = vweird.f32 %v19993_v23  ;;  %v15137_v19 = vadd.f32 %v1503_v48, %v1258_v25  ;;  %v785_v40 = vpop.permute.xlu1 %784 }
 0x41f   : > { %v3340_v49 = vsel %vm3333_vm10, %v3336_v42, %v3339_v31  ;;  %v3501_v30 = vmul.u32 %v3494_v17, %v3485_v47  ;;  %v4099_v1 = vshll.u32 %v19960_v60, %v14950_v16  ;;  %v3505_v39 = vsel %vm3503_vm11, %v3504_v56, %v15111_v11 }
 0x420   : > { %20028 = vst [vmem:[#allocation105_spill] sm:$0xff] %v15137_v19  ;;  %v3341_v6 = vsel %vm3330_vm5, nan, %v3340_v49  ;;  %vm9244_vm14 = vcmp.lt.s32.totalorder %v9243_v26, 0  ;;  %v4100_v0 = vshrl.u32 %v19968_v4, %v15072_v2  ;;  %v15145_v58 = vand.u32 31, %v15123_v10 }
 0x421   : > { %9861 = vmatprep.mubr.msk.f32.mxu0 %vm6619_vm1, %v3341_v6  ;;  %v3413_v23 = vsel %vm9244_vm14, 0, %v9243_v26  ;;  %v3506_v43 = vadd.s32 %v3505_v39, %v3501_v30  ;;  %v4288_v25 = vadd.s32 1, %v9277_v14  ;;  %v3398_v17 = vadd.s32 %v15006_v8, %v15014_v33 }
 0x422   : > { %v3414_v46 = vsub.s32 32, %v3413_v23  ;;  %v3418_v48 = vsub.s32 4294967266, %v3413_v23  ;;  %v15150_v9 = vor.u32 %v4097_v20, %v4096_v45  ;;  %v4177_v11 = vand.u32 2139095040, %v15137_v19  ;;  %v1103_v45 = vpop.permute.xlu0 %1102 }
 0x423   : > { %v3428_v27 = vsub.s32 4, %v15063_v62  ;;  %v3507_v47 = vadd.s32 536870912, %v3506_v43  ;;  %v3415_v31 = vshll.u32 %v15087_v57, %v3413_v23  ;;  %v914_v26 = vmul.f32 %v14687_v21, %v785_v40 }
 0x424   : > { %20029 = vst [vmem:[#allocation107_spill] sm:$0xff] %v15150_v9  ;;  %v3416_v42 = vshrl.u32 %v3398_v17, %v3414_v46  ;;  %v3419_v56 = vadd.s32 127, %v3418_v48  ;;  %v4101_v49 = vor.u32 %v4100_v0, %v4099_v1  ;;  %vm4105_vm8 = vcmp.lt.s32.totalorder %v15115_v41, 4 }
 0x425   : > { %v15158_v8 = vsub.s32 32, %v15145_v58  ;;  %v15160_v33 = vshrl.u32 %v3507_v47, 30  ;;  %vm4289_vm6 = vcmp.gt.s32.totalorder %v4288_v25, 0  ;;  %vm3344_vm12 = vcmp.lt.s32.totalorder %v20016_v35, 0 }
 0x426   : > { %v3417_v20 = vor.u32 %v3416_v42, %v3415_v31  ;;  %v3420_v14 = vshll.u32 %v3419_v56, 23  ;;  %v15166_v57 = vsel %vm4105_vm8, %v15150_v9, 920167782  ;;  %v4178_v30 = vshrl.u32 %v4177_v11, 23 }
 0x427   : > { %20030 = vst [vmem:[#allocation101_spill] sm:$0xff] %v15166_v57  ;;  %v3429_v1 = vsel %vm3344_vm12, %v3428_v27, %v15063_v62  ;;  %v3509_v6 = vshll.u32 %v15160_v33, 30  ;;  %v3992_v39 = vshll.u32 %v19733_v61, %v15145_v58  ;;  %v968_v23 = vadd.f32 %v14723_v36, %v914_v26 }
 0x428   : > { %v3421_v0 = vor.u32 4788187, %v3420_v14  ;;  %v1213_v40 = vmul.f32 %v14728_v5, %v1103_v45  ;;  %v15176_v17 = vsel %vm4289_vm6, %v4288_v25, 0  ;;  %v913_v46 = vmul.f32 %v14687_v21, %v15049_v38 }
 0x429   : > { %v20031_v48 = vand.u32 2147483647, %v20016_v35  ;;  %v15186_v62 = vsub.s32 %v3506_v43, %v3509_v6  ;;  %v3993_v27 = vshrl.u32 %v19960_v60, %v15158_v8  ;;  %v3424_v31 = vcvt.s32.f32 %v3417_v20  ;;  %v15199_v43 = vpop.permute.xlu1 %789 }
 0x42a   : > { %v3422_v47 = vand.u32 2147483647, %v3421_v0  ;;  %v15194_v42 = vshrl.u32 %v19968_v4, %v15158_v8  ;;  %v9273_v21 = vadd.s32 4294967169, %v4178_v30  ;;  %v1212_v38 = vmul.f32 %v14728_v5, %v15129_v55  ;;  %v20035_v0 = vld [vmem:[#allocation61_spill] sm:$0xff] }
 0x42b   : > { %vm15182_vm13 = vcmp.le.f32.partialorder %v20031_v48, 0.7853982  ;;  %v3512_v56 = vsub.s32 0, %v15186_v62  ;;  %v15203_v26 = vshll.u32 %v19960_v60, %v15145_v58  ;;  %v15206_v45 = vand.u32 31, %v15176_v17 }
 0x42c   : > { %v3431_v25 = vsel %vm15182_vm13, 0, %v3429_v1  ;;  %v3425_v20 = vmul.f32 %v3424_v31, %v3422_v47  ;;  %v1261_v14 = vadd.f32 %v1213_v40, %v968_v23  ;;  %v967_v1 = vadd.f32 %v14723_v36, %v913_v46  ;;  %v20038_v31 = vld [vmem:[#allocation59_spill] sm:$0xff] }
 0x42d   : > { %20034 = vst [vmem:[#allocation46_spill] sm:$0xff] %v15206_v45  ;;  %v3435_v6 = vadd.s32 3, %v3431_v25  ;;  %v9246_v30 = vmin.u32 %v3512_v56, %v15186_v62  ;;  %v19540_v5 = vand.u32 2147483647, %v20035_v0  ;;  %v15213_v55 = vsel %vm4105_vm8, %v4101_v49, 1326507024  ;;  %v1392_v56 = vpop.permute.xlu1 %1391 }
 0x42e   : > { %20036 = vst [vmem:[#allocation73_spill] sm:$0xff] %v15213_v55  ;;  %v15216_v48 = vshrl.u32 %v15123_v10, 5  ;;  %v15218_v28 = vor.u32 %v3993_v27, %v3992_v39  ;;  %v3426_v19 = vxor.u32 2147483648, %v3425_v20  ;;  %v15222_v40 = vadd.s32 1, %v9273_v21  ;;  %v20040_v39 = vld [vmem:[#allocation94_spill] sm:$0xff] }
 0x42f   : > { %v15224_v36 = vadd.f32 %v1212_v38, %v967_v1  ;;  %v3514_v46 = vclz %v9246_v30  ;;  %v15227_v47 = vsub.s32 32, %v15206_v45  ;;  %v15232_v10 = vadd.f32 %v20038_v31, %v1261_v14  ;;  %v20041_v30 = vld [vmem:[#allocation87_spill] sm:$0xff] }
 0x430   : > { %v3427_v49 = vsel %vm3344_vm12, %v3426_v19, %v3425_v20  ;;  %v3568_v27 = vshrl.u32 %v19731_v29, %v20040_v39  ;;  %v15239_v21 = vand.u32 3, %v3435_v6  ;;  %v3557_v1 = vand.u32 8388607, %v19540_v5 }
 0x431   : > { %20037 = vst [vmem:[#allocation68_spill] sm:$0xff] %v15227_v47  ;;  %20039 = vst [vmem:[#allocation74_spill] sm:$0xff] %v15232_v10  ;;  %v3430_v25 = vsel %vm15182_vm13, %v20016_v35, %v3427_v49  ;;  %v9247_v38 = vadd.s32 4294967294, %v3514_v46  ;;  %v3567_v19 = vshll.u32 %v19730_v18, %v20041_v30  ;;  %v3570_v20 = vshll.u32 %v19731_v29, %v20041_v30 }
 0x432   : > { %10742 = vcosq.f32 %v3430_v25  ;;  %v3571_v14 = vshrl.u32 %v19820_v63, %v20040_v39  ;;  %v3573_v11 = vshll.u32 %v19820_v63, %v20041_v30  ;;  %v3574_v6 = vshrl.u32 %v19733_v61, %v20040_v39 }
 0x433   : > { %10744 = vsinq.f32 %v3430_v25  ;;  %vm9248_vm3 = vcmp.lt.s32.totalorder %v9247_v38, 0  ;;  %v1505_v49 = vmul.f32 %v15126_v3, %v1392_v56  ;;  %v3569_v31 = vor.u32 %v3568_v27, %v3567_v19 }
 0x434   : > { %v3517_v46 = vsel %vm9248_vm3, 0, %v9247_v38  ;;  %v3572_v5 = vor.u32 %v3571_v14, %v3570_v20  ;;  %v3502_v23 = vadd.s32 %v15110_v53, %v15104_v22  ;;  %v3575_v55 = vor.u32 %v3574_v6, %v3573_v11  ;;  %v20045_v20 = vld [vmem:[#allocation58_spill] sm:$0xff] }
 0x435   : > { %v3518_v57 = vsub.s32 32, %v3517_v46  ;;  %v3522_v9 = vsub.s32 4294967266, %v3517_v46  ;;  %vm3448_vm9 = vcmp.lt.s32.totalorder %v20022_v32, 0  ;;  %v3519_v25 = vshll.u32 %v15186_v62, %v3517_v46 }
 0x436   : > { %v4489_v30 = vand.u32 2139095040, %v15232_v10  ;;  %v3558_v41 = vor.u32 8388608, %v3557_v1  ;;  %vm3582_vm0 = vcmp.lt.s32.totalorder %v14594_v52, 1  ;;  %vm3438_vm11 = vcmp.eq.s32.totalorder %v15239_v21, 0 }
 0x437   : > { %v3520_v38 = vshrl.u32 %v3502_v23, %v3518_v57  ;;  %v3523_v27 = vadd.s32 127, %v3522_v9  ;;  %vm3583_vm10 = vcmp.lt.s32.totalorder %v14594_v52, 2  ;;  %vm3584_vm5 = vcmp.lt.s32.totalorder %v14594_v52, 3 }
 0x438   : > { %vm3437_vm14 = vcmp.lt.s32.totalorder %v15239_v21, 2  ;;  %v3587_v22 = vsel %vm3585_vm7, %v3575_v55, 2102212464  ;;  %v3590_v53 = vsel %vm3582_vm0, %v3569_v31, %v3572_v5  ;;  %v3592_v62 = vsel %vm3584_vm5, %v3575_v55, %v14833_v51 }
 0x439   : > { %v3594_v9 = vsel %vm3582_vm0, %v3572_v5, %v3575_v55  ;;  %vm3434_vm6 = vweird.f32 %v20016_v35  ;;  %v20042_v57 = vand.u32 2147483647, %v20022_v32  ;;  %v3521_v56 = vor.u32 %v3520_v38, %v3519_v25  ;;  %v639_v38 = vld [vmem:[%s11954_s26 + $0x178] sm:$0xff] }
 0x43a   : > { %v3524_v1 = vshll.u32 %v3523_v27, 23  ;;  %v3566_v19 = vshrl.u32 %v19730_v18, %v20040_v39  ;;  %v3593_v51 = vsel %vm3583_vm10, %v3590_v53, %v3592_v62  ;;  %vm3441_vm7 = vcmp.eq.s32.totalorder %v15239_v21, 2  ;;  %879 = vperm.xlu1 %10668, %v639_v38   ;;  %1471 = vperm.xlu0 %10673, %v639_v38  }
 0x43b   : > { %vm15276_vm12 = vcmp.le.f32.partialorder %v20042_v57, 0.7853982  ;;  %v3532_v55 = vsub.s32 4, %v15160_v33  ;;  %v3596_v14 = vsel %vm3584_vm5, %v20045_v20, %v14840_v34  ;;  %v3598_v11 = vshll.u32 %v3558_v41, 8  ;;  %v20047_v20 = vld [vmem:[#allocation51_spill] sm:$0xff] }
 0x43c   : > { %v3525_v6 = vor.u32 4788187, %v3524_v1  ;;  %v3586_v46 = vsel %vm3582_vm0, %v3566_v19, %v3569_v31  ;;  %v3588_v39 = vsel %vm3584_vm5, %v3572_v5, %v3587_v22  ;;  %v3597_v25 = vsel %vm3583_vm10, %v3594_v9, %v3596_v14  ;;  %v10743_v27 = vpop.eup %10742 }
 0x43d   : > { %v15297_v53 = vmul.u32.u64.low %v3598_v11, %v3597_v25  ;;  %v15298_v62 = vmul.u32.u64.high %v3598_v11, %v3597_v25, %v15297_v53  ;;  %v15300_v57 = vmul.u32.u64.low %v3598_v11, %v3593_v51  ;;  %v15301_v10 = vmul.u32.u64.high %v3598_v11, %v3593_v51, %v15300_v57  ;;  %v10745_v34 = vpop.eup %10744 }
 0x43e   : > { %v3442_v41 = vxor.u32 2147483648, %v10743_v27  ;;  %v3526_v31 = vand.u32 2147483647, %v3525_v6  ;;  %v3528_v1 = vcvt.s32.f32 %v3521_v56  ;;  %v15304_v19 = vshrl.u32 %v4489_v30, 23  ;;  %v20048_v56 = vld [vmem:[#allocation89_spill] sm:$0xff]  ;;  %10670 = vset.pattern.permute.xlu1 %v19739_v13 }
 0x43f   : > { %v3439_v5 = vxor.u32 2147483648, %v10745_v34  ;;  %v15307_v22 = vadd.f32 %v1505_v49, %v15224_v36  ;;  %v3589_v9 = vsel %vm3583_vm10, %v3586_v46, %v3588_v39  ;;  %v19546_v14 = vand.u32 2147483647, %v20047_v20  ;;  %v20049_v49 = vld [vmem:[#allocation78_spill] sm:$0xff]  ;;  %1463 = vperm.xlu1 %10670, %v15011_v12  }
 0x440   : > { %v3443_v51 = vsel %vm3441_vm7, %v3442_v41, %v10745_v34  ;;  %v3529_v25 = vmul.f32 %v3528_v1, %v3526_v31  ;;  %v3533_v6 = vsel %vm3448_vm9, %v3532_v55, %v15160_v33  ;;  %v3672_v30 = vshrl.u32 %v19731_v29, %v20048_v56 }
 0x441   : > { %20046 = vst [vmem:[#allocation80_spill] sm:$0xff] %v15307_v22  ;;  %v3440_v36 = vsel %vm3438_vm11, %v10743_v27, %v3439_v5  ;;  %vm3607_vm13 = vc.u32 %v15298_v62, %v15300_v57  ;;  %v3608_v52 = vadd.s32 1, %v15301_v10  ;;  %v3671_v46 = vshll.u32 %v19730_v18, %v20049_v49 }
 0x442   : > { %v3444_v39 = vsel %vm3437_vm14, %v3440_v36, %v3443_v51  ;;  %v3530_v33 = vxor.u32 2147483648, %v3529_v25  ;;  %v3605_v55 = vmul.u32 %v3598_v11, %v3589_v9  ;;  %v3661_v53 = vand.u32 8388607, %v19546_v14  ;;  %v20050_v36 = vld [vmem:[#allocation70_spill] sm:$0xff] }
 0x443   : > { %vm4001_vm3 = vcmp.lt.s32.totalorder %v15216_v48, 4  ;;  %v3445_v27 = vsel %vm3434_vm6, nan, %v3444_v39  ;;  %v3535_v34 = vsel %vm15276_vm12, 0, %v3533_v6  ;;  %v3609_v41 = vsel %vm3607_vm13, %v3608_v52, %v15301_v10  ;;  %10671 = vset.pattern.permute.xlu1 %v19744_v50 }
 0x444   : > { %v3673_v31 = vor.u32 %v3672_v30, %v3671_v46  ;;  %9862 = vmatmul.mubr.msk.f32.gmra.mrb[16].mxu0 %vm6619_vm1, %v3445_v27  ;;  %v3531_v21 = vsel %vm3448_vm9, %v3530_v33, %v3529_v25  ;;  %v3610_v11 = vadd.s32 %v3609_v41, %v3605_v55  ;;  %v3674_v12 = vshll.u32 %v19731_v29, %v20049_v49  ;;  %v20052_v46 = vld [vmem:[#allocation103_spill] sm:$0xff]  ;;  %v20053_v33 = vld [vmem:[#allocation42_spill] sm:$0xff] }
 0x445   : > { %v3675_v1 = vshrl.u32 %v19820_v63, %v20048_v56  ;;  %v3534_v35 = vsel %vm15276_vm12, %v20022_v32, %v3531_v21  ;;  %v3662_v5 = vor.u32 8388608, %v3661_v53  ;;  %v3677_v10 = vshll.u32 %v19820_v63, %v20049_v49  ;;  %1178 = vperm.xlu1 %10671, %v639_v38   ;;  %v20051_v49 = vld [vmem:[#allocation54_spill] sm:$0xff] }
 0x446   : > { %v3678_v9 = vshrl.u32 %v19733_v61, %v20048_v56  ;;  %10746 = vcosq.f32 %v3534_v35  ;;  %v3611_v51 = vadd.s32 536870912, %v3610_v11  ;;  %v3670_v25 = vshrl.u32 %v19730_v18, %v20048_v56 }
 0x447   : > { %v3676_v6 = vor.u32 %v3675_v1, %v3674_v12  ;;  %10748 = vsinq.f32 %v3534_v35  ;;  %vm3686_vm9 = vcmp.lt.s32.totalorder %v20050_v36, 1  ;;  %vm3688_vm0 = vcmp.lt.s32.totalorder %v20050_v36, 3 }
 0x448   : > { %v3679_v30 = vor.u32 %v3678_v9, %v3677_v10  ;;  %v15357_v23 = vshrl.u32 %v3611_v51, 30  ;;  %vm3687_vm11 = vcmp.lt.s32.totalorder %v20050_v36, 2  ;;  %v3700_v39 = vsel %vm3688_vm0, %v20052_v46, %v20051_v49 }
 0x449   : > { %v3694_v52 = vsel %vm3686_vm9, %v3673_v31, %v3676_v6  ;;  %v3702_v53 = vshll.u32 %v3662_v5, 8  ;;  %v3539_v27 = vadd.s32 3, %v3535_v34  ;;  %v3690_v21 = vsel %vm3686_vm9, %v3670_v25, %v3673_v31  ;;  %10672 = vset.pattern.permute.xlu1 %v19739_v13 }
 0x44a   : > { %v3691_v56 = vsel %vm3689_vm15, %v3679_v30, 2102212464  ;;  %v3696_v50 = vsel %vm3688_vm0, %v3679_v30, %v20053_v33  ;;  %v3698_v55 = vsel %vm3686_vm9, %v3676_v6, %v3679_v30  ;;  %v3613_v41 = vshll.u32 %v15357_v23, 30  ;;  %1467 = vperm.xlu1 %10672, %v15099_v44  }
 0x44b   : > { %v3697_v38 = vsel %vm3687_vm11, %v3694_v52, %v3696_v50  ;;  %v3692_v12 = vsel %vm3688_vm0, %v3676_v6, %v3691_v56  ;;  %v3701_v1 = vsel %vm3687_vm11, %v3698_v55, %v3700_v39  ;;  %v15378_v34 = vsel %vm4001_vm3, %v15218_v28, 920167782  ;;  %v15416_v39 = vpop.permute.xlu1 %1106 }
 0x44c   : > { %v15370_v35 = vmul.u32.u64.low %v3702_v53, %v3697_v38  ;;  %v15371_v10 = vmul.u32.u64.high %v3702_v53, %v3697_v38, %v15370_v35  ;;  %v15380_v5 = vsub.s32 %v3610_v11, %v3613_v41  ;;  %v20054_v51 = vor.u32 %v15194_v42, %v15203_v26 }
 0x44d   : > { %v15382_v31 = vmul.u32.u64.low %v3702_v53, %v3701_v1  ;;  %v15383_v9 = vmul.u32.u64.high %v3702_v53, %v3701_v1, %v15382_v31  ;;  %v15394_v13 = vshrl.u32 %v15176_v17, 5  ;;  %vm4185_vm15 = vcmp.gt.s32.totalorder %v15222_v40, 0 }
 0x44e   : > { %v15391_v25 = vsel %vm4001_vm3, %v20054_v51, 1326507024  ;;  %v4385_v11 = vand.u32 2139095040, %v15307_v22  ;;  %v3540_v6 = vand.u32 3, %v3539_v27  ;;  %v9285_v30 = vadd.s32 4294967169, %v15304_v19 }
 0x44f   : > { %20055 = vst [vmem:[#allocation81_spill] sm:$0xff] %v15394_v13  ;;  %v3616_v52 = vsub.s32 0, %v15380_v5  ;;  %v3693_v44 = vsel %vm3687_vm11, %v3690_v21, %v3692_v12  ;;  %v4304_v42 = vshll.u32 %v19733_v61, %v15206_v45  ;;  %v4305_v26 = vshrl.u32 %v19960_v60, %v15227_v47 }
 0x450   : > { %v15408_v17 = vshll.u32 %v19960_v60, %v15206_v45  ;;  %v3712_v49 = vadd.s32 1, %v15371_v10  ;;  %v10747_v46 = vpop.eup %10746  ;;  %v15413_v19 = vshrl.u32 %v19968_v4, %v15227_v47  ;;  %v4186_v36 = vsel %vm4185_vm15, %v15222_v40, 0 }
 0x451   : > { %v9250_v56 = vmin.u32 %v3616_v52, %v15380_v5  ;;  %vm3711_vm10 = vc.u32 %v15383_v9, %v15370_v35  ;;  %v10749_v33 = vpop.eup %10748  ;;  %v3546_v50 = vxor.u32 2147483648, %v10747_v46  ;;  %v4386_v55 = vshrl.u32 %v4385_v11, 23 }
 0x452   : > { %v3709_v27 = vmul.u32 %v3702_v53, %v3693_v44  ;;  %v3713_v41 = vsel %vm3711_vm10, %v3712_v49, %v15371_v10  ;;  %vm4313_vm5 = vcmp.lt.s32.totalorder %v15394_v13, 4  ;;  %v3543_v21 = vxor.u32 2147483648, %v10749_v33  ;;  %v795_v49 = vpop.permute.xlu1 %794 }
 0x453   : > { %vm3545_vm14 = vcmp.eq.s32.totalorder %v3540_v6, 2  ;;  %v4496_v38 = vadd.s32 1, %v9285_v30  ;;  %v3618_v12 = vclz %v9250_v56  ;;  %v15423_v40 = vand.u32 31, %v4186_v36 }
 0x454   : > { %vm3542_vm6 = vcmp.eq.s32.totalorder %v3540_v6, 0  ;;  %v3547_v1 = vsel %vm3545_vm14, %v3546_v50, %v10749_v33  ;;  %v3714_v31 = vadd.s32 %v3713_v41, %v3709_v27  ;;  %v15425_v51 = vor.u32 %v4305_v26, %v4304_v42 }
 0x455   : > { %20056 = vst [vmem:[#allocation76_spill] sm:$0xff] %v15423_v40  ;;  %vm3541_vm12 = vcmp.lt.s32.totalorder %v3540_v6, 2  ;;  %v3544_v52 = vsel %vm3542_vm6, %v10747_v46, %v3543_v21  ;;  %v9251_v14 = vadd.s32 4294967294, %v3618_v12  ;;  %vm3538_vm7 = vweird.f32 %v20022_v32  ;;  %v15446_v21 = vld [vmem:[#allocation7] ss:$0 sm:$0xff] }
 0x456   : > { %20057 = vst [vmem:[#allocation43_spill] sm:$0xff] %v15425_v51  ;;  %v3548_v53 = vsel %vm3541_vm12, %v3544_v52, %v3547_v1  ;;  %v9281_v10 = vadd.s32 4294967169, %v4386_v55  ;;  %v3715_v11 = vadd.s32 536870912, %v3714_v31  ;;  %v4309_v44 = vor.u32 %v15413_v19, %v15408_v17 }
 0x457   : > { %v3549_v30 = vsel %vm3538_vm7, nan, %v3548_v53  ;;  %vm4497_vm13 = vcmp.gt.s32.totalorder %v4496_v38, 0  ;;  %vm9252_vm9 = vcmp.lt.s32.totalorder %v9251_v14, 0  ;;  %v15431_v56 = vsub.s32 32, %v15423_v40 }
 0x458   : > { %9864 = vmatprep.mubr.msk.f32.mxu0 %vm6619_vm1, %v3549_v30  ;;  %v3621_v6 = vsel %vm9252_vm9, 0, %v9251_v14  ;;  %v3636_v42 = vsub.s32 4, %v15357_v23  ;;  %v15435_v26 = vshrl.u32 %v3715_v11, 30  ;;  %v15437_v32 = vshrl.u32 %v4186_v36, 5  ;;  %v15468_v11 = vpop.permute.xlu1 %799 }
 0x459   : > { %v3606_v46 = vadd.s32 %v15300_v57, %v15298_v62  ;;  %v3622_v17 = vsub.s32 32, %v3621_v6  ;;  %v3626_v19 = vsub.s32 4294967266, %v3621_v6  ;;  %v15441_v33 = vsel %vm4497_vm13, %v4496_v38, 0 }
 0x45a   : > { %v4392_v50 = vadd.s32 1, %v9281_v10  ;;  %vm3552_vm0 = vcmp.lt.s32.totalorder %v20035_v0, 0  ;;  %v3717_v55 = vshll.u32 %v15435_v26, 30  ;;  %v3623_v14 = vshll.u32 %v15380_v5, %v3621_v6  ;;  %v1111_v5 = vpop.permute.xlu0 %1110 }
 0x45b   : > { %v3624_v27 = vshrl.u32 %v3606_v46, %v3622_v17  ;;  %v3627_v41 = vadd.s32 127, %v3626_v19  ;;  %v916_v36 = vmul.f32 %v15446_v21, %v795_v49  ;;  %v15452_v62 = vsel %vm4313_vm5, %v15425_v51, 920167782  ;;  %v15481_v46 = vld [vmem:[#allocation8] ss:$0 sm:$0xff] }
 0x45c   : > { %20058 = vst [vmem:[#allocation99_spill] sm:$0xff] %v15452_v62  ;;  %v4201_v57 = vshrl.u32 %v19960_v60, %v15431_v56  ;;  %v3637_v38 = vsel %vm3552_vm0, %v3636_v42, %v15357_v23  ;;  %v15459_v12 = vsub.s32 %v3714_v31, %v3717_v55  ;;  %v15463_v1 = vshrl.u32 %v19968_v4, %v15431_v56  ;;  %v15484_v19 = vld [vmem:[#allocation7 + $0x1] ss:$0 sm:$0xff]  ;;  %v1400_v13 = vpop.permute.xlu1 %1399 }
 0x45d   : > { %v15466_v52 = vand.u32 31, %v15441_v33  ;;  %v3625_v53 = vor.u32 %v3624_v27, %v3623_v14  ;;  %v3628_v10 = vshll.u32 %v3627_v41, 23  ;;  %v915_v30 = vmul.f32 %v15446_v21, %v15199_v43 }
 0x45e   : > { %vm4393_vm11 = vcmp.gt.s32.totalorder %v4392_v50, 0  ;;  %v20060_v23 = vand.u32 2147483647, %v20035_v0  ;;  %v3720_v49 = vsub.s32 0, %v15459_v12  ;;  %v970_v17 = vadd.f32 %v15481_v46, %v916_v36 }
 0x45f   : > { %20059 = vst [vmem:[#allocation95_spill] sm:$0xff] %v15466_v52  ;;  %v3629_v6 = vor.u32 4788187, %v3628_v10  ;;  %v1215_v43 = vmul.f32 %v15484_v19, %v1111_v5  ;;  %v15489_v55 = vsel %vm4313_vm5, %v4309_v44, 1326507024  ;;  %v4200_v14 = vshll.u32 %v19733_v61, %v15423_v40 }
 0x460   : > { %vm15474_vm15 = vcmp.le.f32.partialorder %v20060_v23, 0.7853982  ;;  %20063 = vst [vmem:[#allocation111_spill] sm:$0xff] %v15489_v55  ;;  %v1214_v27 = vmul.f32 %v15484_v19, %v15416_v39  ;;  %v9254_v41 = vmin.u32 %v3720_v49, %v15459_v12  ;;  %v15501_v36 = vsub.s32 32, %v15466_v52 }
 0x461   : > { %v3639_v42 = vsel %vm15474_vm15, 0, %v3637_v38  ;;  %v15498_v38 = vshll.u32 %v19960_v60, %v15423_v40  ;;  %v3630_v5 = vand.u32 2147483647, %v3629_v6  ;;  %v3632_v10 = vcvt.s32.f32 %v3625_v53 }
 0x462   : > { %20064 = vst [vmem:[#allocation112_spill] sm:$0xff] %v15501_v36  ;;  %v969_v44 = vadd.f32 %v15481_v46, %v915_v30  ;;  %v15505_v23 = vsel %vm4393_vm11, %v4392_v50, 0  ;;  %v3643_v22 = vadd.s32 3, %v3639_v42  ;;  %v3722_v62 = vclz %v9254_v41  ;;  %v20066_v30 = vld [vmem:[#allocation100_spill] sm:$0xff] }
 0x463   : > { %v15507_v51 = vor.u32 %v4201_v57, %v4200_v14  ;;  %v3633_v49 = vmul.f32 %v3632_v10, %v3630_v5  ;;  %v1263_v55 = vadd.f32 %v1215_v43, %v970_v17  ;;  %v15513_v47 = vshll.u32 %v19733_v61, %v15466_v52  ;;  %v20068_v14 = vld [vmem:[#allocation71_spill] sm:$0xff]  ;;  %v20069_v10 = vld [vmem:[#allocation65_spill] sm:$0xff] }
 0x464   : > { %v1262_v53 = vadd.f32 %v1214_v27, %v969_v44  ;;  %v9255_v6 = vadd.s32 4294967294, %v3722_v62  ;;  %v15518_v50 = vshrl.u32 %v19960_v60, %v15501_v36  ;;  %v15521_v57 = vand.u32 31, %v15505_v23 }
 0x465   : > { %20065 = vst [vmem:[#allocation108_spill] sm:$0xff] %v15507_v51  ;;  %v3634_v42 = vxor.u32 2147483648, %v3633_v49  ;;  %v3776_v17 = vshrl.u32 %v19731_v29, %v20068_v14  ;;  %v15525_v43 = vand.u32 3, %v3643_v22  ;;  %v3710_v41 = vadd.s32 %v15370_v35, %v15383_v9 }
 0x466   : > { %20067 = vst [vmem:[#allocation52_spill] sm:$0xff] %v15521_v57  ;;  %vm9256_vm10 = vcmp.lt.s32.totalorder %v9255_v6, 0  ;;  %v1507_v62 = vmul.f32 %v15126_v3, %v1400_v13  ;;  %v15533_v44 = vadd.f32 %v20069_v10, %v1263_v55  ;;  %v3775_v39 = vshll.u32 %v19730_v18, %v14755_v24 }
 0x467   : > { %v3635_v27 = vsel %vm3552_vm0, %v3634_v42, %v3633_v49  ;;  %v3725_v5 = vsel %vm9256_vm10, 0, %v9255_v6  ;;  %v20071_v35 = vand.u32 2147483647, %v20066_v30  ;;  %vm3656_vm14 = vcmp.lt.s32.totalorder %v20047_v20, 0 }
 0x468   : > { %20070 = vst [vmem:[#allocation60_spill] sm:$0xff] %v15533_v44  ;;  %v3638_v22 = vsel %vm15474_vm15, %v20035_v0, %v3635_v27  ;;  %v3726_v45 = vsub.s32 32, %v3725_v5  ;;  %v3730_v40 = vsub.s32 4294967266, %v3725_v5  ;;  %v3727_v3 = vshll.u32 %v15459_v12, %v3725_v5 }
 0x469   : > { %v3765_v9 = vand.u32 8388607, %v20071_v35  ;;  %10750 = vcosq.f32 %v3638_v22  ;;  %v3777_v13 = vor.u32 %v3776_v17, %v3775_v39  ;;  %v3778_v55 = vshll.u32 %v19731_v29, %v14755_v24 }
 0x46a   : > { %10752 = vsinq.f32 %v3638_v22  ;;  %v3728_v49 = vshrl.u32 %v3710_v41, %v3726_v45  ;;  %v3731_v6 = vadd.s32 127, %v3730_v40  ;;  %v3779_v31 = vshrl.u32 %v19820_v63, %v20068_v14 }
 0x46b   : > { %v3740_v42 = vsub.s32 4, %v15435_v26  ;;  %v15549_v27 = vadd.f32 %v1507_v62, %v1262_v53  ;;  %v3781_v10 = vshll.u32 %v19820_v63, %v14755_v24  ;;  %v3782_v12 = vshrl.u32 %v19733_v61, %v20068_v14 }
 0x46c   : > { %v20073_v39 = vand.u32 2147483647, %v20047_v20  ;;  %v3729_v45 = vor.u32 %v3728_v49, %v3727_v3  ;;  %v3732_v40 = vshll.u32 %v3731_v6, 23  ;;  %v3774_v41 = vshrl.u32 %v19730_v18, %v20068_v14 }
 0x46d   : > { %20072 = vst [vmem:[#allocation86_spill] sm:$0xff] %v15549_v27  ;;  %v3780_v5 = vor.u32 %v3779_v31, %v3778_v55  ;;  %v3766_v53 = vor.u32 8388608, %v3765_v9  ;;  %v3783_v62 = vor.u32 %v3782_v12, %v3781_v10  ;;  %vm3790_vm12 = vcmp.lt.s32.totalorder %v14904_v54, 1 }
 0x46e   : > { %vm15557_vm6 = vcmp.le.f32.partialorder %v20073_v39, 0.7853982  ;;  %vm3791_vm7 = vcmp.lt.s32.totalorder %v14904_v54, 2  ;;  %v3733_v24 = vor.u32 4788187, %v3732_v40  ;;  %v3736_v22 = vcvt.s32.f32 %v3729_v45 }
 0x46f   : > { %vm3792_vm13 = vcmp.lt.s32.totalorder %v14904_v54, 3  ;;  %v3794_v35 = vsel %vm3790_vm12, %v3774_v41, %v3777_v13  ;;  %v3795_v39 = vsel %vm3793_vm2, %v3783_v62, 2102212464  ;;  %v3798_v3 = vsel %vm3790_vm12, %v3777_v13, %v3780_v5  ;;  %v20076_v41 = vld [vmem:[#allocation75_spill] sm:$0xff] }
 0x470   : > { %v3800_v49 = vsel %vm3792_vm13, %v3783_v62, %v14943_v15  ;;  %v3802_v6 = vsel %vm3790_vm12, %v3780_v5, %v3783_v62  ;;  %vm3642_vm9 = vweird.f32 %v20035_v0  ;;  %v3734_v14 = vand.u32 2147483647, %v3733_v24 }
 0x471   : > { %v3796_v9 = vsel %vm3792_vm13, %v3780_v5, %v3795_v39  ;;  %v3801_v55 = vsel %vm3791_vm7, %v3798_v3, %v3800_v49  ;;  %v3804_v31 = vsel %vm3792_vm13, %v14918_v59, %v14947_v37  ;;  %vm3645_vm0 = vcmp.lt.s32.totalorder %v15525_v43, 2 }
 0x472   : > { %v4697_v10 = vand.u32 2139095040, %v15533_v44  ;;  %v3805_v13 = vsel %vm3791_vm7, %v3802_v6, %v3804_v31  ;;  %v3806_v12 = vshll.u32 %v3766_v53, 8  ;;  %v3737_v15 = vmul.f32 %v3736_v22, %v3734_v14 }
 0x473   : > { %v3741_v45 = vsel %vm3656_vm14, %v3740_v42, %v15435_v26  ;;  %v3797_v40 = vsel %vm3791_vm7, %v3794_v35, %v3796_v9  ;;  %v19558_v5 = vand.u32 2147483647, %v20076_v41  ;;  %v10751_v62 = vpop.eup %10750  ;;  %vm3646_vm2 = vcmp.eq.s32.totalorder %v15525_v43, 0  ;;  %v20077_v9 = vld [vmem:[#allocation38_spill] sm:$0xff] }
 0x474   : > { %v15584_v59 = vmul.u32.u64.low %v3806_v12, %v3805_v13  ;;  %v15585_v37 = vmul.u32.u64.high %v3806_v12, %v3805_v13, %v15584_v59  ;;  %v15587_v24 = vmul.u32.u64.low %v3806_v12, %v3801_v55  ;;  %v15588_v39 = vmul.u32.u64.high %v3806_v12, %v3801_v55, %v15587_v24  ;;  %v10753_v3 = vpop.eup %10752 }
 0x475   : > { %vm3649_vm11 = vcmp.eq.s32.totalorder %v15525_v43, 2  ;;  %v3650_v53 = vxor.u32 2147483648, %v10751_v62  ;;  %v3738_v26 = vxor.u32 2147483648, %v3737_v15  ;;  %v3647_v42 = vxor.u32 2147483648, %v10753_v3 }
 0x476   : > { %v3743_v54 = vsel %vm15557_vm6, 0, %v3741_v45  ;;  %v4698_v22 = vshrl.u32 %v4697_v10, 23  ;;  %v3869_v35 = vand.u32 8388607, %v19558_v5  ;;  %v3813_v14 = vmul.u32 %v3806_v12, %v3797_v40  ;;  %v20078_v10 = vld [vmem:[#allocation96_spill] sm:$0xff] }
 0x477   : > { %v3651_v49 = vsel %vm3649_vm11, %v3650_v53, %v10753_v3  ;;  %v3739_v6 = vsel %vm3656_vm14, %v3738_v26, %v3737_v15  ;;  %v3880_v55 = vshrl.u32 %v19731_v29, %v20077_v9  ;;  %v3648_v31 = vsel %vm3646_vm2, %v10751_v62, %v3647_v42 }
 0x478   : > { %v3742_v13 = vsel %vm15557_vm6, %v20047_v20, %v3739_v6  ;;  %vm3815_vm15 = vc.u32 %v15585_v37, %v15587_v24  ;;  %v3879_v45 = vshll.u32 %v19730_v18, %v20078_v10  ;;  %v3652_v59 = vsel %vm3645_vm0, %v3648_v31, %v3651_v49  ;;  %v20080_v31 = vld [vmem:[#allocation72_spill] sm:$0xff] }
 0x479   : > { %10754 = vcosq.f32 %v3742_v13  ;;  %v3816_v12 = vadd.s32 1, %v15588_v39  ;;  %v3870_v15 = vor.u32 8388608, %v3869_v35  ;;  %v3653_v40 = vsel %vm3642_vm9, nan, %v3652_v59 }
 0x47a   : > { %10756 = vsinq.f32 %v3742_v13  ;;  %v3881_v62 = vor.u32 %v3880_v55, %v3879_v45  ;;  %v3882_v17 = vshll.u32 %v19731_v29, %v20078_v10  ;;  %9865 = vmatmul.mubr.msk.f32.gmra.mrb[18].mxu0 %vm6619_vm1, %v3653_v40  ;;  %v3883_v43 = vshrl.u32 %v19820_v63, %v20077_v9 }
 0x47b   : > { %v3817_v3 = vsel %vm3815_vm15, %v3816_v12, %v15588_v39  ;;  %v3885_v53 = vshll.u32 %v19820_v63, %v20078_v10  ;;  %v3886_v26 = vshrl.u32 %v19733_v61, %v20077_v9  ;;  %v3747_v0 = vadd.s32 3, %v3743_v54  ;;  %v20079_v39 = vld [vmem:[#allocation93_spill] sm:$0xff] }
 0x47c   : > { %v9293_v42 = vadd.s32 4294967169, %v4698_v22  ;;  %v3818_v35 = vadd.s32 %v3817_v3, %v3813_v14  ;;  %vm3896_vm10 = vcmp.lt.s32.totalorder %v14866_v7, 3  ;;  %v3878_v49 = vshrl.u32 %v19730_v18, %v20077_v9  ;;  %v20081_v10 = vld [vmem:[#allocation41_spill] sm:$0xff] }
 0x47d   : > { %v3884_v6 = vor.u32 %v3883_v43, %v3882_v17  ;;  %v3887_v55 = vor.u32 %v3886_v26, %v3885_v53  ;;  %v3908_v13 = vsel %vm3896_vm10, %v20080_v31, %v20079_v39  ;;  %vm3894_vm14 = vcmp.lt.s32.totalorder %v14866_v7, 1 }
 0x47e   : > { %v3819_v45 = vadd.s32 536870912, %v3818_v35  ;;  %vm3895_vm6 = vcmp.lt.s32.totalorder %v14866_v7, 2  ;;  %v3910_v54 = vshll.u32 %v3870_v15, 8  ;;  %v3748_v12 = vand.u32 3, %v3747_v0 }
 0x47f   : > { %v3899_v22 = vsel %vm3897_vm4, %v3887_v55, 2102212464  ;;  %v3902_v14 = vsel %vm3894_vm14, %v3881_v62, %v3884_v6  ;;  %v3904_v9 = vsel %vm3896_vm10, %v3887_v55, %v20081_v10  ;;  %v3906_v59 = vsel %vm3894_vm14, %v3884_v6, %v3887_v55  ;;  %v1115_v10 = vpop.permute.xlu1 %1114 }
 0x480   : > { %v15637_v40 = vshrl.u32 %v3819_v45, 30  ;;  %v3905_v17 = vsel %vm3895_vm6, %v3902_v14, %v3904_v9  ;;  %v3909_v3 = vsel %vm3895_vm6, %v3906_v59, %v3908_v13  ;;  %v3898_v43 = vsel %vm3894_vm14, %v3878_v49, %v3881_v62 }
 0x481   : > { %v3900_v15 = vsel %vm3896_vm10, %v3884_v6, %v3899_v22  ;;  %v15645_v53 = vmul.u32.u64.low %v3910_v54, %v3909_v3  ;;  %v15646_v26 = vmul.u32.u64.high %v3910_v54, %v3909_v3, %v15645_v53  ;;  %v15649_v39 = vshrl.u32 %v15441_v33, 5 }
 0x482   : > { %v3821_v0 = vshll.u32 %v15637_v40, 30  ;;  %v15652_v55 = vmul.u32.u64.low %v3910_v54, %v3905_v17  ;;  %v15653_v31 = vmul.u32.u64.high %v3910_v54, %v3905_v17, %v15652_v55  ;;  %v15658_v13 = vor.u32 %v15518_v50, %v15513_v47 }
 0x483   : > { %20082 = vst [vmem:[#allocation82_spill] sm:$0xff] %v15649_v39  ;;  %v10755_v45 = vpop.eup %10754  ;;  %v4515_v62 = vshll.u32 %v19960_v60, %v15466_v52  ;;  %v4516_v49 = vshrl.u32 %v19968_v4, %v15501_v36  ;;  %v4593_v33 = vand.u32 2139095040, %v15549_v27  ;;  %v15666_v22 = vsub.s32 32, %v15521_v57 }
 0x484   : > { %20083 = vst [vmem:[#allocation85_spill] sm:$0xff] %v15658_v13  ;;  %v10757_v6 = vpop.eup %10756  ;;  %v3754_v14 = vxor.u32 2147483648, %v10755_v45  ;;  %v15668_v9 = vsub.s32 %v3818_v35, %v3821_v0  ;;  %v3901_v47 = vsel %vm3895_vm6, %v3898_v43, %v3900_v15  ;;  %vm3753_vm4 = vcmp.eq.s32.totalorder %v3748_v12, 2 }
 0x485   : > { %20084 = vst [vmem:[#allocation91_spill] sm:$0xff] %v15666_v22  ;;  %v3751_v50 = vxor.u32 2147483648, %v10757_v6  ;;  %v4704_v59 = vadd.s32 1, %v9293_v42  ;;  %vm3919_vm12 = vc.u32 %v15646_v26, %v15652_v55  ;;  %vm3750_vm7 = vcmp.eq.s32.totalorder %v3748_v12, 0 }
 0x486   : > { %v3755_v17 = vsel %vm3753_vm4, %v3754_v14, %v10757_v6  ;;  %v3824_v3 = vsub.s32 0, %v15668_v9  ;;  %v3920_v53 = vadd.s32 1, %v15653_v31  ;;  %vm3749_vm13 = vcmp.lt.s32.totalorder %v3748_v12, 2 }
 0x487   : > { %v3752_v5 = vsel %vm3750_vm7, %v10755_v45, %v3751_v50  ;;  %v4594_v44 = vshrl.u32 %v4593_v33, 23  ;;  %v3917_v35 = vmul.u32 %v3910_v54, %v3901_v47  ;;  %vm3746_vm9 = vweird.f32 %v20047_v20 }
 0x488   : > { %v3756_v7 = vsel %vm3749_vm13, %v3752_v5, %v3755_v17  ;;  %v9258_v43 = vmin.u32 %v3824_v3, %v15668_v9  ;;  %v3921_v42 = vsel %vm3919_vm12, %v3920_v53, %v15653_v31  ;;  %vm4209_vm0 = vcmp.lt.s32.totalorder %v15437_v32, 4  ;;  %v805_v5 = vpop.permute.xlu1 %804 }
 0x489   : > { %v4517_v15 = vor.u32 %v4516_v49, %v4515_v62  ;;  %v3757_v0 = vsel %vm3746_vm9, nan, %v3756_v7  ;;  %v3922_v6 = vadd.s32 %v3921_v42, %v3917_v35  ;;  %v15683_v14 = vsel %vm4209_vm0, %v15507_v51, 920167782  ;;  %v1119_v42 = vpop.permute.xlu0 %1118 }
 0x48a   : > { %v4409_v54 = vshrl.u32 %v19960_v60, %v15666_v22  ;;  %9867 = vmatprep.mubr.msk.f32.mxu0 %vm6619_vm1, %v3757_v0  ;;  %vm4705_vm2 = vcmp.gt.s32.totalorder %v4704_v59, 0  ;;  %v3826_v20 = vclz %v9258_v43  ;;  %v20085_v12 = vor.u32 %v15463_v1, %v15498_v38 }
 0x48b   : > { %vm4521_vm11 = vcmp.lt.s32.totalorder %v15649_v39, 4  ;;  %v9289_v45 = vadd.s32 4294967169, %v4594_v44  ;;  %v3923_v62 = vadd.s32 536870912, %v3922_v6  ;;  %v15702_v33 = vshrl.u32 %v15505_v23, 5 }
 0x48c   : > { %v15693_v31 = vsel %vm4209_vm0, %v20085_v12, 1326507024  ;;  %v15699_v49 = vsel %vm4521_vm11, %v15658_v13, 920167782  ;;  %v4408_v47 = vshll.u32 %v19733_v61, %v15521_v57  ;;  %v9259_v1 = vadd.s32 4294967294, %v3826_v20 }
 0x48d   : > { %20086 = vst [vmem:[#allocation92_spill] sm:$0xff] %v15693_v31  ;;  %20087 = vst [vmem:[#allocation88_spill] sm:$0xff] %v15699_v49  ;;  %v15708_v38 = vsel %vm4521_vm11, %v4517_v15, 1326507024  ;;  %v4706_v50 = vsel %vm4705_vm2, %v4704_v59, 0  ;;  %v918_v44 = vmul.f32 %v15446_v21, %v805_v5  ;;  %v15711_v17 = vshrl.u32 %v3923_v62, 30 }
 0x48e   : > { %20088 = vst [vmem:[#allocation77_spill] sm:$0xff] %v15708_v38  ;;  %v15713_v3 = vor.u32 %v4409_v54, %v4408_v47  ;;  %v15717_v53 = vshll.u32 %v19960_v60, %v15521_v57  ;;  %v15721_v23 = vshrl.u32 %v19968_v4, %v15666_v22  ;;  %vm9260_vm15 = vcmp.lt.s32.totalorder %v9259_v1, 0 }
 0x48f   : > { %v917_v35 = vmul.f32 %v15446_v21, %v15468_v11  ;;  %v4600_v7 = vadd.s32 1, %v9289_v45  ;;  %v3829_v59 = vsel %vm9260_vm15, 0, %v9259_v1  ;;  %v3925_v43 = vshll.u32 %v15711_v17, 30 }
 0x490   : > { %20089 = vst [vmem:[#allocation102_spill] sm:$0xff] %v15713_v3  ;;  %v15726_v15 = vand.u32 31, %v4706_v50  ;;  %v3814_v0 = vadd.s32 %v15587_v24, %v15585_v37  ;;  %v3830_v54 = vsub.s32 32, %v3829_v59  ;;  %v3834_v20 = vsub.s32 4294967266, %v3829_v59 }
 0x491   : > { %v1216_v5 = vmul.f32 %v15484_v19, %v1115_v10  ;;  %v3844_v12 = vsub.s32 4, %v15637_v40  ;;  %v972_v62 = vadd.f32 %v15481_v46, %v918_v44  ;;  %v15733_v47 = vsub.s32 %v3922_v6, %v3925_v43 }
 0x492   : > { %v3831_v11 = vshll.u32 %v15668_v9, %v3829_v59  ;;  %v3832_v45 = vshrl.u32 %v3814_v0, %v3830_v54  ;;  %v3835_v1 = vadd.s32 127, %v3834_v20  ;;  %v1217_v27 = vmul.f32 %v15484_v19, %v1119_v42 }
 0x493   : > { %vm4417_vm10 = vcmp.lt.s32.totalorder %v15702_v33, 4  ;;  %v971_v37 = vadd.f32 %v15481_v46, %v917_v35  ;;  %vm4601_vm14 = vcmp.gt.s32.totalorder %v4600_v7, 0  ;;  %v3928_v24 = vsub.s32 0, %v15733_v47 }
 0x494   : > { %v15741_v10 = vsub.s32 32, %v15726_v15  ;;  %vm3760_vm6 = vcmp.lt.s32.totalorder %v20066_v30, 0  ;;  %v3833_v6 = vor.u32 %v3832_v45, %v3831_v11  ;;  %v3836_v44 = vshll.u32 %v3835_v1, 23 }
 0x495   : > { %v15749_v59 = vsel %vm4417_vm10, %v15713_v3, 920167782  ;;  %v3845_v35 = vsel %vm3760_vm6, %v3844_v12, %v15637_v40  ;;  %v9262_v43 = vmin.u32 %v3928_v24, %v15733_v47  ;;  %v15755_v42 = vsel %vm4601_vm14, %v4600_v7, 0 }
 0x496   : > { %20090 = vst [vmem:[#allocation97_spill] sm:$0xff] %v15749_v59  ;;  %v15757_v0 = vadd.f32 %v1216_v5, %v971_v37  ;;  %v3837_v54 = vor.u32 4788187, %v3836_v44  ;;  %v1265_v20 = vadd.f32 %v1217_v27, %v972_v62  ;;  %v15759_v11 = vshrl.u32 %v4706_v50, 5  ;;  %v20094_v37 = vld [vmem:[#allocation64_spill] sm:$0xff] }
 0x497   : > { %v15763_v45 = vshll.u32 %v19733_v61, %v15726_v15  ;;  %v20091_v1 = vand.u32 2147483647, %v20066_v30  ;;  %v3930_v40 = vclz %v9262_v43  ;;  %v15773_v7 = vshrl.u32 %v19960_v60, %v15741_v10 }
 0x498   : > { %v3838_v5 = vand.u32 2147483647, %v3837_v54  ;;  %v3840_v12 = vcvt.s32.f32 %v3833_v6  ;;  %v15778_v50 = vand.u32 31, %v15755_v42  ;;  %vm3864_vm12 = vcmp.lt.s32.totalorder %v20076_v41, 0 }
 0x499   : > { %vm15767_vm4 = vcmp.le.f32.partialorder %v20091_v1, 0.7853982  ;;  %v9263_v62 = vadd.s32 4294967294, %v3930_v40  ;;  %v3918_v43 = vadd.s32 %v15652_v55, %v15646_v26  ;;  %v20095_v1 = vld [vmem:[#allocation66_spill] sm:$0xff]  ;;  %v3984_v6 = vshrl.u32 %v19731_v29, %v15158_v8 }
 0x49a   : > { %v3847_v27 = vsel %vm15767_vm4, 0, %v3845_v35  ;;  %v3841_v44 = vmul.f32 %v3840_v12, %v3838_v5  ;;  %v15785_v49 = vadd.f32 %v20095_v1, %v1265_v20  ;;  %v3983_v35 = vshll.u32 %v19730_v18, %v15145_v58  ;;  %v15797_v12 = vpop.permute.xlu1 %809 }
 0x49b   : > { %v3851_v54 = vadd.s32 3, %v3847_v27  ;;  %vm9264_vm7 = vcmp.lt.s32.totalorder %v9263_v62, 0  ;;  %v3987_v40 = vshrl.u32 %v19820_v63, %v15158_v8  ;;  %v3989_v5 = vshll.u32 %v19820_v63, %v15145_v58 }
 0x49c   : > { %20096 = vst [vmem:[#allocation104_spill] sm:$0xff] %v15785_v49  ;;  %v3842_v13 = vxor.u32 2147483648, %v3841_v44  ;;  %v3933_v24 = vsel %vm9264_vm7, 0, %v9263_v62  ;;  %v3990_v26 = vshrl.u32 %v19733_v61, %v15158_v8  ;;  %v20097_v27 = vand.u32 2147483647, %v20094_v37 }
 0x49d   : > { %v3934_v55 = vsub.s32 32, %v3933_v24  ;;  %v3938_v20 = vsub.s32 4294967266, %v3933_v24  ;;  %v3986_v38 = vshll.u32 %v19731_v29, %v15145_v58  ;;  %v20098_v62 = vand.u32 2147483647, %v20076_v41 }
 0x49e   : > { %v3973_v1 = vand.u32 8388607, %v20097_v27  ;;  %v3843_v39 = vsel %vm3760_vm6, %v3842_v13, %v3841_v44  ;;  %v3948_v36 = vsub.s32 4, %v15711_v17  ;;  %v3985_v3 = vor.u32 %v3984_v6, %v3983_v35 }
 0x49f   : > { %vm15807_vm13 = vcmp.le.f32.partialorder %v20098_v62, 0.7853982  ;;  %v3991_v59 = vor.u32 %v3990_v26, %v3989_v5  ;;  %v3846_v27 = vsel %vm15767_vm4, %v20066_v30, %v3843_v39  ;;  %v3935_v57 = vshll.u32 %v15733_v47, %v3933_v24  ;;  %v15834_v5 = vld [vmem:[#allocation7 + $0x2] ss:$0 sm:$0xff] }
 0x4a0   : > { %v3936_v58 = vshrl.u32 %v3918_v43, %v3934_v55  ;;  %v3939_v22 = vadd.s32 127, %v3938_v20  ;;  %10758 = vcosq.f32 %v3846_v27  ;;  %v15816_v13 = vand.u32 3, %v3851_v54  ;;  %v1408_v43 = vpop.permute.xlu1 %1407  ;;  %v20101_v20 = vld [vmem:[#allocation62_spill] sm:$0xff] }
 0x4a1   : > { %v4905_v44 = vand.u32 2139095040, %v15785_v49  ;;  %v3988_v62 = vor.u32 %v3987_v40, %v3986_v38  ;;  %10760 = vsinq.f32 %v3846_v27  ;;  %v3982_v6 = vshrl.u32 %v19730_v18, %v15158_v8 }
 0x4a2   : > { %v3937_v51 = vor.u32 %v3936_v58, %v3935_v57  ;;  %v3940_v31 = vshll.u32 %v3939_v22, 23  ;;  %v3949_v39 = vsel %vm3864_vm12, %v3948_v36, %v15711_v17  ;;  %v3974_v9 = vor.u32 8388608, %v3973_v1 }
 0x4a3   : > { %vm3998_vm9 = vcmp.lt.s32.totalorder %v15216_v48, 1  ;;  %v4003_v47 = vsel %vm4001_vm3, %v3991_v59, 2102212464  ;;  %vm3999_vm2 = vcmp.lt.s32.totalorder %v15216_v48, 2  ;;  %vm4000_vm15 = vcmp.lt.s32.totalorder %v15216_v48, 3 }
 0x4a4   : > { %v3941_v24 = vor.u32 4788187, %v3940_v31  ;;  %v4002_v57 = vsel %vm3998_vm9, %v3982_v6, %v3985_v3  ;;  %v3944_v22 = vcvt.s32.f32 %v3937_v51  ;;  %v4004_v38 = vsel %vm4000_vm15, %v3988_v62, %v4003_v47 }
 0x4a5   : > { %v4006_v8 = vsel %vm3998_vm9, %v3985_v3, %v3988_v62  ;;  %v4008_v54 = vsel %vm4000_vm15, %v3991_v59, %v15378_v34  ;;  %v4010_v17 = vsel %vm3998_vm9, %v3988_v62, %v3991_v59  ;;  %v4012_v40 = vsel %vm4000_vm15, %v15218_v28, %v15391_v25 }
 0x4a6   : > { %v3942_v35 = vand.u32 2147483647, %v3941_v24  ;;  %v4009_v36 = vsel %vm3999_vm2, %v4006_v8, %v4008_v54  ;;  %v4906_v31 = vshrl.u32 %v4905_v44, 23  ;;  %v1509_v26 = vmul.f32 %v15834_v5, %v1408_v43 }
 0x4a7   : > { %v4013_v51 = vsel %vm3999_vm2, %v4010_v17, %v4012_v40  ;;  %v4014_v55 = vshll.u32 %v3974_v9, 8  ;;  %vm3850_vm3 = vweird.f32 %v20066_v30  ;;  %v3951_v3 = vsel %vm15807_vm13, 0, %v3949_v39 }
 0x4a8   : > { %v3945_v34 = vmul.f32 %v3944_v22, %v3942_v35  ;;  %v4005_v59 = vsel %vm3999_vm2, %v4002_v57, %v4004_v38  ;;  %v19576_v28 = vand.u32 2147483647, %v20101_v20  ;;  %vm3853_vm14 = vcmp.lt.s32.totalorder %v15816_v13, 2 }
 0x4a9   : > { %v15845_v25 = vmul.u32.u64.low %v4014_v55, %v4013_v51  ;;  %v15846_v1 = vmul.u32.u64.high %v4014_v55, %v4013_v51, %v15845_v25  ;;  %v15848_v27 = vmul.u32.u64.low %v4014_v55, %v4009_v36  ;;  %v15849_v58 = vmul.u32.u64.high %v4014_v55, %v4009_v36, %v15848_v27 }
 0x4aa   : > { %vm3854_vm6 = vcmp.eq.s32.totalorder %v15816_v13, 0  ;;  %vm3857_vm4 = vcmp.eq.s32.totalorder %v15816_v13, 2  ;;  %v3946_v44 = vxor.u32 2147483648, %v3945_v34  ;;  %v10759_v62 = vpop.eup %10758  ;;  %v3955_v6 = vadd.s32 3, %v3951_v3 }
 0x4ab   : > { %v4021_v48 = vmul.u32 %v4014_v55, %v4005_v59  ;;  %v4077_v39 = vand.u32 8388607, %v19576_v28  ;;  %v4088_v9 = vshrl.u32 %v19731_v29, %v15072_v2  ;;  %v10761_v47 = vpop.eup %10760  ;;  %v3858_v24 = vxor.u32 2147483648, %v10759_v62 }
 0x4ac   : > { %v3947_v43 = vsel %vm3864_vm12, %v3946_v44, %v3945_v34  ;;  %v4087_v57 = vshll.u32 %v19730_v18, %v14950_v16  ;;  %v4091_v22 = vshrl.u32 %v19820_v63, %v15072_v2  ;;  %v3855_v38 = vxor.u32 2147483648, %v10761_v47 }
 0x4ad   : > { %v3950_v8 = vsel %vm15807_vm13, %v20076_v41, %v3947_v43  ;;  %vm4023_vm7 = vc.u32 %v15846_v1, %v15848_v27  ;;  %v4090_v54 = vshll.u32 %v19731_v29, %v14950_v16  ;;  %v3859_v35 = vsel %vm3857_vm4, %v3858_v24, %v10761_v47 }
 0x4ae   : > { %10762 = vcosq.f32 %v3950_v8  ;;  %v4024_v36 = vadd.s32 1, %v15849_v58  ;;  %v4093_v17 = vshll.u32 %v19820_v63, %v14950_v16  ;;  %v3856_v40 = vsel %vm3854_vm6, %v10759_v62, %v3855_v38  ;;  %v20102_v16 = vld [vmem:[#allocation98_spill] sm:$0xff] }
 0x4af   : > { %10764 = vsinq.f32 %v3950_v8  ;;  %v4089_v52 = vor.u32 %v4088_v9, %v4087_v57  ;;  %v4092_v51 = vor.u32 %v4091_v22, %v4090_v54  ;;  %v3860_v55 = vsel %vm3853_vm14, %v3856_v40, %v3859_v35  ;;  %v20105_v9 = vld [vmem:[#allocation107_spill] sm:$0xff]  ;;  %v15908_v8 = vpop.permute.xlu1 %1122 }
 0x4b0   : > { %v4025_v34 = vsel %vm4023_vm7, %v4024_v36, %v15849_v58  ;;  %v4078_v3 = vor.u32 8388608, %v4077_v39  ;;  %v4094_v59 = vshrl.u32 %v19733_v61, %v15072_v2  ;;  %v3861_v25 = vsel %vm3850_vm3, nan, %v3860_v55  ;;  %v20104_v39 = vld [vmem:[#allocation73_spill] sm:$0xff] }
 0x4b1   : > { %v4026_v44 = vadd.s32 %v4025_v34, %v4021_v48  ;;  %vm4102_vm12 = vcmp.lt.s32.totalorder %v20102_v16, 1  ;;  %vm4104_vm13 = vcmp.lt.s32.totalorder %v20102_v16, 3  ;;  %9868 = vmatmul.mubr.msk.f32.gmra.mrb[20].mxu0 %vm6619_vm1, %v3861_v25  ;;  %v15890_v62 = vadd.f32 %v1509_v26, %v15757_v0  ;;  %v20106_v26 = vld [vmem:[#allocation101_spill] sm:$0xff] }
 0x4b2   : > { %v4095_v13 = vor.u32 %v4094_v59, %v4093_v17  ;;  %v4110_v58 = vsel %vm4102_vm12, %v4089_v52, %v4092_v51  ;;  %v4116_v30 = vsel %vm4104_vm13, %v20105_v9, %v20104_v39  ;;  %v9301_v47 = vadd.s32 4294967169, %v4906_v31 }
 0x4b3   : > { %20103 = vst [vmem:[#allocation114_spill] sm:$0xff] %v15890_v62  ;;  %v4027_v48 = vadd.s32 536870912, %v4026_v44  ;;  %v4086_v24 = vshrl.u32 %v19730_v18, %v15072_v2  ;;  %vm4103_vm9 = vcmp.lt.s32.totalorder %v20102_v16, 2  ;;  %v4118_v22 = vshll.u32 %v4078_v3, 8 }
 0x4b4   : > { %v4107_v0 = vsel %vm4105_vm8, %v4095_v13, 2102212464  ;;  %v4112_v43 = vsel %vm4104_vm13, %v4095_v13, %v20106_v26  ;;  %v4114_v57 = vsel %vm4102_vm12, %v4092_v51, %v4095_v13  ;;  %v3956_v38 = vand.u32 3, %v3955_v6 }
 0x4b5   : > { %v15910_v31 = vshrl.u32 %v4027_v48, 30  ;;  %v4113_v2 = vsel %vm4103_vm9, %v4110_v58, %v4112_v43  ;;  %v4117_v54 = vsel %vm4103_vm9, %v4114_v57, %v4116_v30  ;;  %v4106_v35 = vsel %vm4102_vm12, %v4086_v24, %v4089_v52 }
 0x4b6   : > { %v4108_v36 = vsel %vm4104_vm13, %v4092_v51, %v4107_v0  ;;  %v15920_v17 = vmul.u32.u64.low %v4118_v22, %v4117_v54  ;;  %v15921_v40 = vmul.u32.u64.high %v4118_v22, %v4117_v54, %v15920_v17  ;;  %v15925_v6 = vshll.u32 %v19960_v60, %v15726_v15  ;;  %v815_v0 = vpop.permute.xlu1 %814 }
 0x4b7   : > { %v4029_v55 = vshll.u32 %v15910_v31, 30  ;;  %v15928_v34 = vmul.u32.u64.low %v4118_v22, %v4113_v2  ;;  %v15929_v3 = vmul.u32.u64.high %v4118_v22, %v4113_v2, %v15928_v34  ;;  %v15934_v52 = vor.u32 %v15773_v7, %v15763_v45 }
 0x4b8   : > { %v10763_v59 = vpop.eup %10762  ;;  %v15938_v51 = vshrl.u32 %v19968_v4, %v15741_v10  ;;  %v15941_v25 = vshrl.u32 %v15755_v42, 5  ;;  %v15944_v13 = vsub.s32 32, %v15778_v50  ;;  %v4801_v9 = vand.u32 2139095040, %v15890_v62 }
 0x4b9   : > { %20107 = vst [vmem:[#allocation110_spill] sm:$0xff] %v15934_v52  ;;  %v10765_v58 = vpop.eup %10764  ;;  %v3962_v39 = vxor.u32 2147483648, %v10763_v59  ;;  %v15947_v30 = vsub.s32 %v4026_v44, %v4029_v55  ;;  %v4109_v45 = vsel %vm4103_vm9, %v4106_v35, %v4108_v36  ;;  %vm3961_vm8 = vcmp.eq.s32.totalorder %v3956_v38, 2  ;;  %v1127_v55 = vpop.permute.xlu0 %1126 }
 0x4ba   : > { %v3959_v7 = vxor.u32 2147483648, %v10765_v58  ;;  %v4912_v48 = vadd.s32 1, %v9301_v47  ;;  %vm4127_vm2 = vc.u32 %v15921_v40, %v15928_v34  ;;  %vm3958_vm15 = vcmp.eq.s32.totalorder %v3956_v38, 0 }
 0x4bb   : > { %v3963_v42 = vsel %vm3961_vm8, %v3962_v39, %v10765_v58  ;;  %v4032_v24 = vsub.s32 0, %v15947_v30  ;;  %v4128_v26 = vadd.s32 1, %v15929_v3  ;;  %vm3954_vm3 = vweird.f32 %v20076_v41 }
 0x4bc   : > { %vm3957_vm14 = vcmp.lt.s32.totalorder %v3956_v38, 2  ;;  %v3960_v44 = vsel %vm3958_vm15, %v10763_v59, %v3959_v7  ;;  %v4125_v43 = vmul.u32 %v4118_v22, %v4109_v45  ;;  %v4802_v57 = vshrl.u32 %v4801_v9, 23 }
 0x4bd   : > { %v3964_v16 = vsel %vm3957_vm14, %v3960_v44, %v3963_v42  ;;  %v9266_v2 = vmin.u32 %v4032_v24, %v15947_v30  ;;  %v4129_v47 = vsel %vm4127_vm2, %v4128_v26, %v15929_v3  ;;  %vm4913_vm6 = vcmp.gt.s32.totalorder %v4912_v48, 0 }
 0x4be   : > { %v3965_v54 = vsel %vm3954_vm3, nan, %v3964_v16  ;;  %v920_v35 = vmul.f32 %v15446_v21, %v815_v0  ;;  %v4130_v36 = vadd.s32 %v4129_v47, %v4125_v43  ;;  %v20108_v17 = vor.u32 %v15721_v23, %v15717_v53 }
 0x4bf   : > { %vm4729_vm4 = vcmp.lt.s32.totalorder %v15759_v11, 4  ;;  %v4617_v22 = vshrl.u32 %v19960_v60, %v15944_v13  ;;  %9870 = vmatprep.mubr.msk.f32.mxu0 %vm6619_vm1, %v3965_v54  ;;  %v4034_v38 = vclz %v9266_v2  ;;  %vm3968_vm7 = vcmp.lt.s32.totalorder %v20094_v37, 0  ;;  %v16006_v54 = vpop.permute.xlu1 %819 }
 0x4c0   : > { %v15964_v41 = vsel %vm4417_vm10, %v20108_v17, 1326507024  ;;  %v4725_v3 = vor.u32 %v15938_v51, %v15925_v6  ;;  %v4616_v53 = vshll.u32 %v19733_v61, %v15778_v50  ;;  %vm4625_vm12 = vcmp.lt.s32.totalorder %v15941_v25, 4 }
 0x4c1   : > { %v4131_v23 = vadd.s32 536870912, %v4130_v36  ;;  %v15979_v59 = vsel %vm4729_vm4, %v15934_v52, 920167782  ;;  %v15983_v58 = vshll.u32 %v19960_v60, %v15778_v50  ;;  %v4914_v39 = vsel %vm4913_vm6, %v4912_v48, 0 }
 0x4c2   : > { %v9267_v9 = vadd.s32 4294967294, %v4034_v38  ;;  %v9297_v45 = vadd.s32 4294967169, %v4802_v57  ;;  %v974_v6 = vadd.f32 %v15481_v46, %v920_v35  ;;  %v1219_v7 = vmul.f32 %v15484_v19, %v1127_v55 }
 0x4c3   : > { %v15987_v51 = vshrl.u32 %v4131_v23, 30  ;;  %v15990_v42 = vor.u32 %v4617_v22, %v4616_v53  ;;  %v15994_v24 = vshrl.u32 %v19968_v4, %v15944_v13  ;;  %v919_v0 = vmul.f32 %v15446_v21, %v15797_v12 }
 0x4c4   : > { %vm9268_vm13 = vcmp.lt.s32.totalorder %v9267_v9, 0  ;;  %v15998_v26 = vand.u32 31, %v4914_v39  ;;  %v1218_v48 = vmul.f32 %v15484_v19, %v15908_v8  ;;  %v4022_v16 = vadd.s32 %v15848_v27, %v15846_v1 }
 0x4c5   : > { %v4037_v44 = vsel %vm9268_vm13, 0, %v9267_v9  ;;  %v4133_v43 = vshll.u32 %v15987_v51, 30  ;;  %v4052_v47 = vsub.s32 4, %v15910_v31  ;;  %v16010_v21 = vsel %vm4729_vm4, %v4725_v3, 1326507024 }
 0x4c6   : > { %20109 = vst [vmem:[#allocation113_spill] sm:$0xff] %v15998_v26  ;;  %v4038_v57 = vsub.s32 32, %v4037_v44  ;;  %v4042_v2 = vsub.s32 4294967266, %v4037_v44  ;;  %20110 = vst [vmem:[#allocation84_spill] sm:$0xff] %v16010_v21  ;;  %v4808_v12 = vadd.s32 1, %v9297_v45  ;;  %v1267_v19 = vadd.f32 %v1219_v7, %v974_v6  ;;  %v20115_v6 = vld [vmem:[#allocation67_spill] sm:$0xff] }
 0x4c7   : > { %v16012_v35 = vsub.s32 %v4130_v36, %v4133_v43  ;;  %v973_v8 = vadd.f32 %v15481_v46, %v919_v0  ;;  %v4039_v17 = vshll.u32 %v15947_v30, %v4037_v44  ;;  %v16021_v38 = vsel %vm4625_vm12, %v15990_v42, 920167782  ;;  %v1416_v43 = vpop.permute.xlu1 %1415 }
 0x4c8   : > { %v4040_v22 = vshrl.u32 %v4022_v16, %v4038_v57  ;;  %v4043_v1 = vadd.s32 127, %v4042_v2  ;;  %v16024_v55 = vsub.s32 32, %v15998_v26  ;;  %v4053_v30 = vsel %vm3968_vm7, %v4052_v47, %v15910_v31 }
 0x4c9   : > { %v4136_v36 = vsub.s32 0, %v16012_v35  ;;  %v1266_v3 = vadd.f32 %v1218_v48, %v973_v8  ;;  %vm4809_vm9 = vcmp.gt.s32.totalorder %v4808_v12, 0  ;;  %v20112_v23 = vand.u32 2147483647, %v20094_v37 }
 0x4ca   : > { %20111 = vst [vmem:[#allocation106_spill] sm:$0xff] %v16024_v55  ;;  %v4041_v53 = vor.u32 %v4040_v22, %v4039_v17  ;;  %v4044_v46 = vshll.u32 %v4043_v1, 23  ;;  %v16038_v7 = vadd.f32 %v20115_v6, %v1267_v19  ;;  %v16040_v0 = vshrl.u32 %v4914_v39, 5  ;;  %v20118_v39 = vld [vmem:[#allocation105_spill] sm:$0xff] }
 0x4cb   : > { %vm16032_vm8 = vcmp.le.f32.partialorder %v20112_v23, 0.7853982  ;;  %v9270_v45 = vmin.u32 %v4136_v36, %v16012_v35  ;;  %v16044_v48 = vshll.u32 %v19733_v61, %v15998_v26  ;;  %v16048_v31 = vshll.u32 %v19960_v60, %v15998_v26 }
 0x4cc   : > { %20116 = vst [vmem:[#allocation121_spill] sm:$0xff] %v16038_v7  ;;  %20117 = vst [vmem:[#allocation47_spill] sm:$0xff] %v16040_v0  ;;  %v4045_v44 = vor.u32 4788187, %v4044_v46  ;;  %v16052_v16 = vshrl.u32 %v19960_v60, %v16024_v55  ;;  %v4055_v57 = vsel %vm16032_vm8, 0, %v4053_v30  ;;  %v16059_v19 = vshrl.u32 %v19968_v4, %v16024_v55 }
 0x4cd   : > { %v4138_v2 = vclz %v9270_v45  ;;  %v19577_v47 = vand.u32 2147483647, %v20118_v39  ;;  %v16061_v8 = vsel %vm4809_vm9, %v4808_v12, 0  ;;  %v4048_v22 = vcvt.s32.f32 %v4041_v53  ;;  %v20119_v53 = vld [vmem:[#allocation76_spill] sm:$0xff] }
 0x4ce   : > { %v4046_v17 = vand.u32 2147483647, %v4045_v44  ;;  %v4126_v1 = vadd.s32 %v15928_v34, %v15921_v40  ;;  %v5113_v46 = vand.u32 2139095040, %v16038_v7  ;;  %v1511_v23 = vmul.f32 %v15834_v5, %v1416_v43 }
 0x4cf   : > { %v9271_v36 = vadd.s32 4294967294, %v4138_v2  ;;  %v4059_v45 = vadd.s32 3, %v4055_v57  ;;  %v4192_v6 = vshrl.u32 %v19731_v29, %v15431_v56  ;;  %v4195_v27 = vshrl.u32 %v19820_v63, %v15431_v56 }
 0x4d0   : > { %v4049_v30 = vmul.f32 %v4048_v22, %v4046_v17  ;;  %v4181_v12 = vand.u32 8388607, %v19577_v47  ;;  %v4191_v40 = vshll.u32 %v19730_v18, %v20119_v53  ;;  %v4198_v34 = vshrl.u32 %v19733_v61, %v15431_v56 }
 0x4d1   : > { %vm9272_vm2 = vcmp.lt.s32.totalorder %v9271_v36, 0  ;;  %v4194_v57 = vshll.u32 %v19731_v29, %v20119_v53  ;;  %v4197_v2 = vshll.u32 %v19820_v63, %v20119_v53  ;;  %vm4072_vm15 = vcmp.lt.s32.totalorder %v20101_v20, 0 }
 0x4d2   : > { %v4050_v44 = vxor.u32 2147483648, %v4049_v30  ;;  %v4141_v43 = vsel %vm9272_vm2, 0, %v9271_v36  ;;  %v5114_v28 = vshrl.u32 %v5113_v46, 23  ;;  %v16082_v47 = vadd.f32 %v1511_v23, %v1266_v3 }
 0x4d3   : > { %v4142_v17 = vsub.s32 32, %v4141_v43  ;;  %v4146_v22 = vsub.s32 4294967266, %v4141_v43  ;;  %v4193_v26 = vor.u32 %v4192_v6, %v4191_v40  ;;  %v4196_v55 = vor.u32 %v4195_v27, %v4194_v57 }
 0x4d4   : > { %20120 = vst [vmem:[#allocation117_spill] sm:$0xff] %v16082_v47  ;;  %v4051_v7 = vsel %vm3968_vm7, %v4050_v44, %v4049_v30  ;;  %v4199_v49 = vor.u32 %v4198_v34, %v4197_v2  ;;  %v4143_v62 = vshll.u32 %v16012_v35, %v4141_v43  ;;  %v16090_v21 = vand.u32 3, %v4059_v45  ;;  %v20125_v43 = vld [vmem:[#allocation108_spill] sm:$0xff] }
 0x4d5   : > { %v4054_v36 = vsel %vm16032_vm8, %v20094_v37, %v4051_v7  ;;  %v4144_v53 = vshrl.u32 %v4126_v1, %v4142_v17  ;;  %v4147_v52 = vadd.s32 127, %v4146_v22  ;;  %v20121_v3 = vand.u32 2147483647, %v20101_v20 }
 0x4d6   : > { %10766 = vcosq.f32 %v4054_v36  ;;  %v4182_v23 = vor.u32 8388608, %v4181_v12  ;;  %v4190_v27 = vshrl.u32 %v19730_v18, %v15431_v56  ;;  %vm4206_vm14 = vcmp.lt.s32.totalorder %v15437_v32, 1 }
 0x4d7   : > { %vm16094_vm3 = vcmp.le.f32.partialorder %v20121_v3, 0.7853982  ;;  %10768 = vsinq.f32 %v4054_v36  ;;  %v4145_v9 = vor.u32 %v4144_v53, %v4143_v62  ;;  %v4148_v7 = vshll.u32 %v4147_v52, 23  ;;  %v20126_v3 = vld [vmem:[#allocation90_spill] sm:$0xff] }
 0x4d8   : > { %v4156_v35 = vsub.s32 4, %v15987_v51  ;;  %v9309_v1 = vadd.s32 4294967169, %v5114_v28  ;;  %v4211_v30 = vsel %vm4209_vm0, %v4199_v49, 2102212464  ;;  %v4214_v45 = vsel %vm4206_vm14, %v4193_v26, %v4196_v55  ;;  %v20124_v28 = vld [vmem:[#allocation92_spill] sm:$0xff] }
 0x4d9   : > { %v4149_v6 = vor.u32 4788187, %v4148_v7  ;;  %vm4207_vm6 = vcmp.lt.s32.totalorder %v15437_v32, 2  ;;  %vm4208_vm7 = vcmp.lt.s32.totalorder %v15437_v32, 3  ;;  %v4210_v12 = vsel %vm4206_vm14, %v4190_v27, %v4193_v26 }
 0x4da   : > { %v4152_v40 = vcvt.s32.f32 %v4145_v9  ;;  %v4212_v56 = vsel %vm4208_vm7, %v4196_v55, %v4211_v30  ;;  %v4216_v62 = vsel %vm4208_vm7, %v4199_v49, %v15683_v14  ;;  %v4218_v52 = vsel %vm4206_vm14, %v4196_v55, %v4199_v49  ;;  %v20127_v30 = vld [vmem:[#allocation46_spill] sm:$0xff] }
 0x4db   : > { %v4150_v34 = vand.u32 2147483647, %v4149_v6  ;;  %v4217_v44 = vsel %vm4207_vm6, %v4214_v45, %v4216_v62  ;;  %v4220_v57 = vsel %vm4208_vm7, %v20125_v43, %v20124_v28  ;;  %v4222_v2 = vshll.u32 %v4182_v23, 8  ;;  %v20128_v6 = vld [vmem:[#allocation68_spill] sm:$0xff] }
 0x4dc   : > { %vm4061_vm0 = vcmp.lt.s32.totalorder %v16090_v21, 2  ;;  %vm4062_vm13 = vcmp.eq.s32.totalorder %v16090_v21, 0  ;;  %v4157_v26 = vsel %vm4072_vm15, %v4156_v35, %v15987_v51  ;;  %v4221_v14 = vsel %vm4207_vm6, %v4218_v52, %v4220_v57 }
 0x4dd   : > { %vm4058_vm9 = vweird.f32 %v20094_v37  ;;  %v4153_v49 = vmul.f32 %v4152_v40, %v4150_v34  ;;  %v4213_v55 = vsel %vm4207_vm6, %v4210_v12, %v4212_v56  ;;  %vm4065_vm8 = vcmp.eq.s32.totalorder %v16090_v21, 2 }
 0x4de   : > { %v16121_v17 = vmul.u32.u64.low %v4222_v2, %v4221_v14  ;;  %v16122_v22 = vmul.u32.u64.high %v4222_v2, %v4221_v14, %v16121_v17  ;;  %v16125_v36 = vmul.u32.u64.low %v4222_v2, %v4217_v44  ;;  %v16126_v53 = vmul.u32.u64.high %v4222_v2, %v4217_v44, %v16125_v36 }
 0x4df   : > { %v19589_v51 = vand.u32 2147483647, %v20126_v3  ;;  %v4154_v23 = vxor.u32 2147483648, %v4153_v49  ;;  %v4159_v27 = vsel %vm16094_vm3, 0, %v4157_v26  ;;  %v16132_v9 = vadd.s32 1, %v9309_v1 }
 0x4e0   : > { %v5009_v32 = vand.u32 2139095040, %v16082_v47  ;;  %v10767_v7 = vpop.eup %10766  ;;  %v4229_v35 = vmul.u32 %v4222_v2, %v4213_v55  ;;  %v4295_v45 = vshll.u32 %v19730_v18, %v20127_v30  ;;  %v4296_v12 = vshrl.u32 %v19731_v29, %v20128_v6 }
 0x4e1   : > { %v4299_v40 = vshrl.u32 %v19820_v63, %v20128_v6  ;;  %v10769_v56 = vpop.eup %10768  ;;  %v4066_v62 = vxor.u32 2147483648, %v10767_v7  ;;  %v4155_v52 = vsel %vm4072_vm15, %v4154_v23, %v4153_v49  ;;  %vm4231_vm2 = vc.u32 %v16122_v22, %v16125_v36 }
 0x4e2   : > { %v4298_v1 = vshll.u32 %v19731_v29, %v20127_v30  ;;  %v4063_v34 = vxor.u32 2147483648, %v10769_v56  ;;  %v4158_v44 = vsel %vm16094_vm3, %v20101_v20, %v4155_v52  ;;  %v4232_v28 = vadd.s32 1, %v16126_v53 }
 0x4e3   : > { %v4285_v43 = vand.u32 8388607, %v19589_v51  ;;  %v4067_v57 = vsel %vm4065_vm8, %v4066_v62, %v10769_v56  ;;  %10770 = vcosq.f32 %v4158_v44  ;;  %v4297_v2 = vor.u32 %v4296_v12, %v4295_v45 }
 0x4e4   : > { %v4300_v26 = vor.u32 %v4299_v40, %v4298_v1  ;;  %v4064_v14 = vsel %vm4062_vm13, %v10767_v7, %v4063_v34  ;;  %10772 = vsinq.f32 %v4158_v44  ;;  %v4163_v49 = vadd.s32 3, %v4159_v27  ;;  %v20129_v40 = vld [vmem:[#allocation81_spill] sm:$0xff]  ;;  %v20130_v7 = vld [vmem:[#allocation111_spill] sm:$0xff]  ;;  %v16181_v1 = vpop.permute.xlu1 %1130 }
 0x4e5   : > { %v4233_v55 = vsel %vm4231_vm2, %v4232_v28, %v16126_v53  ;;  %v4068_v46 = vsel %vm4061_vm0, %v4064_v14, %v4067_v57  ;;  %v4301_v23 = vshll.u32 %v19820_v63, %v20127_v30  ;;  %v4302_v56 = vshrl.u32 %v19733_v61, %v20128_v6  ;;  %v20132_v28 = vld [vmem:[#allocation99_spill] sm:$0xff] }
 0x4e6   : > { %v4234_v17 = vadd.s32 %v4233_v55, %v4229_v35  ;;  %v4069_v45 = vsel %vm4058_vm9, nan, %v4068_v46  ;;  %v4286_v12 = vor.u32 8388608, %v4285_v43  ;;  %vm4310_vm15 = vcmp.lt.s32.totalorder %v20129_v40, 1  ;;  %v20131_v35 = vld [vmem:[#allocation43_spill] sm:$0xff] }
 0x4e7   : > { %vm4312_vm3 = vcmp.lt.s32.totalorder %v20129_v40, 3  ;;  %9871 = vmatmul.mubr.msk.f32.gmra.mrb[22].mxu0 %vm6619_vm1, %v4069_v45  ;;  %v4303_v21 = vor.u32 %v4302_v56, %v4301_v23  ;;  %v4318_v27 = vsel %vm4310_vm15, %v4297_v2, %v4300_v26  ;;  %v16176_v37 = vand.u32 31, %v16061_v8 }
 0x4e8   : > { %v4235_v53 = vadd.s32 536870912, %v4234_v17  ;;  %v4324_v30 = vsel %vm4312_vm3, %v20131_v35, %v20130_v7  ;;  %v5010_v62 = vshrl.u32 %v5009_v32, 23  ;;  %v4294_v52 = vshrl.u32 %v19730_v18, %v20128_v6 }
 0x4e9   : > { %vm4311_vm14 = vcmp.lt.s32.totalorder %v20129_v40, 2  ;;  %v4315_v44 = vsel %vm4313_vm5, %v4303_v21, 2102212464  ;;  %v4320_v43 = vsel %vm4312_vm3, %v4303_v21, %v20132_v28  ;;  %v4322_v57 = vsel %vm4310_vm15, %v4300_v26, %v4303_v21 }
 0x4ea   : > { %v16183_v34 = vshrl.u32 %v4235_v53, 30  ;;  %vm5121_vm6 = vcmp.gt.s32.totalorder %v16132_v9, 0  ;;  %v4321_v32 = vsel %vm4311_vm14, %v4318_v27, %v4320_v43  ;;  %v4325_v6 = vsel %vm4311_vm14, %v4322_v57, %v4324_v30 }
 0x4eb   : > { %v4326_v14 = vshll.u32 %v4286_v12, 8  ;;  %v4164_v55 = vand.u32 3, %v4163_v49  ;;  %v4314_v23 = vsel %vm4310_vm15, %v4294_v52, %v4297_v2  ;;  %v4316_v56 = vsel %vm4312_vm3, %v4300_v26, %v4315_v44 }
 0x4ec   : > { %v4237_v46 = vshll.u32 %v16183_v34, 30  ;;  %v16211_v12 = vor.u32 %v16052_v16, %v16044_v48  ;;  %v4933_v49 = vor.u32 %v16059_v19, %v16048_v31  ;;  %v16216_v2 = vsub.s32 32, %v16176_v37  ;;  %v825_v31 = vpop.permute.xlu1 %824 }
 0x4ed   : > { %v16202_v45 = vmul.u32.u64.low %v4326_v14, %v4325_v6  ;;  %v16203_v53 = vmul.u32.u64.high %v4326_v14, %v4325_v6, %v16202_v45  ;;  %v16205_v21 = vmul.u32.u64.low %v4326_v14, %v4321_v32  ;;  %v16206_v7 = vmul.u32.u64.high %v4326_v14, %v4321_v32, %v16205_v21  ;;  %v10771_v27 = vpop.eup %10770  ;;  %v16236_v32 = vld [vmem:[#allocation7] ss:$0 sm:$0xff] }
 0x4ee   : > { %20133 = vst [vmem:[#allocation115_spill] sm:$0xff] %v16211_v12  ;;  %v16218_v35 = vsub.s32 %v4234_v17, %v4237_v46  ;;  %v10773_v26 = vpop.eup %10772  ;;  %vm4162_vm5 = vweird.f32 %v20101_v20  ;;  %v4170_v30 = vxor.u32 2147483648, %v10771_v27  ;;  %v16224_v52 = vsel %vm5121_vm6, %v16132_v9, 0 }
 0x4ef   : > { %v9305_v44 = vadd.s32 4294967169, %v5010_v62  ;;  %v4167_v48 = vxor.u32 2147483648, %v10773_v26  ;;  %vm4169_vm7 = vcmp.eq.s32.totalorder %v4164_v55, 2  ;;  %v4317_v19 = vsel %vm4311_vm14, %v4314_v23, %v4316_v56 }
 0x4f0   : > { %v4240_v16 = vsub.s32 0, %v16218_v35  ;;  %vm4166_vm0 = vcmp.eq.s32.totalorder %v4164_v55, 0  ;;  %v4171_v17 = vsel %vm4169_vm7, %v4170_v30, %v10773_v26  ;;  %vm4335_vm13 = vc.u32 %v16203_v53, %v16205_v21 }
 0x4f1   : > { %v4336_v28 = vadd.s32 1, %v16206_v7  ;;  %vm4165_vm9 = vcmp.lt.s32.totalorder %v4164_v55, 2  ;;  %v4168_v43 = vsel %vm4166_vm0, %v10771_v27, %v4167_v48  ;;  %v16233_v9 = vand.u32 31, %v16224_v52  ;;  %v1135_v27 = vpop.permute.xlu0 %1134  ;;  %v16271_v48 = vld [vmem:[#allocation8] ss:$0 sm:$0xff] }
 0x4f2   : > { %v9274_v62 = vmin.u32 %v4240_v16, %v16218_v35  ;;  %v4172_v57 = vsel %vm4165_vm9, %v4168_v43, %v4171_v17  ;;  %v922_v40 = vmul.f32 %v16236_v32, %v825_v31  ;;  %v4333_v6 = vmul.u32 %v4326_v14, %v4317_v19  ;;  %v16274_v19 = vld [vmem:[#allocation7 + $0x1] ss:$0 sm:$0xff] }
 0x4f3   : > { %20134 = vst [vmem:[#allocation116_spill] sm:$0xff] %v16233_v9  ;;  %v4337_v46 = vsel %vm4335_vm13, %v4336_v28, %v16206_v7  ;;  %v16241_v23 = vshrl.u32 %v16061_v8, 5  ;;  %v4173_v55 = vsel %vm4162_vm5, nan, %v4172_v57  ;;  %v5016_v56 = vadd.s32 1, %v9305_v44 }
 0x4f4   : > { %v4242_v45 = vclz %v9274_v62  ;;  %v20135_v26 = vor.u32 %v15994_v24, %v15983_v58  ;;  %vm4937_vm8 = vcmp.lt.s32.totalorder %v16040_v0, 4  ;;  %v4825_v14 = vshrl.u32 %v19960_v60, %v16216_v2  ;;  %9873 = vmatprep.mubr.msk.f32.mxu0 %vm6619_vm1, %v4173_v55 }
 0x4f5   : > { %v4338_v8 = vadd.s32 %v4337_v46, %v4333_v6  ;;  %v16259_v20 = vsel %vm4937_vm8, %v16211_v12, 920167782  ;;  %v16263_v58 = vsel %vm4937_vm8, %v4933_v49, 1326507024  ;;  %v16266_v24 = vsub.s32 32, %v16233_v9 }
 0x4f6   : > { %v16250_v30 = vsel %vm4625_vm12, %v20135_v26, 1326507024  ;;  %20136 = vst [vmem:[#allocation124_spill] sm:$0xff] %v16259_v20  ;;  %20137 = vst [vmem:[#allocation127_spill] sm:$0xff] %v16263_v58  ;;  %v9275_v7 = vadd.s32 4294967294, %v4242_v45  ;;  %vm4176_vm2 = vcmp.lt.s32.totalorder %v20118_v39, 0  ;;  %v4824_v44 = vshll.u32 %v19733_v61, %v16176_v37 }
 0x4f7   : > { %20138 = vst [vmem:[#allocation122_spill] sm:$0xff] %v16266_v24  ;;  %v976_v16 = vadd.f32 %v16271_v48, %v922_v40  ;;  %v4339_v31 = vadd.s32 536870912, %v4338_v8  ;;  %v1221_v17 = vmul.f32 %v16274_v19, %v1135_v27  ;;  %v4827_v49 = vshll.u32 %v19960_v60, %v16176_v37 }
 0x4f8   : > { %v4828_v28 = vshrl.u32 %v19968_v4, %v16216_v2  ;;  %vm4833_vm15 = vcmp.lt.s32.totalorder %v16241_v23, 4  ;;  %vm5017_vm3 = vcmp.gt.s32.totalorder %v5016_v56, 0  ;;  %vm9276_vm14 = vcmp.lt.s32.totalorder %v9275_v7, 0 }
 0x4f9   : > { %v16282_v43 = vor.u32 %v4825_v14, %v4824_v44  ;;  %v921_v62 = vmul.f32 %v16236_v32, %v16006_v54  ;;  %v4245_v57 = vsel %vm9276_vm14, 0, %v9275_v7  ;;  %v16286_v40 = vshrl.u32 %v4339_v31, 30 }
 0x4fa   : > { %v5137_v6 = vshrl.u32 %v19960_v60, %v16266_v24  ;;  %v4230_v46 = vadd.s32 %v16125_v36, %v16122_v22  ;;  %v4246_v55 = vsub.s32 32, %v4245_v57  ;;  %v4250_v45 = vsub.s32 4294967266, %v4245_v57 }
 0x4fb   : > { %20139 = vst [vmem:[#allocation131_spill] sm:$0xff] %v16282_v43  ;;  %v5140_v27 = vshrl.u32 %v19968_v4, %v16266_v24  ;;  %v5018_v26 = vsel %vm5017_vm3, %v5016_v56, 0  ;;  %v4341_v14 = vshll.u32 %v16286_v40, 30  ;;  %v1269_v44 = vadd.f32 %v1221_v17, %v976_v16 }
 0x4fc   : > { %v4247_v54 = vshll.u32 %v16218_v35, %v4245_v57  ;;  %v4248_v7 = vshrl.u32 %v4230_v46, %v4246_v55  ;;  %v4251_v31 = vadd.s32 127, %v4250_v45  ;;  %v4260_v51 = vsub.s32 4, %v16183_v34  ;;  %v20142_v57 = vld [vmem:[#allocation69_spill] sm:$0xff] }
 0x4fd   : > { %v4829_v47 = vor.u32 %v4828_v28, %v4827_v49  ;;  %v5136_v20 = vshll.u32 %v19733_v61, %v16233_v9  ;;  %v1220_v22 = vmul.f32 %v16274_v19, %v16181_v1  ;;  %v16301_v36 = vsub.s32 %v4338_v8, %v4341_v14 }
 0x4fe   : > { %v5139_v56 = vshll.u32 %v19960_v60, %v16233_v9  ;;  %v16305_v24 = vand.u32 31, %v5018_v26  ;;  %v4249_v16 = vor.u32 %v4248_v7, %v4247_v54  ;;  %v4252_v35 = vshll.u32 %v4251_v31, 23  ;;  %v16345_v31 = vpop.permute.xlu1 %829 }
 0x4ff   : > { %v16308_v17 = vshrl.u32 %v16224_v52, 5  ;;  %v975_v49 = vadd.f32 %v16271_v48, %v921_v62  ;;  %v4344_v28 = vsub.s32 0, %v16301_v36  ;;  %v16313_v46 = vadd.f32 %v20142_v57, %v1269_v44 }
 0x500   : > { %20140 = vst [vmem:[#allocation109_spill] sm:$0xff] %v16305_v24  ;;  %v16315_v1 = vor.u32 %v5137_v6, %v5136_v20  ;;  %v5141_v8 = vor.u32 %v5140_v27, %v5139_v56  ;;  %v4253_v55 = vor.u32 4788187, %v4252_v35  ;;  %v4261_v45 = vsel %vm4176_vm2, %v4260_v51, %v16183_v34  ;;  %v20152_v35 = vld [vmem:[#allocation80_spill] sm:$0xff] }
 0x501   : > { %20141 = vst [vmem:[#allocation126_spill] sm:$0xff] %v16308_v17  ;;  %20143 = vst [vmem:[#allocation128_spill] sm:$0xff] %v16313_v46  ;;  %v16323_v52 = vsel %vm4833_vm15, %v16282_v43, 920167782  ;;  %v16327_v62 = vsel %vm4833_vm15, %v4829_v47, 1326507024  ;;  %v16329_v14 = vadd.f32 %v1220_v22, %v975_v49  ;;  %v9278_v20 = vmin.u32 %v4344_v28, %v16301_v36 }
 0x502   : > { %20144 = vst [vmem:[#allocation83_spill] sm:$0xff] %v16315_v1  ;;  %20145 = vst [vmem:[#allocation55_spill] sm:$0xff] %v16327_v62  ;;  %v16333_v6 = vsub.s32 32, %v16305_v24  ;;  %v20147_v27 = vand.u32 2147483647, %v20118_v39  ;;  %v4256_v44 = vcvt.s32.f32 %v4249_v16  ;;  %vm5145_vm5 = vcmp.lt.s32.totalorder %v16308_v17, 4 }
 0x503   : > { %v4254_v34 = vand.u32 2147483647, %v4253_v55  ;;  %v4346_v54 = vclz %v9278_v20  ;;  %v5321_v7 = vand.u32 2139095040, %v16313_v46  ;;  %v16350_v22 = vsel %vm5145_vm5, %v16315_v1, 920167782  ;;  %v20155_v49 = vld [vmem:[#allocation52_spill] sm:$0xff] }
 0x504   : > { %20146 = vst [vmem:[#allocation132_spill] sm:$0xff] %v16333_v6  ;;  %vm16337_vm6 = vcmp.le.f32.partialorder %v20147_v27, 0.7853982  ;;  %20150 = vst [vmem:[#allocation48_spill] sm:$0xff] %v16350_v22  ;;  %v16354_v56 = vsel %vm5145_vm5, %v5141_v8, 1326507024  ;;  %v16361_v57 = vshll.u32 %v19733_v61, %v16305_v24  ;;  %v16367_v27 = vshrl.u32 %v19960_v60, %v16333_v6 }
 0x505   : > { %v4263_v47 = vsel %vm16337_vm6, 0, %v4261_v45  ;;  %20151 = vst [vmem:[#allocation120_spill] sm:$0xff] %v16354_v56  ;;  %v4257_v16 = vmul.f32 %v4256_v44, %v4254_v34  ;;  %v16357_v28 = vshrl.u32 %v5018_v26, 5  ;;  %v9279_v55 = vadd.s32 4294967294, %v4346_v54  ;;  %v20154_v45 = vld [vmem:[#allocation91_spill] sm:$0xff] }
 0x506   : > { %v4400_v20 = vshrl.u32 %v19731_v29, %v20154_v45  ;;  %v4267_v8 = vadd.s32 3, %v4263_v47  ;;  %v4403_v34 = vshrl.u32 %v19820_v63, %v20154_v45  ;;  %v4334_v26 = vadd.s32 %v16205_v21, %v16203_v53 }
 0x507   : > { %20153 = vst [vmem:[#allocation118_spill] sm:$0xff] %v16357_v28  ;;  %v4258_v46 = vxor.u32 2147483648, %v4257_v16  ;;  %vm9280_vm7 = vcmp.lt.s32.totalorder %v9279_v55, 0  ;;  %v5322_v44 = vshrl.u32 %v5321_v7, 23  ;;  %v4399_v54 = vshll.u32 %v19730_v18, %v20155_v49  ;;  %v1424_v7 = vpop.permute.xlu1 %1423 }
 0x508   : > { %v4349_v56 = vsel %vm9280_vm7, 0, %v9279_v55  ;;  %v20156_v22 = vand.u32 2147483647, %v20152_v35  ;;  %v4402_v47 = vshll.u32 %v19731_v29, %v20155_v49  ;;  %v4268_v51 = vand.u32 3, %v4267_v8 }
 0x509   : > { %v4259_v1 = vsel %vm4176_vm2, %v4258_v46, %v4257_v16  ;;  %v4350_v53 = vsub.s32 32, %v4349_v56  ;;  %v4354_v21 = vsub.s32 4294967266, %v4349_v56  ;;  %v4401_v12 = vor.u32 %v4400_v20, %v4399_v54 }
 0x50a   : > { %v4389_v17 = vand.u32 8388607, %v20156_v22  ;;  %v4262_v9 = vsel %vm16337_vm6, %v20118_v39, %v4259_v1  ;;  %v4404_v58 = vor.u32 %v4403_v34, %v4402_v47  ;;  %v4405_v46 = vshll.u32 %v19820_v63, %v20155_v49 }
 0x50b   : > { %10774 = vcosq.f32 %v4262_v9  ;;  %v4406_v16 = vshrl.u32 %v19733_v61, %v20154_v45  ;;  %v4351_v22 = vshll.u32 %v16301_v36, %v4349_v56  ;;  %v4352_v55 = vshrl.u32 %v4334_v26, %v4350_v53 }
 0x50c   : > { %10776 = vsinq.f32 %v4262_v9  ;;  %v4355_v0 = vadd.s32 127, %v4354_v21  ;;  %v16391_v1 = vshrl.u32 %v19968_v4, %v16333_v6  ;;  %v1513_v20 = vmul.f32 %v15834_v5, %v1424_v7  ;;  %v20157_v5 = vld [vmem:[#allocation97_spill] sm:$0xff] }
 0x50d   : > { %v4407_v54 = vor.u32 %v4406_v16, %v4405_v46  ;;  %v4353_v34 = vor.u32 %v4352_v55, %v4351_v22  ;;  %v4390_v43 = vor.u32 8388608, %v4389_v17  ;;  %vm4414_vm0 = vcmp.lt.s32.totalorder %v15702_v33, 1 }
 0x50e   : > { %v4356_v47 = vshll.u32 %v4355_v0, 23  ;;  %v9317_v49 = vadd.s32 4294967169, %v5322_v44  ;;  %v4398_v9 = vshrl.u32 %v19730_v18, %v20154_v45  ;;  %vm4416_vm13 = vcmp.lt.s32.totalorder %v15702_v33, 3  ;;  %v20158_v44 = vld [vmem:[#allocation102_spill] sm:$0xff] }
 0x50f   : > { %v4422_v36 = vsel %vm4414_vm0, %v4401_v12, %v4404_v58  ;;  %v4364_v8 = vsub.s32 4, %v16286_v40  ;;  %vm4415_vm9 = vcmp.lt.s32.totalorder %v15702_v33, 2  ;;  %v4424_v0 = vsel %vm4416_vm13, %v4407_v54, %v20157_v5 }
 0x510   : > { %v4357_v56 = vor.u32 4788187, %v4356_v47  ;;  %v4360_v17 = vcvt.s32.f32 %v4353_v34  ;;  %v4419_v26 = vsel %vm4417_vm10, %v4407_v54, 2102212464  ;;  %v4426_v45 = vsel %vm4414_vm0, %v4404_v58, %v4407_v54 }
 0x511   : > { %v4428_v53 = vsel %vm4416_vm13, %v20158_v44, %v15964_v41  ;;  %vm4266_vm2 = vweird.f32 %v20118_v39  ;;  %v4425_v7 = vsel %vm4415_vm9, %v4422_v36, %v4424_v0  ;;  %v4430_v16 = vshll.u32 %v4390_v43, 8 }
 0x512   : > { %v4358_v21 = vand.u32 2147483647, %v4357_v56  ;;  %v4429_v46 = vsel %vm4415_vm9, %v4426_v45, %v4428_v53  ;;  %v20159_v22 = vand.u32 2147483647, %v20126_v3  ;;  %vm4280_vm3 = vcmp.lt.s32.totalorder %v20126_v3, 0 }
 0x513   : > { %v16426_v41 = vadd.f32 %v1513_v20, %v16329_v14  ;;  %v4418_v54 = vsel %vm4414_vm0, %v4398_v9, %v4401_v12  ;;  %v4420_v47 = vsel %vm4416_vm13, %v4404_v58, %v4419_v26  ;;  %vm4269_vm14 = vcmp.lt.s32.totalorder %v4268_v51, 2 }
 0x514   : > { %vm16420_vm10 = vcmp.le.f32.partialorder %v20159_v22, 0.7853982  ;;  %v4361_v34 = vmul.f32 %v4360_v17, %v4358_v21  ;;  %v16432_v36 = vmul.u32.u64.low %v4430_v16, %v4429_v46  ;;  %v16433_v43 = vmul.u32.u64.high %v4430_v16, %v4429_v46, %v16432_v36 }
 0x515   : > { %20162 = vst [vmem:[#allocation123_spill] sm:$0xff] %v16426_v41  ;;  %v10775_v56 = vpop.eup %10774  ;;  %v4365_v5 = vsel %vm4280_vm3, %v4364_v8, %v16286_v40  ;;  %v16438_v0 = vmul.u32.u64.low %v4430_v16, %v4425_v7  ;;  %v16439_v45 = vmul.u32.u64.high %v4430_v16, %v4425_v7, %v16438_v0  ;;  %vm4270_vm6 = vcmp.eq.s32.totalorder %v4268_v51, 0  ;;  %v20163_v7 = vld [vmem:[#allocation74_spill] sm:$0xff] }
 0x516   : > { %v10777_v14 = vpop.eup %10776  ;;  %v4274_v12 = vxor.u32 2147483648, %v10775_v56  ;;  %v4362_v20 = vxor.u32 2147483648, %v4361_v34  ;;  %v5328_v9 = vadd.s32 1, %v9317_v49  ;;  %vm4273_vm7 = vcmp.eq.s32.totalorder %v4268_v51, 2 }
 0x517   : > { %v4271_v17 = vxor.u32 2147483648, %v10777_v14  ;;  %v5217_v58 = vand.u32 2139095040, %v16426_v41  ;;  %v4421_v26 = vsel %vm4415_vm9, %v4418_v54, %v4420_v47  ;;  %v4367_v8 = vsel %vm16420_vm10, 0, %v4365_v5  ;;  %v20164_v47 = vld [vmem:[#allocation112_spill] sm:$0xff]  ;;  %v20165_v5 = vld [vmem:[#allocation95_spill] sm:$0xff] }
 0x518   : > { %v4275_v44 = vsel %vm4273_vm7, %v4274_v12, %v10777_v14  ;;  %v4363_v40 = vsel %vm4280_vm3, %v4362_v20, %v4361_v34  ;;  %vm4439_vm0 = vc.u32 %v16433_v43, %v16438_v0  ;;  %v4440_v21 = vadd.s32 1, %v16439_v45 }
 0x519   : > { %v4272_v53 = vsel %vm4270_vm6, %v10775_v56, %v4271_v17  ;;  %v4366_v49 = vsel %vm16420_vm10, %v20126_v3, %v4363_v40  ;;  %v19605_v33 = vand.u32 2147483647, %v20163_v7  ;;  %vm5329_vm13 = vcmp.gt.s32.totalorder %v5328_v9, 0 }
 0x51a   : > { %v4276_v46 = vsel %vm4269_vm14, %v4272_v53, %v4275_v44  ;;  %10778 = vcosq.f32 %v4366_v49  ;;  %v4437_v22 = vmul.u32 %v4430_v16, %v4421_v26  ;;  %v4441_v34 = vsel %vm4439_vm0, %v4440_v21, %v16439_v45  ;;  %v1139_v53 = vpop.permute.xlu1 %1138 }
 0x51b   : > { %v4277_v54 = vsel %vm4266_vm2, nan, %v4276_v46  ;;  %10780 = vsinq.f32 %v4366_v49  ;;  %v4504_v36 = vshrl.u32 %v19731_v29, %v20164_v47  ;;  %v4371_v55 = vadd.s32 3, %v4367_v8 }
 0x51c   : > { %9874 = vmatmul.mubr.msk.f32.gmra.mrb[24].mxu0 %vm6619_vm1, %v4277_v54  ;;  %v4442_v56 = vadd.s32 %v4441_v34, %v4437_v22  ;;  %v4506_v51 = vshll.u32 %v19731_v29, %v20165_v5  ;;  %v4507_v14 = vshrl.u32 %v19820_v63, %v20164_v47  ;;  %v4493_v39 = vand.u32 8388607, %v19605_v33  ;;  %v20167_v54 = vld [vmem:[#allocation82_spill] sm:$0xff] }
 0x51d   : > { %v4503_v16 = vshll.u32 %v19730_v18, %v20165_v5  ;;  %v4509_v45 = vshll.u32 %v19820_v63, %v20165_v5  ;;  %v4510_v12 = vshrl.u32 %v19733_v61, %v20164_v47  ;;  %v16477_v20 = vor.u32 %v16367_v27, %v16361_v57  ;;  %v20168_v5 = vld [vmem:[#allocation77_spill] sm:$0xff] }
 0x51e   : > { %v5035_v17 = vshll.u32 %v19960_v60, %v16305_v24  ;;  %v4443_v26 = vadd.s32 536870912, %v4442_v56  ;;  %v4508_v44 = vor.u32 %v4507_v14, %v4506_v51  ;;  %v16482_v40 = vsel %vm5329_vm13, %v5328_v9, 0  ;;  %v20169_v9 = vld [vmem:[#allocation85_spill] sm:$0xff] }
 0x51f   : > { %20166 = vst [vmem:[#allocation130_spill] sm:$0xff] %v16477_v20  ;;  %v5218_v8 = vshrl.u32 %v5217_v58, 23  ;;  %v4505_v49 = vor.u32 %v4504_v36, %v4503_v16  ;;  %v4511_v21 = vor.u32 %v4510_v12, %v4509_v45  ;;  %v4372_v46 = vand.u32 3, %v4371_v55 }
 0x520   : > { %v16484_v22 = vshrl.u32 %v4443_v26, 30  ;;  %vm4518_vm9 = vcmp.lt.s32.totalorder %v20167_v54, 1  ;;  %vm4520_vm2 = vcmp.lt.s32.totalorder %v20167_v54, 3  ;;  %v5037_v57 = vor.u32 %v16391_v1, %v5035_v17 }
 0x521   : > { %v4494_v27 = vor.u32 8388608, %v4493_v39  ;;  %v4530_v34 = vsel %vm4518_vm9, %v4508_v44, %v4511_v21  ;;  %v4532_v58 = vsel %vm4520_vm2, %v20169_v9, %v20168_v5  ;;  %vm5041_vm10 = vcmp.lt.s32.totalorder %v16357_v28, 4  ;;  %v20171_v39 = vld [vmem:[#allocation88_spill] sm:$0xff]  ;;  %v1143_v5 = vpop.permute.xlu0 %1142 }
 0x522   : > { %vm4370_vm3 = vweird.f32 %v20126_v3  ;;  %v923_v36 = vmul.f32 %v16236_v32, %v16345_v31  ;;  %v1222_v55 = vmul.f32 %v16274_v19, %v1139_v53  ;;  %v4445_v1 = vshll.u32 %v16484_v22, 30 }
 0x523   : > { %v16502_v51 = vand.u32 31, %v16482_v40  ;;  %vm4519_vm14 = vcmp.lt.s32.totalorder %v20167_v54, 2  ;;  %v4526_v14 = vsel %vm4518_vm9, %v4505_v49, %v4508_v44  ;;  %v4528_v16 = vsel %vm4520_vm2, %v4511_v21, %v20171_v39 }
 0x524   : > { %v10779_v45 = vpop.eup %10778  ;;  %vm4373_vm6 = vcmp.lt.s32.totalorder %v4372_v46, 2  ;;  %v9313_v12 = vadd.s32 4294967169, %v5218_v8  ;;  %v16510_v31 = vsub.s32 %v4442_v56, %v4445_v1  ;;  %v4533_v17 = vsel %vm4519_vm14, %v4530_v34, %v4532_v58 }
 0x525   : > { %20170 = vst [vmem:[#allocation125_spill] sm:$0xff] %v16502_v51  ;;  %v10781_v26 = vpop.eup %10780  ;;  %vm4377_vm7 = vcmp.eq.s32.totalorder %v4372_v46, 2  ;;  %v4378_v53 = vxor.u32 2147483648, %v10779_v45  ;;  %v4523_v9 = vsel %vm4521_vm11, %v4511_v21, 2102212464  ;;  %v4534_v33 = vshll.u32 %v4494_v27, 8  ;;  %v1151_v3 = vpop.permute.xlu0 %1150 }
 0x526   : > { %v4375_v41 = vxor.u32 2147483648, %v10781_v26  ;;  %v4448_v24 = vsub.s32 0, %v16510_v31  ;;  %v4502_v39 = vshrl.u32 %v19730_v18, %v20164_v47  ;;  %v4529_v56 = vsel %vm4519_vm14, %v4526_v14, %v4528_v16 }
 0x527   : > { %vm4374_vm0 = vcmp.eq.s32.totalorder %v4372_v46, 0  ;;  %v4379_v8 = vsel %vm4377_vm7, %v4378_v53, %v10781_v26  ;;  %v16521_v34 = vmul.u32.u64.low %v4534_v33, %v4533_v17  ;;  %v16522_v58 = vmul.u32.u64.high %v4534_v33, %v4533_v17, %v16521_v34 }
 0x528   : > { %v4376_v1 = vsel %vm4374_vm0, %v10779_v45, %v4375_v41  ;;  %v9282_v6 = vmin.u32 %v4448_v24, %v16510_v31  ;;  %v4522_v21 = vsel %vm4518_vm9, %v4502_v39, %v4505_v49  ;;  %v4524_v27 = vsel %vm4520_vm2, %v4508_v44, %v4523_v9  ;;  %v835_v49 = vpop.permute.xlu1 %834 }
 0x529   : > { %v4380_v62 = vsel %vm4373_vm6, %v4376_v1, %v4379_v8  ;;  %v16531_v47 = vsub.s32 32, %v16502_v51  ;;  %v16533_v14 = vmul.u32.u64.low %v4534_v33, %v4529_v56  ;;  %v16534_v16 = vmul.u32.u64.high %v4534_v33, %v4529_v56, %v16533_v14 }
 0x52a   : > { %v4381_v41 = vsel %vm4370_vm3, nan, %v4380_v62  ;;  %v977_v24 = vadd.f32 %v16271_v48, %v923_v36  ;;  %v5224_v45 = vadd.s32 1, %v9313_v12  ;;  %v4450_v17 = vclz %v9282_v6 }
 0x52b   : > { %20172 = vst [vmem:[#allocation53_spill] sm:$0xff] %v16531_v47  ;;  %v16543_v44 = vsel %vm5041_vm10, %v16477_v20, 920167782  ;;  %v16547_v46 = vsel %vm5041_vm10, %v5037_v57, 1326507024  ;;  %9876 = vmatprep.mubr.msk.f32.mxu0 %vm6619_vm1, %v4381_v41  ;;  %v1223_v26 = vmul.f32 %v16274_v19, %v1143_v5  ;;  %v4525_v62 = vsel %vm4519_vm14, %v4522_v21, %v4524_v27 }
 0x52c   : > { %20173 = vst [vmem:[#allocation129_spill] sm:$0xff] %v16543_v44  ;;  %20174 = vst [vmem:[#allocation119_spill] sm:$0xff] %v16547_v46  ;;  %v16554_v6 = vmul.f32 %v16274_v19, %v1151_v3  ;;  %v16556_v36 = vadd.f32 %v1222_v55, %v977_v24  ;;  %v9283_v12 = vadd.s32 4294967294, %v4450_v17  ;;  %vm4543_vm11 = vc.u32 %v16522_v58, %v16533_v14 }
 0x52d   : > { %v16561_v57 = vshrl.u32 %v16482_v40, 5  ;;  %v5345_v53 = vshrl.u32 %v19960_v60, %v16531_v47  ;;  %v924_v5 = vmul.f32 %v16236_v32, %v835_v49  ;;  %v4544_v54 = vadd.s32 1, %v16534_v16 }
 0x52e   : > { %vm4384_vm13 = vcmp.lt.s32.totalorder %v20152_v35, 0  ;;  %v5344_v55 = vshll.u32 %v19733_v61, %v16502_v51  ;;  %vm5225_vm9 = vcmp.gt.s32.totalorder %v5224_v45, 0  ;;  %vm9284_vm2 = vcmp.lt.s32.totalorder %v9283_v12, 0 }
 0x52f   : > { %v4541_v9 = vmul.u32 %v4534_v33, %v4525_v62  ;;  %v16572_v39 = vshll.u32 %v19960_v60, %v16502_v51  ;;  %v16576_v40 = vshrl.u32 %v19968_v4, %v16531_v47  ;;  %v4453_v56 = vsel %vm9284_vm2, 0, %v9283_v12  ;;  %v20179_v12 = vld [vmem:[#allocation86_spill] sm:$0xff] }
 0x530   : > { %v4545_v8 = vsel %vm4543_vm11, %v4544_v54, %v16534_v16  ;;  %v4438_v34 = vadd.s32 %v16438_v0, %v16433_v43  ;;  %v4454_v1 = vsub.s32 32, %v4453_v56  ;;  %v4458_v21 = vsub.s32 4294967266, %v4453_v56 }
 0x531   : > { %v4546_v27 = vadd.s32 %v4545_v8, %v4541_v9  ;;  %v16581_v41 = vor.u32 %v5345_v53, %v5344_v55  ;;  %vm5353_vm3 = vcmp.lt.s32.totalorder %v16561_v57, 4  ;;  %v5226_v33 = vsel %vm5225_vm9, %v5224_v45, 0 }
 0x532   : > { %v978_v24 = vadd.f32 %v16271_v48, %v924_v5  ;;  %v20176_v17 = vand.u32 2147483647, %v20152_v35  ;;  %v4455_v16 = vshll.u32 %v16510_v31, %v4453_v56  ;;  %v4456_v3 = vshrl.u32 %v4438_v34, %v4454_v1 }
 0x533   : > { %20175 = vst [vmem:[#allocation57_spill] sm:$0xff] %v16581_v41  ;;  %v4459_v43 = vadd.s32 127, %v4458_v21  ;;  %v4547_v0 = vadd.s32 536870912, %v4546_v27  ;;  %v4468_v62 = vsub.s32 4, %v16484_v22  ;;  %v19617_v53 = vand.u32 2147483647, %v20179_v12  ;;  %v16620_v21 = vpop.permute.xlu1 %839 }
 0x534   : > { %vm16587_vm14 = vcmp.le.f32.partialorder %v20176_v17, 0.7853982  ;;  %v4608_v45 = vshrl.u32 %v19731_v29, %v15944_v13  ;;  %v4611_v5 = vshrl.u32 %v19820_v63, %v15944_v13  ;;  %v4457_v54 = vor.u32 %v4456_v3, %v4455_v16 }
 0x535   : > { %v4460_v55 = vshll.u32 %v4459_v43, 23  ;;  %v16598_v9 = vshrl.u32 %v4547_v0, 30  ;;  %v4614_v31 = vshrl.u32 %v19733_v61, %v15944_v13  ;;  %v16602_v56 = vand.u32 31, %v5226_v33 }
 0x536   : > { %v1271_v8 = vadd.f32 %v1223_v26, %v978_v24  ;;  %v4607_v34 = vshll.u32 %v19730_v18, %v15778_v50  ;;  %v4610_v1 = vshll.u32 %v19731_v29, %v15778_v50  ;;  %v4613_v3 = vshll.u32 %v19820_v63, %v15778_v50 }
 0x537   : > { %20180 = vst [vmem:[#allocation49_spill] sm:$0xff] %v16602_v56  ;;  %v4461_v17 = vor.u32 4788187, %v4460_v55  ;;  %v4549_v16 = vshll.u32 %v16598_v9, 30  ;;  %v4469_v43 = vsel %vm4384_vm13, %v4468_v62, %v16484_v22  ;;  %v4597_v26 = vand.u32 8388607, %v19617_v53 }
 0x538   : > { %v4609_v24 = vor.u32 %v4608_v45, %v4607_v34  ;;  %v4612_v0 = vor.u32 %v4611_v5, %v4610_v1  ;;  %v4464_v47 = vcvt.s32.f32 %v4457_v54  ;;  %v4615_v55 = vor.u32 %v4614_v31, %v4613_v3  ;;  %v20183_v62 = vld [vmem:[#allocation39_spill] sm:$0xff] }
 0x539   : > { %v4462_v51 = vand.u32 2147483647, %v4461_v17  ;;  %v16618_v20 = vsub.s32 %v4546_v27, %v4549_v16  ;;  %v16625_v50 = vsel %vm5353_vm3, %v16581_v41, 920167782  ;;  %v16627_v46 = vshrl.u32 %v5226_v33, 5 }
 0x53a   : > { %20181 = vst [vmem:[#allocation50_spill] sm:$0xff] %v16625_v50  ;;  %v16630_v22 = vsub.s32 32, %v16602_v56  ;;  %v16633_v45 = vadd.f32 %v20183_v62, %v1271_v8  ;;  %v16637_v27 = vshll.u32 %v19733_v61, %v16602_v56  ;;  %v16641_v5 = vshll.u32 %v19960_v60, %v16602_v56 }
 0x53b   : > { %v4465_v54 = vmul.f32 %v4464_v47, %v4462_v51  ;;  %v4552_v31 = vsub.s32 0, %v16618_v20  ;;  %v4471_v33 = vsel %vm16587_vm14, 0, %v4469_v43  ;;  %v4598_v34 = vor.u32 8388608, %v4597_v26 }
 0x53c   : > { %20182 = vst [vmem:[#allocation79_spill] sm:$0xff] %v16630_v22  ;;  %20184 = vst [vmem:[#allocation63_spill] sm:$0xff] %v16633_v45  ;;  %vm4622_vm6 = vcmp.lt.s32.totalorder %v15941_v25, 1  ;;  %vm4624_vm7 = vcmp.lt.s32.totalorder %v15941_v25, 3  ;;  %v16656_v47 = vshrl.u32 %v19960_v60, %v16630_v22  ;;  %v5529_v16 = vand.u32 2139095040, %v16633_v45 }
 0x53d   : > { %v4466_v8 = vxor.u32 2147483648, %v4465_v54  ;;  %v9286_v1 = vmin.u32 %v4552_v31, %v16618_v20  ;;  %v4630_v17 = vsel %vm4622_vm6, %v4609_v24, %v4612_v0  ;;  %v4632_v51 = vsel %vm4624_vm7, %v4615_v55, %v16021_v38  ;;  %v1432_v38 = vpop.permute.xlu1 %1431 }
 0x53e   : > { %v4634_v3 = vsel %vm4622_vm6, %v4612_v0, %v4615_v55  ;;  %v4636_v43 = vsel %vm4624_vm7, %v15990_v42, %v16250_v30  ;;  %v4475_v62 = vadd.s32 3, %v4471_v33  ;;  %vm4623_vm0 = vcmp.lt.s32.totalorder %v15941_v25, 2 }
 0x53f   : > { %v4467_v26 = vsel %vm4384_vm13, %v4466_v8, %v4465_v54  ;;  %v4554_v31 = vclz %v9286_v1  ;;  %v4606_v45 = vshrl.u32 %v19730_v18, %v15944_v13  ;;  %v4627_v41 = vsel %vm4625_vm12, %v4615_v55, 2102212464  ;;  %v16679_v1 = vld [vmem:[#allocation7 + $0x2] ss:$0 sm:$0xff] }
 0x540   : > { %v4470_v53 = vsel %vm16587_vm14, %v20152_v35, %v4467_v26  ;;  %v4633_v42 = vsel %vm4623_vm0, %v4630_v17, %v4632_v51  ;;  %v4637_v54 = vsel %vm4623_vm0, %v4634_v3, %v4636_v43  ;;  %v4638_v33 = vshll.u32 %v4598_v34, 8 }
 0x541   : > { %10782 = vcosq.f32 %v4470_v53  ;;  %v9287_v30 = vadd.s32 4294967294, %v4554_v31  ;;  %v5530_v8 = vshrl.u32 %v5529_v16, 23  ;;  %v1515_v49 = vmul.f32 %v16679_v1, %v1432_v38 }
 0x542   : > { %10784 = vsinq.f32 %v4470_v53  ;;  %v4626_v13 = vsel %vm4622_vm6, %v4606_v45, %v4609_v24  ;;  %v4628_v55 = vsel %vm4624_vm7, %v4612_v0, %v4627_v41  ;;  %v4572_v3 = vsub.s32 4, %v16598_v9 }
 0x543   : > { %vm9288_vm11 = vcmp.lt.s32.totalorder %v9287_v30, 0  ;;  %v16686_v17 = vmul.u32.u64.low %v4638_v33, %v4637_v54  ;;  %v16687_v51 = vmul.u32.u64.high %v4638_v33, %v4637_v54, %v16686_v17  ;;  %v4476_v16 = vand.u32 3, %v4475_v62 }
 0x544   : > { %v4557_v26 = vsel %vm9288_vm11, 0, %v9287_v30  ;;  %v16690_v34 = vmul.u32.u64.low %v4638_v33, %v4633_v42  ;;  %v16691_v53 = vmul.u32.u64.high %v4638_v33, %v4633_v42, %v16690_v34  ;;  %v4542_v43 = vadd.s32 %v16533_v14, %v16522_v58 }
 0x545   : > { %v4558_v31 = vsub.s32 32, %v4557_v26  ;;  %v4562_v24 = vsub.s32 4294967266, %v4557_v26  ;;  %v16698_v45 = vshrl.u32 %v19968_v4, %v16630_v22  ;;  %vm4488_vm12 = vcmp.lt.s32.totalorder %v20163_v7, 0 }
 0x546   : > { %v16702_v41 = vadd.f32 %v1515_v49, %v16556_v36  ;;  %v4629_v0 = vsel %vm4623_vm0, %v4626_v13, %v4628_v55  ;;  %v4559_v38 = vshll.u32 %v16618_v20, %v4557_v26  ;;  %vm4647_vm13 = vc.u32 %v16687_v51, %v16690_v34 }
 0x547   : > { %v4560_v62 = vshrl.u32 %v4542_v43, %v4558_v31  ;;  %v4563_v42 = vadd.s32 127, %v4562_v24  ;;  %vm4474_vm9 = vweird.f32 %v20152_v35  ;;  %v9325_v58 = vadd.s32 4294967169, %v5530_v8  ;;  %v20189_v31 = vld [vmem:[#allocation60_spill] sm:$0xff] }
 0x548   : > { %20185 = vst [vmem:[#allocation56_spill] sm:$0xff] %v16702_v41  ;;  %v20186_v14 = vand.u32 2147483647, %v20163_v7  ;;  %v4573_v25 = vsel %vm4488_vm12, %v4572_v3, %v16598_v9  ;;  %v4648_v20 = vadd.s32 1, %v16691_v53  ;;  %vm4477_vm14 = vcmp.lt.s32.totalorder %v4476_v16, 2 }
 0x549   : > { %v4561_v36 = vor.u32 %v4560_v62, %v4559_v38  ;;  %v4564_v54 = vshll.u32 %v4563_v42, 23  ;;  %v4645_v49 = vmul.u32 %v4638_v33, %v4629_v0  ;;  %vm4478_vm6 = vcmp.eq.s32.totalorder %v4476_v16, 0 }
 0x54a   : > { %vm16712_vm2 = vcmp.le.f32.partialorder %v20186_v14, 0.7853982  ;;  %vm4481_vm7 = vcmp.eq.s32.totalorder %v4476_v16, 2  ;;  %v5425_v8 = vand.u32 2139095040, %v16702_v41  ;;  %v4649_v13 = vsel %vm4647_vm13, %v4648_v20, %v16691_v53 }
 0x54b   : > { %v10783_v55 = vpop.eup %10782  ;;  %v4565_v17 = vor.u32 4788187, %v4564_v54  ;;  %v4575_v26 = vsel %vm16712_vm2, 0, %v4573_v25  ;;  %v4650_v43 = vadd.s32 %v4649_v13, %v4645_v49  ;;  %v4712_v38 = vshrl.u32 %v19731_v29, %v15741_v10 }
 0x54c   : > { %v10785_v3 = vpop.eup %10784  ;;  %v4482_v24 = vxor.u32 2147483648, %v10783_v55  ;;  %v4715_v33 = vshrl.u32 %v19820_v63, %v15741_v10  ;;  %v4718_v0 = vshrl.u32 %v19733_v61, %v15741_v10  ;;  %v4568_v42 = vcvt.s32.f32 %v4561_v36 }
 0x54d   : > { %v4479_v53 = vxor.u32 2147483648, %v10785_v3  ;;  %v4566_v62 = vand.u32 2147483647, %v4565_v17  ;;  %v4651_v14 = vadd.s32 536870912, %v4650_v43  ;;  %v4711_v20 = vshll.u32 %v19730_v18, %v15726_v15 }
 0x54e   : > { %v4483_v25 = vsel %vm4481_vm7, %v4482_v24, %v10785_v3  ;;  %v4714_v54 = vshll.u32 %v19731_v29, %v15726_v15  ;;  %v4717_v49 = vshll.u32 %v19820_v63, %v15726_v15  ;;  %v20190_v17 = vand.u32 2147483647, %v20189_v31  ;;  %v16744_v3 = vpop.permute.xlu1 %1146 }
 0x54f   : > { %v4480_v13 = vsel %vm4478_vm6, %v10783_v55, %v4479_v53  ;;  %v4569_v9 = vmul.f32 %v4568_v42, %v4566_v62  ;;  %v16739_v41 = vshrl.u32 %v4651_v14, 30  ;;  %v4713_v24 = vor.u32 %v4712_v38, %v4711_v20 }
 0x550   : > { %v4701_v36 = vand.u32 8388607, %v20190_v17  ;;  %v4484_v50 = vsel %vm4477_vm14, %v4480_v13, %v4483_v25  ;;  %v4716_v56 = vor.u32 %v4715_v33, %v4714_v54  ;;  %v4719_v22 = vor.u32 %v4718_v0, %v4717_v49  ;;  %v20192_v0 = vld [vmem:[#allocation110_spill] sm:$0xff] }
 0x551   : > { %v4485_v44 = vsel %vm4474_vm9, nan, %v4484_v50  ;;  %v5536_v28 = vadd.s32 1, %v9325_v58  ;;  %v4570_v15 = vxor.u32 2147483648, %v4569_v9  ;;  %v4653_v55 = vshll.u32 %v16739_v41, 30  ;;  %v1159_v58 = vpop.permute.xlu0 %1158 }
 0x552   : > { %v16751_v53 = vor.u32 %v16656_v47, %v16637_v27  ;;  %vm5249_vm0 = vcmp.lt.s32.totalorder %v16627_v46, 4  ;;  %9877 = vmatmul.mubr.msk.f32.gmra.mrb[26].mxu0 %vm6619_vm1, %v4485_v44  ;;  %v4579_v16 = vadd.s32 3, %v4575_v26  ;;  %v5426_v62 = vshrl.u32 %v5425_v8, 23  ;;  %v845_v26 = vpop.permute.xlu1 %844 }
 0x553   : > { %v4571_v38 = vsel %vm4488_vm12, %v4570_v15, %v4569_v9  ;;  %v16757_v33 = vsub.s32 %v4650_v43, %v4653_v55  ;;  %vm4726_vm11 = vcmp.lt.s32.totalorder %v15759_v11, 1  ;;  %vm4728_vm13 = vcmp.lt.s32.totalorder %v15759_v11, 3  ;;  %v20191_v9 = vld [vmem:[#allocation84_spill] sm:$0xff] }
 0x554   : > { %v4574_v35 = vsel %vm16712_vm2, %v20163_v7, %v4571_v38  ;;  %v4702_v50 = vor.u32 8388608, %v4701_v36  ;;  %v4734_v27 = vsel %vm4726_vm11, %v4713_v24, %v4716_v56  ;;  %v4736_v44 = vsel %vm4728_vm13, %v4719_v22, %v15979_v59 }
 0x555   : > { %v5245_v47 = vor.u32 %v16698_v45, %v16641_v5  ;;  %vm5537_vm12 = vcmp.gt.s32.totalorder %v5536_v28, 0  ;;  %10786 = vcosq.f32 %v4574_v35  ;;  %v4656_v8 = vsub.s32 0, %v16757_v33  ;;  %v1167_v38 = vpop.permute.xlu0 %1166 }
 0x556   : > { %10788 = vsinq.f32 %v4574_v35  ;;  %vm4727_vm9 = vcmp.lt.s32.totalorder %v15759_v11, 2  ;;  %v4731_v30 = vsel %vm4729_vm4, %v4719_v22, 2102212464  ;;  %v4738_v43 = vsel %vm4726_vm11, %v4716_v56, %v4719_v22 }
 0x557   : > { %v9290_v59 = vmin.u32 %v4656_v8, %v16757_v33  ;;  %v4710_v5 = vshrl.u32 %v19730_v18, %v15741_v10  ;;  %v4737_v45 = vsel %vm4727_vm9, %v4734_v27, %v4736_v44  ;;  %v4740_v42 = vsel %vm4728_vm13, %v20192_v0, %v20191_v9 }
 0x558   : > { %v4580_v14 = vand.u32 3, %v4579_v16  ;;  %v9321_v25 = vadd.s32 4294967169, %v5426_v62  ;;  %v4741_v20 = vsel %vm4727_vm9, %v4738_v43, %v4740_v42  ;;  %v4742_v54 = vshll.u32 %v4702_v50, 8 }
 0x559   : > { %v4658_v22 = vclz %v9290_v59  ;;  %v926_v49 = vmul.f32 %v16236_v32, %v845_v26  ;;  %v4730_v10 = vsel %vm4726_vm11, %v4710_v5, %v4713_v24  ;;  %v4732_v13 = vsel %vm4728_vm13, %v4716_v56, %v4731_v30 }
 0x55a   : > { %v16793_v17 = vmul.u32.u64.low %v4742_v54, %v4741_v20  ;;  %v16794_v36 = vmul.u32.u64.high %v4742_v54, %v4741_v20, %v16793_v17  ;;  %v16796_v15 = vmul.u32.u64.low %v4742_v54, %v4737_v45  ;;  %v16797_v55 = vmul.u32.u64.high %v4742_v54, %v4737_v45, %v16796_v15 }
 0x55b   : > { %v20193_v16 = vor.u32 %v16576_v40, %v16572_v39  ;;  %v16810_v24 = vsel %vm5249_vm0, %v16751_v53, 920167782  ;;  %v16813_v56 = vmul.f32 %v16274_v19, %v1159_v58  ;;  %v9291_v35 = vadd.s32 4294967294, %v4658_v22  ;;  %v16839_v22 = vpop.permute.xlu1 %849 }
 0x55c   : > { %vm4592_vm4 = vcmp.lt.s32.totalorder %v20179_v12, 0  ;;  %v16818_v50 = vsel %vm5249_vm0, %v5245_v47, 1326507024  ;;  %v16821_v39 = vmul.f32 %v16274_v19, %v1167_v38  ;;  %v925_v40 = vmul.f32 %v16236_v32, %v16620_v21 }
 0x55d   : > { %v16805_v62 = vsel %vm5353_vm3, %v20193_v16, 1326507024  ;;  %v4733_v27 = vsel %vm4727_vm9, %v4730_v10, %v4732_v13  ;;  %v16828_v44 = vsel %vm5537_vm12, %v5536_v28, 0  ;;  %vm4585_vm2 = vcmp.eq.s32.totalorder %v4580_v14, 2 }
 0x55e   : > { %v5432_v58 = vadd.s32 1, %v9321_v25  ;;  %vm9292_vm14 = vcmp.lt.s32.totalorder %v9291_v35, 0  ;;  %v980_v26 = vadd.f32 %v16271_v48, %v926_v49  ;;  %vm4751_vm6 = vc.u32 %v16794_v36, %v16796_v15 }
 0x55f   : > { %v4661_v8 = vsel %vm9292_vm14, 0, %v9291_v35  ;;  %v4752_v47 = vadd.s32 1, %v16797_v55  ;;  %v10787_v30 = vpop.eup %10786  ;;  %v4646_v32 = vadd.s32 %v16690_v34, %v16687_v51  ;;  %v4749_v43 = vmul.u32 %v4742_v54, %v4733_v27 }
 0x560   : > { %v4662_v11 = vsub.s32 32, %v4661_v8  ;;  %v4666_v21 = vsub.s32 4294967266, %v4661_v8  ;;  %v10789_v28 = vpop.eup %10788  ;;  %v4586_v59 = vxor.u32 2147483648, %v10787_v30  ;;  %v4663_v5 = vshll.u32 %v16757_v33, %v4661_v8 }
 0x561   : > { %v4676_v45 = vsub.s32 4, %v16739_v41  ;;  %v4753_v9 = vsel %vm4751_vm6, %v4752_v47, %v16797_v55  ;;  %v4583_v0 = vxor.u32 2147483648, %v10789_v28  ;;  %vm4581_vm7 = vcmp.lt.s32.totalorder %v4580_v14, 2 }
 0x562   : > { %v4664_v42 = vshrl.u32 %v4646_v32, %v4662_v11  ;;  %v4667_v25 = vadd.s32 127, %v4666_v21  ;;  %v4754_v20 = vadd.s32 %v4753_v9, %v4749_v43  ;;  %vm4582_vm11 = vcmp.eq.s32.totalorder %v4580_v14, 0 }
 0x563   : > { %v4587_v51 = vsel %vm4585_vm2, %v4586_v59, %v10789_v28  ;;  %v1273_v34 = vadd.f32 %v16554_v6, %v980_v26  ;;  %v4584_v54 = vsel %vm4582_vm11, %v10787_v30, %v4583_v0  ;;  %vm4578_vm13 = vweird.f32 %v20163_v7  ;;  %v1440_v30 = vpop.permute.xlu1 %1439 }
 0x564   : > { %v4665_v49 = vor.u32 %v4664_v42, %v4663_v5  ;;  %v4668_v10 = vshll.u32 %v4667_v25, 23  ;;  %v4755_v33 = vadd.s32 536870912, %v4754_v20  ;;  %v4588_v13 = vsel %vm4581_vm7, %v4584_v54, %v4587_v51 }
 0x565   : > { %vm5433_vm12 = vcmp.gt.s32.totalorder %v5432_v58, 0  ;;  %v1224_v17 = vmul.f32 %v16274_v19, %v16744_v3  ;;  %v4589_v55 = vsel %vm4578_vm13, nan, %v4588_v13  ;;  %v4677_v14 = vsel %vm4592_vm4, %v4676_v45, %v16739_v41  ;;  %v20197_v19 = vld [vmem:[#allocation40_spill] sm:$0xff] }
 0x566   : > { %v4669_v16 = vor.u32 4788187, %v4668_v10  ;;  %v16849_v38 = vshrl.u32 %v4755_v33, 30  ;;  %v16852_v6 = vand.u32 31, %v16828_v44  ;;  %9879 = vmatprep.mubr.msk.f32.mxu0 %vm6619_vm1, %v4589_v55  ;;  %v979_v7 = vadd.f32 %v16271_v48, %v925_v40  ;;  %v20199_v48 = vld [vmem:[#allocation114_spill] sm:$0xff] }
 0x567   : > { %v20194_v35 = vand.u32 2147483647, %v20179_v12  ;;  %v16863_v3 = vadd.f32 %v20197_v19, %v1273_v34  ;;  %v5434_v8 = vsel %vm5433_vm12, %v5432_v58, 0  ;;  %v4672_v26 = vcvt.s32.f32 %v4665_v49 }
 0x568   : > { %v4670_v41 = vand.u32 2147483647, %v4669_v16  ;;  %v4757_v47 = vshll.u32 %v16849_v38, 30  ;;  %v1272_v32 = vadd.f32 %v1224_v17, %v979_v7  ;;  %v19630_v40 = vand.u32 2147483647, %v20199_v48 }
 0x569   : > { %vm16858_vm9 = vcmp.le.f32.partialorder %v20194_v35, 0.7853982  ;;  %20198 = vst [vmem:[#allocation61_spill] sm:$0xff] %v16863_v3  ;;  %v4816_v21 = vshrl.u32 %v19731_v29, %v16216_v2  ;;  %v4819_v58 = vshrl.u32 %v19820_v63, %v16216_v2  ;;  %v4822_v59 = vshrl.u32 %v19733_v61, %v16216_v2 }
 0x56a   : > { %v4679_v11 = vsel %vm16858_vm9, 0, %v4677_v14  ;;  %v4673_v43 = vmul.f32 %v4672_v26, %v4670_v41  ;;  %v16871_v28 = vsub.s32 %v4754_v20, %v4757_v47  ;;  %v16877_v5 = vand.u32 31, %v5434_v8 }
 0x56b   : > { %v5737_v45 = vand.u32 2139095040, %v16863_v3  ;;  %v1517_v9 = vmul.f32 %v16679_v1, %v1440_v30  ;;  %v4815_v0 = vshll.u32 %v19730_v18, %v16176_v37  ;;  %v4818_v20 = vshll.u32 %v19731_v29, %v16176_v37 }
 0x56c   : > { %v4674_v42 = vxor.u32 2147483648, %v4673_v43  ;;  %v4760_v25 = vsub.s32 0, %v16871_v28  ;;  %v4821_v51 = vshll.u32 %v19820_v63, %v16176_v37  ;;  %v16888_v34 = vshrl.u32 %v5434_v8, 5 }
 0x56d   : > { %v4683_v54 = vadd.s32 3, %v4679_v11  ;;  %v4805_v49 = vand.u32 8388607, %v19630_v40  ;;  %v4817_v10 = vor.u32 %v4816_v21, %v4815_v0  ;;  %v4820_v17 = vor.u32 %v4819_v58, %v4818_v20 }
 0x56e   : > { %v4675_v33 = vsel %vm4592_vm4, %v4674_v42, %v4673_v43  ;;  %v9294_v13 = vmin.u32 %v4760_v25, %v16871_v28  ;;  %v4823_v55 = vor.u32 %v4822_v59, %v4821_v51  ;;  %v16896_v16 = vsub.s32 32, %v16877_v5  ;;  %v20201_v59 = vld [vmem:[#allocation55_spill] sm:$0xff] }
 0x56f   : > { %v16900_v37 = vshll.u32 %v19733_v61, %v16877_v5  ;;  %v16904_v14 = vshll.u32 %v19960_v60, %v16877_v5  ;;  %v4678_v7 = vsel %vm16858_vm9, %v20179_v12, %v4675_v33  ;;  %v5738_v35 = vshrl.u32 %v5737_v45, 23 }
 0x570   : > { %10790 = vcosq.f32 %v4678_v7  ;;  %v4762_v19 = vclz %v9294_v13  ;;  %v16909_v8 = vadd.f32 %v1517_v9, %v1272_v32  ;;  %v4806_v41 = vor.u32 8388608, %v4805_v49 }
 0x571   : > { %10792 = vsinq.f32 %v4678_v7  ;;  %vm4830_vm4 = vcmp.lt.s32.totalorder %v16241_v23, 1  ;;  %vm4832_vm2 = vcmp.lt.s32.totalorder %v16241_v23, 3  ;;  %v4684_v26 = vand.u32 3, %v4683_v54 }
 0x572   : > { %20200 = vst [vmem:[#allocation59_spill] sm:$0xff] %v16909_v8  ;;  %v9295_v47 = vadd.s32 4294967294, %v4762_v19  ;;  %v4838_v30 = vsel %vm4830_vm4, %v4817_v10, %v4820_v17  ;;  %v4840_v27 = vsel %vm4832_vm2, %v4823_v55, %v16323_v52  ;;  %v4814_v11 = vshrl.u32 %v19730_v18, %v16216_v2  ;;  %v20202_v52 = vld [vmem:[#allocation131_spill] sm:$0xff] }
 0x573   : > { %vm4831_vm14 = vcmp.lt.s32.totalorder %v16241_v23, 2  ;;  %v4835_v32 = vsel %vm4833_vm15, %v4823_v55, 2102212464  ;;  %v4842_v21 = vsel %vm4830_vm4, %v4820_v17, %v4823_v55  ;;  %v4750_v43 = vadd.s32 %v16796_v15, %v16794_v36 }
 0x574   : > { %vm9296_vm6 = vcmp.lt.s32.totalorder %v9295_v47, 0  ;;  %v4841_v58 = vsel %vm4831_vm14, %v4838_v30, %v4840_v27  ;;  %v4844_v2 = vsel %vm4832_vm2, %v20202_v52, %v20201_v59  ;;  %v5633_v9 = vand.u32 2139095040, %v16909_v8 }
 0x575   : > { %v4765_v45 = vsel %vm9296_vm6, 0, %v9295_v47  ;;  %v4845_v0 = vsel %vm4831_vm14, %v4842_v21, %v4844_v2  ;;  %v4846_v42 = vshll.u32 %v4806_v41, 8  ;;  %v4834_v36 = vsel %vm4830_vm4, %v4814_v11, %v4817_v10 }
 0x576   : > { %v4766_v25 = vsub.s32 32, %v4765_v45  ;;  %v4770_v20 = vsub.s32 4294967266, %v4765_v45  ;;  %v4836_v15 = vsel %vm4832_vm2, %v4820_v17, %v4835_v32  ;;  %vm4682_vm15 = vweird.f32 %v20179_v12 }
 0x577   : > { %v16941_v51 = vmul.u32.u64.low %v4846_v42, %v4845_v0  ;;  %v16942_v54 = vmul.u32.u64.high %v4846_v42, %v4845_v0, %v16941_v51  ;;  %v16944_v49 = vmul.u32.u64.low %v4846_v42, %v4841_v58  ;;  %v16945_v33 = vmul.u32.u64.high %v4846_v42, %v4841_v58, %v16944_v49  ;;  %v20203_v58 = vld [vmem:[#allocation104_spill] sm:$0xff] }
 0x578   : > { %vm4696_vm7 = vcmp.lt.s32.totalorder %v20189_v31, 0  ;;  %v4767_v13 = vshll.u32 %v16871_v28, %v4765_v45  ;;  %v4768_v55 = vshrl.u32 %v4750_v43, %v4766_v25  ;;  %v4771_v7 = vadd.s32 127, %v4770_v20  ;;  %v20204_v45 = vld [vmem:[#allocation106_spill] sm:$0xff] }
 0x579   : > { %vm4685_vm11 = vcmp.lt.s32.totalorder %v4684_v26, 2  ;;  %v9333_v10 = vadd.s32 4294967169, %v5738_v35  ;;  %v4780_v19 = vsub.s32 4, %v16849_v38  ;;  %v4837_v17 = vsel %vm4831_vm14, %v4834_v36, %v4836_v15 }
 0x57a   : > { %v10791_v41 = vpop.eup %10790  ;;  %vm4686_vm13 = vcmp.eq.s32.totalorder %v4684_v26, 0  ;;  %vm4689_vm12 = vcmp.eq.s32.totalorder %v4684_v26, 2  ;;  %v4769_v47 = vor.u32 %v4768_v55, %v4767_v13  ;;  %v4772_v30 = vshll.u32 %v4771_v7, 23 }
 0x57b   : > { %v10793_v27 = vpop.eup %10792  ;;  %v4690_v11 = vxor.u32 2147483648, %v10791_v41  ;;  %v5634_v32 = vshrl.u32 %v5633_v9, 23  ;;  %vm4855_vm9 = vc.u32 %v16942_v54, %v16944_v49  ;;  %v4856_v28 = vadd.s32 1, %v16945_v33 }
 0x57c   : > { %v4687_v21 = vxor.u32 2147483648, %v10793_v27  ;;  %v4773_v35 = vor.u32 4788187, %v4772_v30  ;;  %v4853_v43 = vmul.u32 %v4846_v42, %v4837_v17  ;;  %v19629_v59 = vand.u32 2147483647, %v20203_v58  ;;  %v20205_v42 = vld [vmem:[#allocation113_spill] sm:$0xff] }
 0x57d   : > { %v4691_v23 = vsel %vm4689_vm12, %v4690_v11, %v10793_v27  ;;  %v4781_v52 = vsel %vm4696_vm7, %v4780_v19, %v16849_v38  ;;  %v4857_v2 = vsel %vm4855_vm9, %v4856_v28, %v16945_v33  ;;  %v4920_v9 = vshrl.u32 %v19731_v29, %v20204_v45 }
 0x57e   : > { %v4688_v0 = vsel %vm4686_vm13, %v10791_v41, %v4687_v21  ;;  %v4774_v25 = vand.u32 2147483647, %v4773_v35  ;;  %v4776_v20 = vcvt.s32.f32 %v4769_v47  ;;  %v4858_v36 = vadd.s32 %v4857_v2, %v4853_v43 }
 0x57f   : > { %v4692_v15 = vsel %vm4685_vm11, %v4688_v0, %v4691_v23  ;;  %v4919_v51 = vshll.u32 %v19730_v18, %v20205_v42  ;;  %v4922_v13 = vshll.u32 %v19731_v29, %v20205_v42  ;;  %v4923_v38 = vshrl.u32 %v19820_v63, %v20204_v45  ;;  %v20209_v0 = vld [vmem:[#allocation47_spill] sm:$0xff] }
 0x580   : > { %v4693_v33 = vsel %vm4682_vm15, nan, %v4692_v15  ;;  %v4777_v55 = vmul.f32 %v4776_v20, %v4774_v25  ;;  %v4859_v7 = vadd.s32 536870912, %v4858_v36  ;;  %v4909_v19 = vand.u32 8388607, %v19629_v59 }
 0x581   : > { %9880 = vmatmul.mubr.msk.f32.gmra.mrb[28].mxu0 %vm6619_vm1, %v4693_v33  ;;  %v4921_v26 = vor.u32 %v4920_v9, %v4919_v51  ;;  %v4924_v17 = vor.u32 %v4923_v38, %v4922_v13  ;;  %v4925_v41 = vshll.u32 %v19820_v63, %v20205_v42  ;;  %v4926_v47 = vshrl.u32 %v19733_v61, %v20204_v45  ;;  %v20212_v51 = vld [vmem:[#allocation124_spill] sm:$0xff] }
 0x582   : > { %v5449_v30 = vshrl.u32 %v19960_v60, %v16896_v16  ;;  %v20206_v12 = vand.u32 2147483647, %v20189_v31  ;;  %v4778_v11 = vxor.u32 2147483648, %v4777_v55  ;;  %v16988_v28 = vshrl.u32 %v4859_v7, 30 }
 0x583   : > { %v5744_v21 = vadd.s32 1, %v9333_v10  ;;  %v9329_v43 = vadd.s32 4294967169, %v5634_v32  ;;  %v4927_v23 = vor.u32 %v4926_v47, %v4925_v41  ;;  %vm4934_vm2 = vcmp.lt.s32.totalorder %v20209_v0, 1  ;;  %v20211_v32 = vld [vmem:[#allocation115_spill] sm:$0xff]  ;;  %v1175_v47 = vpop.permute.xlu0 %1174 }
 0x584   : > { %vm16984_vm4 = vcmp.le.f32.partialorder %v20206_v12, 0.7853982  ;;  %v4779_v2 = vsel %vm4696_vm7, %v4778_v11, %v4777_v55  ;;  %v4861_v9 = vshll.u32 %v16988_v28, 30  ;;  %vm4936_vm14 = vcmp.lt.s32.totalorder %v20209_v0, 3  ;;  %v1155_v11 = vpop.permute.xlu1 %1154 }
 0x585   : > { %v4783_v35 = vsel %vm16984_vm4, 0, %v4781_v52  ;;  %v4782_v25 = vsel %vm16984_vm4, %v20189_v31, %v4779_v2  ;;  %v4910_v20 = vor.u32 8388608, %v4909_v19  ;;  %v4942_v10 = vsel %vm4934_vm2, %v4921_v26, %v4924_v17  ;;  %v20210_v52 = vld [vmem:[#allocation127_spill] sm:$0xff] }
 0x586   : > { %v4948_v15 = vsel %vm4936_vm14, %v20211_v32, %v20210_v52  ;;  %10794 = vcosq.f32 %v4782_v25  ;;  %v17006_v42 = vsub.s32 %v4858_v36, %v4861_v9  ;;  %v4944_v13 = vsel %vm4936_vm14, %v4927_v23, %v20212_v51 }
 0x587   : > { %v4946_v38 = vsel %vm4934_vm2, %v4924_v17, %v4927_v23  ;;  %v17014_v33 = vor.u32 %v5449_v30, %v16900_v37  ;;  %v17018_v55 = vshrl.u32 %v19968_v4, %v16896_v16  ;;  %10796 = vsinq.f32 %v4782_v25 }
 0x588   : > { %v4939_v7 = vsel %vm4937_vm8, %v4927_v23, 2102212464  ;;  %v4787_v36 = vadd.s32 3, %v4783_v35  ;;  %v4864_v19 = vsub.s32 0, %v17006_v42  ;;  %v4918_v41 = vshrl.u32 %v19730_v18, %v20204_v45 }
 0x589   : > { %vm4935_vm6 = vcmp.lt.s32.totalorder %v20209_v0, 2  ;;  %v5640_v12 = vadd.s32 1, %v9329_v43  ;;  %v4950_v27 = vshll.u32 %v4910_v20, 8  ;;  %vm5745_vm15 = vcmp.gt.s32.totalorder %v5744_v21, 0  ;;  %v17045_v20 = vld [vmem:[#allocation7 + $0x1] ss:$0 sm:$0xff]  ;;  %v855_v0 = vpop.permute.xlu1 %854 }
 0x58a   : > { %v4945_v37 = vsel %vm4935_vm6, %v4942_v10, %v4944_v13  ;;  %v4949_v30 = vsel %vm4935_vm6, %v4946_v38, %v4948_v15  ;;  %v9298_v35 = vmin.u32 %v4864_v19, %v17006_v42  ;;  %v4938_v23 = vsel %vm4934_vm2, %v4918_v41, %v4921_v26 }
 0x58b   : > { %v4940_v45 = vsel %vm4936_vm14, %v4924_v17, %v4939_v7  ;;  %v17035_v2 = vmul.u32.u64.low %v4950_v27, %v4949_v30  ;;  %v17036_v9 = vmul.u32.u64.high %v4950_v27, %v4949_v30, %v17035_v2  ;;  %v17043_v10 = vshrl.u32 %v16828_v44, 5  ;;  %v17064_v7 = vld [vmem:[#allocation7] ss:$0 sm:$0xff] }
 0x58c   : > { %v17038_v43 = vmul.u32.u64.low %v4950_v27, %v4945_v37  ;;  %v17039_v25 = vmul.u32.u64.high %v4950_v27, %v4945_v37, %v17038_v43  ;;  %v17048_v52 = vmul.f32 %v17045_v20, %v1175_v47  ;;  %v4788_v32 = vand.u32 3, %v4787_v36 }
 0x58d   : > { %20213 = vst [vmem:[#allocation94_spill] sm:$0xff] %v17043_v10  ;;  %v4866_v26 = vclz %v9298_v35  ;;  %v17051_v15 = vsub.s32 32, %v16852_v6  ;;  %v5453_v17 = vor.u32 %v17018_v55, %v16904_v14  ;;  %vm5457_vm8 = vcmp.lt.s32.totalorder %v16888_v34, 4 }
 0x58e   : > { %20214 = vst [vmem:[#allocation87_spill] sm:$0xff] %v17048_v52  ;;  %vm5641_vm7 = vcmp.gt.s32.totalorder %v5640_v12, 0  ;;  %v17059_v44 = vsel %vm5457_vm8, %v17014_v33, 920167782  ;;  %v5746_v51 = vsel %vm5745_vm15, %v5744_v21, 0  ;;  %v4941_v38 = vsel %vm4935_vm6, %v4938_v23, %v4940_v45 }
 0x58f   : > { %v9299_v13 = vadd.s32 4294967294, %v4866_v26  ;;  %v927_v36 = vmul.f32 %v17064_v7, %v16839_v22  ;;  %v1226_v14 = vmul.f32 %v17045_v20, %v1155_v11  ;;  %vm4959_vm11 = vc.u32 %v17036_v9, %v17038_v43 }
 0x590   : > { %v4960_v55 = vadd.s32 1, %v17039_v25  ;;  %v10795_v19 = vpop.eup %10794  ;;  %vm4800_vm13 = vcmp.lt.s32.totalorder %v20199_v48, 0  ;;  %vm4789_vm12 = vcmp.lt.s32.totalorder %v4788_v32, 2  ;;  %vm4793_vm9 = vcmp.eq.s32.totalorder %v4788_v32, 2 }
 0x591   : > { %v5642_v21 = vsel %vm5641_vm7, %v5640_v12, 0  ;;  %vm9300_vm4 = vcmp.lt.s32.totalorder %v9299_v13, 0  ;;  %v10797_v41 = vpop.eup %10796  ;;  %v4794_v47 = vxor.u32 2147483648, %v10795_v19  ;;  %v4957_v22 = vmul.u32 %v4950_v27, %v4941_v38 }
 0x592   : > { %v4869_v37 = vsel %vm9300_vm4, 0, %v9299_v13  ;;  %v4961_v30 = vsel %vm4959_vm11, %v4960_v55, %v17039_v25  ;;  %v4791_v11 = vxor.u32 2147483648, %v10797_v41  ;;  %v4854_v35 = vadd.s32 %v16944_v49, %v16942_v54  ;;  %v17082_v49 = vld [vmem:[#allocation8] ss:$0 sm:$0xff] }
 0x593   : > { %v4870_v23 = vsub.s32 32, %v4869_v37  ;;  %v4874_v45 = vsub.s32 4294967266, %v4869_v37  ;;  %vm4790_vm2 = vcmp.eq.s32.totalorder %v4788_v32, 0  ;;  %v4795_v2 = vsel %vm4793_vm9, %v4794_v47, %v10797_v41 }
 0x594   : > { %v928_v26 = vmul.f32 %v17064_v7, %v855_v0  ;;  %v4962_v59 = vadd.s32 %v4961_v30, %v4957_v22  ;;  %v4792_v12 = vsel %vm4790_vm2, %v10795_v19, %v4791_v11  ;;  %v4871_v40 = vshll.u32 %v17006_v42, %v4869_v37  ;;  %v20219_v22 = vld [vmem:[#allocation132_spill] sm:$0xff] }
 0x595   : > { %v4872_v3 = vshrl.u32 %v4854_v35, %v4870_v23  ;;  %v4875_v8 = vadd.s32 127, %v4874_v45  ;;  %vm4786_vm14 = vweird.f32 %v20189_v31  ;;  %v4796_v27 = vsel %vm4789_vm12, %v4792_v12, %v4795_v2 }
 0x596   : > { %v4884_v25 = vsub.s32 4, %v16988_v28  ;;  %v4963_v13 = vadd.s32 536870912, %v4962_v59  ;;  %v4797_v54 = vsel %vm4786_vm14, nan, %v4796_v27  ;;  %v981_v38 = vadd.f32 %v17082_v49, %v927_v36  ;;  %v20224_v27 = vld [vmem:[#allocation109_spill] sm:$0xff] }
 0x597   : > { %v4873_v55 = vor.u32 %v4872_v3, %v4871_v40  ;;  %v4876_v0 = vshll.u32 %v4875_v8, 23  ;;  %v17087_v19 = vsel %vm5457_vm8, %v5453_v17, 1326507024  ;;  %9882 = vmatprep.mubr.msk.f32.mxu0 %vm6619_vm1, %v4797_v54  ;;  %v17090_v42 = vand.u32 31, %v5642_v21  ;;  %v20218_v17 = vld [vmem:[#allocation117_spill] sm:$0xff] }
 0x598   : > { %v982_v31 = vadd.f32 %v17082_v49, %v928_v26  ;;  %v17093_v32 = vshrl.u32 %v4963_v13, 30  ;;  %v17095_v41 = vshrl.u32 %v5746_v51, 5  ;;  %v17097_v47 = vand.u32 31, %v5746_v51 }
 0x599   : > { %20215 = vst [vmem:[#allocation58_spill] sm:$0xff] %v17090_v42  ;;  %v17099_v37 = vadd.f32 %v1226_v14, %v981_v38  ;;  %v4877_v3 = vor.u32 4788187, %v4876_v0  ;;  %v4885_v40 = vsel %vm4800_vm13, %v4884_v25, %v16988_v28  ;;  %v19635_v36 = vand.u32 2147483647, %v20218_v17 }
 0x59a   : > { %20216 = vst [vmem:[#allocation51_spill] sm:$0xff] %v17095_v41  ;;  %20217 = vst [vmem:[#allocation89_spill] sm:$0xff] %v17097_v47  ;;  %v4965_v8 = vshll.u32 %v17093_v32, 30  ;;  %v5024_v30 = vshrl.u32 %v19731_v29, %v20219_v22  ;;  %v4880_v35 = vcvt.s32.f32 %v4873_v55  ;;  %v5027_v51 = vshrl.u32 %v19820_v63, %v20219_v22  ;;  %v20231_v41 = vld [vmem:[#allocation130_spill] sm:$0xff] }
 0x59b   : > { %v4878_v11 = vand.u32 2147483647, %v4877_v3  ;;  %v5030_v14 = vshrl.u32 %v19733_v61, %v20219_v22  ;;  %v17113_v23 = vsub.s32 32, %v17090_v42  ;;  %v20221_v28 = vand.u32 2147483647, %v20199_v48 }
 0x59c   : > { %v1275_v2 = vadd.f32 %v16813_v56, %v982_v31  ;;  %v17122_v26 = vsub.s32 %v4962_v59, %v4965_v8  ;;  %v5023_v25 = vshll.u32 %v19730_v18, %v20224_v27  ;;  %v5026_v13 = vshll.u32 %v19731_v29, %v20224_v27 }
 0x59d   : > { %20220 = vst [vmem:[#allocation78_spill] sm:$0xff] %v17113_v23  ;;  %vm17117_vm6 = vcmp.le.f32.partialorder %v20221_v28, 0.7853982  ;;  %v4881_v12 = vmul.f32 %v4880_v35, %v4878_v11  ;;  %v5029_v54 = vshll.u32 %v19820_v63, %v20224_v27  ;;  %v17130_v38 = vshrl.u32 %v5642_v21, 5  ;;  %v20225_v21 = vld [vmem:[#allocation44_spill] sm:$0xff] }
 0x59e   : > { %v4887_v55 = vsel %vm17117_vm6, 0, %v4885_v40  ;;  %v4968_v0 = vsub.s32 0, %v17122_v26  ;;  %v5013_v56 = vand.u32 8388607, %v19635_v36  ;;  %v5025_v31 = vor.u32 %v5024_v30, %v5023_v25  ;;  %v17155_v25 = vpop.permute.xlu1 %859  ;;  %v20228_v36 = vld [vmem:[#allocation129_spill] sm:$0xff] }
 0x59f   : > { %v4882_v59 = vxor.u32 2147483648, %v4881_v12  ;;  %v5028_v3 = vor.u32 %v5027_v51, %v5026_v13  ;;  %v5031_v8 = vor.u32 %v5030_v14, %v5029_v54  ;;  %v5656_v11 = vshll.u32 %v19733_v61, %v17090_v42  ;;  %v20227_v54 = vld [vmem:[#allocation118_spill] sm:$0xff] }
 0x5a0   : > { %v5657_v35 = vshrl.u32 %v19960_v60, %v17113_v23  ;;  %v17142_v28 = vadd.f32 %v20225_v21, %v1275_v2  ;;  %v9302_v40 = vmin.u32 %v4968_v0, %v17122_v26  ;;  %v17147_v27 = vshll.u32 %v19960_v60, %v17090_v42 }
 0x5a1   : > { %v17151_v30 = vshrl.u32 %v19968_v4, %v17113_v23  ;;  %v4883_v51 = vsel %vm4800_vm13, %v4882_v59, %v4881_v12  ;;  %v4891_v14 = vadd.s32 3, %v4887_v55  ;;  %vm5038_vm15 = vcmp.lt.s32.totalorder %v20227_v54, 1 }
 0x5a2   : > { %20226 = vst [vmem:[#allocation70_spill] sm:$0xff] %v17142_v28  ;;  %v4886_v2 = vsel %vm17117_vm6, %v20199_v48, %v4883_v51  ;;  %v4970_v13 = vclz %v9302_v40  ;;  %vm5040_vm7 = vcmp.lt.s32.totalorder %v20227_v54, 3  ;;  %v5014_v0 = vor.u32 8388608, %v5013_v56  ;;  %v20230_v51 = vld [vmem:[#allocation119_spill] sm:$0xff] }
 0x5a3   : > { %10798 = vcosq.f32 %v4886_v2  ;;  %v5046_v21 = vsel %vm5038_vm15, %v5025_v31, %v5028_v3  ;;  %v5048_v12 = vsel %vm5040_vm7, %v5031_v8, %v20228_v36  ;;  %v17167_v55 = vor.u32 %v5657_v35, %v5656_v11 }
 0x5a4   : > { %10800 = vsinq.f32 %v4886_v2  ;;  %v5945_v45 = vand.u32 2139095040, %v17142_v28  ;;  %v9303_v59 = vadd.s32 4294967294, %v4970_v13  ;;  %vm5039_vm11 = vcmp.lt.s32.totalorder %v20227_v54, 2  ;;  %v1448_v28 = vpop.permute.xlu1 %1447 }
 0x5a5   : > { %20229 = vst [vmem:[#allocation54_spill] sm:$0xff] %v17167_v55  ;;  %v5043_v40 = vsel %vm5041_vm10, %v5031_v8, 2102212464  ;;  %v5050_v56 = vsel %vm5038_vm15, %v5028_v3, %v5031_v8  ;;  %v5052_v23 = vsel %vm5040_vm7, %v20231_v41, %v20230_v51  ;;  %v5022_v36 = vshrl.u32 %v19730_v18, %v20219_v22 }
 0x5a6   : > { %vm9304_vm13 = vcmp.lt.s32.totalorder %v9303_v59, 0  ;;  %v5049_v11 = vsel %vm5039_vm11, %v5046_v21, %v5048_v12  ;;  %v5053_v35 = vsel %vm5039_vm11, %v5050_v56, %v5052_v23  ;;  %v4892_v2 = vand.u32 3, %v4891_v14 }
 0x5a7   : > { %v4958_v13 = vadd.s32 %v17038_v43, %v17036_v9  ;;  %v4973_v8 = vsel %vm9304_vm13, 0, %v9303_v59  ;;  %v5054_v42 = vshll.u32 %v5014_v0, 8  ;;  %v5042_v41 = vsel %vm5038_vm15, %v5022_v36, %v5025_v31 }
 0x5a8   : > { %v4974_v52 = vsub.s32 32, %v4973_v8  ;;  %v4978_v10 = vsub.s32 4294967266, %v4973_v8  ;;  %v5044_v22 = vsel %vm5040_vm7, %v5028_v3, %v5043_v40  ;;  %v4975_v9 = vshll.u32 %v17122_v26, %v4973_v8  ;;  %v20234_v8 = vld [vmem:[#allocation122_spill] sm:$0xff] }
 0x5a9   : > { %v17191_v51 = vmul.u32.u64.low %v5054_v42, %v5053_v35  ;;  %v17192_v21 = vmul.u32.u64.high %v5054_v42, %v5053_v35, %v17191_v51  ;;  %v17194_v12 = vmul.u32.u64.low %v5054_v42, %v5049_v11  ;;  %v17195_v23 = vmul.u32.u64.high %v5054_v42, %v5049_v11, %v17194_v12  ;;  %v20233_v35 = vld [vmem:[#allocation121_spill] sm:$0xff] }
 0x5aa   : > { %v4976_v43 = vshrl.u32 %v4958_v13, %v4974_v52  ;;  %v4979_v14 = vadd.s32 127, %v4978_v10  ;;  %v1519_v0 = vmul.f32 %v16679_v1, %v1448_v28  ;;  %vm4890_vm10 = vweird.f32 %v20199_v48 }
 0x5ab   : > { %v5946_v59 = vshrl.u32 %v5945_v45, 23  ;;  %vm4904_vm12 = vcmp.lt.s32.totalorder %v20203_v58, 0  ;;  %v5045_v31 = vsel %vm5039_vm11, %v5042_v41, %v5044_v22  ;;  %vm4893_vm9 = vcmp.lt.s32.totalorder %v4892_v2, 2 }
 0x5ac   : > { %vm4894_vm4 = vcmp.eq.s32.totalorder %v4892_v2, 0  ;;  %v4977_v3 = vor.u32 %v4976_v43, %v4975_v9  ;;  %v4980_v40 = vshll.u32 %v4979_v14, 23  ;;  %vm4897_vm2 = vcmp.eq.s32.totalorder %v4892_v2, 2 }
 0x5ad   : > { %v10799_v56 = vpop.eup %10798  ;;  %v4988_v26 = vsub.s32 4, %v17093_v32  ;;  %vm5063_vm14 = vc.u32 %v17192_v21, %v17194_v12  ;;  %v5064_v1 = vadd.s32 1, %v17195_v23  ;;  %v17209_v45 = vadd.f32 %v1519_v0, %v17099_v37  ;;  %v20235_v0 = vld [vmem:[#allocation116_spill] sm:$0xff] }
 0x5ae   : > { %v10801_v10 = vpop.eup %10800  ;;  %v4898_v52 = vxor.u32 2147483648, %v10799_v56  ;;  %v4981_v28 = vor.u32 4788187, %v4980_v40  ;;  %v5061_v54 = vmul.u32 %v5054_v42, %v5045_v31  ;;  %v19644_v13 = vand.u32 2147483647, %v20233_v35 }
 0x5af   : > { %20232 = vst [vmem:[#allocation103_spill] sm:$0xff] %v17209_v45  ;;  %v4895_v36 = vxor.u32 2147483648, %v10801_v10  ;;  %v5065_v11 = vsel %vm5063_vm14, %v5064_v1, %v17195_v23  ;;  %v5128_v41 = vshrl.u32 %v19731_v29, %v20234_v8  ;;  %v4984_v9 = vcvt.s32.f32 %v4977_v3  ;;  %v1163_v1 = vpop.permute.xlu1 %1162 }
 0x5b0   : > { %v4899_v22 = vsel %vm4897_vm2, %v4898_v52, %v10801_v10  ;;  %v4982_v51 = vand.u32 2147483647, %v4981_v28  ;;  %v5066_v43 = vadd.s32 %v5065_v11, %v5061_v54  ;;  %v4989_v37 = vsel %vm4904_vm12, %v4988_v26, %v17093_v32 }
 0x5b1   : > { %v4896_v14 = vsel %vm4894_vm4, %v10799_v56, %v4895_v36  ;;  %v5127_v42 = vshll.u32 %v19730_v18, %v20235_v0  ;;  %v5131_v23 = vshrl.u32 %v19820_v63, %v20234_v8  ;;  %v5130_v3 = vshll.u32 %v19731_v29, %v20235_v0 }
 0x5b2   : > { %v4900_v31 = vsel %vm4893_vm9, %v4896_v14, %v4899_v22  ;;  %v4985_v40 = vmul.f32 %v4984_v9, %v4982_v51  ;;  %v5067_v10 = vadd.s32 536870912, %v5066_v43  ;;  %v5117_v32 = vand.u32 8388607, %v19644_v13  ;;  %v20241_v22 = vld [vmem:[#allocation120_spill] sm:$0xff] }
 0x5b3   : > { %v4901_v56 = vsel %vm4890_vm10, nan, %v4900_v31  ;;  %v5133_v26 = vshll.u32 %v19820_v63, %v20235_v0  ;;  %v5134_v52 = vshrl.u32 %v19733_v61, %v20234_v8  ;;  %v5129_v54 = vor.u32 %v5128_v41, %v5127_v42 }
 0x5b4   : > { %9883 = vmatmul.mubr.msk.f32.gmra.mrb[30].mxu0 %vm6619_vm1, %v4901_v56  ;;  %v4986_v2 = vxor.u32 2147483648, %v4985_v40  ;;  %v17235_v28 = vshrl.u32 %v5067_v10, 30  ;;  %v5132_v36 = vor.u32 %v5131_v23, %v5130_v3  ;;  %v5661_v48 = vor.u32 %v17151_v30, %v17147_v27  ;;  %v20239_v23 = vld [vmem:[#allocation126_spill] sm:$0xff]  ;;  %v20240_v10 = vld [vmem:[#allocation48_spill] sm:$0xff] }
 0x5b5   : > { %v20236_v11 = vand.u32 2147483647, %v20203_v58  ;;  %v5841_v51 = vand.u32 2139095040, %v17209_v45  ;;  %v5135_v9 = vor.u32 %v5134_v52, %v5133_v26  ;;  %v9341_v14 = vadd.s32 4294967169, %v5946_v59  ;;  %v865_v59 = vpop.permute.xlu1 %864 }
 0x5b6   : > { %v4987_v0 = vsel %vm4904_vm12, %v4986_v2, %v4985_v40  ;;  %v5069_v42 = vshll.u32 %v17235_v28, 30  ;;  %v5118_v30 = vor.u32 8388608, %v5117_v32  ;;  %vm5142_vm15 = vcmp.lt.s32.totalorder %v20239_v23, 1 }
 0x5b7   : > { %vm17241_vm6 = vcmp.le.f32.partialorder %v20236_v11, 0.7853982  ;;  %vm5144_vm7 = vcmp.lt.s32.totalorder %v20239_v23, 3  ;;  %v5150_v40 = vsel %vm5142_vm15, %v5129_v54, %v5132_v36  ;;  %v5842_v3 = vshrl.u32 %v5841_v51, 23  ;;  %v20242_v51 = vld [vmem:[#allocation83_spill] sm:$0xff] }
 0x5b8   : > { %v4991_v41 = vsel %vm17241_vm6, 0, %v4989_v37  ;;  %v4990_v27 = vsel %vm17241_vm6, %v20203_v58, %v4987_v0  ;;  %v17256_v31 = vsub.s32 %v5066_v43, %v5069_v42  ;;  %v5152_v37 = vsel %vm5144_vm7, %v5135_v9, %v20240_v10 }
 0x5b9   : > { %10802 = vcosq.f32 %v4990_v27  ;;  %v5147_v56 = vsel %vm5145_vm5, %v5135_v9, 2102212464  ;;  %v5154_v32 = vsel %vm5142_vm15, %v5132_v36, %v5135_v9  ;;  %v4995_v26 = vadd.s32 3, %v4991_v41 }
 0x5ba   : > { %10804 = vsinq.f32 %v4990_v27  ;;  %v5072_v43 = vsub.s32 0, %v17256_v31  ;;  %v5126_v52 = vshrl.u32 %v19730_v18, %v20234_v8  ;;  %vm5143_vm11 = vcmp.lt.s32.totalorder %v20239_v23, 2 }
 0x5bb   : > { %v930_v2 = vmul.f32 %v17064_v7, %v865_v59  ;;  %v5153_v11 = vsel %vm5143_vm11, %v5150_v40, %v5152_v37  ;;  %v5156_v0 = vsel %vm5144_vm7, %v20242_v51, %v20241_v22  ;;  %v5158_v42 = vshll.u32 %v5118_v30, 8 }
 0x5bc   : > { %v9306_v9 = vmin.u32 %v5072_v43, %v17256_v31  ;;  %v5146_v41 = vsel %vm5142_vm15, %v5126_v52, %v5129_v54  ;;  %v5148_v8 = vsel %vm5144_vm7, %v5132_v36, %v5147_v56  ;;  %v5157_v27 = vsel %vm5143_vm11, %v5154_v32, %v5156_v0 }
 0x5bd   : > { %v17285_v59 = vmul.u32.u64.low %v5158_v42, %v5157_v27  ;;  %v17286_v10 = vmul.u32.u64.high %v5158_v42, %v5157_v27, %v17285_v59  ;;  %v17288_v40 = vmul.u32.u64.low %v5158_v42, %v5153_v11  ;;  %v17289_v37 = vmul.u32.u64.high %v5158_v42, %v5153_v11, %v17288_v40  ;;  %v17312_v11 = vpop.permute.xlu1 %869 }
 0x5be   : > { %vm5665_vm5 = vcmp.lt.s32.totalorder %v17130_v38, 4  ;;  %v4996_v30 = vand.u32 3, %v4995_v26  ;;  %v9337_v43 = vadd.s32 4294967169, %v5842_v3  ;;  %v5074_v22 = vclz %v9306_v9 }
 0x5bf   : > { %v17294_v54 = vsub.s32 32, %v17097_v47  ;;  %v17299_v36 = vsel %vm5665_vm5, %v17167_v55, 920167782  ;;  %v17303_v56 = vsel %vm5665_vm5, %v5661_v48, 1326507024  ;;  %v17305_v32 = vadd.s32 1, %v9341_v14 }
 0x5c0   : > { %20244 = vst [vmem:[#allocation100_spill] sm:$0xff] %v17299_v36  ;;  %20245 = vst [vmem:[#allocation71_spill] sm:$0xff] %v17303_v56  ;;  %vm4994_vm13 = vweird.f32 %v20203_v58  ;;  %v929_v3 = vmul.f32 %v17064_v7, %v17155_v25  ;;  %v9307_v26 = vadd.s32 4294967294, %v5074_v22  ;;  %v5149_v52 = vsel %vm5143_vm11, %v5146_v41, %v5148_v8 }
 0x5c1   : > { %20243 = vst [vmem:[#allocation42_spill] sm:$0xff] %v17294_v54  ;;  %v1228_v51 = vmul.f32 %v17045_v20, %v1163_v1  ;;  %v984_v0 = vadd.f32 %v17082_v49, %v930_v2  ;;  %vm5167_vm10 = vc.u32 %v17286_v10, %v17288_v40  ;;  %v5168_v48 = vadd.s32 1, %v17289_v37 }
 0x5c2   : > { %vm5008_vm12 = vcmp.lt.s32.totalorder %v20218_v17, 0  ;;  %vm4997_vm9 = vcmp.lt.s32.totalorder %v4996_v30, 2  ;;  %vm5001_vm4 = vcmp.eq.s32.totalorder %v4996_v30, 2  ;;  %v5848_v25 = vadd.s32 1, %v9337_v43 }
 0x5c3   : > { %v10803_v14 = vpop.eup %10802  ;;  %vm9308_vm2 = vcmp.lt.s32.totalorder %v9307_v26, 0  ;;  %v5165_v8 = vmul.u32 %v5158_v42, %v5149_v52  ;;  %v5169_v1 = vsel %vm5167_vm10, %v5168_v48, %v17289_v37  ;;  %v5062_v2 = vadd.s32 %v17194_v12, %v17192_v21 }
 0x5c4   : > { %v10805_v23 = vpop.eup %10804  ;;  %v5002_v9 = vxor.u32 2147483648, %v10803_v14  ;;  %v5077_v41 = vsel %vm9308_vm2, 0, %v9307_v26  ;;  %vm4998_vm14 = vcmp.eq.s32.totalorder %v4996_v30, 0  ;;  %v1277_v45 = vadd.f32 %v16821_v39, %v984_v0  ;;  %v1456_v26 = vpop.permute.xlu1 %1455 }
 0x5c5   : > { %v4999_v27 = vxor.u32 2147483648, %v10805_v23  ;;  %v5078_v59 = vsub.s32 32, %v5077_v41  ;;  %v5082_v22 = vsub.s32 4294967266, %v5077_v41  ;;  %v5170_v47 = vadd.s32 %v5169_v1, %v5165_v8  ;;  %v20252_v1 = vld [vmem:[#allocation79_spill] sm:$0xff] }
 0x5c6   : > { %v5003_v13 = vsel %vm5001_vm4, %v5002_v9, %v10805_v23  ;;  %v5079_v43 = vshll.u32 %v17256_v31, %v5077_v41  ;;  %vm5849_vm6 = vcmp.gt.s32.totalorder %v5848_v25, 0  ;;  %v5092_v37 = vsub.s32 4, %v17235_v28  ;;  %v20251_v41 = vld [vmem:[#allocation123_spill] sm:$0xff] }
 0x5c7   : > { %v5000_v54 = vsel %vm4998_vm14, %v10803_v14, %v4999_v27  ;;  %v5080_v36 = vshrl.u32 %v5062_v2, %v5078_v59  ;;  %v5083_v55 = vadd.s32 127, %v5082_v22  ;;  %v5171_v52 = vadd.s32 536870912, %v5170_v47 }
 0x5c8   : > { %v5004_v42 = vsel %vm4997_vm9, %v5000_v54, %v5003_v13  ;;  %v983_v12 = vadd.f32 %v17082_v49, %v929_v3  ;;  %vm5953_vm15 = vcmp.gt.s32.totalorder %v17305_v32, 0  ;;  %v20246_v31 = vand.u32 2147483647, %v20218_v17  ;;  %v17340_v54 = vld [vmem:[#allocation7 + $0x2] ss:$0 sm:$0xff] }
 0x5c9   : > { %v5005_v21 = vsel %vm4994_vm13, nan, %v5004_v42  ;;  %v5081_v48 = vor.u32 %v5080_v36, %v5079_v43  ;;  %v5084_v39 = vshll.u32 %v5083_v55, 23  ;;  %v17338_v13 = vshrl.u32 %v5171_v52, 30  ;;  %v20249_v55 = vld [vmem:[#allocation45_spill] sm:$0xff] }
 0x5ca   : > { %9885 = vmatprep.mubr.msk.f32.mxu0 %vm6619_vm1, %v5005_v21  ;;  %vm17334_vm7 = vcmp.le.f32.partialorder %v20246_v31, 0.7853982  ;;  %v1521_v58 = vmul.f32 %v17340_v54, %v1456_v26  ;;  %v5850_v0 = vsel %vm5849_vm6, %v5848_v25, 0  ;;  %v1276_v3 = vadd.f32 %v1228_v51, %v983_v12  ;;  %v20254_v43 = vld [vmem:[#allocation49_spill] sm:$0xff] }
 0x5cb   : > { %v5085_v36 = vor.u32 4788187, %v5084_v39  ;;  %v17344_v14 = vadd.f32 %v20249_v55, %v1277_v45  ;;  %v5093_v23 = vsel %vm5008_vm12, %v5092_v37, %v17235_v28  ;;  %v5173_v9 = vshll.u32 %v17338_v13, 30 }
 0x5cc   : > { %v19651_v8 = vand.u32 2147483647, %v20251_v41  ;;  %v5232_v27 = vshrl.u32 %v19731_v29, %v20252_v1  ;;  %v5088_v59 = vcvt.s32.f32 %v5081_v48  ;;  %v5235_v51 = vshrl.u32 %v19820_v63, %v20252_v1 }
 0x5cd   : > { %20250 = vst [vmem:[#allocation65_spill] sm:$0xff] %v17344_v14  ;;  %v5086_v2 = vand.u32 2147483647, %v5085_v36  ;;  %v5238_v45 = vshrl.u32 %v19733_v61, %v20252_v1  ;;  %v17357_v25 = vand.u32 31, %v5850_v0  ;;  %v17359_v22 = vsub.s32 %v5170_v47, %v5173_v9 }
 0x5ce   : > { %v17361_v28 = vadd.f32 %v1521_v58, %v1276_v3  ;;  %v5237_v26 = vshll.u32 %v19820_v63, %v20254_v43  ;;  %v6153_v37 = vand.u32 2139095040, %v17344_v14  ;;  %v5231_v52 = vshll.u32 %v19730_v18, %v20254_v43 }
 0x5cf   : > { %v5089_v42 = vmul.f32 %v5088_v59, %v5086_v2  ;;  %v5234_v21 = vshll.u32 %v19731_v29, %v20254_v43  ;;  %v17373_v12 = vsel %vm5953_vm15, %v17305_v32, 0  ;;  %v5095_v47 = vsel %vm17334_vm7, 0, %v5093_v23 }
 0x5d0   : > { %20253 = vst [vmem:[#allocation75_spill] sm:$0xff] %v17361_v28  ;;  %v5176_v48 = vsub.s32 0, %v17359_v22  ;;  %v5239_v39 = vor.u32 %v5238_v45, %v5237_v26  ;;  %v5221_v58 = vand.u32 8388607, %v19651_v8  ;;  %v5233_v3 = vor.u32 %v5232_v27, %v5231_v52 }
 0x5d1   : > { %v5090_v31 = vxor.u32 2147483648, %v5089_v42  ;;  %v5236_v36 = vor.u32 %v5235_v51, %v5234_v21  ;;  %v17380_v55 = vshrl.u32 %v5850_v0, 5  ;;  %v17383_v9 = vsub.s32 32, %v17357_v25 }
 0x5d2   : > { %v9310_v32 = vmin.u32 %v5176_v48, %v17359_v22  ;;  %v6049_v2 = vand.u32 2139095040, %v17361_v28  ;;  %v5099_v59 = vadd.s32 3, %v5095_v47  ;;  %v6154_v45 = vshrl.u32 %v6153_v37, 23 }
 0x5d3   : > { %v5091_v23 = vsel %vm5008_vm12, %v5090_v31, %v5089_v42  ;;  %v5230_v43 = vshrl.u32 %v19730_v18, %v20252_v1  ;;  %vm5246_vm11 = vcmp.lt.s32.totalorder %v16627_v46, 1  ;;  %v5251_v51 = vsel %vm5249_vm0, %v5239_v39, 2102212464 }
 0x5d4   : > { %v5094_v0 = vsel %vm17334_vm7, %v20218_v17, %v5091_v23  ;;  %v5178_v27 = vclz %v9310_v32  ;;  %v5222_v26 = vor.u32 8388608, %v5221_v58  ;;  %vm5248_vm13 = vcmp.lt.s32.totalorder %v16627_v46, 3 }
 0x5d5   : > { %10806 = vcosq.f32 %v5094_v0  ;;  %v5254_v42 = vsel %vm5246_vm11, %v5233_v3, %v5236_v36  ;;  %v6050_v52 = vshrl.u32 %v6049_v2, 23  ;;  %v5256_v1 = vsel %vm5248_vm13, %v5239_v39, %v16810_v24 }
 0x5d6   : > { %10808 = vsinq.f32 %v5094_v0  ;;  %v9311_v37 = vadd.s32 4294967294, %v5178_v27  ;;  %vm5247_vm10 = vcmp.lt.s32.totalorder %v16627_v46, 2  ;;  %v5250_v30 = vsel %vm5246_vm11, %v5230_v43, %v5233_v3 }
 0x5d7   : > { %v5252_v21 = vsel %vm5248_vm13, %v5236_v36, %v5251_v51  ;;  %v5258_v47 = vsel %vm5246_vm11, %v5236_v36, %v5239_v39  ;;  %v5100_v48 = vand.u32 3, %v5099_v59  ;;  %v5257_v31 = vsel %vm5247_vm10, %v5254_v42, %v5256_v1  ;;  %v17417_v51 = vpop.permute.xlu1 %1170 }
 0x5d8   : > { %vm9312_vm12 = vcmp.lt.s32.totalorder %v9311_v37, 0  ;;  %v5260_v32 = vsel %vm5248_vm13, %v16751_v53, %v16818_v50  ;;  %v5166_v58 = vadd.s32 %v17288_v40, %v17286_v10  ;;  %v5262_v27 = vshll.u32 %v5222_v26, 8  ;;  %v20255_v40 = vld [vmem:[#allocation128_spill] sm:$0xff] }
 0x5d9   : > { %v5181_v23 = vsel %vm9312_vm12, 0, %v9311_v37  ;;  %v5261_v0 = vsel %vm5247_vm10, %v5258_v47, %v5260_v32  ;;  %v9345_v24 = vadd.s32 4294967169, %v6050_v52  ;;  %v5253_v14 = vsel %vm5247_vm10, %v5250_v30, %v5252_v21  ;;  %v20259_v21 = vld [vmem:[#allocation53_spill] sm:$0xff] }
 0x5da   : > { %v5182_v2 = vsub.s32 32, %v5181_v23  ;;  %v5186_v8 = vsub.s32 4294967266, %v5181_v23  ;;  %v17404_v46 = vmul.u32.u64.low %v5262_v27, %v5261_v0  ;;  %v17405_v3 = vmul.u32.u64.high %v5262_v27, %v5261_v0, %v17404_v46  ;;  %v20260_v0 = vld [vmem:[#allocation125_spill] sm:$0xff] }
 0x5db   : > { %v17407_v39 = vmul.u32.u64.low %v5262_v27, %v5257_v31  ;;  %v17408_v36 = vmul.u32.u64.high %v5262_v27, %v5257_v31, %v17407_v39  ;;  %vm5098_vm0 = vweird.f32 %v20218_v17  ;;  %vm5112_vm9 = vcmp.lt.s32.totalorder %v20233_v35, 0  ;;  %v20261_v17 = vld [vmem:[#allocation50_spill] sm:$0xff] }
 0x5dc   : > { %v5183_v53 = vshll.u32 %v17359_v22, %v5181_v23  ;;  %v5184_v50 = vshrl.u32 %v5166_v58, %v5182_v2  ;;  %v5187_v10 = vadd.s32 127, %v5186_v8  ;;  %v19654_v59 = vand.u32 2147483647, %v20255_v40 }
 0x5dd   : > { %vm5101_vm4 = vcmp.lt.s32.totalorder %v5100_v48, 2  ;;  %vm5102_vm2 = vcmp.eq.s32.totalorder %v5100_v48, 0  ;;  %vm5105_vm14 = vcmp.eq.s32.totalorder %v5100_v48, 2  ;;  %v17415_v43 = vadd.s32 4294967169, %v6154_v45 }
 0x5de   : > { %v5185_v26 = vor.u32 %v5184_v50, %v5183_v53  ;;  %v5188_v42 = vshll.u32 %v5187_v10, 23  ;;  %v5196_v37 = vsub.s32 4, %v17338_v13  ;;  %v17420_v52 = vadd.s32 1, %v9345_v24 }
 0x5df   : > { %v10807_v1 = vpop.eup %10806  ;;  %v20256_v22 = vand.u32 2147483647, %v20233_v35  ;;  %v5269_v30 = vmul.u32 %v5262_v27, %v5253_v14  ;;  %vm5271_vm15 = vc.u32 %v17405_v3, %v17407_v39  ;;  %v5272_v45 = vadd.s32 1, %v17408_v36 }
 0x5e0   : > { %v5336_v47 = vshrl.u32 %v19731_v29, %v20259_v21  ;;  %v10809_v31 = vpop.eup %10808  ;;  %v5106_v32 = vxor.u32 2147483648, %v10807_v1  ;;  %v5189_v58 = vor.u32 4788187, %v5188_v42  ;;  %v5325_v23 = vand.u32 8388607, %v19654_v59  ;;  %v17444_v59 = vpop.permute.xlu1 %874 }
 0x5e1   : > { %vm17424_vm6 = vcmp.le.f32.partialorder %v20256_v22, 0.7853982  ;;  %v5335_v2 = vshll.u32 %v19730_v18, %v20260_v0  ;;  %v5103_v24 = vxor.u32 2147483648, %v10809_v31  ;;  %v5192_v46 = vcvt.s32.f32 %v5185_v26 }
 0x5e2   : > { %v5273_v14 = vsel %vm5271_vm15, %v5272_v45, %v17408_v36  ;;  %v5338_v27 = vshll.u32 %v19731_v29, %v20260_v0  ;;  %v5107_v53 = vsel %vm5105_vm14, %v5106_v32, %v10809_v31  ;;  %v5190_v50 = vand.u32 2147483647, %v5189_v58 }
 0x5e3   : > { %v5274_v10 = vadd.s32 %v5273_v14, %v5269_v30  ;;  %v5339_v42 = vshrl.u32 %v19820_v63, %v20259_v21  ;;  %v5104_v22 = vsel %vm5102_vm2, %v10807_v1, %v5103_v24  ;;  %v5337_v28 = vor.u32 %v5336_v47, %v5335_v2 }
 0x5e4   : > { %v5341_v26 = vshll.u32 %v19820_v63, %v20260_v0  ;;  %v5342_v36 = vshrl.u32 %v19733_v61, %v20259_v21  ;;  %v5108_v45 = vsel %vm5101_vm4, %v5104_v22, %v5107_v53  ;;  %v5193_v56 = vmul.f32 %v5192_v46, %v5190_v50 }
 0x5e5   : > { %v5275_v31 = vadd.s32 536870912, %v5274_v10  ;;  %v5340_v32 = vor.u32 %v5339_v42, %v5338_v27  ;;  %v5109_v30 = vsel %vm5098_vm0, nan, %v5108_v45  ;;  %v5197_v1 = vsel %vm5112_vm9, %v5196_v37, %v17338_v13  ;;  %v20262_v37 = vld [vmem:[#allocation57_spill] sm:$0xff]  ;;  %v17487_v42 = vpop.permute.xlu1 %879 }
 0x5e6   : > { %v5326_v58 = vor.u32 8388608, %v5325_v23  ;;  %v5343_v47 = vor.u32 %v5342_v36, %v5341_v26  ;;  %9886 = vmatmul.mubr.msk.f32.gmra.mrb[32].mxu0 %vm6619_vm1, %v5109_v30  ;;  %v5194_v0 = vxor.u32 2147483648, %v5193_v56  ;;  %vm5350_vm7 = vcmp.lt.s32.totalorder %v16561_v57, 1  ;;  %v6615_v30 = vld [vmem:[#allocation10 + $0x8] sm:$0xff] }
 0x5e7   : > { %v17457_v2 = vshrl.u32 %v5275_v31, 30  ;;  %vm5352_vm11 = vcmp.lt.s32.totalorder %v16561_v57, 3  ;;  %v5358_v48 = vsel %vm5350_vm7, %v5337_v28, %v5340_v32  ;;  %v5199_v14 = vsel %vm17424_vm6, 0, %v5197_v1  ;;  %v6614_v31 = vld [vmem:[#allocation10] sm:$0xff] }
 0x5e8   : > { %v5360_v24 = vsel %vm5352_vm11, %v5343_v47, %v20261_v17  ;;  %v5362_v13 = vsel %vm5350_vm7, %v5340_v32, %v5343_v47  ;;  %v5364_v23 = vsel %vm5352_vm11, %v20262_v37, %v16805_v62  ;;  %v5195_v46 = vsel %vm5112_vm9, %v5194_v0, %v5193_v56 }
 0x5e9   : > { %v5277_v27 = vshll.u32 %v17457_v2, 30  ;;  %vm5351_vm13 = vcmp.lt.s32.totalorder %v16561_v57, 2  ;;  %v5198_v53 = vsel %vm17424_vm6, %v20233_v35, %v5195_v46  ;;  %v5334_v50 = vshrl.u32 %v19730_v18, %v20259_v21 }
 0x5ea   : > { %v5355_v62 = vsel %vm5353_vm3, %v5343_v47, 2102212464  ;;  %v5365_v56 = vsel %vm5351_vm13, %v5362_v13, %v5364_v23  ;;  %10810 = vcosq.f32 %v5198_v53  ;;  %v5361_v26 = vsel %vm5351_vm13, %v5358_v48, %v5360_v24 }
 0x5eb   : > { %v17489_v22 = vsub.s32 %v5274_v10, %v5277_v27  ;;  %v5366_v36 = vshll.u32 %v5326_v58, 8  ;;  %v5865_v8 = vshrl.u32 %v19960_v60, %v17383_v9  ;;  %v6160_v21 = vadd.s32 1, %v17415_v43 }
 0x5ec   : > { %10812 = vsinq.f32 %v5198_v53  ;;  %v5354_v45 = vsel %vm5350_vm7, %v5334_v50, %v5337_v28  ;;  %v5356_v10 = vsel %vm5352_vm11, %v5340_v32, %v5355_v62  ;;  %v5864_v58 = vshll.u32 %v19733_v61, %v17357_v25 }
 0x5ed   : > { %v5280_v1 = vsub.s32 0, %v17489_v22  ;;  %v17501_v47 = vmul.u32.u64.low %v5366_v36, %v5365_v56  ;;  %v17502_v0 = vmul.u32.u64.high %v5366_v36, %v5365_v56, %v17501_v47  ;;  %v5203_v48 = vadd.s32 3, %v5199_v14  ;;  %v1464_v14 = vpop.permute.xlu1 %1463 }
 0x5ee   : > { %v17506_v17 = vmul.u32.u64.low %v5366_v36, %v5361_v26  ;;  %v17507_v43 = vmul.u32.u64.high %v5366_v36, %v5361_v26, %v17506_v17  ;;  %v931_v28 = vmul.f32 %v17064_v7, %v17312_v11  ;;  %vm6057_vm3 = vcmp.gt.s32.totalorder %v17420_v52, 0 }
 0x5ef   : > { %v9314_v24 = vmin.u32 %v5280_v1, %v17489_v22  ;;  %v10165_v13 = vpack.c.bf16 %v6615_v30, %v6614_v31  ;;  %v17515_v32 = vand.u32 31, %v17373_v12  ;;  %v17519_v37 = vshll.u32 %v19960_v60, %v17357_v25 }
 0x5f0   : > { %v5868_v23 = vshrl.u32 %v19968_v4, %v17383_v9  ;;  %v5357_v46 = vsel %vm5351_vm13, %v5354_v45, %v5356_v10  ;;  %v17525_v11 = vor.u32 %v5865_v8, %v5864_v58  ;;  %vm6161_vm10 = vcmp.gt.s32.totalorder %v6160_v21, 0 }
 0x5f1   : > { %v1230_v27 = vmul.f32 %v17045_v20, %v17417_v51  ;;  %v5282_v53 = vclz %v9314_v24  ;;  %10166 = vmatprep.subr.bf16.mxu0 %v10165_v13  ;;  %v5204_v50 = vand.u32 3, %v5203_v48  ;;  %v17532_v62 = vsel %vm6057_vm3, %v17420_v52, 0 }
 0x5f2   : > { %vm5375_vm12 = vc.u32 %v17502_v0, %v17506_v17  ;;  %v5376_v57 = vadd.s32 1, %v17507_v43  ;;  %10168 = vmatpush3.bf16.msra.mxu0 %v10165_v13  ;;  %vm5873_vm0 = vcmp.lt.s32.totalorder %v17380_v55, 4  ;;  %v985_v56 = vadd.f32 %v17082_v49, %v931_v28 }
 0x5f3   : > { %v9315_v26 = vadd.s32 4294967294, %v5282_v53  ;;  %v5373_v51 = vmul.u32 %v5366_v36, %v5357_v46  ;;  %v1523_v8 = vmul.f32 %v17340_v54, %v1464_v14  ;;  %v5869_v45 = vor.u32 %v5868_v23, %v17519_v37 }
 0x5f4   : > { %v6162_v31 = vsel %vm6161_vm10, %v6160_v21, 0  ;;  %vm5202_vm9 = vweird.f32 %v20233_v35  ;;  %v5377_v52 = vsel %vm5375_vm12, %v5376_v57, %v17507_v43  ;;  %v10811_v30 = vpop.eup %10810  ;;  %vm5216_vm4 = vcmp.lt.s32.totalorder %v20251_v41, 0 }
 0x5f5   : > { %v17545_v1 = vand.u32 31, %v17532_v62  ;;  %v1278_v10 = vadd.f32 %v1230_v27, %v985_v56  ;;  %vm9316_vm2 = vcmp.lt.s32.totalorder %v9315_v26, 0  ;;  %v5378_v47 = vadd.s32 %v5377_v52, %v5373_v51  ;;  %v1179_v52 = vpop.permute.xlu1 %1178 }
 0x5f6   : > { %v10813_v58 = vpop.eup %10812  ;;  %vm5209_vm14 = vcmp.eq.s32.totalorder %v5204_v50, 2  ;;  %v5210_v36 = vxor.u32 2147483648, %v10811_v30  ;;  %v5270_v48 = vadd.s32 %v17407_v39, %v17405_v3  ;;  %v5285_v21 = vsel %vm9316_vm2, 0, %v9315_v26 }
 0x5f7   : > { %v5207_v28 = vxor.u32 2147483648, %v10813_v58  ;;  %v5286_v24 = vsub.s32 32, %v5285_v21  ;;  %v5290_v13 = vsub.s32 4294967266, %v5285_v21  ;;  %v17549_v43 = vadd.f32 %v1523_v8, %v1278_v10 }
 0x5f8   : > { %vm5205_vm6 = vcmp.lt.s32.totalorder %v5204_v50, 2  ;;  %vm5206_vm15 = vcmp.eq.s32.totalorder %v5204_v50, 0  ;;  %v5211_v37 = vsel %vm5209_vm14, %v5210_v36, %v10813_v58  ;;  %v5379_v23 = vadd.s32 536870912, %v5378_v47 }
 0x5f9   : > { %20263 = vst [vmem:[#allocation38_spill] sm:$0xff] %v17549_v43  ;;  %v5208_v46 = vsel %vm5206_vm15, %v10811_v30, %v5207_v28  ;;  %v5287_v14 = vshll.u32 %v17489_v22, %v5285_v21  ;;  %v5288_v27 = vshrl.u32 %v5270_v48, %v5286_v24  ;;  %v5291_v53 = vadd.s32 127, %v5290_v13 }
 0x5fa   : > { %v5212_v57 = vsel %vm5205_vm6, %v5208_v46, %v5211_v37  ;;  %v17553_v56 = vsub.s32 32, %v17545_v1  ;;  %v5300_v3 = vsub.s32 4, %v17457_v2  ;;  %v17556_v39 = vshrl.u32 %v5379_v23, 30  ;;  %v1472_v46 = vpop.permute.xlu0 %1471 }
 0x5fb   : > { %v5213_v26 = vsel %vm5202_vm9, nan, %v5212_v57  ;;  %v5289_v51 = vor.u32 %v5288_v27, %v5287_v14  ;;  %v5292_v50 = vshll.u32 %v5291_v53, 23  ;;  %v6257_v8 = vand.u32 2139095040, %v17549_v43 }
 0x5fc   : > { %v17562_v22 = vshrl.u32 %v17373_v12, 5  ;;  %v17567_v30 = vsel %vm5873_vm0, %v17525_v11, 920167782  ;;  %9888 = vmatprep.mubr.msk.f32.mxu0 %vm6619_vm1, %v5213_v26  ;;  %v5381_v10 = vshll.u32 %v17556_v39, 30  ;;  %v933_v35 = vmul.f32 %v17064_v7, %v17487_v42 }
 0x5fd   : > { %v17574_v58 = vsub.s32 32, %v17515_v32  ;;  %v17578_v36 = vsel %vm5873_vm0, %v5869_v45, 1326507024  ;;  %v17580_v12 = vshrl.u32 %v6162_v31, 5  ;;  %v5293_v48 = vor.u32 4788187, %v5292_v50 }
 0x5fe   : > { %v20265_v21 = vand.u32 2147483647, %v20251_v41  ;;  %v5301_v7 = vsel %vm5216_vm4, %v5300_v3, %v17457_v2  ;;  %v17591_v42 = vsub.s32 %v5378_v47, %v5381_v10  ;;  %v1232_v24 = vmul.f32 %v17045_v20, %v1179_v52  ;;  %v20268_v2 = vld [vmem:[#allocation56_spill] sm:$0xff] }
 0x5ff   : > { %20264 = vst [vmem:[#allocation96_spill] sm:$0xff] %v17580_v12  ;;  %v6073_v45 = vshrl.u32 %v19960_v60, %v17553_v56  ;;  %v5294_v13 = vand.u32 2147483647, %v5293_v48  ;;  %v5296_v37 = vcvt.s32.f32 %v5289_v51  ;;  %v6258_v23 = vshrl.u32 %v6257_v8, 23 }
 0x600   : > { %vm17584_vm7 = vcmp.le.f32.partialorder %v20265_v21, 0.7853982  ;;  %v17598_v14 = vshrl.u32 %v19968_v4, %v17553_v56  ;;  %v5384_v27 = vsub.s32 0, %v17591_v42  ;;  %v987_v53 = vadd.f32 %v17082_v49, %v933_v35 }
 0x601   : > { %v19657_v47 = vand.u32 2147483647, %v20268_v2  ;;  %v17603_v57 = vand.u32 31, %v6162_v31  ;;  %v6072_v20 = vshll.u32 %v19733_v61, %v17545_v1  ;;  %v5297_v3 = vmul.f32 %v5296_v37, %v5294_v13 }
 0x602   : > { %v5303_v26 = vsel %vm17584_vm7, 0, %v5301_v7  ;;  %v17611_v51 = vshll.u32 %v19960_v60, %v17545_v1  ;;  %v9318_v50 = vmin.u32 %v5384_v27, %v17591_v42  ;;  %v1280_v8 = vadd.f32 %v1232_v24, %v987_v53 }
 0x603   : > { %v1525_v49 = vmul.f32 %v17340_v54, %v1472_v46  ;;  %v17616_v52 = vshrl.u32 %v17532_v62, 5  ;;  %v17618_v31 = vor.u32 %v6073_v45, %v6072_v20  ;;  %v5298_v10 = vxor.u32 2147483648, %v5297_v3 }
 0x604   : > { %v9353_v35 = vadd.s32 4294967169, %v6258_v23  ;;  %v5307_v21 = vadd.s32 3, %v5303_v26  ;;  %v5386_v7 = vclz %v9318_v50  ;;  %v5429_v13 = vand.u32 8388607, %v19657_v47 }
 0x605   : > { %v5299_v24 = vsel %vm5216_vm4, %v5298_v10, %v5297_v3  ;;  %v5439_v37 = vshll.u32 %v19730_v18, %v16877_v5  ;;  %v5440_v62 = vshrl.u32 %v19731_v29, %v16896_v16  ;;  %v5443_v45 = vshrl.u32 %v19820_v63, %v16896_v16 }
 0x606   : > { %v5302_v23 = vsel %vm17584_vm7, %v20251_v41, %v5299_v24  ;;  %v9319_v46 = vadd.s32 4294967294, %v5386_v7  ;;  %v17635_v27 = vadd.f32 %v1525_v49, %v1280_v8  ;;  %v5446_v53 = vshrl.u32 %v19733_v61, %v16896_v16 }
 0x607   : > { %10814 = vcosq.f32 %v5302_v23  ;;  %v6264_v20 = vadd.s32 1, %v9353_v35  ;;  %v5442_v3 = vshll.u32 %v19731_v29, %v16877_v5  ;;  %v5445_v26 = vshll.u32 %v19820_v63, %v16877_v5 }
 0x608   : > { %20269 = vst [vmem:[#allocation93_spill] sm:$0xff] %v17635_v27  ;;  %10816 = vsinq.f32 %v5302_v23  ;;  %v5308_v50 = vand.u32 3, %v5307_v21  ;;  %vm5320_vm11 = vcmp.lt.s32.totalorder %v20255_v40, 0  ;;  %vm9320_vm13 = vcmp.lt.s32.totalorder %v9319_v46, 0 }
 0x609   : > { %v5389_v28 = vsel %vm9320_vm13, 0, %v9319_v46  ;;  %v5441_v10 = vor.u32 %v5440_v62, %v5439_v37  ;;  %v5444_v8 = vor.u32 %v5443_v45, %v5442_v3  ;;  %v5447_v49 = vor.u32 %v5446_v53, %v5445_v26 }
 0x60a   : > { %v5374_v7 = vadd.s32 %v17506_v17, %v17502_v0  ;;  %v5390_v24 = vsub.s32 32, %v5389_v28  ;;  %v5394_v35 = vsub.s32 4294967266, %v5389_v28  ;;  %v6465_v47 = vand.u32 2139095040, %v17635_v27 }
 0x60b   : > { %vm6265_vm3 = vcmp.gt.s32.totalorder %v6264_v20, 0  ;;  %v5430_v48 = vor.u32 8388608, %v5429_v13  ;;  %v5438_v5 = vshrl.u32 %v19730_v18, %v16896_v16  ;;  %vm5454_vm10 = vcmp.lt.s32.totalorder %v16888_v34, 1 }
 0x60c   : > { %v5391_v21 = vshll.u32 %v17591_v42, %v5389_v28  ;;  %v5392_v23 = vshrl.u32 %v5374_v7, %v5390_v24  ;;  %v5395_v37 = vadd.s32 127, %v5394_v35  ;;  %vm5456_vm12 = vcmp.lt.s32.totalorder %v16888_v34, 3 }
 0x60d   : > { %vm5313_vm9 = vcmp.eq.s32.totalorder %v5308_v50, 2  ;;  %v5404_v0 = vsub.s32 4, %v17556_v39  ;;  %v5462_v17 = vsel %vm5454_vm10, %v5441_v10, %v5444_v8  ;;  %v5464_v13 = vsel %vm5456_vm12, %v5447_v49, %v17059_v44 }
 0x60e   : > { %vm5306_vm4 = vweird.f32 %v20251_v41  ;;  %v5393_v16 = vor.u32 %v5392_v23, %v5391_v21  ;;  %v5396_v62 = vshll.u32 %v5395_v37, 23  ;;  %v6466_v45 = vshrl.u32 %v6465_v47, 23 }
 0x60f   : > { %v5459_v42 = vsel %vm5457_vm8, %v5447_v49, 2102212464  ;;  %v6266_v46 = vsel %vm6265_vm3, %v6264_v20, 0  ;;  %vm5455_vm2 = vcmp.lt.s32.totalorder %v16888_v34, 2  ;;  %v5466_v53 = vsel %vm5454_vm10, %v5444_v8, %v5447_v49 }
 0x610   : > { %v5468_v44 = vsel %vm5456_vm12, %v17014_v33, %v17087_v19  ;;  %v5397_v3 = vor.u32 4788187, %v5396_v62  ;;  %v5465_v26 = vsel %vm5455_vm2, %v5462_v17, %v5464_v13  ;;  %v5470_v28 = vshll.u32 %v5430_v48, 8 }
 0x611   : > { %v5469_v47 = vsel %vm5455_vm2, %v5466_v53, %v5468_v44  ;;  %v10815_v7 = vpop.eup %10814  ;;  %v5400_v20 = vcvt.s32.f32 %v5393_v16  ;;  %v5405_v24 = vsel %vm5320_vm11, %v5404_v0, %v17556_v39  ;;  %v5458_v49 = vsel %vm5454_vm10, %v5438_v5, %v5441_v10 }
 0x612   : > { %v5460_v33 = vsel %vm5456_vm12, %v5444_v8, %v5459_v42  ;;  %v10817_v19 = vpop.eup %10816  ;;  %v5314_v35 = vxor.u32 2147483648, %v10815_v7  ;;  %v5398_v21 = vand.u32 2147483647, %v5397_v3  ;;  %v9361_v48 = vadd.s32 4294967169, %v6466_v45 }
 0x613   : > { %v17680_v23 = vmul.u32.u64.low %v5470_v28, %v5469_v47  ;;  %v17681_v37 = vmul.u32.u64.high %v5470_v28, %v5469_v47, %v17680_v23  ;;  %v5311_v17 = vxor.u32 2147483648, %v10817_v19  ;;  %vm5310_vm8 = vcmp.eq.s32.totalorder %v5308_v50, 0 }
 0x614   : > { %v17683_v13 = vmul.u32.u64.low %v5470_v28, %v5465_v26  ;;  %v17684_v16 = vmul.u32.u64.high %v5470_v28, %v5465_v26, %v17683_v13  ;;  %v5315_v39 = vsel %vm5313_vm9, %v5314_v35, %v10817_v19  ;;  %v20270_v10 = vand.u32 2147483647, %v20255_v40  ;;  %v11094_v26 = vld [vmem:[#allocation7] ss:$0 sm:$0xff]  ;;  %v11095_v23 = vld [vmem:[#allocation8] ss:$0 sm:$0xff] }
 0x615   : > { %v5401_v8 = vmul.f32 %v5400_v20, %v5398_v21  ;;  %vm5309_vm6 = vcmp.lt.s32.totalorder %v5308_v50, 2  ;;  %v5312_v0 = vsel %vm5310_vm8, %v10815_v7, %v5311_v17  ;;  %v5461_v45 = vsel %vm5455_vm2, %v5458_v49, %v5460_v33 }
 0x616   : > { %vm17690_vm14 = vcmp.le.f32.partialorder %v20270_v10, 0.7853982  ;;  %v5316_v42 = vsel %vm5309_vm6, %v5312_v0, %v5315_v39  ;;  %v17698_v44 = vand.u32 31, %v6266_v46  ;;  %vm5479_vm15 = vc.u32 %v17681_v37, %v17683_v13  ;;  %v20277_v10 = vld [vmem:[#allocation63_spill] sm:$0xff] }
 0x617   : > { %v5407_v62 = vsel %vm17690_vm14, 0, %v5405_v24  ;;  %v5402_v53 = vxor.u32 2147483648, %v5401_v8  ;;  %v5317_v3 = vsel %vm5306_vm4, nan, %v5316_v42  ;;  %v932_v50 = vmul.f32 %v11094_v26, %v17444_v59 }
 0x618   : > { %20273 = vst [vmem:[#allocation72_spill] sm:$0xff] %v17698_v44  ;;  %v6472_v47 = vadd.s32 1, %v9361_v48  ;;  %v5480_v7 = vadd.s32 1, %v17684_v16  ;;  %vm6081_vm7 = vcmp.lt.s32.totalorder %v17616_v52, 4  ;;  %9889 = vmatmul.mubr.msk.f32.gmra.mrb[34].mxu0 %vm6619_vm1, %v5317_v3  ;;  %v5411_v20 = vadd.s32 3, %v5407_v62 }
 0x619   : > { %v5403_v34 = vsel %vm5320_vm11, %v5402_v53, %v5401_v8  ;;  %v5477_v24 = vmul.u32 %v5470_v28, %v5461_v45  ;;  %v17711_v49 = vsub.s32 32, %v17603_v57  ;;  %v17716_v41 = vsel %vm6081_vm7, %v17618_v31, 920167782 }
 0x61a   : > { %v5406_v59 = vsel %vm17690_vm14, %v20255_v40, %v5403_v34  ;;  %v5481_v33 = vsel %vm5479_vm15, %v5480_v7, %v17684_v16  ;;  %v20274_v19 = vor.u32 %v17598_v14, %v17611_v51  ;;  %v17730_v35 = vsub.s32 32, %v17698_v44 }
 0x61b   : > { %10818 = vcosq.f32 %v5406_v59  ;;  %v5482_v21 = vadd.s32 %v5481_v33, %v5477_v24  ;;  %v986_v17 = vadd.f32 %v11095_v23, %v932_v50  ;;  %v17732_v48 = vshrl.u32 %v6266_v46, 5 }
 0x61c   : > { %v17727_v28 = vsel %vm6081_vm7, %v20274_v19, 1326507024  ;;  %20275 = vst [vmem:[#allocation41_spill] sm:$0xff] %v17730_v35  ;;  %10820 = vsinq.f32 %v5406_v59  ;;  %vm6473_vm11 = vcmp.gt.s32.totalorder %v6472_v47, 0  ;;  %v5412_v39 = vand.u32 3, %v5411_v20  ;;  %v1468_v20 = vpop.permute.xlu1 %1467 }
 0x61d   : > { %20276 = vst [vmem:[#allocation64_spill] sm:$0xff] %v17732_v48  ;;  %v5483_v16 = vadd.s32 536870912, %v5482_v21  ;;  %v19658_v5 = vand.u32 2147483647, %v20277_v10  ;;  %v5553_v14 = vshrl.u32 %v19960_v60, %v17051_v15  ;;  %v6280_v51 = vshll.u32 %v19733_v61, %v17698_v44 }
 0x61e   : > { %v17741_v8 = vshll.u32 %v19960_v60, %v17698_v44  ;;  %v5544_v0 = vshrl.u32 %v19731_v29, %v17051_v15  ;;  %v5552_v46 = vshll.u32 %v19733_v61, %v16852_v6  ;;  %v6281_v62 = vshrl.u32 %v19960_v60, %v17730_v35 }
 0x61f   : > { %v5484_v45 = vshrl.u32 %v5483_v16, 30  ;;  %v5547_v42 = vshrl.u32 %v19820_v63, %v17051_v15  ;;  %v5550_v53 = vshrl.u32 %v19733_v61, %v17051_v15  ;;  %v17755_v3 = vshrl.u32 %v19968_v4, %v17730_v35 }
 0x620   : > { %v17757_v26 = vsel %vm6473_vm11, %v6472_v47, 0  ;;  %v5543_v50 = vshll.u32 %v19730_v18, %v16852_v6  ;;  %v5554_v7 = vor.u32 %v5553_v14, %v5552_v46  ;;  %vm5424_vm13 = vcmp.lt.s32.totalorder %v20268_v2, 0  ;;  %v20278_v46 = vld [vmem:[#allocation94_spill] sm:$0xff] }
 0x621   : > { %vm5413_vm3 = vcmp.lt.s32.totalorder %v5412_v39, 2  ;;  %v5485_v34 = vshll.u32 %v5484_v45, 30  ;;  %v5533_v24 = vand.u32 8388607, %v19658_v5  ;;  %v5546_v59 = vshll.u32 %v19731_v29, %v16852_v6 }
 0x622   : > { %v5549_v33 = vshll.u32 %v19820_v63, %v16852_v6  ;;  %vm5410_vm10 = vweird.f32 %v20255_v40  ;;  %vm5414_vm12 = vcmp.eq.s32.totalorder %v5412_v39, 0  ;;  %vm5417_vm9 = vcmp.eq.s32.totalorder %v5412_v39, 2 }
 0x623   : > { %v5545_v47 = vor.u32 %v5544_v0, %v5543_v50  ;;  %v5556_v19 = vshrl.u32 %v19968_v4, %v17051_v15  ;;  %v17771_v23 = vsub.s32 %v5482_v21, %v5485_v34  ;;  %v5548_v16 = vor.u32 %v5547_v42, %v5546_v59 }
 0x624   : > { %v5551_v14 = vor.u32 %v5550_v53, %v5549_v33  ;;  %vm5561_vm4 = vcmp.lt.s32.totalorder %v20278_v46, 4  ;;  %v17774_v5 = vor.u32 %v6281_v62, %v6280_v51  ;;  %v1524_v27 = vmul.f32 %v17340_v54, %v1468_v20  ;;  %v20283_v53 = vld [vmem:[#allocation87_spill] sm:$0xff] }
 0x625   : > { %v5555_v44 = vshll.u32 %v19960_v60, %v16852_v6  ;;  %v5567_v35 = vsel %vm5561_vm4, %v5554_v7, 920167782  ;;  %v10819_v0 = vpop.eup %10818  ;;  %v20280_v50 = vand.u32 2147483647, %v20268_v2  ;;  %v5488_v42 = vsub.s32 0, %v17771_v23 }
 0x626   : > { %20279 = vst [vmem:[#allocation66_spill] sm:$0xff] %v17774_v5  ;;  %v1279_v51 = vadd.f32 %v20283_v53, %v986_v17  ;;  %v5534_v62 = vor.u32 8388608, %v5533_v24  ;;  %vm5558_vm8 = vcmp.lt.s32.totalorder %v20278_v46, 1  ;;  %v10821_v54 = vpop.eup %10820  ;;  %v5418_v34 = vxor.u32 2147483648, %v10819_v0 }
 0x627   : > { %vm17783_vm2 = vcmp.le.f32.partialorder %v20280_v50, 0.7853982  ;;  %v5508_v6 = vsub.s32 4, %v5484_v45  ;;  %v5557_v20 = vor.u32 %v5556_v19, %v5555_v44  ;;  %vm5560_vm14 = vcmp.lt.s32.totalorder %v20278_v46, 3 }
 0x628   : > { %v5415_v59 = vxor.u32 2147483648, %v10821_v54  ;;  %v9322_v33 = vmin.u32 %v5488_v42, %v17771_v23  ;;  %v5566_v50 = vsel %vm5558_vm8, %v5545_v47, %v5548_v16  ;;  %v5568_v43 = vsel %vm5560_vm14, %v5551_v14, %v5567_v35 }
 0x629   : > { %v5419_v17 = vsel %vm5417_vm9, %v5418_v34, %v10821_v54  ;;  %v5478_v24 = vadd.s32 %v17683_v13, %v17681_v37  ;;  %v17799_v53 = vadd.f32 %v1524_v27, %v1279_v51  ;;  %v5542_v44 = vshrl.u32 %v19730_v18, %v17051_v15 }
 0x62a   : > { %v5416_v19 = vsel %vm5414_vm12, %v10819_v0, %v5415_v59  ;;  %v5490_v12 = vclz %v9322_v33  ;;  %vm5559_vm6 = vcmp.lt.s32.totalorder %v20278_v46, 2  ;;  %v5563_v42 = vsel %vm5561_vm4, %v5551_v14, 2102212464 }
 0x62b   : > { %20284 = vst [vmem:[#allocation62_spill] sm:$0xff] %v17799_v53  ;;  %v5420_v35 = vsel %vm5413_vm3, %v5416_v19, %v5419_v17  ;;  %v5509_v54 = vsel %vm5424_vm13, %v5508_v6, %v5484_v45  ;;  %v5569_v27 = vsel %vm5559_vm6, %v5566_v50, %v5568_v43  ;;  %v5570_v37 = vsel %vm5558_vm8, %v5548_v16, %v5551_v14  ;;  %v20285_v14 = vld [vmem:[#allocation59_spill] sm:$0xff] }
 0x62c   : > { %v5421_v15 = vsel %vm5410_vm10, nan, %v5420_v35  ;;  %v9323_v13 = vadd.s32 4294967294, %v5490_v12  ;;  %v5571_v0 = vsel %vm5561_vm4, %v5557_v20, 1326507024  ;;  %v5574_v51 = vshll.u32 %v5534_v62, 8 }
 0x62d   : > { %9891 = vmatprep.mubr.msk.f32.mxu0 %vm6619_vm1, %v5421_v15  ;;  %v5562_v39 = vsel %vm5558_vm8, %v5542_v44, %v5545_v47  ;;  %v5564_v45 = vsel %vm5560_vm14, %v5548_v16, %v5563_v42  ;;  %v5572_v43 = vsel %vm5560_vm14, %v5554_v7, %v5571_v0  ;;  %v19669_v34 = vand.u32 2147483647, %v20285_v14  ;;  %v20286_v44 = vld [vmem:[#allocation58_spill] sm:$0xff] }
 0x62e   : > { %vm9324_vm15 = vcmp.lt.s32.totalorder %v9323_v13, 0  ;;  %v5573_v40 = vsel %vm5559_vm6, %v5570_v37, %v5572_v43  ;;  %v17828_v12 = vmul.u32.u64.low %v5574_v51, %v5569_v27  ;;  %v17829_v6 = vmul.u32.u64.high %v5574_v51, %v5569_v27, %v17828_v12  ;;  %v20287_v42 = vld [vmem:[#allocation78_spill] sm:$0xff] }
 0x62f   : > { %v5493_v62 = vsel %vm9324_vm15, 0, %v9323_v13  ;;  %v5511_v47 = vsel %vm17783_vm2, 0, %v5509_v54  ;;  %v17834_v20 = vmul.u32.u64.low %v5574_v51, %v5573_v40  ;;  %v17835_v59 = vmul.u32.u64.high %v5574_v51, %v5573_v40, %v17834_v20 }
 0x630   : > { %v5494_v16 = vsub.s32 32, %v5493_v62  ;;  %v5495_v7 = vshll.u32 %v17771_v23, %v5493_v62  ;;  %v5498_v33 = vsub.s32 4294967266, %v5493_v62  ;;  %v5565_v50 = vsel %vm5559_vm6, %v5562_v39, %v5564_v45 }
 0x631   : > { %v5637_v17 = vand.u32 8388607, %v19669_v34  ;;  %v5647_v19 = vshll.u32 %v19730_v18, %v20286_v44  ;;  %v5648_v35 = vshrl.u32 %v19731_v29, %v20287_v42  ;;  %v5650_v54 = vshll.u32 %v19731_v29, %v20286_v44 }
 0x632   : > { %v5496_v27 = vshrl.u32 %v5478_v24, %v5494_v16  ;;  %v5499_v37 = vadd.s32 127, %v5498_v33  ;;  %v5584_v23 = vadd.s32 1, %v17829_v6  ;;  %v5651_v46 = vshrl.u32 %v19820_v63, %v20287_v42 }
 0x633   : > { %v6361_v15 = vand.u32 2139095040, %v17799_v53  ;;  %v5581_v13 = vmul.u32 %v5574_v51, %v5565_v50  ;;  %vm5583_vm11 = vc.u32 %v17835_v59, %v17828_v12  ;;  %v5649_v0 = vor.u32 %v5648_v35, %v5647_v19 }
 0x634   : > { %v5497_v39 = vor.u32 %v5496_v27, %v5495_v7  ;;  %v5500_v45 = vshll.u32 %v5499_v37, 23  ;;  %vm5528_vm3 = vcmp.lt.s32.totalorder %v20277_v10, 0  ;;  %v5585_v43 = vsel %vm5583_vm11, %v5584_v23, %v17829_v6  ;;  %v20290_v37 = vld [vmem:[#allocation100_spill] sm:$0xff] }
 0x635   : > { %v5652_v24 = vor.u32 %v5651_v46, %v5650_v54  ;;  %v5515_v40 = vadd.s32 3, %v5511_v47  ;;  %v5586_v62 = vadd.s32 %v5585_v43, %v5581_v13  ;;  %v5653_v20 = vshll.u32 %v19820_v63, %v20286_v44  ;;  %v20288_v44 = vld [vmem:[#allocation71_spill] sm:$0xff]  ;;  %v20289_v54 = vld [vmem:[#allocation54_spill] sm:$0xff] }
 0x636   : > { %v5654_v16 = vshrl.u32 %v19733_v61, %v20287_v42  ;;  %v5501_v51 = vor.u32 4788187, %v5500_v45  ;;  %v5638_v33 = vor.u32 8388608, %v5637_v17  ;;  %v5646_v50 = vshrl.u32 %v19730_v18, %v20287_v42 }
 0x637   : > { %vm5662_vm10 = vcmp.lt.s32.totalorder %v17130_v38, 1  ;;  %v5587_v7 = vadd.s32 536870912, %v5586_v62  ;;  %vm5664_vm12 = vcmp.lt.s32.totalorder %v17130_v38, 3  ;;  %v5504_v35 = vcvt.s32.f32 %v5497_v39 }
 0x638   : > { %v5655_v19 = vor.u32 %v5654_v16, %v5653_v20  ;;  %v5670_v6 = vsel %vm5662_vm10, %v5649_v0, %v5652_v24  ;;  %v5502_v47 = vand.u32 2147483647, %v5501_v51  ;;  %vm5663_vm9 = vcmp.lt.s32.totalorder %v17130_v38, 2 }
 0x639   : > { %v5676_v17 = vsel %vm5664_vm12, %v20289_v54, %v20288_v44  ;;  %vm6289_vm4 = vcmp.lt.s32.totalorder %v17732_v48, 4  ;;  %v5588_v42 = vshrl.u32 %v5587_v7, 30  ;;  %v5678_v43 = vshll.u32 %v5638_v33, 8 }
 0x63a   : > { %v5667_v27 = vsel %vm5665_vm5, %v5655_v19, 2102212464  ;;  %v5672_v23 = vsel %vm5664_vm12, %v5655_v19, %v20290_v37  ;;  %v5674_v46 = vsel %vm5662_vm10, %v5652_v24, %v5655_v19  ;;  %v5505_v13 = vmul.f32 %v5504_v35, %v5502_v47  ;;  %v20291_v19 = vld [vmem:[#allocation61_spill] sm:$0xff] }
 0x63b   : > { %v5673_v39 = vsel %vm5663_vm9, %v5670_v6, %v5672_v23  ;;  %v5677_v45 = vsel %vm5663_vm9, %v5674_v46, %v5676_v17  ;;  %v5589_v20 = vshll.u32 %v5588_v42, 30  ;;  %v5612_v16 = vsub.s32 4, %v5588_v42 }
 0x63c   : > { %v5666_v51 = vsel %vm5662_vm10, %v5646_v50, %v5649_v0  ;;  %v5668_v7 = vsel %vm5664_vm12, %v5652_v24, %v5667_v27  ;;  %v5506_v44 = vxor.u32 2147483648, %v5505_v13  ;;  %v19668_v47 = vand.u32 2147483647, %v20291_v19 }
 0x63d   : > { %v17887_v54 = vmul.u32.u64.low %v5678_v43, %v5677_v45  ;;  %v17888_v37 = vmul.u32.u64.high %v5678_v43, %v5677_v45, %v17887_v54  ;;  %v17891_v35 = vsub.s32 %v5586_v62, %v5589_v20  ;;  %v5613_v6 = vsel %vm5528_vm3, %v5612_v16, %v5588_v42 }
 0x63e   : > { %v17895_v33 = vmul.u32.u64.low %v5678_v43, %v5673_v39  ;;  %v17896_v17 = vmul.u32.u64.high %v5678_v43, %v5673_v39, %v17895_v33  ;;  %v6285_v0 = vor.u32 %v17755_v3, %v17741_v8  ;;  %v17902_v24 = vand.u32 31, %v17757_v26 }
 0x63f   : > { %v5507_v50 = vsel %vm5424_vm13, %v5506_v44, %v5505_v13  ;;  %v20292_v27 = vand.u32 2147483647, %v20277_v10  ;;  %v17915_v23 = vand.u32 3, %v5515_v40  ;;  %v6362_v46 = vshrl.u32 %v6361_v15, 23  ;;  %v20298_v44 = vld [vmem:[#allocation42_spill] sm:$0xff] }
 0x640   : > { %v5510_v42 = vsel %vm17783_vm2, %v20268_v2, %v5507_v50  ;;  %v5592_v8 = vsub.s32 0, %v17891_v35  ;;  %v5669_v13 = vsel %vm5663_vm9, %v5666_v51, %v5668_v7  ;;  %v17924_v39 = vand.u32 8388607, %v19668_v47 }
 0x641   : > { %vm17908_vm5 = vcmp.le.f32.partialorder %v20292_v27, 0.7853982  ;;  %10822 = vcosq.f32 %v5510_v42  ;;  %vm5687_vm13 = vc.u32 %v17888_v37, %v17895_v33  ;;  %v5688_v15 = vadd.s32 1, %v17896_v17 }
 0x642   : > { %v5615_v3 = vsel %vm17908_vm5, 0, %v5613_v6  ;;  %10824 = vsinq.f32 %v5510_v42  ;;  %v9326_v21 = vmin.u32 %v5592_v8, %v17891_v35  ;;  %v17933_v40 = vsel %vm6289_vm4, %v17774_v5, 920167782  ;;  %v20300_v5 = vld [vmem:[#allocation51_spill] sm:$0xff] }
 0x643   : > { %20295 = vst [vmem:[#allocation98_spill] sm:$0xff] %v17933_v40  ;;  %v17937_v38 = vsel %vm6289_vm4, %v6285_v0, 1326507024  ;;  %v17940_v45 = vshrl.u32 %v17757_v26, 5  ;;  %v17943_v20 = vsub.s32 32, %v17902_v24  ;;  %v17945_v16 = vadd.s32 4294967169, %v6362_v46 }
 0x644   : > { %20296 = vst [vmem:[#allocation73_spill] sm:$0xff] %v17937_v38  ;;  %v5594_v51 = vclz %v9326_v21  ;;  %v5685_v7 = vmul.u32 %v5678_v43, %v5669_v13  ;;  %v5752_v54 = vshrl.u32 %v19731_v29, %v20298_v44  ;;  %vm5521_vm2 = vcmp.eq.s32.totalorder %v17915_v23, 2  ;;  %v20299_v46 = vld [vmem:[#allocation89_spill] sm:$0xff] }
 0x645   : > { %20297 = vst [vmem:[#allocation107_spill] sm:$0xff] %v17940_v45  ;;  %v5582_v6 = vadd.s32 %v17828_v12, %v17835_v59  ;;  %v17952_v0 = vadd.s32 3, %v5615_v3  ;;  %v5689_v26 = vsel %vm5687_vm13, %v5688_v15, %v17896_v17  ;;  %v5755_v50 = vshrl.u32 %v19820_v63, %v20298_v44 }
 0x646   : > { %vm5518_vm8 = vcmp.eq.s32.totalorder %v17915_v23, 0  ;;  %v9327_v27 = vadd.s32 4294967294, %v5594_v51  ;;  %v5690_v42 = vadd.s32 %v5689_v26, %v5685_v7  ;;  %v5742_v43 = vor.u32 8388608, %v17924_v39 }
 0x647   : > { %v5751_v8 = vshll.u32 %v19730_v18, %v20299_v46  ;;  %vm5517_vm14 = vcmp.lt.s32.totalorder %v17915_v23, 2  ;;  %v5754_v12 = vshll.u32 %v19731_v29, %v20299_v46  ;;  %v5758_v59 = vshrl.u32 %v19733_v61, %v20298_v44 }
 0x648   : > { %v5760_v17 = vshll.u32 %v19733_v61, %v20299_v46  ;;  %v5761_v3 = vshrl.u32 %v19960_v60, %v20298_v44  ;;  %vm5514_vm6 = vweird.f32 %v20268_v2  ;;  %vm9328_vm15 = vcmp.lt.s32.totalorder %v9327_v27, 0 }
 0x649   : > { %v5691_v13 = vadd.s32 536870912, %v5690_v42  ;;  %v5753_v39 = vor.u32 %v5752_v54, %v5751_v8  ;;  %v5757_v21 = vshll.u32 %v19820_v63, %v20299_v46  ;;  %v5597_v15 = vsel %vm9328_vm15, 0, %v9327_v27 }
 0x64a   : > { %v5756_v51 = vor.u32 %v5755_v50, %v5754_v12  ;;  %v5762_v7 = vor.u32 %v5761_v3, %v5760_v17  ;;  %v5764_v26 = vshrl.u32 %v19968_v4, %v20298_v44  ;;  %vm5632_vm11 = vcmp.lt.s32.totalorder %v20285_v14, 0 }
 0x64b   : > { %v5598_v47 = vsub.s32 32, %v5597_v15  ;;  %v5602_v34 = vsub.s32 4294967266, %v5597_v15  ;;  %v5692_v45 = vshrl.u32 %v5691_v13, 30  ;;  %v5763_v53 = vshll.u32 %v19960_v60, %v20299_v46  ;;  %v10823_v40 = vpop.eup %10822 }
 0x64c   : > { %v5599_v54 = vshll.u32 %v17891_v35, %v5597_v15  ;;  %v5759_v8 = vor.u32 %v5758_v59, %v5757_v21  ;;  %vm5766_vm10 = vcmp.lt.s32.totalorder %v20300_v5, 1  ;;  %vm5769_vm12 = vcmp.lt.s32.totalorder %v20300_v5, 4  ;;  %v10825_v50 = vpop.eup %10824 }
 0x64d   : > { %v5522_v27 = vxor.u32 2147483648, %v10823_v40  ;;  %v5600_v12 = vshrl.u32 %v5582_v6, %v5598_v47  ;;  %v5603_v17 = vadd.s32 127, %v5602_v34  ;;  %v5693_v3 = vshll.u32 %v5692_v45, 30 }
 0x64e   : > { %v5519_v38 = vxor.u32 2147483648, %v10825_v50  ;;  %v5765_v48 = vor.u32 %v5764_v26, %v5763_v53  ;;  %vm5768_vm9 = vcmp.lt.s32.totalorder %v20300_v5, 3  ;;  %v5775_v46 = vsel %vm5769_vm12, %v5762_v7, 920167782 }
 0x64f   : > { %v5523_v35 = vsel %vm5521_vm2, %v5522_v27, %v10825_v50  ;;  %v5601_v59 = vor.u32 %v5600_v12, %v5599_v54  ;;  %v5604_v13 = vshll.u32 %v5603_v17, 23  ;;  %v17986_v21 = vsub.s32 %v5690_v42, %v5693_v3 }
 0x650   : > { %v5520_v15 = vsel %vm5518_vm8, %v10823_v40, %v5519_v38  ;;  %v5716_v47 = vsub.s32 4, %v5692_v45  ;;  %v5774_v34 = vsel %vm5766_vm10, %v5753_v39, %v5756_v51  ;;  %v5776_v53 = vsel %vm5768_vm9, %v5759_v8, %v5775_v46 }
 0x651   : > { %v5524_v6 = vsel %vm5517_vm14, %v5520_v15, %v5523_v35  ;;  %v5605_v26 = vor.u32 4788187, %v5604_v13  ;;  %v5696_v50 = vsub.s32 0, %v17986_v21  ;;  %v5750_v42 = vshrl.u32 %v19730_v18, %v20298_v44 }
 0x652   : > { %v5525_v54 = vsel %vm5514_vm6, nan, %v5524_v6  ;;  %v5608_v40 = vcvt.s32.f32 %v5601_v59  ;;  %vm5767_vm13 = vcmp.lt.s32.totalorder %v20300_v5, 2  ;;  %v5771_v38 = vsel %vm5769_vm12, %v5759_v8, 2102212464 }
 0x653   : > { %9892 = vmatmul.mubr.msk.f32.gmra.mrb[36].mxu0 %vm6619_vm1, %v5525_v54  ;;  %v5606_v27 = vand.u32 2147483647, %v5605_v26  ;;  %v9330_v23 = vmin.u32 %v5696_v50, %v17986_v21  ;;  %v5777_v12 = vsel %vm5767_vm13, %v5774_v34, %v5776_v53  ;;  %v5778_v44 = vsel %vm5766_vm10, %v5756_v51, %v5759_v8  ;;  %v20304_v50 = vld [vmem:[#allocation103_spill] sm:$0xff] }
 0x654   : > { %v5717_v2 = vsel %vm5632_vm11, %v5716_v47, %v5692_v45  ;;  %v5770_v17 = vsel %vm5766_vm10, %v5750_v42, %v5753_v39  ;;  %v5779_v3 = vsel %vm5769_vm12, %v5765_v48, 1326507024  ;;  %v5782_v46 = vshll.u32 %v5742_v43, 8  ;;  %v20311_v34 = vld [vmem:[#allocation75_spill] sm:$0xff] }
 0x655   : > { %v5609_v35 = vmul.f32 %v5608_v40, %v5606_v27  ;;  %v5698_v59 = vclz %v9330_v23  ;;  %v5772_v13 = vsel %vm5768_vm9, %v5756_v51, %v5771_v38  ;;  %v5780_v15 = vsel %vm5768_vm9, %v5762_v7, %v5779_v3 }
 0x656   : > { %v20301_v8 = vand.u32 2147483647, %v20285_v14  ;;  %v5781_v45 = vsel %vm5767_vm13, %v5778_v44, %v5780_v15  ;;  %v18028_v39 = vmul.u32.u64.low %v5782_v46, %v5777_v12  ;;  %v18029_v48 = vmul.u32.u64.high %v5782_v46, %v5777_v12, %v18028_v39 }
 0x657   : > { %v18033_v43 = vadd.s32 1, %v17945_v16  ;;  %v5610_v51 = vxor.u32 2147483648, %v5609_v35  ;;  %v9331_v47 = vadd.s32 4294967294, %v5698_v59  ;;  %v5773_v53 = vsel %vm5767_vm13, %v5770_v17, %v5772_v13 }
 0x658   : > { %vm18022_vm2 = vcmp.le.f32.partialorder %v20301_v8, 0.7853982  ;;  %v18039_v6 = vmul.u32.u64.low %v5782_v46, %v5781_v45  ;;  %v18040_v26 = vmul.u32.u64.high %v5782_v46, %v5781_v45, %v18039_v6  ;;  %v5838_v42 = vand.u32 2147483647, %v20304_v50 }
 0x659   : > { %v5719_v7 = vsel %vm18022_vm2, 0, %v5717_v2  ;;  %v5611_v54 = vsel %vm5528_vm3, %v5610_v51, %v5609_v35  ;;  %v18046_v40 = vand.u32 3, %v17952_v0  ;;  %v5686_v16 = vadd.s32 %v17895_v33, %v17888_v37 }
 0x65a   : > { %vm9332_vm8 = vcmp.lt.s32.totalorder %v9331_v47, 0  ;;  %v5614_v5 = vsel %vm17908_vm5, %v20277_v10, %v5611_v54  ;;  %v5723_v27 = vadd.s32 3, %v5719_v7  ;;  %v5792_v23 = vadd.s32 1, %v18029_v48 }
 0x65b   : > { %v5701_v38 = vsel %vm9332_vm8, 0, %v9331_v47  ;;  %10826 = vcosq.f32 %v5614_v5  ;;  %v5789_v2 = vmul.u32 %v5782_v46, %v5773_v53  ;;  %vm5791_vm3 = vc.u32 %v18040_v26, %v18028_v39 }
 0x65c   : > { %v5702_v12 = vsub.s32 32, %v5701_v38  ;;  %v5706_v44 = vsub.s32 4294967266, %v5701_v38  ;;  %10828 = vsinq.f32 %v5614_v5  ;;  %v5703_v0 = vshll.u32 %v17986_v21, %v5701_v38 }
 0x65d   : > { %v5845_v37 = vand.u32 8388607, %v5838_v42  ;;  %v5793_v17 = vsel %vm5791_vm3, %v5792_v23, %v18029_v48  ;;  %v5856_v3 = vshrl.u32 %v19731_v29, %v17383_v9  ;;  %v5855_v46 = vshll.u32 %v19730_v18, %v17357_v25 }
 0x65e   : > { %v5704_v33 = vshrl.u32 %v5686_v16, %v5702_v12  ;;  %v5707_v62 = vadd.s32 127, %v5706_v44  ;;  %v5794_v35 = vadd.s32 %v5793_v17, %v5789_v2  ;;  %v5858_v21 = vshll.u32 %v19731_v29, %v17357_v25 }
 0x65f   : > { %v5859_v59 = vshrl.u32 %v19820_v63, %v17383_v9  ;;  %vm5736_vm5 = vcmp.lt.s32.totalorder %v20291_v19, 0  ;;  %v5861_v8 = vshll.u32 %v19820_v63, %v17357_v25  ;;  %v5862_v45 = vshrl.u32 %v19733_v61, %v17383_v9 }
 0x660   : > { %v5705_v13 = vor.u32 %v5704_v33, %v5703_v0  ;;  %v5708_v15 = vshll.u32 %v5707_v62, 23  ;;  %vm5622_vm14 = vcmp.eq.s32.totalorder %v18046_v40, 0  ;;  %vm5625_vm6 = vcmp.eq.s32.totalorder %v18046_v40, 2 }
 0x661   : > { %v5795_v48 = vadd.s32 536870912, %v5794_v35  ;;  %v5860_v51 = vor.u32 %v5859_v59, %v5858_v21  ;;  %vm5621_vm15 = vcmp.lt.s32.totalorder %v18046_v40, 2  ;;  %v18076_v7 = vand.u32 3, %v5723_v27 }
 0x662   : > { %v5709_v47 = vor.u32 4788187, %v5708_v15  ;;  %v5857_v53 = vor.u32 %v5856_v3, %v5855_v46  ;;  %v5863_v6 = vor.u32 %v5862_v45, %v5861_v8  ;;  %vm5618_vm10 = vweird.f32 %v20277_v10 }
 0x663   : > { %v5796_v54 = vshrl.u32 %v5795_v48, 30  ;;  %v5846_v25 = vor.u32 8388608, %v5845_v37  ;;  %vm5870_vm12 = vcmp.lt.s32.totalorder %v17380_v55, 1  ;;  %vm5872_vm9 = vcmp.lt.s32.totalorder %v17380_v55, 3 }
 0x664   : > { %vm6369_vm13 = vcmp.gt.s32.totalorder %v18033_v43, 0  ;;  %v5710_v16 = vand.u32 2147483647, %v5709_v47  ;;  %v5712_v5 = vcvt.s32.f32 %v5705_v13  ;;  %v5882_v38 = vsel %vm5870_vm12, %v5860_v51, %v5863_v6 }
 0x665   : > { %v5884_v27 = vsel %vm5872_vm9, %v17525_v11, %v17578_v36  ;;  %v5797_v23 = vshll.u32 %v5796_v54, 30  ;;  %v5820_v12 = vsub.s32 4, %v5796_v54  ;;  %v5854_v44 = vshrl.u32 %v19730_v18, %v17383_v9  ;;  %v10827_v0 = vpop.eup %10826 }
 0x666   : > { %v5875_v2 = vsel %vm5873_vm0, %v5863_v6, 2102212464  ;;  %v5713_v37 = vmul.f32 %v5712_v5, %v5710_v16  ;;  %vm5871_vm8 = vcmp.lt.s32.totalorder %v17380_v55, 2  ;;  %v5878_v33 = vsel %vm5870_vm12, %v5857_v53, %v5860_v51  ;;  %v10829_v11 = vpop.eup %10828 }
 0x667   : > { %v5880_v62 = vsel %vm5872_vm9, %v5863_v6, %v17567_v30  ;;  %v5626_v36 = vxor.u32 2147483648, %v10827_v0  ;;  %v18098_v17 = vsub.s32 %v5794_v35, %v5797_v23  ;;  %v5874_v9 = vsel %vm5870_vm12, %v5854_v44, %v5857_v53 }
 0x668   : > { %v5885_v3 = vsel %vm5871_vm8, %v5882_v38, %v5884_v27  ;;  %v5623_v46 = vxor.u32 2147483648, %v10829_v11  ;;  %v5714_v21 = vxor.u32 2147483648, %v5713_v37  ;;  %v5876_v59 = vsel %vm5872_vm9, %v5860_v51, %v5875_v2 }
 0x669   : > { %v5886_v13 = vshll.u32 %v5846_v25, 8  ;;  %v5627_v15 = vsel %vm5625_vm6, %v5626_v36, %v10829_v11  ;;  %v5800_v30 = vsub.s32 0, %v18098_v17  ;;  %v5821_v35 = vsel %vm5736_vm5, %v5820_v12, %v5796_v54  ;;  %v20305_v25 = vld [vmem:[#allocation70_spill] sm:$0xff] }
 0x66a   : > { %v5881_v8 = vsel %vm5871_vm8, %v5878_v33, %v5880_v62  ;;  %v5624_v45 = vsel %vm5622_vm14, %v10827_v0, %v5623_v46  ;;  %v5715_v48 = vsel %vm5632_vm11, %v5714_v21, %v5713_v37  ;;  %v5942_v16 = vand.u32 2147483647, %v20305_v25 }
 0x66b   : > { %v18117_v47 = vmul.u32.u64.low %v5886_v13, %v5885_v3  ;;  %v18118_v51 = vmul.u32.u64.high %v5886_v13, %v5885_v3, %v18117_v47  ;;  %v5628_v53 = vsel %vm5621_vm15, %v5624_v45, %v5627_v15  ;;  %v5718_v6 = vsel %vm18022_vm2, %v20285_v14, %v5715_v48 }
 0x66c   : > { %v9334_v54 = vmin.u32 %v5800_v30, %v18098_v17  ;;  %v5629_v5 = vsel %vm5618_vm10, nan, %v5628_v53  ;;  %10830 = vcosq.f32 %v5718_v6  ;;  %v20306_v40 = vand.u32 2147483647, %v20291_v19 }
 0x66d   : > { %v18129_v38 = vmul.u32.u64.low %v5886_v13, %v5881_v8  ;;  %v18130_v27 = vmul.u32.u64.high %v5886_v13, %v5881_v8, %v18129_v38  ;;  %9894 = vmatprep.mubr.msk.f32.mxu0 %vm6619_vm1, %v5629_v5  ;;  %10832 = vsinq.f32 %v5718_v6  ;;  %v5877_v12 = vsel %vm5871_vm8, %v5874_v9, %v5876_v59 }
 0x66e   : > { %vm18136_vm0 = vcmp.le.f32.partialorder %v20306_v40, 0.7853982  ;;  %v5802_v23 = vclz %v9334_v54  ;;  %v18144_v10 = vshll.u32 %v19733_v61, %v17902_v24  ;;  %v18148_v44 = vshrl.u32 %v19960_v60, %v17943_v20 }
 0x66f   : > { %v18152_v2 = vshll.u32 %v19960_v60, %v17902_v24  ;;  %v5823_v0 = vsel %vm18136_vm0, 0, %v5821_v35  ;;  %v18159_v55 = vsel %vm6369_vm13, %v18033_v43, 0  ;;  %v5790_v37 = vadd.s32 %v18028_v39, %v18040_v26 }
 0x670   : > { %v9335_v33 = vadd.s32 4294967294, %v5802_v23  ;;  %vm5895_vm11 = vc.u32 %v18118_v51, %v18129_v38  ;;  %vm5729_vm2 = vcmp.eq.s32.totalorder %v18076_v7, 2  ;;  %v5893_v62 = vmul.u32 %v5886_v13, %v5877_v12 }
 0x671   : > { %v5896_v11 = vadd.s32 1, %v18130_v27  ;;  %v18169_v36 = vand.u32 8388607, %v5942_v16  ;;  %v5960_v43 = vshrl.u32 %v19731_v29, %v17574_v58  ;;  %vm5726_vm3 = vcmp.eq.s32.totalorder %v18076_v7, 0 }
 0x672   : > { %vm9336_vm14 = vcmp.lt.s32.totalorder %v9335_v33, 0  ;;  %v18174_v39 = vadd.s32 3, %v5823_v0  ;;  %v5958_v26 = vshrl.u32 %v19730_v18, %v17574_v58  ;;  %v5959_v9 = vshll.u32 %v19730_v18, %v17515_v32 }
 0x673   : > { %vm5725_vm6 = vcmp.lt.s32.totalorder %v18076_v7, 2  ;;  %v5805_v3 = vsel %vm9336_vm14, 0, %v9335_v33  ;;  %v5897_v46 = vsel %vm5895_vm11, %v5896_v11, %v18130_v27  ;;  %v5963_v21 = vshrl.u32 %v19820_v63, %v17574_v58 }
 0x674   : > { %v5966_v59 = vshrl.u32 %v19733_v61, %v17574_v58  ;;  %vm5722_vm15 = vweird.f32 %v20285_v14  ;;  %v5806_v13 = vsub.s32 32, %v5805_v3  ;;  %v5810_v15 = vsub.s32 4294967266, %v5805_v3 }
 0x675   : > { %v5898_v30 = vadd.s32 %v5897_v46, %v5893_v62  ;;  %v5962_v35 = vshll.u32 %v19731_v29, %v17515_v32  ;;  %v5950_v8 = vor.u32 8388608, %v18169_v36  ;;  %v5961_v45 = vor.u32 %v5960_v43, %v5959_v9 }
 0x676   : > { %v5965_v48 = vshll.u32 %v19820_v63, %v17515_v32  ;;  %v5969_v47 = vshrl.u32 %v19960_v60, %v17574_v58  ;;  %v5807_v53 = vshll.u32 %v18098_v17, %v5805_v3  ;;  %v5808_v6 = vshrl.u32 %v5790_v37, %v5806_v13  ;;  %v10831_v27 = vpop.eup %10830 }
 0x677   : > { %v5811_v54 = vadd.s32 127, %v5810_v15  ;;  %v5899_v5 = vadd.s32 536870912, %v5898_v30  ;;  %vm5840_vm10 = vcmp.lt.s32.totalorder %v20304_v50, 0  ;;  %v5964_v40 = vor.u32 %v5963_v21, %v5962_v35  ;;  %v10833_v33 = vpop.eup %10832 }
 0x678   : > { %v5967_v23 = vor.u32 %v5966_v59, %v5965_v48  ;;  %v5968_v12 = vshll.u32 %v19733_v61, %v17515_v32  ;;  %v5972_v0 = vshrl.u32 %v19968_v4, %v17574_v58  ;;  %v5730_v62 = vxor.u32 2147483648, %v10831_v27 }
 0x679   : > { %v5809_v11 = vor.u32 %v5808_v6, %v5807_v53  ;;  %v5812_v36 = vshll.u32 %v5811_v54, 23  ;;  %v5900_v43 = vshrl.u32 %v5899_v5, 30  ;;  %v5727_v17 = vxor.u32 2147483648, %v10833_v33 }
 0x67a   : > { %v5970_v37 = vor.u32 %v5969_v47, %v5968_v12  ;;  %v5971_v9 = vshll.u32 %v19960_v60, %v17515_v32  ;;  %vm5974_vm12 = vcmp.lt.s32.totalorder %v17562_v22, 1  ;;  %v5731_v3 = vsel %vm5729_vm2, %v5730_v62, %v10833_v33 }
 0x67b   : > { %v5813_v46 = vor.u32 4788187, %v5812_v36  ;;  %v5901_v21 = vshll.u32 %v5900_v43, 30  ;;  %vm5977_vm9 = vcmp.lt.s32.totalorder %v17562_v22, 4  ;;  %v5728_v58 = vsel %vm5726_vm3, %v10831_v27, %v5727_v17 }
 0x67c   : > { %v5816_v59 = vcvt.s32.f32 %v5809_v11  ;;  %v5973_v13 = vor.u32 %v5972_v0, %v5971_v9  ;;  %v5979_v15 = vsel %vm5977_vm9, %v5967_v23, 2102212464  ;;  %v5732_v32 = vsel %vm5725_vm6, %v5728_v58, %v5731_v3 }
 0x67d   : > { %v5814_v35 = vand.u32 2147483647, %v5813_v46  ;;  %v18212_v48 = vsub.s32 %v5898_v30, %v5901_v21  ;;  %v5924_v47 = vsub.s32 4, %v5900_v43  ;;  %v5733_v53 = vsel %vm5722_vm15, nan, %v5732_v32 }
 0x67e   : > { %vm5975_vm13 = vcmp.lt.s32.totalorder %v17562_v22, 2  ;;  %vm5976_vm8 = vcmp.lt.s32.totalorder %v17562_v22, 3  ;;  %v5978_v6 = vsel %vm5974_vm12, %v5958_v26, %v5961_v45  ;;  %9895 = vmatmul.mubr.msk.f32.gmra.mrb[38].mxu0 %vm6619_vm1, %v5733_v53  ;;  %v5983_v30 = vsel %vm5977_vm9, %v5970_v37, 920167782 }
 0x67f   : > { %v5817_v54 = vmul.f32 %v5816_v59, %v5814_v35  ;;  %v5904_v7 = vsub.s32 0, %v18212_v48  ;;  %v5980_v5 = vsel %vm5976_vm8, %v5964_v40, %v5979_v15  ;;  %v5982_v14 = vsel %vm5974_vm12, %v5961_v45, %v5964_v40 }
 0x680   : > { %v5984_v27 = vsel %vm5976_vm8, %v5967_v23, %v5983_v30  ;;  %v5986_v12 = vsel %vm5974_vm12, %v5964_v40, %v5967_v23  ;;  %v5987_v0 = vsel %vm5977_vm9, %v5973_v13, 1326507024  ;;  %v5925_v62 = vsel %vm5840_vm10, %v5924_v47, %v5900_v43 }
 0x681   : > { %v5818_v26 = vxor.u32 2147483648, %v5817_v54  ;;  %v9338_v33 = vmin.u32 %v5904_v7, %v18212_v48  ;;  %v5988_v11 = vsel %vm5976_vm8, %v5970_v37, %v5987_v0  ;;  %v18235_v36 = vshrl.u32 %v19968_v4, %v17943_v20 }
 0x682   : > { %v18238_v45 = vand.u32 31, %v18159_v55  ;;  %vm18242_vm11 = vcmp.le.f32.partialorder %v5838_v42, 0.7853982  ;;  %v5989_v23 = vsel %vm5975_vm13, %v5986_v12, %v5988_v11  ;;  %v5985_v37 = vsel %vm5975_vm13, %v5982_v14, %v5984_v27 }
 0x683   : > { %v5819_v43 = vsel %vm5736_vm5, %v5818_v26, %v5817_v54  ;;  %v5906_v17 = vclz %v9338_v33  ;;  %v5990_v9 = vshll.u32 %v5950_v8, 8  ;;  %v18256_v42 = vand.u32 3, %v18174_v39 }
 0x684   : > { %v5822_v3 = vsel %vm18136_vm0, %v20291_v19, %v5819_v43  ;;  %v5927_v46 = vsel %vm18242_vm11, 0, %v5925_v62  ;;  %v5981_v21 = vsel %vm5975_vm13, %v5978_v6, %v5980_v5  ;;  %v6046_v32 = vand.u32 2147483647, %v20311_v34 }
 0x685   : > { %10834 = vcosq.f32 %v5822_v3  ;;  %v9339_v58 = vadd.s32 4294967294, %v5906_v17  ;;  %v18262_v59 = vmul.u32.u64.low %v5990_v9, %v5989_v23  ;;  %v18263_v13 = vmul.u32.u64.high %v5990_v9, %v5989_v23, %v18262_v59 }
 0x686   : > { %10836 = vsinq.f32 %v5822_v3  ;;  %v18265_v8 = vmul.u32.u64.low %v5990_v9, %v5985_v37  ;;  %v18266_v15 = vmul.u32.u64.high %v5990_v9, %v5985_v37, %v18265_v8  ;;  %v18272_v39 = vor.u32 %v18148_v44, %v18144_v10 }
 0x687   : > { %v18275_v35 = vsub.s32 32, %v18238_v45  ;;  %v5894_v22 = vadd.s32 %v18129_v38, %v18118_v51  ;;  %vm9340_vm5 = vcmp.lt.s32.totalorder %v9339_v58, 0  ;;  %v18279_v53 = vadd.s32 3, %v5927_v46 }
 0x688   : > { %v5909_v47 = vsel %vm9340_vm5, 0, %v9339_v58  ;;  %v6064_v6 = vshrl.u32 %v19731_v29, %v17553_v56  ;;  %v6067_v54 = vshrl.u32 %v19820_v63, %v17553_v56  ;;  %vm5833_vm0 = vcmp.eq.s32.totalorder %v18256_v42, 2 }
 0x689   : > { %v5910_v10 = vsub.s32 32, %v5909_v47  ;;  %v5914_v44 = vsub.s32 4294967266, %v5909_v47  ;;  %v5997_v7 = vmul.u32 %v5990_v9, %v5981_v21  ;;  %v6063_v5 = vshll.u32 %v19730_v18, %v17545_v1 }
 0x68a   : > { %vm5830_vm2 = vcmp.eq.s32.totalorder %v18256_v42, 0  ;;  %vm5999_vm3 = vc.u32 %v18263_v13, %v18265_v8  ;;  %v6000_v51 = vadd.s32 1, %v18266_v15  ;;  %v6053_v38 = vand.u32 8388607, %v6046_v32 }
 0x68b   : > { %v6066_v30 = vshll.u32 %v19731_v29, %v17545_v1  ;;  %vm5829_vm14 = vcmp.lt.s32.totalorder %v18256_v42, 2  ;;  %v5911_v14 = vshll.u32 %v18212_v48, %v5909_v47  ;;  %v5912_v27 = vshrl.u32 %v5894_v22, %v5910_v10 }
 0x68c   : > { %v5915_v12 = vadd.s32 127, %v5914_v44  ;;  %v6065_v0 = vor.u32 %v6064_v6, %v6063_v5  ;;  %vm5826_vm6 = vweird.f32 %v20291_v19  ;;  %v6001_v26 = vsel %vm5999_vm3, %v6000_v51, %v18266_v15 }
 0x68d   : > { %v6068_v33 = vor.u32 %v6067_v54, %v6066_v30  ;;  %v6069_v62 = vshll.u32 %v19820_v63, %v17545_v1  ;;  %v6070_v11 = vshrl.u32 %v19733_v61, %v17553_v56  ;;  %v5913_v23 = vor.u32 %v5912_v27, %v5911_v14 }
 0x68e   : > { %v5916_v43 = vshll.u32 %v5915_v12, 23  ;;  %v6002_v17 = vadd.s32 %v6001_v26, %v5997_v7  ;;  %v6062_v48 = vshrl.u32 %v19730_v18, %v17553_v56  ;;  %v6054_v37 = vor.u32 8388608, %v6053_v38 }
 0x68f   : > { %v6071_v9 = vor.u32 %v6070_v11, %v6069_v62  ;;  %vm6078_vm15 = vcmp.lt.s32.totalorder %v17616_v52, 1  ;;  %vm6080_vm12 = vcmp.lt.s32.totalorder %v17616_v52, 3  ;;  %v10835_v3 = vpop.eup %10834  ;;  %vm6079_vm9 = vcmp.lt.s32.totalorder %v17616_v52, 2 }
 0x690   : > { %v5917_v46 = vor.u32 4788187, %v5916_v43  ;;  %v6003_v21 = vadd.s32 536870912, %v6002_v17  ;;  %v6092_v1 = vsel %vm6080_vm12, %v17618_v31, %v17727_v28  ;;  %v10837_v58 = vpop.eup %10836  ;;  %v5834_v59 = vxor.u32 2147483648, %v10835_v3 }
 0x691   : > { %v6086_v56 = vsel %vm6078_vm15, %v6065_v0, %v6068_v33  ;;  %v6088_v15 = vsel %vm6080_vm12, %v6071_v9, %v17716_v41  ;;  %v6090_v22 = vsel %vm6078_vm15, %v6068_v33, %v6071_v9  ;;  %v5831_v47 = vxor.u32 2147483648, %v10837_v58 }
 0x692   : > { %v5918_v6 = vand.u32 2147483647, %v5917_v46  ;;  %v5920_v54 = vcvt.s32.f32 %v5913_v23  ;;  %v6004_v10 = vshrl.u32 %v6003_v21, 30  ;;  %v5835_v44 = vsel %vm5833_vm0, %v5834_v59, %v10837_v58 }
 0x693   : > { %v6083_v31 = vsel %vm6081_vm7, %v6071_v9, 2102212464  ;;  %v6093_v28 = vsel %vm6079_vm9, %v6090_v22, %v6092_v1  ;;  %v6094_v7 = vshll.u32 %v6054_v37, 8  ;;  %v5832_v41 = vsel %vm5830_vm2, %v10835_v3, %v5831_v47  ;;  %v20312_v9 = vld [vmem:[#allocation65_spill] sm:$0xff] }
 0x694   : > { %v5921_v5 = vmul.f32 %v5920_v54, %v5918_v6  ;;  %v6005_v51 = vshll.u32 %v6004_v10, 30  ;;  %v6089_v38 = vsel %vm6079_vm9, %v6086_v56, %v6088_v15  ;;  %v5836_v30 = vsel %vm5829_vm14, %v5832_v41, %v5835_v44 }
 0x695   : > { %v6082_v14 = vsel %vm6078_vm15, %v6062_v48, %v6065_v0  ;;  %v18334_v27 = vmul.u32.u64.low %v6094_v7, %v6093_v28  ;;  %v18335_v12 = vmul.u32.u64.high %v6094_v7, %v6093_v28, %v18334_v27  ;;  %v5837_v26 = vsel %vm5826_vm6, nan, %v5836_v30 }
 0x696   : > { %v5922_v62 = vxor.u32 2147483648, %v5921_v5  ;;  %v18339_v11 = vsub.s32 %v6002_v17, %v6005_v51  ;;  %v6084_v23 = vsel %vm6080_vm12, %v6068_v33, %v6083_v31  ;;  %v18344_v43 = vshrl.u32 %v18159_v55, 5  ;;  %9897 = vmatprep.mubr.msk.f32.mxu0 %vm6619_vm1, %v5837_v26 }
 0x697   : > { %v6028_v42 = vsub.s32 4, %v6004_v10  ;;  %v18347_v37 = vmul.u32.u64.low %v6094_v7, %v6089_v38  ;;  %v18348_v0 = vmul.u32.u64.high %v6094_v7, %v6089_v38, %v18347_v37  ;;  %v6384_v19 = vshll.u32 %v19733_v61, %v18238_v45 }
 0x698   : > { %v5923_v17 = vsel %vm5840_vm10, %v5922_v62, %v5921_v5  ;;  %v6008_v48 = vsub.s32 0, %v18339_v11  ;;  %v6150_v33 = vand.u32 2147483647, %v20312_v9  ;;  %v6385_v55 = vshrl.u32 %v19960_v60, %v18275_v35 }
 0x699   : > { %v5926_v3 = vsel %vm18242_vm11, %v20304_v50, %v5923_v17  ;;  %vm5944_vm7 = vcmp.lt.s32.totalorder %v20305_v25, 0  ;;  %v6085_v46 = vsel %vm6079_vm9, %v6082_v14, %v6084_v23  ;;  %v18366_v21 = vand.u32 3, %v18279_v53 }
 0x69a   : > { %10838 = vcosq.f32 %v5926_v3  ;;  %v9342_v1 = vmin.u32 %v6008_v48, %v18339_v11  ;;  %vm6103_vm10 = vc.u32 %v18335_v12, %v18347_v37  ;;  %v18373_v58 = vsel %vm5944_vm7, %v6028_v42, %v6004_v10 }
 0x69b   : > { %10840 = vsinq.f32 %v5926_v3  ;;  %v6104_v40 = vadd.s32 1, %v18348_v0  ;;  %v18378_v52 = vand.u32 8388607, %v6150_v33  ;;  %v18382_v53 = vshll.u32 %v19960_v60, %v18238_v45 }
 0x69c   : > { %v18386_v59 = vshrl.u32 %v19968_v4, %v18275_v35  ;;  %v6010_v56 = vclz %v9342_v1  ;;  %v6101_v15 = vmul.u32 %v6094_v7, %v6085_v46  ;;  %v18388_v22 = vor.u32 %v6385_v55, %v6384_v19 }
 0x69d   : > { %vm18392_vm13 = vcmp.le.f32.partialorder %v5942_v16, 0.7853982  ;;  %v5998_v6 = vadd.s32 %v18265_v8, %v18263_v13  ;;  %v6105_v54 = vsel %vm6103_vm10, %v6104_v40, %v18348_v0  ;;  %vm5937_vm8 = vcmp.eq.s32.totalorder %v18366_v21, 2 }
 0x69e   : > { %v9343_v10 = vadd.s32 4294967294, %v6010_v56  ;;  %v6031_v44 = vsel %vm18392_vm13, 0, %v18373_v58  ;;  %v6106_v31 = vadd.s32 %v6105_v54, %v6101_v15  ;;  %v6168_v28 = vshrl.u32 %v19731_v29, %v17711_v49  ;;  %v20315_v54 = vld [vmem:[#allocation96_spill] sm:$0xff] }
 0x69f   : > { %vm5934_vm11 = vcmp.eq.s32.totalorder %v18366_v21, 0  ;;  %v6158_v16 = vor.u32 8388608, %v18378_v52  ;;  %v6166_v13 = vshrl.u32 %v19730_v18, %v17711_v49  ;;  %v6171_v8 = vshrl.u32 %v19820_v63, %v17711_v49 }
 0x6a0   : > { %v6174_v7 = vshrl.u32 %v19733_v61, %v17711_v49  ;;  %vm5933_vm5 = vcmp.lt.s32.totalorder %v18366_v21, 2  ;;  %vm9344_vm0 = vcmp.lt.s32.totalorder %v9343_v10, 0  ;;  %v6107_v41 = vadd.s32 536870912, %v6106_v31 }
 0x6a1   : > { %v6167_v5 = vshll.u32 %v19730_v18, %v17603_v57  ;;  %v6170_v51 = vshll.u32 %v19731_v29, %v17603_v57  ;;  %vm5930_vm2 = vweird.f32 %v20304_v50  ;;  %v6013_v38 = vsel %vm9344_vm0, 0, %v9343_v10 }
 0x6a2   : > { %v6173_v30 = vshll.u32 %v19820_v63, %v17603_v57  ;;  %v6177_v14 = vshrl.u32 %v19960_v60, %v17711_v49  ;;  %v6180_v27 = vshrl.u32 %v19968_v4, %v17711_v49  ;;  %v6014_v26 = vsub.s32 32, %v6013_v38 }
 0x6a3   : > { %v6018_v62 = vsub.s32 4294967266, %v6013_v38  ;;  %v6108_v23 = vshrl.u32 %v6107_v41, 30  ;;  %v6169_v42 = vor.u32 %v6168_v28, %v6167_v5  ;;  %v6172_v0 = vor.u32 %v6171_v8, %v6170_v51 }
 0x6a4   : > { %v6175_v19 = vor.u32 %v6174_v7, %v6173_v30  ;;  %v6176_v17 = vshll.u32 %v19733_v61, %v17603_v57  ;;  %v6179_v48 = vshll.u32 %v19960_v60, %v17603_v57  ;;  %v10839_v55 = vpop.eup %10838  ;;  %v6015_v3 = vshll.u32 %v18339_v11, %v6013_v38 }
 0x6a5   : > { %v6016_v46 = vshrl.u32 %v5998_v6, %v6014_v26  ;;  %v6019_v1 = vadd.s32 127, %v6018_v62  ;;  %v6109_v40 = vshll.u32 %v6108_v23, 30  ;;  %v10841_v56 = vpop.eup %10840  ;;  %vm6048_vm3 = vcmp.lt.s32.totalorder %v20311_v34, 0 }
 0x6a6   : > { %v5938_v4 = vxor.u32 2147483648, %v10839_v55  ;;  %v6178_v49 = vor.u32 %v6177_v14, %v6176_v17  ;;  %v6181_v15 = vor.u32 %v6180_v27, %v6179_v48  ;;  %vm6182_vm14 = vcmp.lt.s32.totalorder %v20315_v54, 1 }
 0x6a7   : > { %v5935_v10 = vxor.u32 2147483648, %v10841_v56  ;;  %v6017_v28 = vor.u32 %v6016_v46, %v6015_v3  ;;  %v6020_v8 = vshll.u32 %v6019_v1, 23  ;;  %v18432_v7 = vsub.s32 %v6106_v31, %v6109_v40 }
 0x6a8   : > { %v5939_v60 = vsel %vm5937_vm8, %v5938_v4, %v10841_v56  ;;  %v6132_v57 = vsub.s32 4, %v6108_v23  ;;  %vm6183_vm6 = vcmp.lt.s32.totalorder %v20315_v54, 2  ;;  %vm6185_vm15 = vcmp.lt.s32.totalorder %v20315_v54, 4 }
 0x6a9   : > { %v5936_v11 = vsel %vm5934_vm11, %v10839_v55, %v5935_v10  ;;  %v6021_v6 = vor.u32 4788187, %v6020_v8  ;;  %v6112_v41 = vsub.s32 0, %v18432_v7  ;;  %v6187_v5 = vsel %vm6185_vm15, %v6175_v19, 2102212464 }
 0x6aa   : > { %v5940_v31 = vsel %vm5933_vm5, %v5936_v11, %v5939_v60  ;;  %vm6184_vm12 = vcmp.lt.s32.totalorder %v20315_v54, 3  ;;  %v6190_v51 = vsel %vm6182_vm14, %v6169_v42, %v6172_v0  ;;  %v6191_v38 = vsel %vm6185_vm15, %v6178_v49, 920167782 }
 0x6ab   : > { %v5941_v30 = vsel %vm5930_vm2, nan, %v5940_v31  ;;  %v6022_v14 = vand.u32 2147483647, %v6021_v6  ;;  %v6024_v27 = vcvt.s32.f32 %v6017_v28  ;;  %v9346_v26 = vmin.u32 %v6112_v41, %v18432_v7  ;;  %v20318_v28 = vld [vmem:[#allocation38_spill] sm:$0xff] }
 0x6ac   : > { %9898 = vmatmul.mubr.msk.f32.gmra.mrb[40].mxu0 %vm6619_vm1, %v5941_v30  ;;  %v6186_v21 = vsel %vm6182_vm14, %v6166_v13, %v6169_v42  ;;  %v6188_v62 = vsel %vm6184_vm12, %v6172_v0, %v6187_v5  ;;  %v6192_v17 = vsel %vm6184_vm12, %v6175_v19, %v6191_v38  ;;  %v6195_v48 = vsel %vm6185_vm15, %v6181_v15, 1326507024  ;;  %v20319_v30 = vld [vmem:[#allocation41_spill] sm:$0xff] }
 0x6ad   : > { %v6025_v50 = vmul.f32 %v6024_v27, %v6022_v14  ;;  %v6114_v55 = vclz %v9346_v26  ;;  %v6193_v3 = vsel %vm6183_vm6, %v6190_v51, %v6192_v17  ;;  %v6194_v46 = vsel %vm6182_vm14, %v6172_v0, %v6175_v19 }
 0x6ae   : > { %v6389_v13 = vor.u32 %v18386_v59, %v18382_v53  ;;  %vm18470_vm9 = vcmp.le.f32.partialorder %v6046_v32, 0.7853982  ;;  %v6196_v1 = vsel %vm6184_vm12, %v6178_v49, %v6195_v48  ;;  %v6198_v40 = vshll.u32 %v6158_v16, 8 }
 0x6af   : > { %v6026_v56 = vxor.u32 2147483648, %v6025_v50  ;;  %v6035_v0 = vadd.s32 3, %v6031_v44  ;;  %v9347_v19 = vadd.s32 4294967294, %v6114_v55  ;;  %v6133_v4 = vsel %vm6048_vm3, %v6132_v57, %v6108_v23 }
 0x6b0   : > { %v6189_v32 = vsel %vm6183_vm6, %v6186_v21, %v6188_v62  ;;  %v6197_v15 = vsel %vm6183_vm6, %v6194_v46, %v6196_v1  ;;  %v18488_v49 = vmul.u32.u64.low %v6198_v40, %v6193_v3  ;;  %v18489_v10 = vmul.u32.u64.high %v6198_v40, %v6193_v3, %v18488_v49  ;;  %v20320_v62 = vld [vmem:[#allocation72_spill] sm:$0xff] }
 0x6b1   : > { %v6027_v52 = vsel %vm5944_vm7, %v6026_v56, %v6025_v50  ;;  %vm9348_vm10 = vcmp.lt.s32.totalorder %v9347_v19, 0  ;;  %v18494_v58 = vmul.u32.u64.low %v6198_v40, %v6197_v15  ;;  %v18495_v44 = vmul.u32.u64.high %v6198_v40, %v6197_v15, %v18494_v58 }
 0x6b2   : > { %v6030_v16 = vsel %vm18392_vm13, %v20305_v25, %v6027_v52  ;;  %v6102_v23 = vadd.s32 %v18347_v37, %v18335_v12  ;;  %v6117_v54 = vsel %vm9348_vm10, 0, %v9347_v19  ;;  %v6254_v8 = vand.u32 2147483647, %v20318_v28  ;;  %v20322_v58 = vld [vmem:[#allocation73_spill] sm:$0xff] }
 0x6b3   : > { %10842 = vcosq.f32 %v6030_v16  ;;  %v6118_v60 = vsub.s32 32, %v6117_v54  ;;  %v6122_v57 = vsub.s32 4294967266, %v6117_v54  ;;  %v6135_v11 = vsel %vm18470_vm9, 0, %v6133_v4 }
 0x6b4   : > { %10844 = vsinq.f32 %v6030_v16  ;;  %v6036_v6 = vand.u32 3, %v6035_v0  ;;  %v6205_v41 = vmul.u32 %v6198_v40, %v6189_v32  ;;  %v6208_v5 = vadd.s32 1, %v18489_v10  ;;  %v20321_v32 = vld [vmem:[#allocation64_spill] sm:$0xff]  ;;  %v20323_v16 = vld [vmem:[#allocation66_spill] sm:$0xff] }
 0x6b5   : > { %v6119_v47 = vshll.u32 %v18432_v7, %v6117_v54  ;;  %v6120_v31 = vshrl.u32 %v6102_v23, %v6118_v60  ;;  %v6123_v51 = vadd.s32 127, %v6122_v57  ;;  %vm6207_vm7 = vc.u32 %v18495_v44, %v18488_v49 }
 0x6b6   : > { %v6139_v12 = vadd.s32 3, %v6135_v11  ;;  %v6209_v37 = vsel %vm6207_vm7, %v6208_v5, %v18489_v10  ;;  %v6261_v38 = vand.u32 8388607, %v6254_v8  ;;  %v6272_v14 = vshrl.u32 %v19731_v29, %v20319_v30 }
 0x6b7   : > { %v6121_v27 = vor.u32 %v6120_v31, %v6119_v47  ;;  %v6124_v26 = vshll.u32 %v6123_v51, 23  ;;  %v6210_v21 = vadd.s32 %v6209_v37, %v6205_v41  ;;  %v6271_v7 = vshll.u32 %v19730_v18, %v20320_v62  ;;  %v20324_v51 = vld [vmem:[#allocation98_spill] sm:$0xff] }
 0x6b8   : > { %v6274_v17 = vshll.u32 %v19731_v29, %v20320_v62  ;;  %v6275_v48 = vshrl.u32 %v19820_v63, %v20319_v30  ;;  %v6277_v50 = vshll.u32 %v19820_v63, %v20320_v62  ;;  %v6278_v55 = vshrl.u32 %v19733_v61, %v20319_v30 }
 0x6b9   : > { %vm6037_vm13 = vcmp.lt.s32.totalorder %v6036_v6, 2  ;;  %vm6038_vm8 = vcmp.eq.s32.totalorder %v6036_v6, 0  ;;  %vm6041_vm11 = vcmp.eq.s32.totalorder %v6036_v6, 2  ;;  %v6125_v3 = vor.u32 4788187, %v6124_v26 }
 0x6ba   : > { %v6211_v46 = vadd.s32 536870912, %v6210_v21  ;;  %vm6034_vm5 = vweird.f32 %v20305_v25  ;;  %v6128_v1 = vcvt.s32.f32 %v6121_v27  ;;  %v6273_v40 = vor.u32 %v6272_v14, %v6271_v7 }
 0x6bb   : > { %v6276_v56 = vor.u32 %v6275_v48, %v6274_v17  ;;  %v6279_v0 = vor.u32 %v6278_v55, %v6277_v50  ;;  %v6126_v19 = vand.u32 2147483647, %v6125_v3  ;;  %vm6286_vm0 = vcmp.lt.s32.totalorder %v20321_v32, 1 }
 0x6bc   : > { %v6212_v4 = vshrl.u32 %v6211_v46, 30  ;;  %vm6288_vm2 = vcmp.lt.s32.totalorder %v20321_v32, 3  ;;  %v18527_v15 = vand.u32 3, %v6139_v12  ;;  %v6262_v10 = vor.u32 8388608, %v6261_v38 }
 0x6bd   : > { %v6298_v52 = vsel %vm6286_vm0, %v6276_v56, %v6279_v0  ;;  %v6300_v23 = vsel %vm6288_vm2, %v20323_v16, %v20322_v58  ;;  %v10843_v54 = vpop.eup %10842  ;;  %v6129_v60 = vmul.f32 %v6128_v1, %v6126_v19  ;;  %v6270_v11 = vshrl.u32 %v19730_v18, %v20319_v30 }
 0x6be   : > { %v6213_v57 = vshll.u32 %v6212_v4, 30  ;;  %v6291_v41 = vsel %vm6289_vm4, %v6279_v0, 2102212464  ;;  %v10845_v5 = vpop.eup %10844  ;;  %v6042_v47 = vxor.u32 2147483648, %v10843_v54  ;;  %vm6287_vm14 = vcmp.lt.s32.totalorder %v20321_v32, 2 }
 0x6bf   : > { %v6294_v31 = vsel %vm6286_vm0, %v6273_v40, %v6276_v56  ;;  %v6296_v12 = vsel %vm6288_vm2, %v6279_v0, %v20324_v51  ;;  %v6039_v37 = vxor.u32 2147483648, %v10845_v5  ;;  %v6130_v38 = vxor.u32 2147483648, %v6129_v60 }
 0x6c0   : > { %v18545_v14 = vsub.s32 %v6210_v21, %v6213_v57  ;;  %v6301_v30 = vsel %vm6287_vm14, %v6298_v52, %v6300_v23  ;;  %v6043_v27 = vsel %vm6041_vm11, %v6042_v47, %v10845_v5  ;;  %v6290_v26 = vsel %vm6286_vm0, %v6270_v11, %v6273_v40  ;;  %v20327_v23 = vld [vmem:[#allocation62_spill] sm:$0xff] }
 0x6c1   : > { %v6292_v62 = vsel %vm6288_vm2, %v6276_v56, %v6291_v41  ;;  %v6302_v7 = vshll.u32 %v6262_v10, 8  ;;  %v6040_v17 = vsel %vm6038_vm8, %v10843_v54, %v6039_v37  ;;  %v6131_v48 = vsel %vm6048_vm3, %v6130_v38, %v6129_v60 }
 0x6c2   : > { %v6216_v21 = vsub.s32 0, %v18545_v14  ;;  %v6297_v50 = vsel %vm6287_vm14, %v6294_v31, %v6296_v12  ;;  %v6044_v55 = vsel %vm6037_vm13, %v6040_v17, %v6043_v27  ;;  %v6134_v3 = vsel %vm18470_vm9, %v20311_v34, %v6131_v48 }
 0x6c3   : > { %v18564_v46 = vmul.u32.u64.low %v6302_v7, %v6301_v30  ;;  %v18565_v1 = vmul.u32.u64.high %v6302_v7, %v6301_v30, %v18564_v46  ;;  %v6045_v40 = vsel %vm6034_vm5, nan, %v6044_v55  ;;  %10846 = vcosq.f32 %v6134_v3 }
 0x6c4   : > { %v9350_v56 = vmin.u32 %v6216_v21, %v18545_v14  ;;  %v6236_v0 = vsub.s32 4, %v6212_v4  ;;  %vm6393_vm4 = vcmp.lt.s32.totalorder %v18344_v43, 4  ;;  %9900 = vmatprep.mubr.msk.f32.mxu0 %vm6619_vm1, %v6045_v40  ;;  %10848 = vsinq.f32 %v6134_v3 }
 0x6c5   : > { %v18572_v6 = vmul.u32.u64.low %v6302_v7, %v6297_v50  ;;  %v18573_v19 = vmul.u32.u64.high %v6302_v7, %v6297_v50, %v18572_v6  ;;  %v6399_v42 = vsel %vm6393_vm4, %v18388_v22, 920167782  ;;  %v6403_v25 = vsel %vm6393_vm4, %v6389_v13, 1326507024 }
 0x6c6   : > { %v6218_v10 = vclz %v9350_v56  ;;  %v6293_v52 = vsel %vm6287_vm14, %v6290_v26, %v6292_v62  ;;  %v6493_v58 = vor.u32 %v18235_v36, %v18152_v2  ;;  %vm18590_vm3 = vcmp.le.f32.partialorder %v6150_v33, 0.7853982 }
 0x6c7   : > { %vm6152_vm6 = vcmp.lt.s32.totalorder %v20312_v9, 0  ;;  %v6358_v53 = vand.u32 2147483647, %v20327_v23  ;;  %vm6145_vm15 = vcmp.eq.s32.totalorder %v18527_v15, 2  ;;  %v6206_v59 = vadd.s32 %v18488_v49, %v18495_v44 }
 0x6c8   : > { %v9351_v13 = vadd.s32 4294967294, %v6218_v10  ;;  %v6237_v32 = vsel %vm6152_vm6, %v6236_v0, %v6212_v4  ;;  %vm6311_vm12 = vc.u32 %v18565_v1, %v18572_v6  ;;  %vm6142_vm9 = vcmp.eq.s32.totalorder %v18527_v15, 0 }
 0x6c9   : > { %v6309_v33 = vmul.u32 %v6302_v7, %v6293_v52  ;;  %v6312_v54 = vadd.s32 1, %v18573_v19  ;;  %v6376_v60 = vshrl.u32 %v19731_v29, %v18275_v35  ;;  %v6379_v57 = vshrl.u32 %v19820_v63, %v18275_v35 }
 0x6ca   : > { %vm6141_vm10 = vcmp.lt.s32.totalorder %v18527_v15, 2  ;;  %vm9352_vm7 = vcmp.lt.s32.totalorder %v9351_v13, 0  ;;  %v6375_v49 = vshll.u32 %v19730_v18, %v18238_v45  ;;  %v6378_v44 = vshll.u32 %v19731_v29, %v18238_v45 }
 0x6cb   : > { %v6382_v4 = vshrl.u32 %v19733_v61, %v18275_v35  ;;  %vm6138_vm13 = vweird.f32 %v20311_v34  ;;  %v6221_v11 = vsel %vm9352_vm7, 0, %v9351_v13  ;;  %v6313_v41 = vsel %vm6311_vm12, %v6312_v54, %v18573_v19 }
 0x6cc   : > { %v6365_v5 = vand.u32 8388607, %v6358_v53  ;;  %v6381_v47 = vshll.u32 %v19820_v63, %v18238_v45  ;;  %v6222_v31 = vsub.s32 32, %v6221_v11  ;;  %v6226_v51 = vsub.s32 4294967266, %v6221_v11 }
 0x6cd   : > { %v6239_v12 = vsel %vm18590_vm3, 0, %v6237_v32  ;;  %v6314_v37 = vadd.s32 %v6313_v41, %v6309_v33  ;;  %v6374_v38 = vshrl.u32 %v19730_v18, %v18275_v35  ;;  %v6377_v30 = vor.u32 %v6376_v60, %v6375_v49  ;;  %v10847_v62 = vpop.eup %10846 }
 0x6ce   : > { %v6380_v27 = vor.u32 %v6379_v57, %v6378_v44  ;;  %v6383_v26 = vor.u32 %v6382_v4, %v6381_v47  ;;  %v6223_v7 = vshll.u32 %v18545_v14, %v6221_v11  ;;  %v6224_v17 = vshrl.u32 %v6206_v59, %v6222_v31  ;;  %v10849_v50 = vpop.eup %10848  ;;  %v20329_v47 = vld [vmem:[#allocation107_spill] sm:$0xff] }
 0x6cf   : > { %v6227_v48 = vadd.s32 127, %v6226_v51  ;;  %v6315_v21 = vadd.s32 536870912, %v6314_v37  ;;  %v6146_v45 = vxor.u32 2147483648, %v10847_v62  ;;  %v6366_v55 = vor.u32 8388608, %v6365_v5 }
 0x6d0   : > { %vm6390_vm8 = vcmp.lt.s32.totalorder %v18344_v43, 1  ;;  %vm6391_vm11 = vcmp.lt.s32.totalorder %v18344_v43, 2  ;;  %v6143_v3 = vxor.u32 2147483648, %v10849_v50  ;;  %v6225_v46 = vor.u32 %v6224_v17, %v6223_v7 }
 0x6d1   : > { %v6228_v40 = vshll.u32 %v6227_v48, 23  ;;  %v18629_v35 = vshrl.u32 %v6315_v21, 30  ;;  %v6147_v56 = vsel %vm6145_vm15, %v6146_v45, %v10849_v50  ;;  %vm6392_vm5 = vcmp.lt.s32.totalorder %v18344_v43, 3 }
 0x6d2   : > { %v6398_v14 = vsel %vm6390_vm8, %v6377_v30, %v6380_v27  ;;  %v6402_v0 = vsel %vm6390_vm8, %v6380_v27, %v6383_v26  ;;  %v6144_v19 = vsel %vm6142_vm9, %v10847_v62, %v6143_v3  ;;  %v6400_v59 = vsel %vm6392_vm5, %v6383_v26, %v6399_v42 }
 0x6d3   : > { %v6229_v10 = vor.u32 4788187, %v6228_v40  ;;  %v6317_v52 = vshll.u32 %v18629_v35, 30  ;;  %v6148_v13 = vsel %vm6141_vm10, %v6144_v19, %v6147_v56  ;;  %v6232_v32 = vcvt.s32.f32 %v6225_v46 }
 0x6d4   : > { %v6395_v33 = vsel %vm6393_vm4, %v6383_v26, 2102212464  ;;  %v6404_v54 = vsel %vm6392_vm5, %v18388_v22, %v6403_v25  ;;  %v6149_v60 = vsel %vm6138_vm13, nan, %v6148_v13  ;;  %v6243_v15 = vadd.s32 3, %v6239_v12  ;;  %v20328_v25 = vld [vmem:[#allocation93_spill] sm:$0xff] }
 0x6d5   : > { %v6230_v57 = vand.u32 2147483647, %v6229_v10  ;;  %v6318_v49 = vsub.s32 %v6314_v37, %v6317_v52  ;;  %v6405_v44 = vsel %vm6391_vm11, %v6402_v0, %v6404_v54  ;;  %9901 = vmatmul.mubr.msk.f32.gmra.mrb[42].mxu0 %vm6619_vm1, %v6149_v60  ;;  %v6394_v42 = vsel %vm6390_vm8, %v6374_v38, %v6377_v30 }
 0x6d6   : > { %v6401_v4 = vsel %vm6391_vm11, %v6398_v14, %v6400_v59  ;;  %v6406_v11 = vshll.u32 %v6366_v55, 8  ;;  %v6396_v34 = vsel %vm6392_vm5, %v6380_v27, %v6395_v33  ;;  %v6462_v5 = vand.u32 2147483647, %v20328_v25 }
 0x6d7   : > { %v6233_v41 = vmul.f32 %v6232_v32, %v6230_v57  ;;  %v6320_v22 = vsub.s32 0, %v6318_v49  ;;  %vm6497_vm0 = vcmp.lt.s32.totalorder %v20329_v47, 4  ;;  %v6397_v62 = vsel %vm6391_vm11, %v6394_v42, %v6396_v34 }
 0x6d8   : > { %v18663_v31 = vmul.u32.u64.low %v6406_v11, %v6405_v44  ;;  %v18664_v51 = vmul.u32.u64.high %v6406_v11, %v6405_v44, %v18663_v31  ;;  %v18666_v26 = vmul.u32.u64.low %v6406_v11, %v6401_v4  ;;  %v18667_v38 = vmul.u32.u64.high %v6406_v11, %v6401_v4, %v18666_v26 }
 0x6d9   : > { %v6234_v12 = vxor.u32 2147483648, %v6233_v41  ;;  %v9354_v37 = vmin.u32 %v6320_v22, %v6318_v49  ;;  %v6503_v30 = vsel %vm6497_vm0, %v18272_v39, 920167782  ;;  %v6507_v27 = vsel %vm6497_vm0, %v6493_v58, 1326507024 }
 0x6da   : > { %v18682_v17 = vand.u32 3, %v6243_v15  ;;  %v6469_v21 = vand.u32 8388607, %v6462_v5  ;;  %v6310_v2 = vadd.s32 %v18572_v6, %v18565_v1  ;;  %v6478_v36 = vshrl.u32 %v19730_v18, %v17943_v20 }
 0x6db   : > { %v6235_v7 = vsel %vm6152_vm6, %v6234_v12, %v6233_v41  ;;  %v6322_v48 = vclz %v9354_v37  ;;  %v6480_v43 = vshrl.u32 %v19731_v29, %v17943_v20  ;;  %v6413_v45 = vmul.u32 %v6406_v11, %v6397_v62 }
 0x6dc   : > { %v6238_v50 = vsel %vm18590_vm3, %v20312_v9, %v6235_v7  ;;  %vm6415_vm2 = vc.u32 %v18664_v51, %v18666_v26  ;;  %v6416_v55 = vadd.s32 1, %v18667_v38  ;;  %v6479_v16 = vshll.u32 %v19730_v18, %v17902_v24 }
 0x6dd   : > { %10850 = vcosq.f32 %v6238_v50  ;;  %v9355_v58 = vadd.s32 4294967294, %v6322_v48  ;;  %v6482_v1 = vshll.u32 %v19731_v29, %v17902_v24  ;;  %v6470_v6 = vor.u32 8388608, %v6469_v21 }
 0x6de   : > { %10852 = vsinq.f32 %v6238_v50  ;;  %v6483_v3 = vshrl.u32 %v19820_v63, %v17943_v20  ;;  %v6486_v46 = vshrl.u32 %v19733_v61, %v17943_v20  ;;  %v6417_v56 = vsel %vm6415_vm2, %v6416_v55, %v18667_v38 }
 0x6df   : > { %vm9356_vm14 = vcmp.lt.s32.totalorder %v9355_v58, 0  ;;  %v6481_v14 = vor.u32 %v6480_v43, %v6479_v16  ;;  %v6485_v0 = vshll.u32 %v19820_v63, %v17902_v24  ;;  %v6418_v10 = vadd.s32 %v6417_v56, %v6413_v45 }
 0x6e0   : > { %v6325_v40 = vsel %vm9356_vm14, 0, %v9355_v58  ;;  %vm6494_vm4 = vcmp.lt.s32.totalorder %v20329_v47, 1  ;;  %v6484_v52 = vor.u32 %v6483_v3, %v6482_v1  ;;  %vm6496_vm3 = vcmp.lt.s32.totalorder %v20329_v47, 3 }
 0x6e1   : > { %v6326_v19 = vsub.s32 32, %v6325_v40  ;;  %v6330_v18 = vsub.s32 4294967266, %v6325_v40  ;;  %v6327_v29 = vshll.u32 %v6318_v49, %v6325_v40  ;;  %v6487_v59 = vor.u32 %v6486_v46, %v6485_v0 }
 0x6e2   : > { %v6419_v61 = vadd.s32 536870912, %v6418_v10  ;;  %v6508_v20 = vsel %vm6496_vm3, %v18272_v39, %v6507_v27  ;;  %vm6495_vm6 = vcmp.lt.s32.totalorder %v20329_v47, 2  ;;  %v6502_v63 = vsel %vm6494_vm4, %v6481_v14, %v6484_v52 }
 0x6e3   : > { %v6328_v13 = vshrl.u32 %v6310_v2, %v6326_v19  ;;  %v6331_v32 = vadd.s32 127, %v6330_v18  ;;  %v6504_v24 = vsel %vm6496_vm3, %v6487_v59, %v6503_v30  ;;  %v6506_v33 = vsel %vm6494_vm4, %v6484_v52, %v6487_v59 }
 0x6e4   : > { %v18721_v57 = vshrl.u32 %v6419_v61, 30  ;;  %v6499_v49 = vsel %vm6497_vm0, %v6487_v59, 2102212464  ;;  %vm6246_vm15 = vcmp.eq.s32.totalorder %v18682_v17, 0  ;;  %vm6249_vm12 = vcmp.eq.s32.totalorder %v18682_v17, 2 }
 0x6e5   : > { %v6329_v54 = vor.u32 %v6328_v13, %v6327_v29  ;;  %v6332_v60 = vshll.u32 %v6331_v32, 23  ;;  %v6509_v39 = vsel %vm6495_vm6, %v6506_v33, %v6508_v20  ;;  %v6510_v44 = vshll.u32 %v6470_v6, 8 }
 0x6e6   : > { %v6421_v4 = vshll.u32 %v18721_v57, 30  ;;  %v6498_v11 = vsel %vm6494_vm4, %v6478_v36, %v6481_v14  ;;  %v6505_v41 = vsel %vm6495_vm6, %v6502_v63, %v6504_v24  ;;  %v6500_v31 = vsel %vm6496_vm3, %v6484_v52, %v6499_v49 }
 0x6e7   : > { %v10851_v15 = vpop.eup %10850  ;;  %v6333_v42 = vor.u32 4788187, %v6332_v60  ;;  %v18736_v12 = vmul.u32.u64.low %v6510_v44, %v6509_v39  ;;  %v18737_v37 = vmul.u32.u64.high %v6510_v44, %v6509_v39, %v18736_v12  ;;  %v6336_v27 = vcvt.s32.f32 %v6329_v54 }
 0x6e8   : > { %v10853_v22 = vpop.eup %10852  ;;  %v6250_v34 = vxor.u32 2147483648, %v10851_v15  ;;  %v6422_v62 = vsub.s32 %v6418_v10, %v6421_v4  ;;  %v6340_v48 = vsub.s32 4, %v18629_v35  ;;  %vm6245_vm9 = vcmp.lt.s32.totalorder %v18682_v17, 2 }
 0x6e9   : > { %v6247_v38 = vxor.u32 2147483648, %v10853_v22  ;;  %v6334_v30 = vand.u32 2147483647, %v6333_v42  ;;  %v18742_v21 = vmul.u32.u64.low %v6510_v44, %v6505_v41  ;;  %v18743_v50 = vmul.u32.u64.high %v6510_v44, %v6505_v41, %v18742_v21 }
 0x6ea   : > { %v6251_v7 = vsel %vm6249_vm12, %v6250_v34, %v10853_v22  ;;  %v6424_v43 = vsub.s32 0, %v6422_v62  ;;  %vm6256_vm10 = vcmp.lt.s32.totalorder %v20318_v28, 0  ;;  %vm6242_vm7 = vweird.f32 %v20312_v9 }
 0x6eb   : > { %v6248_v2 = vsel %vm6246_vm15, %v10851_v15, %v6247_v38  ;;  %v6337_v36 = vmul.f32 %v6336_v27, %v6334_v30  ;;  %v6501_v45 = vsel %vm6495_vm6, %v6498_v11, %v6500_v31  ;;  %vm6519_vm13 = vc.u32 %v18737_v37, %v18742_v21  ;;  %v6573_v27 = vld [vmem:[%s11946_s21 + $0x38] sm:$0xff] }
 0x6ec   : > { %v6252_v58 = vsel %vm6245_vm9, %v6248_v2, %v6251_v7  ;;  %v9358_v1 = vmin.u32 %v6424_v43, %v6422_v62  ;;  %v6341_v17 = vsel %vm6256_vm10, %v6340_v48, %v18629_v35  ;;  %v6520_v6 = vadd.s32 1, %v18743_v50  ;;  %v7622_v43 = vld [vmem:[#allocation14] sm:$0xff] }
 0x6ed   : > { %v6253_v55 = vsel %vm6242_vm7, nan, %v6252_v58  ;;  %v6338_v16 = vxor.u32 2147483648, %v6337_v36  ;;  %vm6255_vm8 = vcmp.le.f32.partialorder %v6254_v8, 0.7853982  ;;  %v6517_v46 = vmul.u32 %v6510_v44, %v6501_v45  ;;  %v7623_v58 = vld [vmem:[#allocation14 + $0x8] sm:$0xff]  ;;  %v7624_v45 = vld [vmem:[#allocation14 + $0x10] sm:$0xff] }
 0x6ee   : > { %9903 = vmatprep.mubr.msk.f32.mxu0 %vm6619_vm1, %v6253_v55  ;;  %v6426_v3 = vclz %v9358_v1  ;;  %v6521_v40 = vsel %vm6519_vm13, %v6520_v6, %v18743_v50  ;;  %v6343_v56 = vsel %vm6255_vm8, 0, %v6341_v17  ;;  %v6414_v10 = vadd.s32 %v18666_v26, %v18664_v51  ;;  %v7625_v17 = vld [vmem:[#allocation14 + $0x18] sm:$0xff] }
 0x6ef   : > { %v6339_v9 = vsel %vm6256_vm10, %v6338_v16, %v6337_v36  ;;  %v6522_v0 = vadd.s32 %v6521_v40, %v6517_v46  ;;  %v6347_v35 = vadd.s32 3, %v6343_v56  ;;  %v6444_v22 = vsub.s32 4, %v18721_v57  ;;  %v7627_v46 = vld [vmem:[#allocation14 + $0x28] sm:$0xff] }
 0x6f0   : > { %v6342_v47 = vsel %vm6255_vm8, %v20318_v28, %v6339_v9  ;;  %v9359_v14 = vadd.s32 4294967294, %v6426_v3  ;;  %vm6346_vm14 = vweird.f32 %v20318_v28  ;;  %vm6360_vm4 = vcmp.lt.s32.totalorder %v20327_v23, 0 }
 0x6f1   : > { %10854 = vcosq.f32 %v6342_v47  ;;  %v6523_v19 = vadd.s32 536870912, %v6522_v0  ;;  %v6348_v20 = vand.u32 3, %v6347_v35  ;;  %vm18773_vm3 = vcmp.le.f32.partialorder %v6358_v53, 0.7853982  ;;  %v7629_v35 = vld [vmem:[#allocation14 + $0x38] sm:$0xff] }
 0x6f2   : > { %10856 = vsinq.f32 %v6342_v47  ;;  %vm9360_vm11 = vcmp.lt.s32.totalorder %v9359_v14, 0  ;;  %v6445_v7 = vsel %vm6360_vm4, %v6444_v22, %v18721_v57  ;;  %v6518_v50 = vadd.s32 %v18742_v21, %v18737_v37  ;;  %v7626_v21 = vld [vmem:[#allocation14 + $0x20] sm:$0xff] }
 0x6f3   : > { %v6429_v18 = vsel %vm9360_vm11, 0, %v9359_v14  ;;  %v18764_v52 = vshrl.u32 %v6523_v19, 30  ;;  %vm6353_vm5 = vcmp.eq.s32.totalorder %v6348_v20, 2  ;;  %vm6349_vm0 = vcmp.lt.s32.totalorder %v6348_v20, 2  ;;  %v7628_v19 = vld [vmem:[#allocation14 + $0x30] sm:$0xff] }
 0x6f4   : > { %v6430_v8 = vsub.s32 32, %v6429_v18  ;;  %v6434_v29 = vsub.s32 4294967266, %v6429_v18  ;;  %v6431_v59 = vshll.u32 %v6422_v62, %v6429_v18  ;;  %vm6350_vm2 = vcmp.eq.s32.totalorder %v6348_v20, 0 }
 0x6f5   : > { %v6525_v61 = vshll.u32 %v18764_v52, 30  ;;  %v6447_v53 = vsel %vm18773_vm3, 0, %v6445_v7  ;;  %v18785_v1 = vpack.c.bf16 %v7623_v58, %v7622_v43  ;;  %v18788_v37 = vpack.c.bf16 %v7625_v17, %v7624_v45  ;;  %v6575_v7 = vld [vmem:[%s11946_s21 + $0x48] sm:$0xff]  ;;  %v6582_v43 = vld [vmem:[%s11946_s21 + $0x80] sm:$0xff]  ;;  %v6584_v45 = vld [vmem:[%s11946_s21 + $0x90] sm:$0xff] }
 0x6f6   : > { %v6432_v13 = vshrl.u32 %v6414_v10, %v6430_v8  ;;  %v6435_v32 = vadd.s32 127, %v6434_v29  ;;  %v6451_v6 = vadd.s32 3, %v6447_v53  ;;  %v6548_v8 = vsub.s32 4, %v18764_v52  ;;  %v6581_v53 = vld [vmem:[%s11946_s21 + $0x78] sm:$0xff]  ;;  %v6583_v58 = vld [vmem:[%s11946_s21 + $0x88] sm:$0xff] }
 0x6f7   : > { %v6526_v33 = vsub.s32 %v6522_v0, %v6525_v61  ;;  %10170 = vmatprep.subr.bf16.mxu0 %v18785_v1  ;;  %10201 = vmatprep.subr.bf16.mxu1 %v18785_v1  ;;  %v18793_v0 = vpack.c.bf16 %v7627_v46, %v7626_v21  ;;  %v10181_v61 = vpack.c.bf16 %v7629_v35, %v7628_v19  ;;  %vm6464_vm12 = vcmp.lt.s32.totalorder %v20328_v25, 0  ;;  %v6589_v17 = vld [vmem:[%s11946_s21 + $0xb8] sm:$0xff]  ;;  %v6594_v21 = vld [vmem:[%s11946_s21 + $0xe0] sm:$0xff]  ;;  %v6595_v46 = vld [vmem:[%s11946_s21 + $0xe8] sm:$0xff] }
 0x6f8   : > { %v6433_v63 = vor.u32 %v6432_v13, %v6431_v59  ;;  %v6436_v24 = vshll.u32 %v6435_v32, 23  ;;  %10205 = vmatpush3.bf16.msra.mxu1 %v18785_v1  ;;  %v6452_v40 = vand.u32 3, %v6451_v6  ;;  %vm18801_vm10 = vcmp.le.f32.partialorder %v6462_v5, 0.7853982  ;;  %v6590_v6 = vld [vmem:[%s11946_s21 + $0xc0] sm:$0xff]  ;;  %v6601_v19 = vld [vmem:[%s11946_s21 + $0x118] sm:$0xff] }
 0x6f9   : > { %v6528_v49 = vsub.s32 0, %v6526_v33  ;;  %10202 = vmatprep.subr.bf16.mxu1 %v18788_v37  ;;  %vm6450_vm13 = vweird.f32 %v20327_v23  ;;  %v6602_v35 = vld [vmem:[%s11946_s21 + $0x120] sm:$0xff] }
 0x6fa   : > { %v6437_v60 = vor.u32 4788187, %v6436_v24  ;;  %v6440_v15 = vcvt.s32.f32 %v6433_v63  ;;  %vm6457_vm15 = vcmp.eq.s32.totalorder %v6452_v40, 2  ;;  %vm6454_vm9 = vcmp.eq.s32.totalorder %v6452_v40, 0  ;;  %v6612_v63 = vld [vmem:[%s11946_s21 + $0x170] sm:$0xff] }
 0x6fb   : > { %v10855_v54 = vpop.eup %10854  ;;  %v9362_v42 = vmin.u32 %v6528_v49, %v6526_v33  ;;  %vm6453_vm7 = vcmp.lt.s32.totalorder %v6452_v40, 2  ;;  %v6597_v40 = vld [vmem:[%s11946_s21 + $0xf8] sm:$0xff] }
 0x6fc   : > { %v10857_v39 = vpop.eup %10856  ;;  %v6354_v44 = vxor.u32 2147483648, %v10855_v54  ;;  %v6438_v26 = vand.u32 2147483647, %v6437_v60  ;;  %10206 = vmatpush3.bf16.msra.mxu1 %v18788_v37 }
 0x6fd   : > { %v6351_v51 = vxor.u32 2147483648, %v10857_v39  ;;  %v6530_v34 = vclz %v9362_v42  ;;  %10203 = vmatprep.subr.bf16.mxu1 %v18793_v0 }
 0x6fe   : > { %v6355_v4 = vsel %vm6353_vm5, %v6354_v44, %v10857_v39  ;;  %v6441_v41 = vmul.f32 %v6440_v15, %v6438_v26 }
 0x6ff   : > { %v6352_v11 = vsel %vm6350_vm2, %v10855_v54, %v6351_v51  ;;  %v9363_v30 = vadd.s32 4294967294, %v6530_v34  ;;  %v6549_v54 = vsel %vm6464_vm12, %v6548_v8, %v18764_v52  ;;  %vm7069_vm2 = vcmask 130048   ;;  %v6567_v34 = vld [vmem:[%s11946_s21 + $0x8] sm:$0xff]  ;;  %v6605_v8 = vld [vmem:[%s11946_s21 + $0x138] sm:$0xff] }
 0x700   : > { %v6356_v31 = vsel %vm6349_vm0, %v6352_v11, %v6355_v4  ;;  %v6442_v38 = vxor.u32 2147483648, %v6441_v41  ;;  %10207 = vmatpush3.bf16.msra.mxu1 %v18793_v0  ;;  %v6551_v5 = vsel %vm18801_vm10, 0, %v6549_v54  ;;  %vm6554_vm0 = vweird.f32 %v20328_v25  ;;  %v8136_v54 = vld [vmem:[#allocation17 + $0x8] sm:$0xff] }
 0x701   : > { %v6357_v12 = vsel %vm6346_vm14, nan, %v6356_v31  ;;  %vm9364_vm6 = vcmp.lt.s32.totalorder %v9363_v30, 0  ;;  %10204 = vmatprep.subr.bf16.mxu1 %v10181_v61  ;;  %v6555_v44 = vadd.s32 3, %v6551_v5  ;;  %v6568_v31 = vld [vmem:[%s11946_s21 + $0x10] sm:$0xff]  ;;  %vm8887_vm14 = vcmask 23552  }
 0x702   : > { %9904 = vmatmul.mubr.msk.f32.gmra.mrb[44].mxu0 %vm6619_vm1, %v6357_v12  ;;  %v6443_v62 = vsel %vm6360_vm4, %v6442_v38, %v6441_v41  ;;  %v6533_v48 = vsel %vm9364_vm6, 0, %v9363_v30  ;;  %v6566_v41 = vld [vmem:[%s11946_s21] sm:$0xff]  ;;  %v6569_v12 = vld [vmem:[%s11946_s21 + $0x18] sm:$0xff]  ;;  %v6571_v38 = vld [vmem:[%s11946_s21 + $0x28] sm:$0xff] }
 0x703   : > { %v6446_v28 = vsel %vm18773_vm3, %v20327_v23, %v6443_v62  ;;  %v6534_v2 = vsub.s32 32, %v6533_v48  ;;  %v6538_v36 = vsub.s32 4294967266, %v6533_v48  ;;  %v6535_v57 = vshll.u32 %v6526_v33, %v6533_v48  ;;  %v6572_v30 = vld [vmem:[%s11946_s21 + $0x30] sm:$0xff]  ;;  %v6574_v62 = vld [vmem:[%s11946_s21 + $0x40] sm:$0xff]  ;;  %v6577_v48 = vld [vmem:[%s11946_s21 + $0x58] sm:$0xff] }
 0x704   : > { %10858 = vcosq.f32 %v6446_v28  ;;  %10208 = vmatpush3.bf16.msra.mxu1 %v10181_v61  ;;  %v6556_v52 = vand.u32 3, %v6555_v44 }
 0x705   : > { %10860 = vsinq.f32 %v6446_v28  ;;  %v6536_v55 = vshrl.u32 %v6518_v50, %v6534_v2  ;;  %v6539_v16 = vadd.s32 127, %v6538_v36  ;;  %v6576_v28 = vld [vmem:[%s11946_s21 + $0x50] sm:$0xff]  ;;  %v6578_v50 = vld [vmem:[%s11946_s21 + $0x60] sm:$0xff]  ;;  %v6579_v2 = vld [vmem:[%s11946_s21 + $0x68] sm:$0xff] }
 0x706   : > { %vm6561_vm8 = vcmp.eq.s32.totalorder %v6556_v52, 2  ;;  %vm6558_vm11 = vcmp.eq.s32.totalorder %v6556_v52, 0  ;;  %vm6557_vm5 = vcmp.lt.s32.totalorder %v6556_v52, 2  ;;  %v6580_v36 = vld [vmem:[%s11946_s21 + $0x70] sm:$0xff] }
 0x707   : > { %v6537_v9 = vor.u32 %v6536_v55, %v6535_v57  ;;  %v6540_v3 = vshll.u32 %v6539_v16, 23  ;;  %v6585_v57 = vld [vmem:[%s11946_s21 + $0x98] sm:$0xff]  ;;  %v6586_v55 = vld [vmem:[%s11946_s21 + $0xa0] sm:$0xff]  ;;  %v6587_v16 = vld [vmem:[%s11946_s21 + $0xa8] sm:$0xff] }
 0x709   : > { %v6541_v47 = vor.u32 4788187, %v6540_v3  ;;  %v6544_v14 = vcvt.s32.f32 %v6537_v9  ;;  %v6591_v9 = vld [vmem:[%s11946_s21 + $0xc8] sm:$0xff]  ;;  %v6592_v3 = vld [vmem:[%s11946_s21 + $0xd0] sm:$0xff] }
 0x70b   : > { %v6542_v56 = vand.u32 2147483647, %v6541_v47  ;;  %v6596_v47 = vld [vmem:[%s11946_s21 + $0xf0] sm:$0xff] }
 0x70d   : > { %v6545_v10 = vmul.f32 %v6544_v14, %v6542_v56  ;;  %v6598_v56 = vld [vmem:[%s11946_s21 + $0x100] sm:$0xff]  ;;  %v6599_v14 = vld [vmem:[%s11946_s21 + $0x108] sm:$0xff] }
 0x70e   : > { %v10859_v18 = vpop.eup %10858 }
 0x70f   : > { %v10861_v29 = vpop.eup %10860  ;;  %v6458_v59 = vxor.u32 2147483648, %v10859_v18  ;;  %v6546_v32 = vxor.u32 2147483648, %v6545_v10 }
 0x710   : > { %v6455_v13 = vxor.u32 2147483648, %v10861_v29 }
 0x711   : > { %v6459_v20 = vsel %vm6457_vm15, %v6458_v59, %v10861_v29  ;;  %v6547_v33 = vsel %vm6464_vm12, %v6546_v32, %v6545_v10  ;;  %v6604_v10 = vld [vmem:[%s11946_s21 + $0x130] sm:$0xff]  ;;  %v6606_v29 = vld [vmem:[%s11946_s21 + $0x140] sm:$0xff]  ;;  %v6607_v59 = vld [vmem:[%s11946_s21 + $0x148] sm:$0xff] }
 0x712   : > { %v6456_v24 = vsel %vm6454_vm9, %v10859_v18, %v6455_v13  ;;  %v6550_v49 = vsel %vm18801_vm10, %v20328_v25, %v6547_v33  ;;  %v6570_v25 = vld [vmem:[%s11946_s21 + $0x20] sm:$0xff]  ;;  %v6603_v18 = vld [vmem:[%s11946_s21 + $0x128] sm:$0xff]  ;;  %v6608_v13 = vld [vmem:[%s11946_s21 + $0x150] sm:$0xff] }
 0x713   : > { %v6460_v60 = vsel %vm6453_vm7, %v6456_v24, %v6459_v20  ;;  %10862 = vcosq.f32 %v6550_v49  ;;  %v6609_v32 = vld [vmem:[%s11946_s21 + $0x158] sm:$0xff]  ;;  %v6611_v20 = vld [vmem:[%s11946_s21 + $0x168] sm:$0xff] }
 0x714   : > { %v6461_v39 = vsel %vm6450_vm13, nan, %v6460_v60  ;;  %10864 = vsinq.f32 %v6550_v49  ;;  %v6613_v24 = vld [vmem:[%s11946_s21 + $0x178] sm:$0xff]  ;;  %v18917_v49 = vld [vmem:[#allocation13] ss:$0 sm:$0xff] }
 0x715   : > { %9906 = vmatprep.mubr.msk.f32.mxu0 %vm6619_vm1, %v6461_v39  ;;  %v8135_v33 = vld [vmem:[#allocation17] sm:$0xff] }
 0x716   : > { %v10185_v60 = vpack.c.bf16 %v8136_v54, %v8135_v33 }
 0x718   : > { %10186 = vmatprep.subr.bf16.mxu1 %v10185_v60 }
 0x71d   : > { %v10863_v51 = vpop.eup %10862 }
 0x71e   : > { %v10865_v23 = vpop.eup %10864  ;;  %v6562_v26 = vxor.u32 2147483648, %v10863_v51 }
 0x71f   : > { %v6559_v15 = vxor.u32 2147483648, %v10865_v23 }
 0x720   : > { %v6563_v42 = vsel %vm6561_vm8, %v6562_v26, %v10865_v23 }
 0x721   : > { %v6560_v4 = vsel %vm6558_vm11, %v10863_v51, %v6559_v15 }
 0x722   : > { %v6564_v11 = vsel %vm6557_vm5, %v6560_v4, %v6563_v42 }
 0x723   : > { %v6565_v22 = vsel %vm6554_vm0, nan, %v6564_v11  ;;  %v8137_v11 = vld [vmem:[#allocation17 + $0x10] sm:$0xff] }
 0x724   : > { %9907 = vmatmul.mubr.msk.f32.gmra.mrb[46].mxu0 %vm6619_vm1, %v6565_v22  ;;  %vm7637_vm1 = vcmask 523264  }
 0x725   : > { %9913 = vmatprep.mubr.msk.f32.mxu0 %vm7069_vm2, %v6566_v41  ;;  %v8138_v41 = vld [vmem:[#allocation17 + $0x18] sm:$0xff] }
 0x728   : > { %9914 = vmatmul.mubr.msk.f32.vlgmr.msra.gmra.mrb[0].mxu0 %vm7069_vm2, %v6567_v34 }
 0x729   : > { %9916 = vmatprep.mubr.msk.f32.mxu0 %vm7069_vm2, %v6568_v31  ;;  %10172 = vmatpush3.bf16.msra.mxu0 %v18785_v1  ;;  %v6588_v1 = vld [vmem:[%s11946_s21 + $0xb0] sm:$0xff] }
 0x72a   : > { %10174 = vmatprep.subr.bf16.mxu0 %v18788_v37 }
 0x72c   : > { %9917 = vmatmul.mubr.msk.f32.gmra.mrb[2].mxu0 %vm7069_vm2, %v6569_v12 }
 0x72d   : > { %9919 = vmatprep.mubr.msk.f32.mxu0 %vm7069_vm2, %v6570_v25  ;;  %10176 = vmatpush3.bf16.msra.mxu0 %v18788_v37  ;;  %v6593_v37 = vld [vmem:[%s11946_s21 + $0xd8] sm:$0xff] }
 0x72e   : > { %10178 = vmatprep.subr.bf16.mxu0 %v18793_v0 }
 0x730   : > { %9920 = vmatmul.mubr.msk.f32.gmra.mrb[4].mxu0 %vm7069_vm2, %v6571_v38  ;;  %v10189_v38 = vpack.c.bf16 %v8138_v41, %v8137_v11 }
 0x731   : > { %9922 = vmatprep.mubr.msk.f32.mxu0 %vm7069_vm2, %v6572_v30  ;;  %10180 = vmatpush3.bf16.msra.mxu0 %v18793_v0  ;;  %v6600_v0 = vld [vmem:[%s11946_s21 + $0x110] sm:$0xff] }
 0x732   : > { %10182 = vmatprep.subr.bf16.mxu0 %v10181_v61 }
 0x734   : > { %9923 = vmatmul.mubr.msk.f32.gmra.mrb[6].mxu0 %vm7069_vm2, %v6573_v27  ;;  %v8139_v27 = vld [vmem:[#allocation17 + $0x20] sm:$0xff] }
 0x735   : > { %9925 = vmatprep.mubr.msk.f32.mxu0 %vm7069_vm2, %v6574_v62  ;;  %10184 = vmatpush3.bf16.msra.mxu0 %v10181_v61  ;;  %v6610_v61 = vld [vmem:[%s11946_s21 + $0x160] sm:$0xff] }
 0x736   : > { %v8140_v62 = vld [vmem:[#allocation17 + $0x28] sm:$0xff] }
 0x738   : > { %9926 = vmatmul.mubr.msk.f32.gmra.mrb[8].mxu0 %vm7069_vm2, %v6575_v7 }
 0x739   : > { %9928 = vmatprep.mubr.msk.f32.mxu0 %vm7069_vm2, %v6576_v28 }
 0x73c   : > { %9929 = vmatmul.mubr.msk.f32.gmra.mrb[10].mxu0 %vm7069_vm2, %v6577_v48 }
 0x73d   : > { %9931 = vmatprep.mubr.msk.f32.mxu0 %vm7069_vm2, %v6578_v50 }
 0x740   : > { %9932 = vmatmul.mubr.msk.f32.gmra.mrb[12].mxu0 %vm7069_vm2, %v6579_v2 }
 0x741   : > { %9934 = vmatprep.mubr.msk.f32.mxu0 %vm7069_vm2, %v6580_v36  ;;  %v10193_v36 = vpack.c.bf16 %v8140_v62, %v8139_v27 }
 0x744   : > { %9935 = vmatmul.mubr.msk.f32.gmra.mrb[14].mxu0 %vm7069_vm2, %v6581_v53 }
 0x745   : > { %9937 = vmatprep.mubr.msk.f32.mxu0 %vm7069_vm2, %v6582_v43  ;;  %v8141_v43 = vld [vmem:[#allocation17 + $0x30] sm:$0xff] }
 0x748   : > { %9938 = vmatmul.mubr.msk.f32.gmra.mrb[16].mxu0 %vm7069_vm2, %v6583_v58  ;;  %v8142_v58 = vld [vmem:[#allocation17 + $0x38] sm:$0xff] }
 0x749   : > { %9940 = vmatprep.mubr.msk.f32.mxu0 %vm7069_vm2, %v6584_v45 }
 0x74c   : > { %9941 = vmatmul.mubr.msk.f32.gmra.mrb[18].mxu0 %vm7069_vm2, %v6585_v57 }
 0x74d   : > { %9943 = vmatprep.mubr.msk.f32.mxu0 %vm7069_vm2, %v6586_v55 }
 0x750   : > { %9944 = vmatmul.mubr.msk.f32.gmra.mrb[20].mxu0 %vm7069_vm2, %v6587_v16 }
 0x751   : > { %9946 = vmatprep.mubr.msk.f32.mxu0 %vm7069_vm2, %v6588_v1 }
 0x754   : > { %9947 = vmatmul.mubr.msk.f32.gmra.mrb[22].mxu0 %vm7069_vm2, %v6589_v17  ;;  %v10197_v17 = vpack.c.bf16 %v8142_v58, %v8141_v43 }
 0x755   : > { %9949 = vmatprep.mubr.msk.f32.mxu0 %vm7069_vm2, %v6590_v6 }
 0x758   : > { %9950 = vmatmul.mubr.msk.f32.gmra.mrb[24].mxu0 %vm7069_vm2, %v6591_v9 }
 0x759   : > { %9952 = vmatprep.mubr.msk.f32.mxu0 %vm7069_vm2, %v6592_v3 }
 0x75c   : > { %9953 = vmatmul.mubr.msk.f32.gmra.mrb[26].mxu0 %vm7069_vm2, %v6593_v37 }
 0x75d   : > { %9955 = vmatprep.mubr.msk.f32.mxu0 %vm7069_vm2, %v6594_v21 }
 0x760   : > { %9956 = vmatmul.mubr.msk.f32.gmra.mrb[28].mxu0 %vm7069_vm2, %v6595_v46 }
 0x761   : > { %9958 = vmatprep.mubr.msk.f32.mxu0 %vm7069_vm2, %v6596_v47 }
 0x764   : > { %9959 = vmatmul.mubr.msk.f32.gmra.mrb[30].mxu0 %vm7069_vm2, %v6597_v40 }
 0x765   : > { %9961 = vmatprep.mubr.msk.f32.mxu0 %vm7069_vm2, %v6598_v56 }
 0x768   : > { %9962 = vmatmul.mubr.msk.f32.gmra.mrb[32].mxu0 %vm7069_vm2, %v6599_v14 }
 0x769   : > { %9964 = vmatprep.mubr.msk.f32.mxu0 %vm7069_vm2, %v6600_v0 }
 0x76c   : > { %9965 = vmatmul.mubr.msk.f32.gmra.mrb[34].mxu0 %vm7069_vm2, %v6601_v19 }
 0x76d   : > { %9967 = vmatprep.mubr.msk.f32.mxu0 %vm7069_vm2, %v6602_v35 }
 0x770   : > { %9968 = vmatmul.mubr.msk.f32.gmra.mrb[36].mxu0 %vm7069_vm2, %v6603_v18 }
 0x771   : > { %9970 = vmatprep.mubr.msk.f32.mxu0 %vm7069_vm2, %v6604_v10 }
 0x774   : > { %9971 = vmatmul.mubr.msk.f32.gmra.mrb[38].mxu0 %vm7069_vm2, %v6605_v8 }
 0x775   : > { %9973 = vmatprep.mubr.msk.f32.mxu0 %vm7069_vm2, %v6606_v29 }
 0x778   : > { %9974 = vmatmul.mubr.msk.f32.gmra.mrb[40].mxu0 %vm7069_vm2, %v6607_v59 }
 0x779   : > { %9976 = vmatprep.mubr.msk.f32.mxu0 %vm7069_vm2, %v6608_v13 }
 0x77c   : > { %9977 = vmatmul.mubr.msk.f32.gmra.mrb[42].mxu0 %vm7069_vm2, %v6609_v32 }
 0x77d   : > { %9979 = vmatprep.mubr.msk.f32.mxu0 %vm7069_vm2, %v6610_v61 }
 0x780   : > { %9980 = vmatmul.mubr.msk.f32.gmra.mrb[44].mxu0 %vm7069_vm2, %v6611_v20 }
 0x781   : > { %9982 = vmatprep.mubr.msk.f32.mxu0 %vm7069_vm2, %v6612_v63 }
 0x784   : > { %9983 = vmatmul.mubr.msk.f32.gmra.mrb[46].mxu0 %vm7069_vm2, %v6613_v24 }
 0x7fb   : > { %v9915_v39 = vpop.f32.mrb[0].mxu0 }
 0x7fc   : > { %v7527_v5 = vadd.f32 %v9915_v39, %v18917_v49  ;;  %v7280_v44 = vpop.f32.mrb[1].mxu0 }
 0x7fd   : > { %v7526_v52 = vadd.f32 %v18917_v49, %v7280_v44 }
 0x7fe   : > { %v7575_v26 = vmax.f32 %v7527_v5, 0.0 }
 0x7ff   : > { %v7574_v51 = vmax.f32 %v7526_v52, 0.0  ;;  %v9918_v23 = vpop.f32.mrb[2].mxu0 }
 0x800   : > { %v7529_v15 = vadd.f32 %v9918_v23, %v18917_v49  ;;  %v7290_v42 = vpop.f32.mrb[3].mxu0 }
 0x801   : > { %v7528_v4 = vadd.f32 %v18917_v49, %v7290_v42  ;;  %10001 = vmatprep.mubr.msk.f32.mxu0 %vm7637_vm1, %v7574_v51 }
 0x802   : > { %10002 = vmatmul.mubr.msk.f32.vlgmr.msra.gmra.mrb[48].mxu0 %vm7637_vm1, %v7575_v26  ;;  %v7577_v31 = vmax.f32 %v7529_v15, 0.0 }
 0x803   : > { %v7576_v22 = vmax.f32 %v7528_v4, 0.0  ;;  %v9921_v34 = vpop.f32.mrb[4].mxu0 }
 0x804   : > { %v7531_v12 = vadd.f32 %v9921_v34, %v18917_v49  ;;  %v7300_v25 = vpop.f32.mrb[5].mxu0 }
 0x805   : > { %v7530_v30 = vadd.f32 %v18917_v49, %v7300_v25  ;;  %10004 = vmatprep.mubr.msk.f32.mxu1 %vm7637_vm1, %v7576_v22 }
 0x806   : > { %10005 = vmatmul.mubr.msk.f32.vlgmr.msra.gmra.mrb[0].mxu1 %vm7637_vm1, %v7577_v31  ;;  %v7579_v48 = vmax.f32 %v7531_v12, 0.0 }
 0x807   : > { %v7578_v7 = vmax.f32 %v7530_v30, 0.0  ;;  %v9924_v28 = vpop.f32.mrb[6].mxu0  ;;  %10188 = vmatpush3.bf16.msra.mxu1 %v10185_v60 }
 0x808   : > { %v7533_v50 = vadd.f32 %v9924_v28, %v18917_v49  ;;  %v7310_v2 = vpop.f32.mrb[7].mxu0  ;;  %10190 = vmatprep.subr.bf16.mxu1 %v10189_v38 }
 0x809   : > { %v7532_v53 = vadd.f32 %v18917_v49, %v7310_v2  ;;  %10007 = vmatprep.mubr.msk.f32.mxu1 %vm7637_vm1, %v7578_v7 }
 0x80a   : > { %10008 = vmatmul.mubr.msk.f32.gmra.mrb[2].mxu1 %vm7637_vm1, %v7579_v48  ;;  %v7581_v55 = vmax.f32 %v7533_v50, 0.0 }
 0x80b   : > { %v7580_v45 = vmax.f32 %v7532_v53, 0.0  ;;  %v9927_v57 = vpop.f32.mrb[8].mxu0  ;;  %10192 = vmatpush3.bf16.msra.mxu1 %v10189_v38 }
 0x80c   : > { %v7535_v16 = vadd.f32 %v9927_v57, %v18917_v49  ;;  %v7320_v1 = vpop.f32.mrb[9].mxu0  ;;  %10194 = vmatprep.subr.bf16.mxu1 %v10193_v36 }
 0x80d   : > { %v7534_v6 = vadd.f32 %v18917_v49, %v7320_v1  ;;  %10010 = vmatprep.mubr.msk.f32.mxu1 %vm7637_vm1, %v7580_v45 }
 0x80e   : > { %10011 = vmatmul.mubr.msk.f32.gmra.mrb[4].mxu1 %vm7637_vm1, %v7581_v55  ;;  %v7583_v37 = vmax.f32 %v7535_v16, 0.0 }
 0x80f   : > { %v7582_v9 = vmax.f32 %v7534_v6, 0.0  ;;  %v9930_v3 = vpop.f32.mrb[10].mxu0  ;;  %10196 = vmatpush3.bf16.msra.mxu1 %v10193_v36 }
 0x810   : > { %v7537_v21 = vadd.f32 %v9930_v3, %v18917_v49  ;;  %v7330_v46 = vpop.f32.mrb[11].mxu0  ;;  %10198 = vmatprep.subr.bf16.mxu1 %v10197_v17 }
 0x811   : > { %v7536_v47 = vadd.f32 %v18917_v49, %v7330_v46  ;;  %10013 = vmatprep.mubr.msk.f32.mxu1 %vm7637_vm1, %v7582_v9 }
 0x812   : > { %10014 = vmatmul.mubr.msk.f32.gmra.mrb[6].mxu1 %vm7637_vm1, %v7583_v37  ;;  %v7585_v14 = vmax.f32 %v7537_v21, 0.0 }
 0x813   : > { %v7584_v40 = vmax.f32 %v7536_v47, 0.0  ;;  %v9933_v56 = vpop.f32.mrb[12].mxu0  ;;  %10200 = vmatpush3.bf16.msra.mxu1 %v10197_v17 }
 0x814   : > { %v7539_v0 = vadd.f32 %v9933_v56, %v18917_v49  ;;  %v7340_v19 = vpop.f32.mrb[13].mxu0 }
 0x815   : > { %v7538_v35 = vadd.f32 %v18917_v49, %v7340_v19  ;;  %10016 = vmatprep.mubr.msk.f32.mxu1 %vm7637_vm1, %v7584_v40 }
 0x816   : > { %10017 = vmatmul.mubr.msk.f32.gmra.mrb[8].mxu1 %vm7637_vm1, %v7585_v14  ;;  %v7587_v8 = vmax.f32 %v7539_v0, 0.0 }
 0x817   : > { %v7586_v18 = vmax.f32 %v7538_v35, 0.0  ;;  %v9936_v10 = vpop.f32.mrb[14].mxu0 }
 0x818   : > { %v7541_v29 = vadd.f32 %v9936_v10, %v18917_v49  ;;  %v7350_v59 = vpop.f32.mrb[15].mxu0 }
 0x819   : > { %v7540_v13 = vadd.f32 %v18917_v49, %v7350_v59  ;;  %10019 = vmatprep.mubr.msk.f32.mxu1 %vm7637_vm1, %v7586_v18 }
 0x81a   : > { %10020 = vmatmul.mubr.msk.f32.gmra.mrb[10].mxu1 %vm7637_vm1, %v7587_v8  ;;  %v7589_v20 = vmax.f32 %v7541_v29, 0.0 }
 0x81b   : > { %v7588_v32 = vmax.f32 %v7540_v13, 0.0  ;;  %v9939_v61 = vpop.f32.mrb[16].mxu0 }
 0x81c   : > { %v7543_v63 = vadd.f32 %v9939_v61, %v18917_v49  ;;  %v7360_v24 = vpop.f32.mrb[17].mxu0 }
 0x81d   : > { %v7542_v33 = vadd.f32 %v18917_v49, %v7360_v24  ;;  %10022 = vmatprep.mubr.msk.f32.mxu1 %vm7637_vm1, %v7588_v32 }
 0x81e   : > { %10023 = vmatmul.mubr.msk.f32.gmra.mrb[12].mxu1 %vm7637_vm1, %v7589_v20  ;;  %v7591_v39 = vmax.f32 %v7543_v63, 0.0 }
 0x81f   : > { %v7590_v54 = vmax.f32 %v7542_v33, 0.0  ;;  %v9942_v60 = vpop.f32.mrb[18].mxu0 }
 0x820   : > { %v7545_v5 = vadd.f32 %v9942_v60, %v18917_v49  ;;  %v7370_v44 = vpop.f32.mrb[19].mxu0 }
 0x821   : > { %v7544_v52 = vadd.f32 %v18917_v49, %v7370_v44  ;;  %10025 = vmatprep.mubr.msk.f32.mxu1 %vm7637_vm1, %v7590_v54 }
 0x822   : > { %10026 = vmatmul.mubr.msk.f32.gmra.mrb[14].mxu1 %vm7637_vm1, %v7591_v39  ;;  %v7593_v26 = vmax.f32 %v7545_v5, 0.0 }
 0x823   : > { %v7592_v51 = vmax.f32 %v7544_v52, 0.0  ;;  %v9945_v23 = vpop.f32.mrb[20].mxu0 }
 0x824   : > { %v7547_v15 = vadd.f32 %v9945_v23, %v18917_v49  ;;  %v7380_v42 = vpop.f32.mrb[21].mxu0 }
 0x825   : > { %v7546_v4 = vadd.f32 %v18917_v49, %v7380_v42  ;;  %10028 = vmatprep.mubr.msk.f32.mxu1 %vm7637_vm1, %v7592_v51 }
 0x826   : > { %10029 = vmatmul.mubr.msk.f32.gmra.mrb[16].mxu1 %vm7637_vm1, %v7593_v26  ;;  %v7595_v22 = vmax.f32 %v7547_v15, 0.0 }
 0x827   : > { %v7594_v11 = vmax.f32 %v7546_v4, 0.0  ;;  %v9948_v41 = vpop.f32.mrb[22].mxu0 }
 0x828   : > { %v7549_v34 = vadd.f32 %v9948_v41, %v18917_v49  ;;  %v7390_v31 = vpop.f32.mrb[23].mxu0 }
 0x829   : > { %v7548_v12 = vadd.f32 %v18917_v49, %v7390_v31  ;;  %10031 = vmatprep.mubr.msk.f32.mxu1 %vm7637_vm1, %v7594_v11 }
 0x82a   : > { %10032 = vmatmul.mubr.msk.f32.gmra.mrb[18].mxu1 %vm7637_vm1, %v7595_v22  ;;  %v7597_v30 = vmax.f32 %v7549_v34, 0.0 }
 0x82b   : > { %v7596_v25 = vmax.f32 %v7548_v12, 0.0  ;;  %v9951_v38 = vpop.f32.mrb[24].mxu0 }
 0x82c   : > { %v7551_v27 = vadd.f32 %v9951_v38, %v18917_v49  ;;  %v7400_v62 = vpop.f32.mrb[25].mxu0 }
 0x82d   : > { %v7550_v7 = vadd.f32 %v18917_v49, %v7400_v62  ;;  %10034 = vmatprep.mubr.msk.f32.mxu1 %vm7637_vm1, %v7596_v25 }
 0x82e   : > { %10035 = vmatmul.mubr.msk.f32.gmra.mrb[20].mxu1 %vm7637_vm1, %v7597_v30  ;;  %v7599_v50 = vmax.f32 %v7551_v27, 0.0 }
 0x82f   : > { %v7598_v28 = vmax.f32 %v7550_v7, 0.0  ;;  %v9954_v48 = vpop.f32.mrb[26].mxu0 }
 0x830   : > { %v7553_v2 = vadd.f32 %v9954_v48, %v18917_v49  ;;  %v7410_v36 = vpop.f32.mrb[27].mxu0 }
 0x831   : > { %v7552_v53 = vadd.f32 %v18917_v49, %v7410_v36  ;;  %10037 = vmatprep.mubr.msk.f32.mxu1 %vm7637_vm1, %v7598_v28 }
 0x832   : > { %10038 = vmatmul.mubr.msk.f32.gmra.mrb[22].mxu1 %vm7637_vm1, %v7599_v50  ;;  %v7601_v45 = vmax.f32 %v7553_v2, 0.0 }
 0x833   : > { %v7600_v43 = vmax.f32 %v7552_v53, 0.0  ;;  %v9957_v58 = vpop.f32.mrb[28].mxu0  ;;  %v19015_v53 = vld [vmem:[#allocation16] ss:$0 sm:$0xff] }
 0x834   : > { %v7555_v57 = vadd.f32 %v9957_v58, %v18917_v49  ;;  %v7420_v55 = vpop.f32.mrb[29].mxu0 }
 0x835   : > { %v7554_v16 = vadd.f32 %v18917_v49, %v7420_v55  ;;  %10040 = vmatprep.mubr.msk.f32.mxu1 %vm7637_vm1, %v7600_v43 }
 0x836   : > { %10041 = vmatmul.mubr.msk.f32.gmra.mrb[24].mxu1 %vm7637_vm1, %v7601_v45  ;;  %v7603_v6 = vmax.f32 %v7555_v57, 0.0 }
 0x837   : > { %v7602_v1 = vmax.f32 %v7554_v16, 0.0  ;;  %v9960_v17 = vpop.f32.mrb[30].mxu0 }
 0x838   : > { %v7557_v9 = vadd.f32 %v9960_v17, %v18917_v49  ;;  %v7430_v3 = vpop.f32.mrb[31].mxu0 }
 0x839   : > { %v7556_v37 = vadd.f32 %v18917_v49, %v7430_v3  ;;  %10043 = vmatprep.mubr.msk.f32.mxu1 %vm7637_vm1, %v7602_v1 }
 0x83a   : > { %10044 = vmatmul.mubr.msk.f32.gmra.mrb[26].mxu1 %vm7637_vm1, %v7603_v6  ;;  %v7605_v47 = vmax.f32 %v7557_v9, 0.0 }
 0x83b   : > { %v7604_v21 = vmax.f32 %v7556_v37, 0.0  ;;  %v9963_v46 = vpop.f32.mrb[32].mxu0 }
 0x83c   : > { %v7559_v40 = vadd.f32 %v9963_v46, %v18917_v49  ;;  %v7440_v56 = vpop.f32.mrb[33].mxu0 }
 0x83d   : > { %v7558_v14 = vadd.f32 %v18917_v49, %v7440_v56  ;;  %10046 = vmatprep.mubr.msk.f32.mxu1 %vm7637_vm1, %v7604_v21 }
 0x83e   : > { %10047 = vmatmul.mubr.msk.f32.gmra.mrb[28].mxu1 %vm7637_vm1, %v7605_v47  ;;  %v7607_v35 = vmax.f32 %v7559_v40, 0.0 }
 0x83f   : > { %v7606_v0 = vmax.f32 %v7558_v14, 0.0  ;;  %v9966_v19 = vpop.f32.mrb[34].mxu0 }
 0x840   : > { %v7561_v18 = vadd.f32 %v9966_v19, %v18917_v49  ;;  %v7450_v10 = vpop.f32.mrb[35].mxu0 }
 0x841   : > { %v7560_v8 = vadd.f32 %v18917_v49, %v7450_v10  ;;  %10049 = vmatprep.mubr.msk.f32.mxu1 %vm7637_vm1, %v7606_v0 }
 0x842   : > { %10050 = vmatmul.mubr.msk.f32.gmra.mrb[30].mxu1 %vm7637_vm1, %v7607_v35  ;;  %v7609_v13 = vmax.f32 %v7561_v18, 0.0 }
 0x843   : > { %v7608_v29 = vmax.f32 %v7560_v8, 0.0  ;;  %v9969_v59 = vpop.f32.mrb[36].mxu0 }
 0x844   : > { %v7563_v32 = vadd.f32 %v9969_v59, %v18917_v49  ;;  %v7460_v61 = vpop.f32.mrb[37].mxu0 }
 0x845   : > { %v7562_v20 = vadd.f32 %v18917_v49, %v7460_v61  ;;  %10052 = vmatprep.mubr.msk.f32.mxu1 %vm7637_vm1, %v7608_v29 }
 0x846   : > { %10053 = vmatmul.mubr.msk.f32.gmra.mrb[32].mxu1 %vm7637_vm1, %v7609_v13  ;;  %v7611_v33 = vmax.f32 %v7563_v32, 0.0 }
 0x847   : > { %v7610_v63 = vmax.f32 %v7562_v20, 0.0  ;;  %v9972_v24 = vpop.f32.mrb[38].mxu0 }
 0x848   : > { %v7565_v54 = vadd.f32 %v9972_v24, %v18917_v49  ;;  %v7470_v60 = vpop.f32.mrb[39].mxu0 }
 0x849   : > { %v7564_v39 = vadd.f32 %v18917_v49, %v7470_v60  ;;  %10055 = vmatprep.mubr.msk.f32.mxu1 %vm7637_vm1, %v7610_v63 }
 0x84a   : > { %10056 = vmatmul.mubr.msk.f32.gmra.mrb[34].mxu1 %vm7637_vm1, %v7611_v33  ;;  %v7613_v52 = vmax.f32 %v7565_v54, 0.0 }
 0x84b   : > { %v7612_v5 = vmax.f32 %v7564_v39, 0.0  ;;  %v9975_v44 = vpop.f32.mrb[40].mxu0 }
 0x84c   : > { %v7567_v51 = vadd.f32 %v9975_v44, %v18917_v49  ;;  %v7480_v23 = vpop.f32.mrb[41].mxu0 }
 0x84d   : > { %v7566_v26 = vadd.f32 %v18917_v49, %v7480_v23  ;;  %10058 = vmatprep.mubr.msk.f32.mxu1 %vm7637_vm1, %v7612_v5 }
 0x84e   : > { %10059 = vmatmul.mubr.msk.f32.gmra.mrb[36].mxu1 %vm7637_vm1, %v7613_v52  ;;  %v7615_v4 = vmax.f32 %v7567_v51, 0.0 }
 0x84f   : > { %v7614_v15 = vmax.f32 %v7566_v26, 0.0  ;;  %v9978_v42 = vpop.f32.mrb[42].mxu0 }
 0x850   : > { %v7569_v11 = vadd.f32 %v9978_v42, %v18917_v49  ;;  %v7490_v41 = vpop.f32.mrb[43].mxu0 }
 0x851   : > { %v7568_v22 = vadd.f32 %v18917_v49, %v7490_v41  ;;  %10061 = vmatprep.mubr.msk.f32.mxu1 %vm7637_vm1, %v7614_v15 }
 0x852   : > { %10062 = vmatmul.mubr.msk.f32.gmra.mrb[38].mxu1 %vm7637_vm1, %v7615_v4  ;;  %v7617_v12 = vmax.f32 %v7569_v11, 0.0 }
 0x853   : > { %v7616_v34 = vmax.f32 %v7568_v22, 0.0  ;;  %v9981_v31 = vpop.f32.mrb[44].mxu0 }
 0x854   : > { %v7571_v25 = vadd.f32 %v9981_v31, %v18917_v49  ;;  %v7500_v38 = vpop.f32.mrb[45].mxu0 }
 0x855   : > { %v7570_v30 = vadd.f32 %v18917_v49, %v7500_v38  ;;  %10064 = vmatprep.mubr.msk.f32.mxu1 %vm7637_vm1, %v7616_v34 }
 0x856   : > { %10065 = vmatmul.mubr.msk.f32.gmra.mrb[40].mxu1 %vm7637_vm1, %v7617_v12  ;;  %v7619_v7 = vmax.f32 %v7571_v25, 0.0 }
 0x857   : > { %v7618_v27 = vmax.f32 %v7570_v30, 0.0  ;;  %v9984_v62 = vpop.f32.mrb[46].mxu0 }
 0x858   : > { %v7573_v28 = vadd.f32 %v9984_v62, %v18917_v49  ;;  %v7510_v48 = vpop.f32.mrb[47].mxu0 }
 0x859   : > { %v7572_v50 = vadd.f32 %v18917_v49, %v7510_v48  ;;  %10067 = vmatprep.mubr.msk.f32.mxu1 %vm7637_vm1, %v7618_v27 }
 0x85a   : > { %10068 = vmatmul.mubr.msk.f32.gmra.mrb[42].mxu1 %vm7637_vm1, %v7619_v7  ;;  %v7621_v36 = vmax.f32 %v7573_v28, 0.0 }
 0x85b   : > { %v7620_v2 = vmax.f32 %v7572_v50, 0.0 }
 0x85d   : > { %10070 = vmatprep.mubr.msk.f32.mxu1 %vm7637_vm1, %v7620_v2 }
 0x85e   : > { %10071 = vmatmul.mubr.msk.f32.gmra.mrb[44].mxu1 %vm7637_vm1, %v7621_v36 }
 0x8d5   : > { %v10003_v43 = vpop.f32.mrb[48].mxu0 }
 0x8d6   : > { %v7854_v58 = vadd.f32 %v10003_v43, %v19015_v53  ;;  %v7848_v45 = vpop.f32.mrb[49].mxu0 }
 0x8d7   : > { %v7849_v57 = vadd.f32 %v19015_v53, %v7848_v45 }
 0x8d8   : > { %v8088_v16 = vmax.f32 %v7854_v58, 0.0 }
 0x8d9   : > { %v8087_v55 = vmax.f32 %v7849_v57, 0.0  ;;  %v10006_v49 = vpop.f32.mrb[0].mxu1 }
 0x8da   : > { %v7864_v1 = vadd.f32 %v10006_v49, %v19015_v53  ;;  %v7858_v17 = vpop.f32.mrb[1].mxu1 }
 0x8db   : > { %v7859_v6 = vadd.f32 %v19015_v53, %v7858_v17  ;;  %10089 = vmatprep.mubr.msk.f32.mxu1 %vm7637_vm1, %v8087_v55 }
 0x8dc   : > { %10090 = vmatmul.mubr.msk.f32.vlgmr.msra.gmra.mrb[46].mxu1 %vm7637_vm1, %v8088_v16  ;;  %v8090_v37 = vmax.f32 %v7864_v1, 0.0 }
 0x8dd   : > { %v8089_v9 = vmax.f32 %v7859_v6, 0.0  ;;  %v10009_v3 = vpop.f32.mrb[2].mxu1 }
 0x8de   : > { %v7874_v21 = vadd.f32 %v10009_v3, %v19015_v53  ;;  %v7868_v46 = vpop.f32.mrb[3].mxu1 }
 0x8df   : > { %v7869_v47 = vadd.f32 %v19015_v53, %v7868_v46  ;;  %10092 = vmatprep.mubr.msk.f32.mxu1 %vm7637_vm1, %v8089_v9 }
 0x8e0   : > { %10093 = vmatmul.mubr.msk.f32.gmra.mrb[48].mxu1 %vm7637_vm1, %v8090_v37  ;;  %v8092_v14 = vmax.f32 %v7874_v21, 0.0 }
 0x8e1   : > { %v8091_v40 = vmax.f32 %v7869_v47, 0.0  ;;  %v10012_v56 = vpop.f32.mrb[4].mxu1 }
 0x8e2   : > { %v7884_v0 = vadd.f32 %v10012_v56, %v19015_v53  ;;  %v7878_v19 = vpop.f32.mrb[5].mxu1 }
 0x8e3   : > { %v7879_v35 = vadd.f32 %v19015_v53, %v7878_v19  ;;  %10095 = vmatprep.mubr.msk.f32.mxu1 %vm7637_vm1, %v8091_v40 }
 0x8e4   : > { %10096 = vmatmul.mubr.msk.f32.gmra.mrb[50].mxu1 %vm7637_vm1, %v8092_v14  ;;  %v8094_v8 = vmax.f32 %v7884_v0, 0.0 }
 0x8e5   : > { %v8093_v18 = vmax.f32 %v7879_v35, 0.0  ;;  %v10015_v10 = vpop.f32.mrb[6].mxu1 }
 0x8e6   : > { %v7894_v29 = vadd.f32 %v10015_v10, %v19015_v53  ;;  %v7888_v59 = vpop.f32.mrb[7].mxu1 }
 0x8e7   : > { %v7889_v13 = vadd.f32 %v19015_v53, %v7888_v59  ;;  %10098 = vmatprep.mubr.msk.f32.mxu1 %vm7637_vm1, %v8093_v18 }
 0x8e8   : > { %10099 = vmatmul.mubr.msk.f32.gmra.mrb[52].mxu1 %vm7637_vm1, %v8094_v8  ;;  %v8096_v20 = vmax.f32 %v7894_v29, 0.0 }
 0x8e9   : > { %v8095_v32 = vmax.f32 %v7889_v13, 0.0  ;;  %v10018_v61 = vpop.f32.mrb[8].mxu1 }
 0x8ea   : > { %v7904_v63 = vadd.f32 %v10018_v61, %v19015_v53  ;;  %v7898_v24 = vpop.f32.mrb[9].mxu1 }
 0x8eb   : > { %v7899_v33 = vadd.f32 %v19015_v53, %v7898_v24  ;;  %10101 = vmatprep.mubr.msk.f32.mxu1 %vm7637_vm1, %v8095_v32 }
 0x8ec   : > { %10102 = vmatmul.mubr.msk.f32.gmra.mrb[54].mxu1 %vm7637_vm1, %v8096_v20  ;;  %v8098_v39 = vmax.f32 %v7904_v63, 0.0 }
 0x8ed   : > { %v8097_v54 = vmax.f32 %v7899_v33, 0.0  ;;  %v10021_v60 = vpop.f32.mrb[10].mxu1 }
 0x8ee   : > { %v7914_v5 = vadd.f32 %v10021_v60, %v19015_v53  ;;  %v7908_v44 = vpop.f32.mrb[11].mxu1 }
 0x8ef   : > { %v7909_v52 = vadd.f32 %v19015_v53, %v7908_v44  ;;  %10104 = vmatprep.mubr.msk.f32.mxu1 %vm7637_vm1, %v8097_v54 }
 0x8f0   : > { %10105 = vmatmul.mubr.msk.f32.gmra.mrb[56].mxu1 %vm7637_vm1, %v8098_v39  ;;  %v8100_v26 = vmax.f32 %v7914_v5, 0.0 }
 0x8f1   : > { %v8099_v51 = vmax.f32 %v7909_v52, 0.0  ;;  %v10024_v23 = vpop.f32.mrb[12].mxu1 }
 0x8f2   : > { %v7924_v15 = vadd.f32 %v10024_v23, %v19015_v53  ;;  %v7918_v42 = vpop.f32.mrb[13].mxu1 }
 0x8f3   : > { %v7919_v4 = vadd.f32 %v19015_v53, %v7918_v42  ;;  %10107 = vmatprep.mubr.msk.f32.mxu1 %vm7637_vm1, %v8099_v51 }
 0x8f4   : > { %10108 = vmatmul.mubr.msk.f32.gmra.mrb[58].mxu1 %vm7637_vm1, %v8100_v26  ;;  %v8102_v22 = vmax.f32 %v7924_v15, 0.0 }
 0x8f5   : > { %v8101_v11 = vmax.f32 %v7919_v4, 0.0  ;;  %v10027_v41 = vpop.f32.mrb[14].mxu1 }
 0x8f6   : > { %v7934_v34 = vadd.f32 %v10027_v41, %v19015_v53  ;;  %v7928_v31 = vpop.f32.mrb[15].mxu1 }
 0x8f7   : > { %v7929_v12 = vadd.f32 %v19015_v53, %v7928_v31  ;;  %10110 = vmatprep.mubr.msk.f32.mxu1 %vm7637_vm1, %v8101_v11 }
 0x8f8   : > { %10111 = vmatmul.mubr.msk.f32.gmra.mrb[60].mxu1 %vm7637_vm1, %v8102_v22  ;;  %v8104_v30 = vmax.f32 %v7934_v34, 0.0 }
 0x8f9   : > { %v8103_v25 = vmax.f32 %v7929_v12, 0.0  ;;  %v10030_v38 = vpop.f32.mrb[16].mxu1 }
 0x8fa   : > { %v7944_v27 = vadd.f32 %v10030_v38, %v19015_v53  ;;  %v7938_v62 = vpop.f32.mrb[17].mxu1 }
 0x8fb   : > { %v7939_v7 = vadd.f32 %v19015_v53, %v7938_v62  ;;  %10113 = vmatprep.mubr.msk.f32.mxu1 %vm7637_vm1, %v8103_v25 }
 0x8fc   : > { %10114 = vmatmul.mubr.msk.f32.gmra.mrb[62].mxu1 %vm7637_vm1, %v8104_v30  ;;  %v8106_v50 = vmax.f32 %v7944_v27, 0.0 }
 0x8fd   : > { %v8105_v28 = vmax.f32 %v7939_v7, 0.0  ;;  %v10033_v48 = vpop.f32.mrb[18].mxu1 }
 0x8fe   : > { %v7954_v2 = vadd.f32 %v10033_v48, %v19015_v53  ;;  %v7948_v36 = vpop.f32.mrb[19].mxu1 }
 0x8ff   : > { %v7949_v43 = vadd.f32 %v19015_v53, %v7948_v36  ;;  %10116 = vmatprep.mubr.msk.f32.mxu1 %vm7637_vm1, %v8105_v28 }
 0x900   : > { %10117 = vmatmul.mubr.msk.f32.gmra.mrb[64].mxu1 %vm7637_vm1, %v8106_v50  ;;  %v8108_v57 = vmax.f32 %v7954_v2, 0.0 }
 0x901   : > { %v8107_v58 = vmax.f32 %v7949_v43, 0.0  ;;  %v10036_v45 = vpop.f32.mrb[20].mxu1 }
 0x902   : > { %v7964_v55 = vadd.f32 %v10036_v45, %v19015_v53  ;;  %v7958_v49 = vpop.f32.mrb[21].mxu1 }
 0x903   : > { %v7959_v16 = vadd.f32 %v19015_v53, %v7958_v49  ;;  %10119 = vmatprep.mubr.msk.f32.mxu1 %vm7637_vm1, %v8107_v58 }
 0x904   : > { %10120 = vmatmul.mubr.msk.f32.gmra.mrb[66].mxu1 %vm7637_vm1, %v8108_v57  ;;  %v8110_v6 = vmax.f32 %v7964_v55, 0.0 }
 0x905   : > { %v8109_v1 = vmax.f32 %v7959_v16, 0.0  ;;  %v10039_v17 = vpop.f32.mrb[22].mxu1 }
 0x906   : > { %v7974_v9 = vadd.f32 %v10039_v17, %v19015_v53  ;;  %v7968_v3 = vpop.f32.mrb[23].mxu1 }
 0x907   : > { %v7969_v37 = vadd.f32 %v19015_v53, %v7968_v3  ;;  %10122 = vmatprep.mubr.msk.f32.mxu1 %vm7637_vm1, %v8109_v1 }
 0x908   : > { %10123 = vmatmul.mubr.msk.f32.gmra.mrb[68].mxu1 %vm7637_vm1, %v8110_v6  ;;  %v8112_v47 = vmax.f32 %v7974_v9, 0.0 }
 0x909   : > { %v8111_v21 = vmax.f32 %v7969_v37, 0.0  ;;  %v10042_v46 = vpop.f32.mrb[24].mxu1 }
 0x90a   : > { %v7984_v40 = vadd.f32 %v10042_v46, %v19015_v53  ;;  %v7978_v56 = vpop.f32.mrb[25].mxu1 }
 0x90b   : > { %v7979_v14 = vadd.f32 %v19015_v53, %v7978_v56  ;;  %10125 = vmatprep.mubr.msk.f32.mxu1 %vm7637_vm1, %v8111_v21 }
 0x90c   : > { %10126 = vmatmul.mubr.msk.f32.gmra.mrb[70].mxu1 %vm7637_vm1, %v8112_v47  ;;  %v8114_v35 = vmax.f32 %v7984_v40, 0.0 }
 0x90d   : > { %v8113_v0 = vmax.f32 %v7979_v14, 0.0  ;;  %v10045_v19 = vpop.f32.mrb[26].mxu1  ;;  %v19113_v14 = vld [vmem:[#allocation19] ss:$0 sm:$0xff] }
 0x90e   : > { %v7994_v18 = vadd.f32 %v10045_v19, %v19015_v53  ;;  %v7988_v10 = vpop.f32.mrb[27].mxu1 }
 0x90f   : > { %v7989_v8 = vadd.f32 %v19015_v53, %v7988_v10  ;;  %10128 = vmatprep.mubr.msk.f32.mxu1 %vm7637_vm1, %v8113_v0 }
 0x910   : > { %10129 = vmatmul.mubr.msk.f32.gmra.mrb[72].mxu1 %vm7637_vm1, %v8114_v35  ;;  %v8116_v13 = vmax.f32 %v7994_v18, 0.0 }
 0x911   : > { %v8115_v29 = vmax.f32 %v7989_v8, 0.0  ;;  %v10048_v59 = vpop.f32.mrb[28].mxu1 }
 0x912   : > { %v8004_v32 = vadd.f32 %v10048_v59, %v19015_v53  ;;  %v7998_v61 = vpop.f32.mrb[29].mxu1 }
 0x913   : > { %v7999_v20 = vadd.f32 %v19015_v53, %v7998_v61  ;;  %10131 = vmatprep.mubr.msk.f32.mxu1 %vm7637_vm1, %v8115_v29 }
 0x914   : > { %10132 = vmatmul.mubr.msk.f32.gmra.mrb[74].mxu1 %vm7637_vm1, %v8116_v13  ;;  %v8118_v33 = vmax.f32 %v8004_v32, 0.0 }
 0x915   : > { %v8117_v63 = vmax.f32 %v7999_v20, 0.0  ;;  %v10051_v24 = vpop.f32.mrb[30].mxu1 }
 0x916   : > { %v8014_v54 = vadd.f32 %v10051_v24, %v19015_v53  ;;  %v8008_v60 = vpop.f32.mrb[31].mxu1 }
 0x917   : > { %v8009_v39 = vadd.f32 %v19015_v53, %v8008_v60  ;;  %10134 = vmatprep.mubr.msk.f32.mxu1 %vm7637_vm1, %v8117_v63 }
 0x918   : > { %10135 = vmatmul.mubr.msk.f32.gmra.mrb[76].mxu1 %vm7637_vm1, %v8118_v33  ;;  %v8120_v52 = vmax.f32 %v8014_v54, 0.0 }
 0x919   : > { %v8119_v5 = vmax.f32 %v8009_v39, 0.0  ;;  %v10054_v44 = vpop.f32.mrb[32].mxu1 }
 0x91a   : > { %v8024_v51 = vadd.f32 %v10054_v44, %v19015_v53  ;;  %v8018_v23 = vpop.f32.mrb[33].mxu1 }
 0x91b   : > { %v8019_v26 = vadd.f32 %v19015_v53, %v8018_v23  ;;  %10137 = vmatprep.mubr.msk.f32.mxu1 %vm7637_vm1, %v8119_v5 }
 0x91c   : > { %10138 = vmatmul.mubr.msk.f32.gmra.mrb[78].mxu1 %vm7637_vm1, %v8120_v52  ;;  %v8122_v4 = vmax.f32 %v8024_v51, 0.0 }
 0x91d   : > { %v8121_v15 = vmax.f32 %v8019_v26, 0.0  ;;  %v10057_v42 = vpop.f32.mrb[34].mxu1 }
 0x91e   : > { %v8034_v11 = vadd.f32 %v10057_v42, %v19015_v53  ;;  %v8028_v41 = vpop.f32.mrb[35].mxu1 }
 0x91f   : > { %v8029_v22 = vadd.f32 %v19015_v53, %v8028_v41  ;;  %10140 = vmatprep.mubr.msk.f32.mxu1 %vm7637_vm1, %v8121_v15 }
 0x920   : > { %10141 = vmatmul.mubr.msk.f32.gmra.mrb[80].mxu1 %vm7637_vm1, %v8122_v4  ;;  %v8124_v12 = vmax.f32 %v8034_v11, 0.0 }
 0x921   : > { %v8123_v34 = vmax.f32 %v8029_v22, 0.0  ;;  %v10060_v31 = vpop.f32.mrb[36].mxu1 }
 0x922   : > { %v8044_v25 = vadd.f32 %v10060_v31, %v19015_v53  ;;  %v8038_v38 = vpop.f32.mrb[37].mxu1 }
 0x923   : > { %v8039_v30 = vadd.f32 %v19015_v53, %v8038_v38  ;;  %10143 = vmatprep.mubr.msk.f32.mxu1 %vm7637_vm1, %v8123_v34 }
 0x924   : > { %10144 = vmatmul.mubr.msk.f32.gmra.mrb[82].mxu1 %vm7637_vm1, %v8124_v12  ;;  %v8126_v7 = vmax.f32 %v8044_v25, 0.0 }
 0x925   : > { %v8125_v27 = vmax.f32 %v8039_v30, 0.0  ;;  %v10063_v62 = vpop.f32.mrb[38].mxu1 }
 0x926   : > { %v8054_v28 = vadd.f32 %v10063_v62, %v19015_v53  ;;  %v8048_v48 = vpop.f32.mrb[39].mxu1 }
 0x927   : > { %v8049_v50 = vadd.f32 %v19015_v53, %v8048_v48  ;;  %10146 = vmatprep.mubr.msk.f32.mxu1 %vm7637_vm1, %v8125_v27 }
 0x928   : > { %10147 = vmatmul.mubr.msk.f32.gmra.mrb[84].mxu1 %vm7637_vm1, %v8126_v7  ;;  %v8128_v43 = vmax.f32 %v8054_v28, 0.0 }
 0x929   : > { %v8127_v2 = vmax.f32 %v8049_v50, 0.0  ;;  %v10066_v36 = vpop.f32.mrb[40].mxu1 }
 0x92a   : > { %v8064_v58 = vadd.f32 %v10066_v36, %v19015_v53  ;;  %v8058_v45 = vpop.f32.mrb[41].mxu1 }
 0x92b   : > { %v8059_v57 = vadd.f32 %v19015_v53, %v8058_v45  ;;  %10149 = vmatprep.mubr.msk.f32.mxu1 %vm7637_vm1, %v8127_v2 }
 0x92c   : > { %10150 = vmatmul.mubr.msk.f32.gmra.mrb[86].mxu1 %vm7637_vm1, %v8128_v43  ;;  %v8130_v16 = vmax.f32 %v8064_v58, 0.0 }
 0x92d   : > { %v8129_v55 = vmax.f32 %v8059_v57, 0.0  ;;  %v10069_v49 = vpop.f32.mrb[42].mxu1 }
 0x92e   : > { %v8074_v1 = vadd.f32 %v10069_v49, %v19015_v53  ;;  %v8068_v17 = vpop.f32.mrb[43].mxu1 }
 0x92f   : > { %v8069_v6 = vadd.f32 %v19015_v53, %v8068_v17  ;;  %10152 = vmatprep.mubr.msk.f32.mxu1 %vm7637_vm1, %v8129_v55 }
 0x930   : > { %10153 = vmatmul.mubr.msk.f32.gmra.mrb[88].mxu1 %vm7637_vm1, %v8130_v16  ;;  %v8132_v37 = vmax.f32 %v8074_v1, 0.0 }
 0x931   : > { %v8131_v9 = vmax.f32 %v8069_v6, 0.0  ;;  %v10072_v3 = vpop.f32.mrb[44].mxu1 }
 0x932   : > { %v8084_v21 = vadd.f32 %v10072_v3, %v19015_v53  ;;  %v8078_v46 = vpop.f32.mrb[45].mxu1 }
 0x933   : > { %v8079_v47 = vadd.f32 %v19015_v53, %v8078_v46  ;;  %10155 = vmatprep.mubr.msk.f32.mxu1 %vm7637_vm1, %v8131_v9 }
 0x934   : > { %10156 = vmatmul.mubr.msk.f32.gmra.mrb[90].mxu1 %vm7637_vm1, %v8132_v37  ;;  %v8134_v56 = vmax.f32 %v8084_v21, 0.0 }
 0x935   : > { %v8133_v40 = vmax.f32 %v8079_v47, 0.0 }
 0x937   : > { %10158 = vmatprep.mubr.msk.f32.mxu1 %vm7637_vm1, %v8133_v40 }
 0x938   : > { %10159 = vmatmul.mubr.msk.f32.gmra.mrb[92].mxu1 %vm7637_vm1, %v8134_v56 }
 0x9af   : > { %v10091_v0 = vpop.f32.mrb[46].mxu1 }
 0x9b0   : > { %v8366_v19 = vadd.f32 %v10091_v0, %v19113_v14  ;;  %v8360_v35 = vpop.f32.mrb[47].mxu1 }
 0x9b1   : > { %v8361_v18 = vadd.f32 %v19113_v14, %v8360_v35 }
 0x9b2   : > { %v9561_v10 = vmul.f32 -1.442695, %v8366_v19 }
 0x9b3   : > { %v9560_v53 = vmul.f32 -1.442695, %v8361_v18  ;;  %v10094_v8 = vpop.f32.mrb[48].mxu1 }
 0x9b4   : > { %10866 = vpow2.f32 %v9561_v10  ;;  %v8376_v29 = vadd.f32 %v10094_v8, %v19113_v14  ;;  %v8370_v59 = vpop.f32.mrb[49].mxu1 }
 0x9b5   : > { %10868 = vpow2.f32 %v9560_v53  ;;  %v8371_v13 = vadd.f32 %v19113_v14, %v8370_v59 }
 0x9b6   : > { %v9563_v32 = vmul.f32 -1.442695, %v8376_v29 }
 0x9b7   : > { %v9562_v61 = vmul.f32 -1.442695, %v8371_v13  ;;  %v10097_v20 = vpop.f32.mrb[50].mxu1 }
 0x9b8   : > { %10870 = vpow2.f32 %v9563_v32  ;;  %v8386_v63 = vadd.f32 %v10097_v20, %v19113_v14  ;;  %v8380_v24 = vpop.f32.mrb[51].mxu1 }
 0x9b9   : > { %10872 = vpow2.f32 %v9562_v61  ;;  %v8381_v33 = vadd.f32 %v19113_v14, %v8380_v24 }
 0x9ba   : > { %v9565_v54 = vmul.f32 -1.442695, %v8386_v63 }
 0x9bb   : > { %v9564_v60 = vmul.f32 -1.442695, %v8381_v33  ;;  %v10100_v39 = vpop.f32.mrb[52].mxu1 }
 0x9bc   : > { %10874 = vpow2.f32 %v9565_v54  ;;  %v8396_v5 = vadd.f32 %v10100_v39, %v19113_v14  ;;  %v8390_v44 = vpop.f32.mrb[53].mxu1 }
 0x9bd   : > { %10876 = vpow2.f32 %v9564_v60  ;;  %v8391_v52 = vadd.f32 %v19113_v14, %v8390_v44 }
 0x9be   : > { %v10867_v51 = vpop.eup %10866  ;;  %v9567_v23 = vmul.f32 -1.442695, %v8396_v5 }
 0x9bf   : > { %v10869_v26 = vpop.eup %10868  ;;  %v8744_v15 = vadd.f32 1.0, %v10867_v51  ;;  %v9566_v42 = vmul.f32 -1.442695, %v8391_v52  ;;  %v10103_v4 = vpop.f32.mrb[54].mxu1 }
 0x9c0   : > { %v8743_v11 = vadd.f32 1.0, %v10869_v26  ;;  %10878 = vpow2.f32 %v9567_v23  ;;  %v8406_v41 = vadd.f32 %v10103_v4, %v19113_v14  ;;  %v8400_v22 = vpop.f32.mrb[55].mxu1 }
 0x9c1   : > { %10880 = vrcp.f32 %v8744_v15  ;;  %v8401_v34 = vadd.f32 %v19113_v14, %v8400_v22 }
 0x9c2   : > { %v10871_v31 = vpop.eup %10870  ;;  %10882 = vrcp.f32 %v8743_v11  ;;  %v9569_v12 = vmul.f32 -1.442695, %v8406_v41 }
 0x9c3   : > { %v10873_v25 = vpop.eup %10872  ;;  %v8746_v38 = vadd.f32 1.0, %v10871_v31  ;;  %10884 = vpow2.f32 %v9566_v42  ;;  %v9568_v30 = vmul.f32 -1.442695, %v8401_v34  ;;  %v10106_v27 = vpop.f32.mrb[56].mxu1 }
 0x9c4   : > { %v8745_v62 = vadd.f32 1.0, %v10873_v25  ;;  %10886 = vpow2.f32 %v9569_v12  ;;  %v8416_v7 = vadd.f32 %v10106_v27, %v19113_v14  ;;  %v8410_v28 = vpop.f32.mrb[57].mxu1 }
 0x9c5   : > { %10888 = vrcp.f32 %v8746_v38  ;;  %v8411_v48 = vadd.f32 %v19113_v14, %v8410_v28 }
 0x9c6   : > { %v10875_v50 = vpop.eup %10874  ;;  %10890 = vrcp.f32 %v8745_v62  ;;  %v9571_v2 = vmul.f32 -1.442695, %v8416_v7 }
 0x9c7   : > { %v10877_v36 = vpop.eup %10876  ;;  %v8748_v43 = vadd.f32 1.0, %v10875_v50  ;;  %10892 = vpow2.f32 %v9568_v30  ;;  %v9570_v58 = vmul.f32 -1.442695, %v8411_v48  ;;  %v10109_v45 = vpop.f32.mrb[58].mxu1 }
 0x9c8   : > { %v8747_v57 = vadd.f32 1.0, %v10877_v36  ;;  %10894 = vpow2.f32 %v9571_v2  ;;  %v8426_v55 = vadd.f32 %v10109_v45, %v19113_v14  ;;  %v8420_v49 = vpop.f32.mrb[59].mxu1 }
 0x9c9   : > { %10896 = vrcp.f32 %v8748_v43  ;;  %v8421_v16 = vadd.f32 %v19113_v14, %v8420_v49 }
 0x9ca   : > { %v10879_v1 = vpop.eup %10878  ;;  %10898 = vrcp.f32 %v8747_v57  ;;  %v9573_v17 = vmul.f32 -1.442695, %v8426_v55 }
 0x9cb   : > { %v10881_v6 = vpop.eup %10880  ;;  %v8750_v9 = vadd.f32 1.0, %v10879_v1  ;;  %10900 = vpow2.f32 %v9570_v58  ;;  %v9572_v3 = vmul.f32 -1.442695, %v8421_v16  ;;  %v10112_v37 = vpop.f32.mrb[60].mxu1 }
 0x9cc   : > { %v10883_v21 = vpop.eup %10882  ;;  %8889 = vst.msk [vmem:[%s19130_s18 + $0x8] sm:$0xff] %vm8887_vm14, %v10881_v6  ;;  %10902 = vpow2.f32 %v9573_v17  ;;  %v8436_v46 = vadd.f32 %v10112_v37, %v19113_v14  ;;  %v8430_v47 = vpop.f32.mrb[61].mxu1 }
 0x9cd   : > { %v10885_v40 = vpop.eup %10884  ;;  %8888 = vst.msk [vmem:[%s19130_s18] sm:$0xff] %vm8887_vm14, %v10883_v21  ;;  %10904 = vrcp.f32 %v8750_v9  ;;  %v8431_v56 = vadd.f32 %v19113_v14, %v8430_v47 }
 0x9ce   : > { %v10887_v0 = vpop.eup %10886  ;;  %v8749_v19 = vadd.f32 1.0, %v10885_v40  ;;  %10906 = vpow2.f32 %v9572_v3  ;;  %v9575_v35 = vmul.f32 -1.442695, %v8436_v46 }
 0x9cf   : > { %v10889_v18 = vpop.eup %10888  ;;  %v8752_v10 = vadd.f32 1.0, %v10887_v0  ;;  %v9574_v53 = vmul.f32 -1.442695, %v8431_v56  ;;  %v10115_v8 = vpop.f32.mrb[62].mxu1 }
 0x9d0   : > { %v10891_v29 = vpop.eup %10890  ;;  %8891 = vst.msk [vmem:[%s19130_s18 + $0x18] sm:$0xff] %vm8887_vm14, %v10889_v18  ;;  %10908 = vrcp.f32 %v8749_v19  ;;  %v8446_v59 = vadd.f32 %v10115_v8, %v19113_v14  ;;  %v8440_v13 = vpop.f32.mrb[63].mxu1 }
 0x9d1   : > { %v10893_v32 = vpop.eup %10892  ;;  %8890 = vst.msk [vmem:[%s19130_s18 + $0x10] sm:$0xff] %vm8887_vm14, %v10891_v29  ;;  %10910 = vrcp.f32 %v8752_v10  ;;  %v8441_v61 = vadd.f32 %v19113_v14, %v8440_v13 }
 0x9d2   : > { %v10895_v20 = vpop.eup %10894  ;;  %v8751_v63 = vadd.f32 1.0, %v10893_v32  ;;  %10912 = vpow2.f32 %v9575_v35  ;;  %v9577_v24 = vmul.f32 -1.442695, %v8446_v59 }
 0x9d3   : > { %v10897_v33 = vpop.eup %10896  ;;  %v8754_v54 = vadd.f32 1.0, %v10895_v20  ;;  %10914 = vpow2.f32 %v9574_v53  ;;  %v9576_v60 = vmul.f32 -1.442695, %v8441_v61  ;;  %v10118_v39 = vpop.f32.mrb[64].mxu1 }
 0x9d4   : > { %v10899_v5 = vpop.eup %10898  ;;  %8893 = vst.msk [vmem:[%s19130_s18 + $0x28] sm:$0xff] %vm8887_vm14, %v10897_v33  ;;  %10916 = vrcp.f32 %v8751_v63  ;;  %v8456_v44 = vadd.f32 %v10118_v39, %v19113_v14  ;;  %v8450_v52 = vpop.f32.mrb[65].mxu1 }
 0x9d5   : > { %v10901_v51 = vpop.eup %10900  ;;  %8892 = vst.msk [vmem:[%s19130_s18 + $0x20] sm:$0xff] %vm8887_vm14, %v10899_v5  ;;  %10918 = vrcp.f32 %v8754_v54  ;;  %v8451_v23 = vadd.f32 %v19113_v14, %v8450_v52 }
 0x9d6   : > { %v10903_v26 = vpop.eup %10902  ;;  %v8753_v15 = vadd.f32 1.0, %v10901_v51  ;;  %10920 = vpow2.f32 %v9577_v24  ;;  %v9579_v42 = vmul.f32 -1.442695, %v8456_v44 }
 0x9d7   : > { %v10905_v4 = vpop.eup %10904  ;;  %v8756_v11 = vadd.f32 1.0, %v10903_v26  ;;  %10922 = vpow2.f32 %v9576_v60  ;;  %v10121_v41 = vpop.f32.mrb[66].mxu1  ;;  %v9578_v34 = vmul.f32 -1.442695, %v8451_v23 }
 0x9d8   : > { %v10907_v22 = vpop.eup %10906  ;;  %8895 = vst.msk [vmem:[%s19130_s18 + $0x38] sm:$0xff] %vm8887_vm14, %v10905_v4  ;;  %10924 = vrcp.f32 %v8753_v15  ;;  %v8466_v31 = vadd.f32 %v10121_v41, %v19113_v14  ;;  %v8460_v12 = vpop.f32.mrb[67].mxu1 }
 0x9d9   : > { %10926 = vrcp.f32 %v8756_v11  ;;  %v8755_v25 = vadd.f32 1.0, %v10907_v22  ;;  %v8461_v38 = vadd.f32 %v19113_v14, %v8460_v12 }
 0x9da   : > { %v10909_v30 = vpop.eup %10908  ;;  %10928 = vpow2.f32 %v9579_v42  ;;  %v9581_v27 = vmul.f32 -1.442695, %v8466_v31 }
 0x9db   : > { %v10911_v62 = vpop.eup %10910  ;;  %8894 = vst.msk [vmem:[%s19130_s18 + $0x30] sm:$0xff] %vm8887_vm14, %v10909_v30  ;;  %10930 = vrcp.f32 %v8755_v25  ;;  %v9580_v7 = vmul.f32 -1.442695, %v8461_v38  ;;  %v10124_v28 = vpop.f32.mrb[68].mxu1 }
 0x9dc   : > { %v10913_v48 = vpop.eup %10912  ;;  %8897 = vst.msk [vmem:[%s19130_s18 + $0x48] sm:$0xff] %vm8887_vm14, %v10911_v62  ;;  %10932 = vpow2.f32 %v9578_v34  ;;  %v8476_v50 = vadd.f32 %v10124_v28, %v19113_v14  ;;  %v8470_v2 = vpop.f32.mrb[69].mxu1 }
 0x9dd   : > { %v10915_v36 = vpop.eup %10914  ;;  %v8758_v43 = vadd.f32 1.0, %v10913_v48  ;;  %10934 = vpow2.f32 %v9581_v27  ;;  %v8471_v58 = vadd.f32 %v19113_v14, %v8470_v2 }
 0x9de   : > { %v10917_v45 = vpop.eup %10916  ;;  %v8757_v57 = vadd.f32 1.0, %v10915_v36  ;;  %10936 = vpow2.f32 %v9580_v7  ;;  %v9583_v55 = vmul.f32 -1.442695, %v8476_v50 }
 0x9df   : > { %v10919_v49 = vpop.eup %10918  ;;  %8896 = vst.msk [vmem:[%s19130_s18 + $0x40] sm:$0xff] %vm8887_vm14, %v10917_v45  ;;  %10938 = vrcp.f32 %v8758_v43  ;;  %v9582_v16 = vmul.f32 -1.442695, %v8471_v58  ;;  %v10127_v1 = vpop.f32.mrb[70].mxu1 }
 0x9e0   : > { %v10921_v17 = vpop.eup %10920  ;;  %8899 = vst.msk [vmem:[%s19130_s18 + $0x58] sm:$0xff] %vm8887_vm14, %v10919_v49  ;;  %10940 = vrcp.f32 %v8757_v57  ;;  %v8486_v6 = vadd.f32 %v10127_v1, %v19113_v14  ;;  %v8480_v9 = vpop.f32.mrb[71].mxu1 }
 0x9e1   : > { %v10923_v3 = vpop.eup %10922  ;;  %v8760_v37 = vadd.f32 1.0, %v10921_v17  ;;  %10942 = vpow2.f32 %v9583_v55  ;;  %v8481_v21 = vadd.f32 %v19113_v14, %v8480_v9 }
 0x9e2   : > { %v10925_v46 = vpop.eup %10924  ;;  %v8759_v47 = vadd.f32 1.0, %v10923_v3  ;;  %10944 = vpow2.f32 %v9582_v16  ;;  %v9585_v40 = vmul.f32 -1.442695, %v8486_v6 }
 0x9e3   : > { %v10927_v56 = vpop.eup %10926  ;;  %8898 = vst.msk [vmem:[%s19130_s18 + $0x50] sm:$0xff] %vm8887_vm14, %v10925_v46  ;;  %10946 = vrcp.f32 %v8760_v37  ;;  %v9584_v0 = vmul.f32 -1.442695, %v8481_v21  ;;  %v10130_v19 = vpop.f32.mrb[72].mxu1 }
 0x9e4   : > { %v10929_v35 = vpop.eup %10928  ;;  %8901 = vst.msk [vmem:[%s19130_s18 + $0x68] sm:$0xff] %vm8887_vm14, %v10927_v56  ;;  %10948 = vrcp.f32 %v8759_v47  ;;  %v8496_v18 = vadd.f32 %v10130_v19, %v19113_v14  ;;  %v8490_v10 = vpop.f32.mrb[73].mxu1 }
 0x9e5   : > { %v10931_v53 = vpop.eup %10930  ;;  %v8762_v8 = vadd.f32 1.0, %v10929_v35  ;;  %10950 = vpow2.f32 %v9585_v40  ;;  %v8491_v29 = vadd.f32 %v19113_v14, %v8490_v10 }
 0x9e6   : > { %v10933_v59 = vpop.eup %10932  ;;  %8900 = vst.msk [vmem:[%s19130_s18 + $0x60] sm:$0xff] %vm8887_vm14, %v10931_v53  ;;  %10952 = vpow2.f32 %v9584_v0  ;;  %v9587_v13 = vmul.f32 -1.442695, %v8496_v18 }
 0x9e7   : > { %v10935_v32 = vpop.eup %10934  ;;  %10954 = vrcp.f32 %v8762_v8  ;;  %v8761_v61 = vadd.f32 1.0, %v10933_v59  ;;  %v10133_v20 = vpop.f32.mrb[74].mxu1  ;;  %v9586_v33 = vmul.f32 -1.442695, %v8491_v29 }
 0x9e8   : > { %v10937_v63 = vpop.eup %10936  ;;  %v8764_v24 = vadd.f32 1.0, %v10935_v32  ;;  %10956 = vpow2.f32 %v9587_v13  ;;  %v8506_v54 = vadd.f32 %v10133_v20, %v19113_v14  ;;  %v8500_v60 = vpop.f32.mrb[75].mxu1 }
 0x9e9   : > { %v10939_v39 = vpop.eup %10938  ;;  %10958 = vrcp.f32 %v8761_v61  ;;  %v8763_v5 = vadd.f32 1.0, %v10937_v63  ;;  %v8501_v44 = vadd.f32 %v19113_v14, %v8500_v60 }
 0x9ea   : > { %v10941_v52 = vpop.eup %10940  ;;  %8903 = vst.msk [vmem:[%s19130_s18 + $0x78] sm:$0xff] %vm8887_vm14, %v10939_v39  ;;  %10960 = vrcp.f32 %v8764_v24  ;;  %v9589_v51 = vmul.f32 -1.442695, %v8506_v54 }
 0x9eb   : > { %v10943_v23 = vpop.eup %10942  ;;  %8902 = vst.msk [vmem:[%s19130_s18 + $0x70] sm:$0xff] %vm8887_vm14, %v10941_v52  ;;  %10962 = vrcp.f32 %v8763_v5  ;;  %v10136_v26 = vpop.f32.mrb[76].mxu1  ;;  %v9588_v4 = vmul.f32 -1.442695, %v8501_v44 }
 0x9ec   : > { %v10945_v15 = vpop.eup %10944  ;;  %v8766_v42 = vadd.f32 1.0, %v10943_v23  ;;  %10964 = vpow2.f32 %v9586_v33  ;;  %v8516_v11 = vadd.f32 %v10136_v26, %v19113_v14  ;;  %v8510_v41 = vpop.f32.mrb[77].mxu1 }
 0x9ed   : > { %v10947_v22 = vpop.eup %10946  ;;  %v8765_v34 = vadd.f32 1.0, %v10945_v15  ;;  %10966 = vpow2.f32 %v9589_v51  ;;  %v8511_v31 = vadd.f32 %v19113_v14, %v8510_v41 }
 0x9ee   : > { %v10949_v12 = vpop.eup %10948  ;;  %8905 = vst.msk [vmem:[%s19130_s18 + $0x88] sm:$0xff] %vm8887_vm14, %v10947_v22  ;;  %10968 = vrcp.f32 %v8766_v42  ;;  %v9591_v25 = vmul.f32 -1.442695, %v8516_v11 }
 0x9ef   : > { %v10951_v38 = vpop.eup %10950  ;;  %8904 = vst.msk [vmem:[%s19130_s18 + $0x80] sm:$0xff] %vm8887_vm14, %v10949_v12  ;;  %10970 = vrcp.f32 %v8765_v34  ;;  %v10139_v30 = vpop.f32.mrb[78].mxu1  ;;  %v9590_v7 = vmul.f32 -1.442695, %v8511_v31 }
 0x9f0   : > { %v10953_v27 = vpop.eup %10952  ;;  %v8768_v62 = vadd.f32 1.0, %v10951_v38  ;;  %10972 = vpow2.f32 %v9588_v4  ;;  %v8526_v28 = vadd.f32 %v10139_v30, %v19113_v14  ;;  %v8520_v48 = vpop.f32.mrb[79].mxu1 }
 0x9f1   : > { %v10955_v50 = vpop.eup %10954  ;;  %v8767_v2 = vadd.f32 1.0, %v10953_v27  ;;  %10974 = vpow2.f32 %v9591_v25  ;;  %v8521_v36 = vadd.f32 %v19113_v14, %v8520_v48 }
 0x9f2   : > { %v10957_v43 = vpop.eup %10956  ;;  %8907 = vst.msk [vmem:[%s19130_s18 + $0x98] sm:$0xff] %vm8887_vm14, %v10955_v50  ;;  %10976 = vrcp.f32 %v8768_v62  ;;  %v9593_v58 = vmul.f32 -1.442695, %v8526_v28 }
 0x9f3   : > { %v10959_v45 = vpop.eup %10958  ;;  %10978 = vrcp.f32 %v8767_v2  ;;  %v8770_v57 = vadd.f32 1.0, %v10957_v43  ;;  %v9592_v55 = vmul.f32 -1.442695, %v8521_v36  ;;  %v10142_v49 = vpop.f32.mrb[80].mxu1 }
 0x9f4   : > { %v10961_v16 = vpop.eup %10960  ;;  %8906 = vst.msk [vmem:[%s19130_s18 + $0x90] sm:$0xff] %vm8887_vm14, %v10959_v45  ;;  %10980 = vpow2.f32 %v9590_v7  ;;  %v8536_v1 = vadd.f32 %v10142_v49, %v19113_v14  ;;  %v8530_v17 = vpop.f32.mrb[81].mxu1 }
 0x9f5   : > { %v10963_v6 = vpop.eup %10962  ;;  %8909 = vst.msk [vmem:[%s19130_s18 + $0xa8] sm:$0xff] %vm8887_vm14, %v10961_v16  ;;  %10982 = vrcp.f32 %v8770_v57  ;;  %v8531_v9 = vadd.f32 %v19113_v14, %v8530_v17 }
 0x9f6   : > { %v10965_v3 = vpop.eup %10964  ;;  %8908 = vst.msk [vmem:[%s19130_s18 + $0xa0] sm:$0xff] %vm8887_vm14, %v10963_v6  ;;  %10984 = vpow2.f32 %v9593_v58  ;;  %v9595_v37 = vmul.f32 -1.442695, %v8536_v1 }
 0x9f7   : > { %v10967_v21 = vpop.eup %10966  ;;  %v8769_v46 = vadd.f32 1.0, %v10965_v3  ;;  %10986 = vpow2.f32 %v9592_v55  ;;  %v9594_v47 = vmul.f32 -1.442695, %v8531_v9  ;;  %v10145_v40 = vpop.f32.mrb[82].mxu1 }
 0x9f8   : > { %v10969_v56 = vpop.eup %10968  ;;  %v8772_v0 = vadd.f32 1.0, %v10967_v21  ;;  %10988 = vpow2.f32 %v9595_v37  ;;  %v8546_v19 = vadd.f32 %v10145_v40, %v19113_v14  ;;  %v8540_v35 = vpop.f32.mrb[83].mxu1 }
 0x9f9   : > { %v10971_v18 = vpop.eup %10970  ;;  %8911 = vst.msk [vmem:[%s19130_s18 + $0xb8] sm:$0xff] %vm8887_vm14, %v10969_v56  ;;  %10990 = vrcp.f32 %v8769_v46  ;;  %v8541_v10 = vadd.f32 %v19113_v14, %v8540_v35 }
 0x9fa   : > { %v10973_v53 = vpop.eup %10972  ;;  %8910 = vst.msk [vmem:[%s19130_s18 + $0xb0] sm:$0xff] %vm8887_vm14, %v10971_v18  ;;  %10992 = vrcp.f32 %v8772_v0  ;;  %v9597_v8 = vmul.f32 -1.442695, %v8546_v19 }
 0x9fb   : > { %v10975_v29 = vpop.eup %10974  ;;  %v8771_v59 = vadd.f32 1.0, %v10973_v53  ;;  %10994 = vpow2.f32 %v9594_v47  ;;  %v9596_v13 = vmul.f32 -1.442695, %v8541_v10  ;;  %v10148_v32 = vpop.f32.mrb[84].mxu1 }
 0x9fc   : > { %v10977_v61 = vpop.eup %10976  ;;  %v8774_v20 = vadd.f32 1.0, %v10975_v29  ;;  %10996 = vpow2.f32 %v9597_v8  ;;  %v8556_v63 = vadd.f32 %v10148_v32, %v19113_v14  ;;  %v8550_v24 = vpop.f32.mrb[85].mxu1 }
 0x9fd   : > { %v10979_v33 = vpop.eup %10978  ;;  %8913 = vst.msk [vmem:[%s19130_s18 + $0xc8] sm:$0xff] %vm8887_vm14, %v10977_v61  ;;  %10998 = vrcp.f32 %v8771_v59  ;;  %v8551_v54 = vadd.f32 %v19113_v14, %v8550_v24 }
 0x9fe   : > { %v10981_v60 = vpop.eup %10980  ;;  %8912 = vst.msk [vmem:[%s19130_s18 + $0xc0] sm:$0xff] %vm8887_vm14, %v10979_v33  ;;  %11000 = vrcp.f32 %v8774_v20  ;;  %v9599_v39 = vmul.f32 -1.442695, %v8556_v63 }
 0x9ff   : > { %v10983_v5 = vpop.eup %10982  ;;  %v8773_v44 = vadd.f32 1.0, %v10981_v60  ;;  %11002 = vpow2.f32 %v9596_v13  ;;  %v9598_v52 = vmul.f32 -1.442695, %v8551_v54  ;;  %v10151_v51 = vpop.f32.mrb[86].mxu1 }
 0xa00   : > { %v10985_v23 = vpop.eup %10984  ;;  %8915 = vst.msk [vmem:[%s19130_s18 + $0xd8] sm:$0xff] %vm8887_vm14, %v10983_v5  ;;  %11004 = vpow2.f32 %v9599_v39  ;;  %v8566_v26 = vadd.f32 %v10151_v51, %v19113_v14  ;;  %v8560_v15 = vpop.f32.mrb[87].mxu1 }
 0xa01   : > { %v10987_v42 = vpop.eup %10986  ;;  %11006 = vrcp.f32 %v8773_v44  ;;  %v8776_v4 = vadd.f32 1.0, %v10985_v23  ;;  %v8561_v11 = vadd.f32 %v19113_v14, %v8560_v15 }
 0xa02   : > { %v10989_v41 = vpop.eup %10988  ;;  %v8775_v22 = vadd.f32 1.0, %v10987_v42  ;;  %11008 = vpow2.f32 %v9598_v52  ;;  %v9601_v34 = vmul.f32 -1.442695, %v8566_v26 }
 0xa03   : > { %v10991_v31 = vpop.eup %10990  ;;  %11010 = vrcp.f32 %v8776_v4  ;;  %v8778_v12 = vadd.f32 1.0, %v10989_v41  ;;  %v9600_v25 = vmul.f32 -1.442695, %v8561_v11  ;;  %v10154_v38 = vpop.f32.mrb[88].mxu1 }
 0xa04   : > { %v10993_v30 = vpop.eup %10992  ;;  %8914 = vst.msk [vmem:[%s19130_s18 + $0xd0] sm:$0xff] %vm8887_vm14, %v10991_v31  ;;  %11012 = vrcp.f32 %v8775_v22  ;;  %v8576_v27 = vadd.f32 %v10154_v38, %v19113_v14  ;;  %v8570_v62 = vpop.f32.mrb[89].mxu1 }
 0xa05   : > { %v10995_v7 = vpop.eup %10994  ;;  %8917 = vst.msk [vmem:[%s19130_s18 + $0xe8] sm:$0xff] %vm8887_vm14, %v10993_v30  ;;  %11014 = vrcp.f32 %v8778_v12  ;;  %v8571_v28 = vadd.f32 %v19113_v14, %v8570_v62 }
 0xa06   : > { %v10997_v48 = vpop.eup %10996  ;;  %v8777_v50 = vadd.f32 1.0, %v10995_v7  ;;  %11016 = vpow2.f32 %v9601_v34  ;;  %v9603_v2 = vmul.f32 -1.442695, %v8576_v27 }
 0xa07   : > { %v10999_v36 = vpop.eup %10998  ;;  %v8780_v43 = vadd.f32 1.0, %v10997_v48  ;;  %11018 = vpow2.f32 %v9600_v25  ;;  %v9602_v58 = vmul.f32 -1.442695, %v8571_v28  ;;  %v10157_v45 = vpop.f32.mrb[90].mxu1 }
 0xa08   : > { %v11001_v57 = vpop.eup %11000  ;;  %8916 = vst.msk [vmem:[%s19130_s18 + $0xe0] sm:$0xff] %vm8887_vm14, %v10999_v36  ;;  %11020 = vrcp.f32 %v8777_v50  ;;  %v8586_v55 = vadd.f32 %v10157_v45, %v19113_v14  ;;  %v8580_v49 = vpop.f32.mrb[91].mxu1 }
 0xa09   : > { %v11003_v16 = vpop.eup %11002  ;;  %8919 = vst.msk [vmem:[%s19130_s18 + $0xf8] sm:$0xff] %vm8887_vm14, %v11001_v57  ;;  %11022 = vrcp.f32 %v8780_v43  ;;  %v8581_v1 = vadd.f32 %v19113_v14, %v8580_v49 }
 0xa0a   : > { %v11005_v17 = vpop.eup %11004  ;;  %v8779_v6 = vadd.f32 1.0, %v11003_v16  ;;  %11024 = vpow2.f32 %v9603_v2  ;;  %v9605_v9 = vmul.f32 -1.442695, %v8586_v55 }
 0xa0b   : > { %v11007_v3 = vpop.eup %11006  ;;  %v8782_v37 = vadd.f32 1.0, %v11005_v17  ;;  %11026 = vpow2.f32 %v9602_v58  ;;  %v10160_v21 = vpop.f32.mrb[92].mxu1  ;;  %v9604_v47 = vmul.f32 -1.442695, %v8581_v1 }
 0xa0c   : > { %v11009_v46 = vpop.eup %11008  ;;  %8918 = vst.msk [vmem:[%s19130_s18 + $0xf0] sm:$0xff] %vm8887_vm14, %v11007_v3  ;;  %11028 = vrcp.f32 %v8779_v6  ;;  %v8596_v40 = vadd.f32 %v10160_v21, %v19113_v14  ;;  %v8590_v56 = vpop.f32.mrb[93].mxu1 }
 0xa0d   : > { %v11011_v0 = vpop.eup %11010  ;;  %11030 = vrcp.f32 %v8782_v37  ;;  %v8781_v19 = vadd.f32 1.0, %v11009_v46  ;;  %v8591_v35 = vadd.f32 %v19113_v14, %v8590_v56 }
 0xa0e   : > { %v11013_v18 = vpop.eup %11012  ;;  %8921 = vst.msk [vmem:[%s19130_s18 + $0x108] sm:$0xff] %vm8887_vm14, %v11011_v0  ;;  %11032 = vpow2.f32 %v9605_v9  ;;  %v9607_v10 = vmul.f32 -1.442695, %v8596_v40 }
 0xa0f   : > { %v11015_v53 = vpop.eup %11014  ;;  %8920 = vst.msk [vmem:[%s19130_s18 + $0x100] sm:$0xff] %vm8887_vm14, %v11013_v18  ;;  %11034 = vrcp.f32 %v8781_v19  ;;  %v9606_v8 = vmul.f32 -1.442695, %v8591_v35 }
 0xa10   : > { %v11017_v29 = vpop.eup %11016  ;;  %8923 = vst.msk [vmem:[%s19130_s18 + $0x118] sm:$0xff] %vm8887_vm14, %v11015_v53  ;;  %11036 = vpow2.f32 %v9604_v47 }
 0xa11   : > { %v11019_v59 = vpop.eup %11018  ;;  %v8784_v13 = vadd.f32 1.0, %v11017_v29  ;;  %11038 = vpow2.f32 %v9607_v10 }
 0xa12   : > { %v11021_v14 = vpop.eup %11020  ;;  %v8783_v32 = vadd.f32 1.0, %v11019_v59  ;;  %11040 = vpow2.f32 %v9606_v8 }
 0xa13   : > { %v11023_v61 = vpop.eup %11022  ;;  %8922 = vst.msk [vmem:[%s19130_s18 + $0x110] sm:$0xff] %vm8887_vm14, %v11021_v14  ;;  %11042 = vrcp.f32 %v8784_v13 }
 0xa14   : > { %v11025_v20 = vpop.eup %11024  ;;  %8925 = vst.msk [vmem:[%s19130_s18 + $0x128] sm:$0xff] %vm8887_vm14, %v11023_v61  ;;  %11044 = vrcp.f32 %v8783_v32 }
 0xa15   : > { %v11027_v63 = vpop.eup %11026  ;;  %v8786_v24 = vadd.f32 1.0, %v11025_v20 }
 0xa16   : > { %v11029_v33 = vpop.eup %11028  ;;  %v8785_v54 = vadd.f32 1.0, %v11027_v63 }
 0xa17   : > { %v11031_v60 = vpop.eup %11030  ;;  %8924 = vst.msk [vmem:[%s19130_s18 + $0x120] sm:$0xff] %vm8887_vm14, %v11029_v33  ;;  %11046 = vrcp.f32 %v8786_v24 }
 0xa18   : > { %v11033_v39 = vpop.eup %11032  ;;  %8927 = vst.msk [vmem:[%s19130_s18 + $0x138] sm:$0xff] %vm8887_vm14, %v11031_v60  ;;  %11048 = vrcp.f32 %v8785_v54 }
 0xa19   : > { %v11035_v5 = vpop.eup %11034  ;;  %v8788_v44 = vadd.f32 1.0, %v11033_v39 }
 0xa1a   : > { %v11037_v52 = vpop.eup %11036  ;;  %8926 = vst.msk [vmem:[%s19130_s18 + $0x130] sm:$0xff] %vm8887_vm14, %v11035_v5 }
 0xa1b   : > { %v11039_v51 = vpop.eup %11038  ;;  %11050 = vrcp.f32 %v8788_v44  ;;  %v8787_v23 = vadd.f32 1.0, %v11037_v52 }
 0xa1c   : > { %v11041_v26 = vpop.eup %11040  ;;  %v8790_v15 = vadd.f32 1.0, %v11039_v51 }
 0xa1d   : > { %v11043_v42 = vpop.eup %11042  ;;  %11052 = vrcp.f32 %v8787_v23  ;;  %v8789_v4 = vadd.f32 1.0, %v11041_v26 }
 0xa1e   : > { %v11045_v11 = vpop.eup %11044  ;;  %8929 = vst.msk [vmem:[%s19130_s18 + $0x148] sm:$0xff] %vm8887_vm14, %v11043_v42  ;;  %11054 = vrcp.f32 %v8790_v15 }
 0xa1f   : > { %8928 = vst.msk [vmem:[%s19130_s18 + $0x140] sm:$0xff] %vm8887_vm14, %v11045_v11  ;;  %11056 = vrcp.f32 %v8789_v4 }
 0xa21   : > { %v11047_v41 = vpop.eup %11046 }
 0xa22   : > { %v11049_v22 = vpop.eup %11048  ;;  %8931 = vst.msk [vmem:[%s19130_s18 + $0x158] sm:$0xff] %vm8887_vm14, %v11047_v41 }
 0xa23   : > { %8930 = vst.msk [vmem:[%s19130_s18 + $0x150] sm:$0xff] %vm8887_vm14, %v11049_v22 }
 0xa24   : > { %8943 = sbr.rel (!%p20335_p3) target bundleno = 2632 (0xa48), region = 112 }
 0xa25   : > { %v11051_v34 = vpop.eup %11050 }
 0xa26   : > { %8933 = vst.msk [vmem:[%s19130_s18 + $0x168] sm:$0xff] %vm8887_vm14, %v11051_v34 }
 0xa27   : > { %v11053_v31 = vpop.eup %11052 }
 0xa28   : > { %v11055_v12 = vpop.eup %11054  ;;  %8932 = vst.msk [vmem:[%s19130_s18 + $0x160] sm:$0xff] %vm8887_vm14, %v11053_v31 }
 0xa29   : > { %v11057_v25 = vpop.eup %11056  ;;  %8935 = vst.msk [vmem:[%s19130_s18 + $0x178] sm:$0xff] %vm8887_vm14, %v11055_v12 }
 0xa2a   : > { %8934 = vst.msk [vmem:[%s19130_s18 + $0x170] sm:$0xff] %vm8887_vm14, %v11057_v25 }
 0xa2b   : > { %s20351_s12 = smov (!%p8946_p10, %s8945_s12), 48 }
 0xa2c   : > { %s19266_s25 = sshll.u32 %s20351_s12, 7 }
 0xa2d   : > { %s8950_s15 = ssub.s32 6144, %s19266_s25 }
 0xa2e   : > { %8951 = vsyncadd %s8937_s24, %s8950_s15  ;;  %p9609_p0 = scmp.ne.s32.totalorder %s19266_s25, 0  ;;  %s9617_s27 = smul.u32 6144, %s20336_s28 }
 0xa2f   : > { %s8956_s23 = sshll.u32 %s19130_s18, 4  ;;  %s20337_s11 = sld [smem:[#allocation134_spill]]  ;;  %s19279_s23 = int_to_ptr.vmem [resolvable:$true] %s8956_s23 }
 0xa30   : > { %s11404_s30 = scalar_lea.vmem %s19279_s23, %s19266_s25  ;;  %s11522_s13 = smov [#allocation20]  }
 0xa31   : > { %p11405_p2 = scmp.ne.s32.totalorder %s19279_s23, %s11404_s30  ;;  %s11408_s29 = sshll.u32 %s11522_s13, 4  ;;  %s11409_s29 = int_to_ptr.vmem [resolvable:$false] %s11408_s29 }
 0xa32   : > { %s11410_s26 = scalar_lea.vmem %s11409_s29, 12288  ;;  %p11411_p12 = scmp.lt.s32.totalorder %s19279_s23, %s11409_s29 }
 0xa33   : > { %p11406_p6 = pnand %p11405_p2, %p9609_p0  ;;  %p11412_p13 = scmp.lt.s32.totalorder %s11410_s26, %s11404_s30 }
 0xa35   : > { %s19277_s21 = scalar_lea.hbm %s20337_s11, %s9617_s27  ;;  %p11407_p5 = pneg %p11406_p6 }
 0xa36   : > { %p11413_p11 = por %p11412_p13, %p11411_p12 }
 0xa38   : > { %p11414_p7 = pnand %p11413_p11, %p11407_p5 }
 0xa3a   : > { %11417 = shalt.err (!%p11414_p7)
}
 0xa3b   : > { %s11418_s18 = scalar_lea.hbm %s19277_s21, %s19266_s25  ;;  %s11422_s22 = scalar_lea.hbm %s20337_s11, 10752 }
 0xa3c   : > { %p11419_p8 = scmp.ne.s32.totalorder %s19277_s21, %s11418_s18  ;;  %p11423_p3 = scmp.lt.u32.totalorder %s19277_s21, %s20337_s11 }
 0xa3d   : > { %p11424_p10 = scmp.lt.u32.totalorder %s11422_s22, %s11418_s18  ;;  %p11426_p6 = scmp.lt.u32.totalorder %s11418_s18, %s19277_s21 }
 0xa3e   : > { %p11420_p9 = pnand %p11419_p8, %p9609_p0 }
 0xa3f   : > { %p11425_p2 = por %p11424_p10, %p11423_p3 }
 0xa40   : > { %p11421_p1 = pneg %p11420_p9 }
 0xa41   : > { %p11427_p5 = por %p11426_p6, %p11425_p2 }
 0xa43   : > { %p11428_p12 = pnand %p11427_p5, %p11421_p1 }
 0xa45   : > { %11431 = shalt.err (!%p11428_p12)
}
 0xa46   : > { %s11523_s27 = smov 128   ;;  %s11524_s3 = smov 8  }
 0xa47   : > { %8962 = dma.vmem_to_hbm [thread:$0]  (%p9609_p0), %s19279_s23, %s19266_s25, %s19277_s21, %s8937_s24, %s11523_s27, %s11523_s27, %s11524_s3  }
 0xa48 PF: > { %s20338_s16 = sld [smem:[#allocation29_spill]]  ;;  %s20339_s30 = sld [smem:[#allocation36_spill]] }
 0xa4e   : > { %s8971_s13 = sand.u32 1, %s20338_s16   ;;  %p20340_p13 = scmp.ne.s32.totalorder %s20339_s30, 0 }
 0xa4f   : > { %s8972_s29 = scalar_lea.sflag [#allocation4], %s8971_s13 }
 0xa50   : > { %p10520_p11 = pnand %p9148_p4, %p20340_p13 }
 0xa52   : > { %11477 = dma.done.wait (!%p10520_p11), %s8972_s29, 6144  }
 0xa53   : > { %11479 = vsyncadd (!%p10520_p11), %s8972_s29, 4294961152  ;;  %s20341_s20 = sld [smem:[#allocation32_spill]]  ;;  %s20342_s17 = sld [smem:[#allocation30_spill]] }
 0xa54   : > { %s20343_s26 = sld [smem:[#allocation33_spill]]  ;;  %s20344_s18 = smov %s11490_s19 }
 0xa59   : > { %p31_p7 = scmp.ge.s32.totalorder %s20341_s20, 4  }
 0xa5a   : > { %s20345_s19 = smov %s20343_s26 }
 0xa5b   :  { %33 = sbr.rel (!%p31_p7) target bundleno = 14 (0xe), region = 158 }
 0xa62   :  { %8977 = vsyncpa [#allocation3], 1 }
 0xa63   :  { %8979 = vsyncpa [#allocation3 + $0x1], 1 }
 0xa64   :  { %8980 = vsyncpa [#allocation6], 1 }
 0xa65   :  { %8982 = vsyncpa [#allocation6 + $0x1], 1 }
 0xa66   :  { %8983 = vsyncpa [#allocation9], 1 }
 0xa67   :  { %8984 = vsyncpa [#allocation12], 1 }
 0xa68   :  { %8985 = vsyncpa [#allocation15], 1 }
 0xa69   :  { %8986 = vsyncpa [#allocation18], 1 }
 0xa6a   :  { %8987 = vsyncpa [#allocation4], 1 }
 0xa6b   :  { %8989 = vsyncpa [#allocation4 + $0x1], 1 }

</bundles_post_ra>
